<compile_context>
chip_gen: v6e
topology: v6e:2x2x1
jax: 0.10.0
libtpu: 0.0.40
codegen_flags: <defaults>
</compile_context>

<pallas_src>
from functools import partial

import numpy as np
import jax
import jax.numpy as jnp
from jax.experimental import pallas as pl
from jax.experimental.pallas import tpu as pltpu

# ----------------------------- model configuration -----------------------------
IN_SHAPE = (1, 16, 16)            # (C, H, W) like the torch module's input_shape
CONV_FILTERS = [8, 16]
CONV_KERNELS = [3, 3]
CONV_STRIDES = [2, 2]
LATENT_DIM = 8
DECODER_OUTPUT_PADDING = [1, 1]
BATCH = 2
BN_EPS = 1e-5

_vmem = pl.BlockSpec(memory_space=pltpu.MemorySpace.VMEM)


def _encoder_spatial():
    h, w = IN_SHAPE[1], IN_SHAPE[2]
    for k, s in zip(CONV_KERNELS, CONV_STRIDES):
        h = (h + 2 - k) // s + 1
        w = (w + 2 - k) // s + 1
    return h, w


_H_BN, _W_BN = _encoder_spatial()
SHAPE_BN = (CONV_FILTERS[-1], _H_BN, _W_BN)           # (16, 4, 4)
FLAT_BN = SHAPE_BN[0] * SHAPE_BN[1] * SHAPE_BN[2]     # 256
OUT_FLAT = 1 * IN_SHAPE[1] * IN_SHAPE[2]              # 256
N_ENC = len(CONV_FILTERS)                             # Conv+ReLU+BN blocks
N_DEC = len(CONV_FILTERS) - 1                         # ConvT+ReLU+BN blocks (pre-final)


# ----------------------------- the single fused Pallas kernel -----------------------------
def _vae_kernel(*refs, n_enc, n_dec, bn_eps):
    it = iter(refs)
    x_ref = next(it)
    enc = [(next(it), next(it), next(it)) for _ in range(n_enc)]
    wm_ref, bm_ref, wv_ref, bv_ref, eps_ref, wd_ref, bd_ref = (next(it) for _ in range(7))
    dec = [(next(it), next(it), next(it)) for _ in range(n_dec)]
    mf_ref, bf_ref = next(it), next(it)
    recon_ref, mean_ref, logvar_ref = next(it), next(it), next(it)

    def conv_relu_bn(h, m_ref, p_ref, r_ref):
        # Conv/ConvT (pre-composed dense matrix) + bias -> ReLU -> train-mode BatchNorm.
        y = jnp.dot(h, m_ref[...], preferred_element_type=jnp.float32) + r_ref[0:1, :]
        y = jnp.maximum(y, 0.0)                               # Conv2d -> ReLU (torch order)
        inv_n = 1.0 / y.shape[0]
        s1 = jnp.sum(y, axis=0, keepdims=True)                # [1, Cout*S]   one-pass stats
        s2 = jnp.sum(y * y, axis=0, keepdims=True)
        mean_b = jnp.dot(s1, p_ref[...], preferred_element_type=jnp.float32) * inv_n
        ex2_b = jnp.dot(s2, p_ref[...], preferred_element_type=jnp.float32) * inv_n
        var_b = ex2_b - mean_b * mean_b                       # biased batch variance
        inv_std = jax.lax.rsqrt(var_b + bn_eps)
        return (y - mean_b) * inv_std * r_ref[1:2, :] + r_ref[2:3, :]

    h = x_ref[...]                                            # [N, C0*H*W]
    for m_ref, p_ref, r_ref in enc:                           # encoder: Conv+ReLU+BN
        h = conv_relu_bn(h, m_ref, p_ref, r_ref)

    # bottleneck: mean / log_var linears -> reparametrize -> decoder linear
    mean = jnp.dot(h, wm_ref[...], preferred_element_type=jnp.float32) + bm_ref[...]
    log_var = jnp.dot(h, wv_ref[...], preferred_element_type=jnp.float32) + bv_ref[...]
    z = mean + jnp.exp(log_var * 0.5) * eps_ref[...]
    h = jnp.dot(z, wd_ref[...], preferred_element_type=jnp.float32) + bd_ref[...]

    for m_ref, p_ref, r_ref in dec:                           # decoder: ConvT+ReLU+BN
        h = conv_relu_bn(h, m_ref, p_ref, r_ref)

    y = jnp.dot(h, mf_ref[...], preferred_element_type=jnp.float32) + bf_ref[...]
    recon_ref[...] = 1.0 / (1.0 + jnp.exp(-y))                # final ConvT + Sigmoid
    mean_ref[...] = mean
    logvar_ref[...] = log_var


# ----------------------------- host-side, one-time weight pre-composition -----------------------------
def _conv2d_matrix(w, hin, win, stride, pad):
    """Dense M s.t. flatten_NCHW(out) = flatten_NCHW(in) @ M.  w: [Cout,Cin,K,K] (torch)."""
    cout, cin, k, _ = w.shape
    hout = (hin + 2 * pad - k) // stride + 1
    wout = (win + 2 * pad - k) // stride + 1
    m = np.zeros((cin, hin * win, cout, hout * wout), np.float32)
    for kh in range(k):
        for kw in range(k):
            wk = np.transpose(w[:, :, kh, kw])                # [Cin, Cout]
            for oh in range(hout):
                ih = oh * stride + kh - pad
                if ih < 0 or ih >= hin:
                    continue
                for ow in range(wout):
                    iw = ow * stride + kw - pad
                    if iw < 0 or iw >= win:
                        continue
                    m[:, ih * win + iw, :, oh * wout + ow] += wk
    return m.reshape(cin * hin * win, cout * hout * wout), hout, wout


def _convtranspose2d_matrix(w, hin, win, stride, pad, out_pad):
    """Dense matrix for torch ConvTranspose2d (exact scatter).  w: [Cin,Cout,K,K]."""
    cin, cout, k, _ = w.shape
    hout = (hin - 1) * stride - 2 * pad + k + out_pad
    wout = (win - 1) * stride - 2 * pad + k + out_pad
    m = np.zeros((cin, hin * win, cout, hout * wout), np.float32)
    for kh in range(k):
        for kw in range(k):
            wk = w[:, :, kh, kw]                              # [Cin, Cout]
            for ih in range(hin):
                oh = ih * stride + kh - pad
                if oh < 0 or oh >= hout:
                    continue
                for iw in range(win):
                    ow = iw * stride + kw - pad
                    if ow < 0 or ow >= wout:
                        continue
                    m[:, ih * win + iw, :, oh * wout + ow] += wk
    return m.reshape(cin * hin * win, cout * hout * wout), hout, wout


def _bn_pool_matrix(c, s):
    """Block-diagonal [c*s, c*s] matrix averaging within each channel's s positions."""
    return np.kron(np.eye(c, dtype=np.float32),
                   np.full((s, s), 1.0 / s, dtype=np.float32))


def _rows_pack(bias, gamma, beta, s):
    """Pack bias/gamma/beta ([Cout] each) into one [3, Cout*s] lane-broadcast operand."""
    return np.stack([np.repeat(np.asarray(bias, np.float32), s),
                     np.repeat(np.asarray(gamma, np.float32), s),
                     np.repeat(np.asarray(beta, np.float32), s)], axis=0)


def prepare(params):
    """One-time pre-composition of the conv layers into dense per-layer matrices."""
    prep = {"enc": [], "dec": []}
    h, w = IN_SHAPE[1], IN_SHAPE[2]
    for layer, ss in zip(params["enc"], CONV_STRIDES):
        wnp = np.asarray(layer["w"], np.float32)
        m, ho, wo = _conv2d_matrix(wnp, h, w, ss, 1)
        cout = wnp.shape[0]
        prep["enc"].append((jnp.asarray(m),
                            jnp.asarray(_bn_pool_matrix(cout, ho * wo)),
                            jnp.asarray(_rows_pack(layer["b"], layer["gamma"],
                                                   layer["beta"], ho * wo))))
        h, w = ho, wo
    assert (CONV_FILTERS[-1], h, w) == SHAPE_BN

    prep["w_mean"] = params["w_mean"]
    prep["b_mean"] = params["b_mean"]
    prep["w_logvar"] = params["w_logvar"]
    prep["b_logvar"] = params["b_logvar"]
    prep["w_dec"] = params["w_dec"]
    prep["b_dec"] = params["b_dec"]

    h, w = SHAPE_BN[1], SHAPE_BN[2]
    dec_idx = list(range(len(CONV_FILTERS) - 1, 0, -1))
    for layer, i in zip(params["dec"], dec_idx):
        wnp = np.asarray(layer["w"], np.float32)
        m, ho, wo = _convtranspose2d_matrix(wnp, h, w, CONV_STRIDES[i], 1,
                                            DECODER_OUTPUT_PADDING[i])
        cout = wnp.shape[1]
        prep["dec"].append((jnp.asarray(m),
                            jnp.asarray(_bn_pool_matrix(cout, ho * wo)),
                            jnp.asarray(_rows_pack(layer["b"], layer["gamma"],
                                                   layer["beta"], ho * wo))))
        h, w = ho, wo

    wnp = np.asarray(params["dec_final"]["w"], np.float32)
    m, ho, wo = _convtranspose2d_matrix(wnp, h, w, CONV_STRIDES[0], 1,
                                        DECODER_OUTPUT_PADDING[0])
    assert (ho, wo) == (IN_SHAPE[1], IN_SHAPE[2])
    bf = np.repeat(np.asarray(params["dec_final"]["b"], np.float32), ho * wo)[None, :]
    prep["m_final"] = jnp.asarray(m)
    prep["b_final"] = jnp.asarray(bf)
    return prep


# ----------------------------- parameters (torch layouts) -----------------------------
def init_params(key):
    keys = iter(jax.random.split(key, 16))

    def rnd(shape, scale=0.05):
        return jax.random.normal(next(keys), shape, jnp.float32) * scale

    params = {"enc": [], "dec": []}
    cin = IN_SHAPE[0]
    for cf, kk in zip(CONV_FILTERS, CONV_KERNELS):
        params["enc"].append(dict(
            w=rnd((cf, cin, kk, kk)),                          # Conv2d: [Cout,Cin,K,K]
            b=rnd((cf,)),
            gamma=jnp.ones((cf,), jnp.float32),
            beta=jnp.zeros((cf,), jnp.float32)))
        cin = cf

    params["w_mean"] = rnd((FLAT_BN, LATENT_DIM))
    params["b_mean"] = rnd((1, LATENT_DIM))
    params["w_logvar"] = rnd((FLAT_BN, LATENT_DIM))
    params["b_logvar"] = rnd((1, LATENT_DIM))
    params["w_dec"] = rnd((LATENT_DIM, FLAT_BN))
    params["b_dec"] = rnd((1, FLAT_BN))

    cin = CONV_FILTERS[-1]
    for i in range(len(CONV_FILTERS) - 1, 0, -1):
        cout, kk = CONV_FILTERS[i - 1], CONV_KERNELS[i]
        params["dec"].append(dict(
            w=rnd((cin, cout, kk, kk)),                        # ConvT2d: [Cin,Cout,K,K]
            b=rnd((cout,)),
            gamma=jnp.ones((cout,), jnp.float32),
            beta=jnp.zeros((cout,), jnp.float32)))
        cin = cout
    kk = CONV_KERNELS[0]
    params["dec_final"] = dict(w=rnd((cin, 1, kk, kk)), b=rnd((1,)))
    return params


# ----------------------------- forward: one pallas_call under one jit -----------------------------
def _vae_forward(prep, x_nchw, key):
    n = x_nchw.shape[0]
    x = x_nchw.reshape(n, -1).astype(jnp.float32)              # NCHW flatten order
    eps = jax.random.normal(key, (n, LATENT_DIM), dtype=jnp.float32)

    operands = [x]
    for m, p, r in prep["enc"]:
        operands += [m, p, r]
    operands += [prep["w_mean"], prep["b_mean"], prep["w_logvar"], prep["b_logvar"],
                 eps, prep["w_dec"], prep["b_dec"]]
    for m, p, r in prep["dec"]:
        operands += [m, p, r]
    operands += [prep["m_final"], prep["b_final"]]

    recon_flat, mean, log_var = pl.pallas_call(
        partial(_vae_kernel, n_enc=N_ENC, n_dec=N_DEC, bn_eps=BN_EPS),
        out_shape=(jax.ShapeDtypeStruct((n, OUT_FLAT), jnp.float32),
                   jax.ShapeDtypeStruct((n, LATENT_DIM), jnp.float32),
                   jax.ShapeDtypeStruct((n, LATENT_DIM), jnp.float32)),
        in_specs=[_vmem] * len(operands),
        out_specs=(_vmem, _vmem, _vmem),
    )(*operands)

    recon = recon_flat.reshape(n, 1, IN_SHAPE[1], IN_SHAPE[2])
    return recon, mean, log_var


vae_forward = jax.jit(_vae_forward)


# ----------------------------- main -----------------------------
if __name__ == "__main__":
    root = jax.random.PRNGKey(0)
    k_param, k_data, k_noise = jax.random.split(root, 3)

    params = init_params(k_param)
    prep = prepare(params)                                     # one-time, weight-only
    x = jax.random.normal(k_data, (BATCH, *IN_SHAPE), dtype=jnp.float32)

    recon, mean, log_var = vae_forward(prep, x, k_noise)
    jax.block_until_ready((recon, mean, log_var))

    assert recon.shape == (BATCH, 1, IN_SHAPE[1], IN_SHAPE[2]), recon.shape
    assert mean.shape == (BATCH, LATENT_DIM) and log_var.shape == (BATCH, LATENT_DIM)
    assert bool(jnp.all(jnp.isfinite(recon)))
    assert bool(jnp.all(jnp.isfinite(mean))) and bool(jnp.all(jnp.isfinite(log_var)))
    assert bool(jnp.all((recon >= 0.0) & (recon <= 1.0)))      # sigmoid output range

    print("KERNEL_OK")
</pallas_src>

<mosaic_0001>
module attributes {stable_mosaic.version = 11 : i64} {
  func.func @_vae_kernel(%arg0: memref<2x256xf32, #tpu.memory_space<vmem>>, %arg1: memref<256x512xf32, #tpu.memory_space<vmem>>, %arg2: memref<512x512xf32, #tpu.memory_space<vmem>>, %arg3: memref<3x512xf32, #tpu.memory_space<vmem>>, %arg4: memref<512x256xf32, #tpu.memory_space<vmem>>, %arg5: memref<256x256xf32, #tpu.memory_space<vmem>>, %arg6: memref<3x256xf32, #tpu.memory_space<vmem>>, %arg7: memref<256x8xf32, #tpu.memory_space<vmem>>, %arg8: memref<1x8xf32, #tpu.memory_space<vmem>>, %arg9: memref<256x8xf32, #tpu.memory_space<vmem>>, %arg10: memref<1x8xf32, #tpu.memory_space<vmem>>, %arg11: memref<2x8xf32, #tpu.memory_space<vmem>>, %arg12: memref<8x256xf32, #tpu.memory_space<vmem>>, %arg13: memref<1x256xf32, #tpu.memory_space<vmem>>, %arg14: memref<256x512xf32, #tpu.memory_space<vmem>>, %arg15: memref<512x512xf32, #tpu.memory_space<vmem>>, %arg16: memref<3x512xf32, #tpu.memory_space<vmem>>, %arg17: memref<512x256xf32, #tpu.memory_space<vmem>>, %arg18: memref<1x256xf32, #tpu.memory_space<vmem>>, %arg19: memref<2x256xf32, #tpu.memory_space<vmem>>, %arg20: memref<2x8xf32, #tpu.memory_space<vmem>>, %arg21: memref<2x8xf32, #tpu.memory_space<vmem>>) attributes {dimension_semantics = [], scalar_prefetch = 0 : i64, scratch_operands = 0 : i64, tpu.core_type = #tpu.core_type<tc>} {
    %c0 = arith.constant 0 : index
    %c0_0 = arith.constant 0 : index
    %0 = vector.load %arg0[%c0, %c0_0] : memref<2x256xf32, #tpu.memory_space<vmem>>, vector<2x256xf32>
    %c0_1 = arith.constant 0 : index
    %c0_2 = arith.constant 0 : index
    %1 = vector.load %arg1[%c0_1, %c0_2] : memref<256x512xf32, #tpu.memory_space<vmem>>, vector<256x512xf32>
    %cst = arith.constant dense<0.000000e+00> : vector<2x512xf32>
    %2 = tpu.matmul %0, %1, %cst {dimension_numbers = #tpu.dot_dimension_numbers<[1], [0], [0], [1], [0, 0, 1, 1], [], []>} : vector<2x256xf32>, vector<256x512xf32>, vector<2x512xf32> -> vector<2x512xf32>
    %c0_3 = arith.constant 0 : index
    %c0_4 = arith.constant 0 : index
    %3 = vector.load %arg3[%c0_3, %c0_4] : memref<3x512xf32, #tpu.memory_space<vmem>>, vector<1x512xf32>
    %4 = vector.broadcast %3 : vector<1x512xf32> to vector<2x512xf32>
    %5 = arith.addf %2, %4 : vector<2x512xf32>
    %cst_5 = arith.constant 0.000000e+00 : f32
    %6 = vector.broadcast %cst_5 : f32 to vector<2x512xf32>
    %7 = arith.maximumf %5, %6 : vector<2x512xf32>
    %cst_6 = arith.constant dense<0.000000e+00> : vector<512xf32>
    %8 = vector.multi_reduction <add>, %7, %cst_6 [0] : vector<2x512xf32> to vector<512xf32>
    %9 = vector.shape_cast %8 : vector<512xf32> to vector<1x512xf32>
    %10 = arith.mulf %7, %7 : vector<2x512xf32>
    %cst_7 = arith.constant dense<0.000000e+00> : vector<512xf32>
    %11 = vector.multi_reduction <add>, %10, %cst_7 [0] : vector<2x512xf32> to vector<512xf32>
    %12 = vector.shape_cast %11 : vector<512xf32> to vector<1x512xf32>
    %c0_8 = arith.constant 0 : index
    %c0_9 = arith.constant 0 : index
    %13 = vector.load %arg2[%c0_8, %c0_9] : memref<512x512xf32, #tpu.memory_space<vmem>>, vector<512x512xf32>
    %cst_10 = arith.constant dense<0.000000e+00> : vector<1x512xf32>
    %14 = tpu.matmul %9, %13, %cst_10 {dimension_numbers = #tpu.dot_dimension_numbers<[1], [0], [0], [1], [0, 0, 1, 1], [], []>} : vector<1x512xf32>, vector<512x512xf32>, vector<1x512xf32> -> vector<1x512xf32>
    %cst_11 = arith.constant 5.000000e-01 : f32
    %15 = vector.broadcast %cst_11 : f32 to vector<1x512xf32>
    %16 = arith.mulf %14, %15 : vector<1x512xf32>
    %c0_12 = arith.constant 0 : index
    %c0_13 = arith.constant 0 : index
    %17 = vector.load %arg2[%c0_12, %c0_13] : memref<512x512xf32, #tpu.memory_space<vmem>>, vector<512x512xf32>
    %cst_14 = arith.constant dense<0.000000e+00> : vector<1x512xf32>
    %18 = tpu.matmul %12, %17, %cst_14 {dimension_numbers = #tpu.dot_dimension_numbers<[1], [0], [0], [1], [0, 0, 1, 1], [], []>} : vector<1x512xf32>, vector<512x512xf32>, vector<1x512xf32> -> vector<1x512xf32>
    %cst_15 = arith.constant 5.000000e-01 : f32
    %19 = vector.broadcast %cst_15 : f32 to vector<1x512xf32>
    %20 = arith.mulf %18, %19 : vector<1x512xf32>
    %21 = arith.mulf %16, %16 : vector<1x512xf32>
    %22 = arith.subf %20, %21 : vector<1x512xf32>
    %cst_16 = arith.constant 9.99999974E-6 : f32
    %23 = vector.broadcast %cst_16 : f32 to vector<1x512xf32>
    %24 = arith.addf %22, %23 : vector<1x512xf32>
    %25 = math.rsqrt %24 : vector<1x512xf32>
    %26 = vector.broadcast %16 : vector<1x512xf32> to vector<2x512xf32>
    %27 = arith.subf %7, %26 : vector<2x512xf32>
    %28 = vector.broadcast %25 : vector<1x512xf32> to vector<2x512xf32>
    %29 = arith.mulf %27, %28 : vector<2x512xf32>
    %c1 = arith.constant 1 : index
    %c0_17 = arith.constant 0 : index
    %30 = vector.load %arg3[%c1, %c0_17] : memref<3x512xf32, #tpu.memory_space<vmem>>, vector<1x512xf32>
    %31 = vector.broadcast %30 : vector<1x512xf32> to vector<2x512xf32>
    %32 = arith.mulf %29, %31 : vector<2x512xf32>
    %c2 = arith.constant 2 : index
    %c0_18 = arith.constant 0 : index
    %33 = vector.load %arg3[%c2, %c0_18] : memref<3x512xf32, #tpu.memory_space<vmem>>, vector<1x512xf32>
    %34 = vector.broadcast %33 : vector<1x512xf32> to vector<2x512xf32>
    %35 = arith.addf %32, %34 : vector<2x512xf32>
    %c0_19 = arith.constant 0 : index
    %c0_20 = arith.constant 0 : index
    %36 = vector.load %arg4[%c0_19, %c0_20] : memref<512x256xf32, #tpu.memory_space<vmem>>, vector<512x256xf32>
    %cst_21 = arith.constant dense<0.000000e+00> : vector<2x256xf32>
    %37 = tpu.matmul %35, %36, %cst_21 {dimension_numbers = #tpu.dot_dimension_numbers<[1], [0], [0], [1], [0, 0, 1, 1], [], []>} : vector<2x512xf32>, vector<512x256xf32>, vector<2x256xf32> -> vector<2x256xf32>
    %c0_22 = arith.constant 0 : index
    %c0_23 = arith.constant 0 : index
    %38 = vector.load %arg6[%c0_22, %c0_23] : memref<3x256xf32, #tpu.memory_space<vmem>>, vector<1x256xf32>
    %39 = vector.broadcast %38 : vector<1x256xf32> to vector<2x256xf32>
    %40 = arith.addf %37, %39 : vector<2x256xf32>
    %cst_24 = arith.constant 0.000000e+00 : f32
    %41 = vector.broadcast %cst_24 : f32 to vector<2x256xf32>
    %42 = arith.maximumf %40, %41 : vector<2x256xf32>
    %cst_25 = arith.constant dense<0.000000e+00> : vector<256xf32>
    %43 = vector.multi_reduction <add>, %42, %cst_25 [0] : vector<2x256xf32> to vector<256xf32>
    %44 = vector.shape_cast %43 : vector<256xf32> to vector<1x256xf32>
    %45 = arith.mulf %42, %42 : vector<2x256xf32>
    %cst_26 = arith.constant dense<0.000000e+00> : vector<256xf32>
    %46 = vector.multi_reduction <add>, %45, %cst_26 [0] : vector<2x256xf32> to vector<256xf32>
    %47 = vector.shape_cast %46 : vector<256xf32> to vector<1x256xf32>
    %c0_27 = arith.constant 0 : index
    %c0_28 = arith.constant 0 : index
    %48 = vector.load %arg5[%c0_27, %c0_28] : memref<256x256xf32, #tpu.memory_space<vmem>>, vector<256x256xf32>
    %cst_29 = arith.constant dense<0.000000e+00> : vector<1x256xf32>
    %49 = tpu.matmul %44, %48, %cst_29 {dimension_numbers = #tpu.dot_dimension_numbers<[1], [0], [0], [1], [0, 0, 1, 1], [], []>} : vector<1x256xf32>, vector<256x256xf32>, vector<1x256xf32> -> vector<1x256xf32>
    %cst_30 = arith.constant 5.000000e-01 : f32
    %50 = vector.broadcast %cst_30 : f32 to vector<1x256xf32>
    %51 = arith.mulf %49, %50 : vector<1x256xf32>
    %c0_31 = arith.constant 0 : index
    %c0_32 = arith.constant 0 : index
    %52 = vector.load %arg5[%c0_31, %c0_32] : memref<256x256xf32, #tpu.memory_space<vmem>>, vector<256x256xf32>
    %cst_33 = arith.constant dense<0.000000e+00> : vector<1x256xf32>
    %53 = tpu.matmul %47, %52, %cst_33 {dimension_numbers = #tpu.dot_dimension_numbers<[1], [0], [0], [1], [0, 0, 1, 1], [], []>} : vector<1x256xf32>, vector<256x256xf32>, vector<1x256xf32> -> vector<1x256xf32>
    %cst_34 = arith.constant 5.000000e-01 : f32
    %54 = vector.broadcast %cst_34 : f32 to vector<1x256xf32>
    %55 = arith.mulf %53, %54 : vector<1x256xf32>
    %56 = arith.mulf %51, %51 : vector<1x256xf32>
    %57 = arith.subf %55, %56 : vector<1x256xf32>
    %cst_35 = arith.constant 9.99999974E-6 : f32
    %58 = vector.broadcast %cst_35 : f32 to vector<1x256xf32>
    %59 = arith.addf %57, %58 : vector<1x256xf32>
    %60 = math.rsqrt %59 : vector<1x256xf32>
    %61 = vector.broadcast %51 : vector<1x256xf32> to vector<2x256xf32>
    %62 = arith.subf %42, %61 : vector<2x256xf32>
    %63 = vector.broadcast %60 : vector<1x256xf32> to vector<2x256xf32>
    %64 = arith.mulf %62, %63 : vector<2x256xf32>
    %c1_36 = arith.constant 1 : index
    %c0_37 = arith.constant 0 : index
    %65 = vector.load %arg6[%c1_36, %c0_37] : memref<3x256xf32, #tpu.memory_space<vmem>>, vector<1x256xf32>
    %66 = vector.broadcast %65 : vector<1x256xf32> to vector<2x256xf32>
    %67 = arith.mulf %64, %66 : vector<2x256xf32>
    %c2_38 = arith.constant 2 : index
    %c0_39 = arith.constant 0 : index
    %68 = vector.load %arg6[%c2_38, %c0_39] : memref<3x256xf32, #tpu.memory_space<vmem>>, vector<1x256xf32>
    %69 = vector.broadcast %68 : vector<1x256xf32> to vector<2x256xf32>
    %70 = arith.addf %67, %69 : vector<2x256xf32>
    %c0_40 = arith.constant 0 : index
    %c0_41 = arith.constant 0 : index
    %71 = vector.load %arg7[%c0_40, %c0_41] : memref<256x8xf32, #tpu.memory_space<vmem>>, vector<256x8xf32>
    %cst_42 = arith.constant dense<0.000000e+00> : vector<2x8xf32>
    %72 = tpu.matmul %70, %71, %cst_42 {dimension_numbers = #tpu.dot_dimension_numbers<[1], [0], [0], [1], [0, 0, 1, 1], [], []>} : vector<2x256xf32>, vector<256x8xf32>, vector<2x8xf32> -> vector<2x8xf32>
    %c0_43 = arith.constant 0 : index
    %c0_44 = arith.constant 0 : index
    %73 = vector.load %arg8[%c0_43, %c0_44] : memref<1x8xf32, #tpu.memory_space<vmem>>, vector<1x8xf32>
    %74 = vector.broadcast %73 : vector<1x8xf32> to vector<2x8xf32>
    %75 = arith.addf %72, %74 : vector<2x8xf32>
    %c0_45 = arith.constant 0 : index
    %c0_46 = arith.constant 0 : index
    %76 = vector.load %arg9[%c0_45, %c0_46] : memref<256x8xf32, #tpu.memory_space<vmem>>, vector<256x8xf32>
    %cst_47 = arith.constant dense<0.000000e+00> : vector<2x8xf32>
    %77 = tpu.matmul %70, %76, %cst_47 {dimension_numbers = #tpu.dot_dimension_numbers<[1], [0], [0], [1], [0, 0, 1, 1], [], []>} : vector<2x256xf32>, vector<256x8xf32>, vector<2x8xf32> -> vector<2x8xf32>
    %c0_48 = arith.constant 0 : index
    %c0_49 = arith.constant 0 : index
    %78 = vector.load %arg10[%c0_48, %c0_49] : memref<1x8xf32, #tpu.memory_space<vmem>>, vector<1x8xf32>
    %79 = vector.broadcast %78 : vector<1x8xf32> to vector<2x8xf32>
    %80 = arith.addf %77, %79 : vector<2x8xf32>
    %cst_50 = arith.constant 5.000000e-01 : f32
    %81 = vector.broadcast %cst_50 : f32 to vector<2x8xf32>
    %82 = arith.mulf %80, %81 : vector<2x8xf32>
    %83 = math.exp %82 : vector<2x8xf32>
    %c0_51 = arith.constant 0 : index
    %c0_52 = arith.constant 0 : index
    %84 = vector.load %arg11[%c0_51, %c0_52] : memref<2x8xf32, #tpu.memory_space<vmem>>, vector<2x8xf32>
    %85 = arith.mulf %83, %84 : vector<2x8xf32>
    %86 = arith.addf %75, %85 : vector<2x8xf32>
    %c0_53 = arith.constant 0 : index
    %c0_54 = arith.constant 0 : index
    %87 = vector.load %arg12[%c0_53, %c0_54] : memref<8x256xf32, #tpu.memory_space<vmem>>, vector<8x256xf32>
    %cst_55 = arith.constant dense<0.000000e+00> : vector<2x256xf32>
    %88 = tpu.matmul %86, %87, %cst_55 {dimension_numbers = #tpu.dot_dimension_numbers<[1], [0], [0], [1], [0, 0, 1, 1], [], []>} : vector<2x8xf32>, vector<8x256xf32>, vector<2x256xf32> -> vector<2x256xf32>
    %c0_56 = arith.constant 0 : index
    %c0_57 = arith.constant 0 : index
    %89 = vector.load %arg13[%c0_56, %c0_57] : memref<1x256xf32, #tpu.memory_space<vmem>>, vector<1x256xf32>
    %90 = vector.broadcast %89 : vector<1x256xf32> to vector<2x256xf32>
    %91 = arith.addf %88, %90 : vector<2x256xf32>
    %c0_58 = arith.constant 0 : index
    %c0_59 = arith.constant 0 : index
    %92 = vector.load %arg14[%c0_58, %c0_59] : memref<256x512xf32, #tpu.memory_space<vmem>>, vector<256x512xf32>
    %cst_60 = arith.constant dense<0.000000e+00> : vector<2x512xf32>
    %93 = tpu.matmul %91, %92, %cst_60 {dimension_numbers = #tpu.dot_dimension_numbers<[1], [0], [0], [1], [0, 0, 1, 1], [], []>} : vector<2x256xf32>, vector<256x512xf32>, vector<2x512xf32> -> vector<2x512xf32>
    %c0_61 = arith.constant 0 : index
    %c0_62 = arith.constant 0 : index
    %94 = vector.load %arg16[%c0_61, %c0_62] : memref<3x512xf32, #tpu.memory_space<vmem>>, vector<1x512xf32>
    %95 = vector.broadcast %94 : vector<1x512xf32> to vector<2x512xf32>
    %96 = arith.addf %93, %95 : vector<2x512xf32>
    %cst_63 = arith.constant 0.000000e+00 : f32
    %97 = vector.broadcast %cst_63 : f32 to vector<2x512xf32>
    %98 = arith.maximumf %96, %97 : vector<2x512xf32>
    %cst_64 = arith.constant dense<0.000000e+00> : vector<512xf32>
    %99 = vector.multi_reduction <add>, %98, %cst_64 [0] : vector<2x512xf32> to vector<512xf32>
    %100 = vector.shape_cast %99 : vector<512xf32> to vector<1x512xf32>
    %101 = arith.mulf %98, %98 : vector<2x512xf32>
    %cst_65 = arith.constant dense<0.000000e+00> : vector<512xf32>
    %102 = vector.multi_reduction <add>, %101, %cst_65 [0] : vector<2x512xf32> to vector<512xf32>
    %103 = vector.shape_cast %102 : vector<512xf32> to vector<1x512xf32>
    %c0_66 = arith.constant 0 : index
    %c0_67 = arith.constant 0 : index
    %104 = vector.load %arg15[%c0_66, %c0_67] : memref<512x512xf32, #tpu.memory_space<vmem>>, vector<512x512xf32>
    %cst_68 = arith.constant dense<0.000000e+00> : vector<1x512xf32>
    %105 = tpu.matmul %100, %104, %cst_68 {dimension_numbers = #tpu.dot_dimension_numbers<[1], [0], [0], [1], [0, 0, 1, 1], [], []>} : vector<1x512xf32>, vector<512x512xf32>, vector<1x512xf32> -> vector<1x512xf32>
    %cst_69 = arith.constant 5.000000e-01 : f32
    %106 = vector.broadcast %cst_69 : f32 to vector<1x512xf32>
    %107 = arith.mulf %105, %106 : vector<1x512xf32>
    %c0_70 = arith.constant 0 : index
    %c0_71 = arith.constant 0 : index
    %108 = vector.load %arg15[%c0_70, %c0_71] : memref<512x512xf32, #tpu.memory_space<vmem>>, vector<512x512xf32>
    %cst_72 = arith.constant dense<0.000000e+00> : vector<1x512xf32>
    %109 = tpu.matmul %103, %108, %cst_72 {dimension_numbers = #tpu.dot_dimension_numbers<[1], [0], [0], [1], [0, 0, 1, 1], [], []>} : vector<1x512xf32>, vector<512x512xf32>, vector<1x512xf32> -> vector<1x512xf32>
    %cst_73 = arith.constant 5.000000e-01 : f32
    %110 = vector.broadcast %cst_73 : f32 to vector<1x512xf32>
    %111 = arith.mulf %109, %110 : vector<1x512xf32>
    %112 = arith.mulf %107, %107 : vector<1x512xf32>
    %113 = arith.subf %111, %112 : vector<1x512xf32>
    %cst_74 = arith.constant 9.99999974E-6 : f32
    %114 = vector.broadcast %cst_74 : f32 to vector<1x512xf32>
    %115 = arith.addf %113, %114 : vector<1x512xf32>
    %116 = math.rsqrt %115 : vector<1x512xf32>
    %117 = vector.broadcast %107 : vector<1x512xf32> to vector<2x512xf32>
    %118 = arith.subf %98, %117 : vector<2x512xf32>
    %119 = vector.broadcast %116 : vector<1x512xf32> to vector<2x512xf32>
    %120 = arith.mulf %118, %119 : vector<2x512xf32>
    %c1_75 = arith.constant 1 : index
    %c0_76 = arith.constant 0 : index
    %121 = vector.load %arg16[%c1_75, %c0_76] : memref<3x512xf32, #tpu.memory_space<vmem>>, vector<1x512xf32>
    %122 = vector.broadcast %121 : vector<1x512xf32> to vector<2x512xf32>
    %123 = arith.mulf %120, %122 : vector<2x512xf32>
    %c2_77 = arith.constant 2 : index
    %c0_78 = arith.constant 0 : index
    %124 = vector.load %arg16[%c2_77, %c0_78] : memref<3x512xf32, #tpu.memory_space<vmem>>, vector<1x512xf32>
    %125 = vector.broadcast %124 : vector<1x512xf32> to vector<2x512xf32>
    %126 = arith.addf %123, %125 : vector<2x512xf32>
    %c0_79 = arith.constant 0 : index
    %c0_80 = arith.constant 0 : index
    %127 = vector.load %arg17[%c0_79, %c0_80] : memref<512x256xf32, #tpu.memory_space<vmem>>, vector<512x256xf32>
    %cst_81 = arith.constant dense<0.000000e+00> : vector<2x256xf32>
    %128 = tpu.matmul %126, %127, %cst_81 {dimension_numbers = #tpu.dot_dimension_numbers<[1], [0], [0], [1], [0, 0, 1, 1], [], []>} : vector<2x512xf32>, vector<512x256xf32>, vector<2x256xf32> -> vector<2x256xf32>
    %c0_82 = arith.constant 0 : index
    %c0_83 = arith.constant 0 : index
    %129 = vector.load %arg18[%c0_82, %c0_83] : memref<1x256xf32, #tpu.memory_space<vmem>>, vector<1x256xf32>
    %130 = vector.broadcast %129 : vector<1x256xf32> to vector<2x256xf32>
    %131 = arith.addf %128, %130 : vector<2x256xf32>
    %cst_84 = arith.constant 0.000000e+00 : f32
    %132 = vector.broadcast %cst_84 : f32 to vector<2x256xf32>
    %133 = arith.subf %132, %131 : vector<2x256xf32>
    %134 = math.exp %133 : vector<2x256xf32>
    %cst_85 = arith.constant 1.000000e+00 : f32
    %135 = vector.broadcast %cst_85 : f32 to vector<2x256xf32>
    %136 = arith.addf %135, %134 : vector<2x256xf32>
    %cst_86 = arith.constant 1.000000e+00 : f32
    %137 = vector.broadcast %cst_86 : f32 to vector<2x256xf32>
    %138 = arith.divf %137, %136 : vector<2x256xf32>
    %c0_87 = arith.constant 0 : index
    %c0_88 = arith.constant 0 : index
    %139 = vector.load %arg19[%c0_87, %c0_88] : memref<2x256xf32, #tpu.memory_space<vmem>>, vector<2x256xf32>
    tpu.vector_store %arg19[%c0_87, %c0_88], %138 {strides = array<i32>} : memref<2x256xf32, #tpu.memory_space<vmem>>, vector<2x256xf32>,
    %c0_89 = arith.constant 0 : index
    %c0_90 = arith.constant 0 : index
    %140 = vector.load %arg20[%c0_89, %c0_90] : memref<2x8xf32, #tpu.memory_space<vmem>>, vector<2x8xf32>
    tpu.vector_store %arg20[%c0_89, %c0_90], %75 {strides = array<i32>} : memref<2x8xf32, #tpu.memory_space<vmem>>, vector<2x8xf32>,
    %c0_91 = arith.constant 0 : index
    %c0_92 = arith.constant 0 : index
    %141 = vector.load %arg21[%c0_91, %c0_92] : memref<2x8xf32, #tpu.memory_space<vmem>>, vector<2x8xf32>
    tpu.vector_store %arg21[%c0_91, %c0_92], %80 {strides = array<i32>} : memref<2x8xf32, #tpu.memory_space<vmem>>, vector<2x8xf32>,
    return
  }
}

</mosaic_0001>

<bundles_post_ra>
// kernel: _vae_forward.1
= control target key start
LH: loop header
LB: loop body
LE: loop exit
PB: predicated region body
PF: predicated region fallthrough
CT: control target
= control target key end

     0   :  { %s6661_s0 = inlined_call_operand.vmem [shape: f32[2,256], index: 0, kind: input, shape index: {}]   ;;  %s6662_s1 = inlined_call_operand.hbm [shape: f32[256,512], index: 1, kind: input, shape index: {}]   ;;  %s6663_s2 = inlined_call_operand.hbm [shape: f32[512,512], index: 2, kind: input, shape index: {}]   ;;  %s6664_s3 = inlined_call_operand.vmem [shape: f32[3,512], index: 3, kind: input, shape index: {}]   ;;  %s6665_s4 = inlined_call_operand.hbm [shape: f32[512,256], index: 4, kind: input, shape index: {}]   ;;  %s6666_s5 = inlined_call_operand.vmem [shape: f32[256,256], index: 5, kind: input, shape index: {}]   ;;  %s6667_s6 = inlined_call_operand.vmem [shape: f32[3,256], index: 6, kind: input, shape index: {}]   ;;  %s6668_s7 = inlined_call_operand.vmem [shape: f32[256,8], index: 7, kind: input, shape index: {}]   ;;  %s6669_s8 = inlined_call_operand.vmem [shape: f32[1,8], index: 8, kind: input, shape index: {}]   ;;  %s6670_s9 = inlined_call_operand.vmem [shape: f32[256,8], index: 9, kind: input, shape index: {}]   ;;  %s6671_s10 = inlined_call_operand.vmem [shape: f32[1,8], index: 10, kind: input, shape index: {}]   ;;  %s6672_s11 = inlined_call_operand.vmem [shape: f32[2,8], index: 11, kind: input, shape index: {}]   ;;  %s6673_s12 = inlined_call_operand.vmem [shape: f32[8,256], index: 12, kind: input, shape index: {}]   ;;  %s6674_s13 = inlined_call_operand.vmem [shape: f32[1,256], index: 13, kind: input, shape index: {}]   ;;  %s6675_s14 = inlined_call_operand.hbm [shape: f32[256,512], index: 14, kind: input, shape index: {}]   ;;  %s6676_s15 = inlined_call_operand.hbm [shape: f32[512,512], index: 15, kind: input, shape index: {}]   ;;  %s6677_s16 = inlined_call_operand.vmem [shape: f32[3,512], index: 16, kind: input, shape index: {}]   ;;  %s6678_s17 = inlined_call_operand.hbm [shape: f32[512,256], index: 17, kind: input, shape index: {}]   ;;  %s6679_s18 = inlined_call_operand.vmem [shape: f32[1,256], index: 18, kind: input, shape index: {}]   ;;  %s6680_s19 = inlined_call_operand.vmem [shape: f32[2,256], index: 19, kind: output, shape index: {0}]   ;;  %s6681_s20 = inlined_call_operand.hbm [shape: f32[2,8], index: 20, kind: output, shape index: {1}]   ;;  %s6682_s21 = inlined_call_operand.hbm [shape: f32[2,8], index: 21, kind: output, shape index: {2}]  }
   0x1   :  { %6952 = sst [smem:[#allocation157_spill]] %s6661_s0 }
   0x2   :  { %6953 = sst [smem:[#allocation158_spill]] %s6662_s1 }
   0x3   :  { %6954 = sst [smem:[#allocation159_spill]] %s6663_s2 }
   0x4   :  { %6955 = sst [smem:[#allocation160_spill]] %s6664_s3 }
   0x5   :  { %6956 = sst [smem:[#allocation161_spill]] %s6665_s4 }
   0x6   :  { %6957 = sst [smem:[#allocation162_spill]] %s6666_s5 }
   0x7   :  { %6958 = sst [smem:[#allocation163_spill]] %s6680_s19 }
   0x8   :  { %27 = vsyncpa [#allocation3], 0 }
   0x9   :  { %28 = vsyncpa [#allocation6], 0 }
   0xa   :  { %29 = vsyncpa [#allocation9], 0 }
   0xb   :  { %30 = vsyncpa [#allocation12], 0 }
   0xc   :  { %31 = vsyncpa [#allocation4], 0 }
   0xd   :  { %32 = vsyncpa [#allocation15], 0  ;;  %s4462_s2 = smov [#allocation5]   ;;  %s4463_s26 = smov [#allocation8]  }
   0xe   :  { %s52_s25 = sshll.u32 %s4462_s2, 4  ;;  %s96_s27 = sshll.u32 %s4463_s26, 4  ;;  %s53_s25 = int_to_ptr.vmem [resolvable:$true] %s52_s25  ;;  %s97_s27 = int_to_ptr.vmem [resolvable:$true] %s96_s27 }
   0xf   :  { %s4298_s3 = scalar_lea.vmem %s53_s25, 32768  ;;  %p4303_p1 = scmp.lt.s32.totalorder %s53_s25, %s53_s25 }
  0x10   :  { %p4299_p0 = scmp.ne.s32.totalorder %s53_s25, %s4298_s3  ;;  %p4304_p2 = scmp.lt.s32.totalorder %s4298_s3, %s4298_s3 }
  0x12   :  { %p4305_p3 = por %p4304_p2, %p4303_p1 }
  0x14   :  { %p4306_p4 = pnand %p4305_p3, %p4299_p0 }
  0x16   :  { %4309 = shalt.err (!%p4306_p4)
}
  0x17   :  { %s4464_s28 = smov 512   ;;  %s4465_s29 = smov 32  }
  0x18   :  { %s6959_s30 = sld [smem:[#allocation159_spill]]  ;;  %s4318_s5 = scalar_lea.vmem %s97_s27, 16384 }
  0x19   :  { %p4319_p5 = scmp.ne.s32.totalorder %s97_s27, %s4318_s5  ;;  %p4323_p6 = scmp.lt.s32.totalorder %s97_s27, %s97_s27 }
  0x1a   :  { %p4324_p7 = scmp.lt.s32.totalorder %s4318_s5, %s4318_s5 }
  0x1c   :  { %p4325_p8 = por %p4324_p7, %p4323_p6 }
  0x1e   :  { %58 = dma.hbm_to_vmem [thread:$0]  %s6959_s30, 32768, %s53_s25, [#allocation6], %s4464_s28, %s4464_s28, %s4465_s29  }
  0x1f   :  { %p4326_p9 = pnand %p4325_p8, %p4319_p5 }
  0x21   :  { %4329 = shalt.err (!%p4326_p9)
}
  0x22   :  { %102 = dma.hbm_to_vmem [thread:$0]  %s6675_s14, 16384, %s97_s27, [#allocation9], %s4464_s28, %s4464_s28, %s4465_s29  }
  0x23   :  { %s4466_s1 = smov [#allocation2]   ;;  %s4467_s2 = smov [#allocation7]  }
  0x24   :  { %s40_s24 = sshll.u32 %s4466_s1, 4  ;;  %s66_s26 = sshll.u32 %s4467_s2, 4  ;;  %s41_s24 = int_to_ptr.vmem [resolvable:$true] %s40_s24  ;;  %s67_s26 = int_to_ptr.vmem [resolvable:$true] %s66_s26 }
  0x25   :  { %s4338_s25 = scalar_lea.vmem %s41_s24, 16384  ;;  %p4343_p11 = scmp.lt.s32.totalorder %s41_s24, %s41_s24 }
  0x26   :  { %p4339_p10 = scmp.ne.s32.totalorder %s41_s24, %s4338_s25  ;;  %p4344_p12 = scmp.lt.s32.totalorder %s4338_s25, %s4338_s25 }
  0x28   :  { %p4345_p13 = por %p4344_p12, %p4343_p11 }
  0x2a   :  { %p4346_p0 = pnand %p4345_p13, %p4339_p10 }
  0x2c   :  { %4349 = shalt.err (!%p4346_p0)
}
  0x2d   :  { %s6960_s4 = sld [smem:[#allocation158_spill]]  ;;  %s4358_s14 = scalar_lea.vmem %s67_s26, 16384 }
  0x2e   :  { %p4359_p1 = scmp.ne.s32.totalorder %s67_s26, %s4358_s14  ;;  %p4363_p2 = scmp.lt.s32.totalorder %s67_s26, %s67_s26 }
  0x2f   :  { %p4364_p3 = scmp.lt.s32.totalorder %s4358_s14, %s4358_s14 }
  0x31   :  { %p4365_p4 = por %p4364_p3, %p4363_p2 }
  0x33   :  { %46 = dma.hbm_to_vmem [thread:$0]  %s6960_s4, 16384, %s41_s24, [#allocation3], %s4464_s28, %s4464_s28, %s4465_s29  }
  0x34   :  { %p4366_p5 = pnand %p4365_p4, %p4359_p1 }
  0x36   :  { %4369 = shalt.err (!%p4366_p5)
}
  0x37   :  { %s4468_s27 = smov 256   ;;  %s4469_s30 = smov 16  }
  0x38   :  { %s6961_s23 = sld [smem:[#allocation161_spill]]  ;;  %s4470_s1 = smov [#allocation10]  }
  0x39   :  { %s108_s2 = sshll.u32 %s4470_s1, 4  ;;  %s4471_s25 = smov [#allocation11]   ;;  %s109_s2 = int_to_ptr.vmem [resolvable:$true] %s108_s2 }
  0x3a   :  { %s122_s19 = sshll.u32 %s4471_s25, 4  ;;  %s4378_s24 = scalar_lea.vmem %s109_s2, 32768  ;;  %s123_s19 = int_to_ptr.vmem [resolvable:$true] %s122_s19 }
  0x3b   :  { %p4379_p6 = scmp.ne.s32.totalorder %s109_s2, %s4378_s24  ;;  %p4383_p7 = scmp.lt.s32.totalorder %s109_s2, %s109_s2 }
  0x3c   :  { %p4384_p8 = scmp.lt.s32.totalorder %s4378_s24, %s4378_s24 }
  0x3e   :  { %72 = dma.hbm_to_vmem [thread:$0]  %s6961_s23, 16384, %s67_s26, [#allocation6], %s4468_s27, %s4468_s27, %s4469_s30  }
  0x3f   :  { %p4385_p9 = por %p4384_p8, %p4383_p7 }
  0x41   :  { %p4386_p10 = pnand %p4385_p9, %p4379_p6 }
  0x43   :  { %4389 = shalt.err (!%p4386_p10)
}
  0x44   :  { %114 = dma.hbm_to_vmem [thread:$0]  %s6676_s15, 32768, %s109_s2, [#allocation9], %s4464_s28, %s4464_s28, %s4465_s29  }
  0x45   :  { %s4398_s26 = scalar_lea.vmem %s123_s19, 16384  ;;  %p4403_p12 = scmp.lt.s32.totalorder %s123_s19, %s123_s19 }
  0x46   :  { %p4399_p11 = scmp.ne.s32.totalorder %s123_s19, %s4398_s26  ;;  %p4404_p13 = scmp.lt.s32.totalorder %s4398_s26, %s4398_s26 }
  0x48   :  { %p4405_p0 = por %p4404_p13, %p4403_p12 }
  0x4a   :  { %p4406_p1 = pnand %p4405_p0, %p4399_p11 }
  0x4c   :  { %4409 = shalt.err (!%p4406_p1)
}
  0x4d   :  { %128 = dma.hbm_to_vmem [thread:$0]  %s6678_s17, 16384, %s123_s19, [#allocation12], %s4468_s27, %s4468_s27, %s4469_s30  }
  0x4e   :  { %4450 = dma.done.wait [#allocation3], 16384  }
  0x4f   :  { %4451 = vsyncadd [#allocation3], 4294950912 }
  0x50   :  { %4452 = dma.done.wait [#allocation6], 49152  }
  0x51   :  { %4453 = vsyncadd [#allocation6], 4294918144 }
  0x52   :  { %4454 = dma.done.wait [#allocation9], 49152  }
  0x53   :  { %4455 = vsyncadd [#allocation9], 4294918144 }
  0x54   :  { %4456 = dma.done.wait [#allocation12], 16384  }
  0x55   :  { %4457 = vsyncadd [#allocation12], 4294950912  ;;  %v211_v0 = vld [vmem:[#allocation2 + $0x1e8] sm:$0xff]  ;;  %v213_v1 = vld [vmem:[#allocation2 + $0x1f8] sm:$0xff]  ;;  %s6962_s19 = sld [smem:[#allocation157_spill]]  ;;  %vm457_vm0 = vcmask 1041408  }
  0x56   :  { %v210_v2 = vld [vmem:[#allocation2 + $0x1e0] sm:$0xff]  ;;  %311 = vmatprep.subr.mxu0 %v211_v0  ;;  %382 = vmatprep.subr.mxu1 %v213_v1  ;;  %v212_v3 = vld [vmem:[#allocation2 + $0x1f0] sm:$0xff]  ;;  %v207_v4 = vld [vmem:[#allocation2 + $0x1c8] sm:$0xff]  ;;  %s6972_s27 = sld [smem:[#allocation160_spill]]  ;;  %vm3959_vm1 = vcmask 58368   ;;  %vm2280_vm2 = vcmask 64512  }
  0x57   :  { %v209_v5 = vld [vmem:[#allocation2 + $0x1d8] sm:$0xff]  ;;  %312 = vmatpush1.msra.mxu0 %v210_v2  ;;  %383 = vmatpush1.msra.mxu1 %v212_v3  ;;  %v206_v6 = vld [vmem:[#allocation2 + $0x1c0] sm:$0xff]  ;;  %v208_v7 = vld [vmem:[#allocation2 + $0x1d0] sm:$0xff]  ;;  %s7220_s25 = sld [smem:[#allocation162_spill]] }
  0x58   :  { %v203_v8 = vld [vmem:[#allocation2 + $0x1a8] sm:$0xff]  ;;  %313 = vmatprep.subr.mxu0 %v207_v4  ;;  %384 = vmatprep.subr.mxu1 %v209_v5  ;;  %v205_v9 = vld [vmem:[#allocation2 + $0x1b8] sm:$0xff]  ;;  %v202_v10 = vld [vmem:[#allocation2 + $0x1a0] sm:$0xff] }
  0x59   :  { %v204_v11 = vld [vmem:[#allocation2 + $0x1b0] sm:$0xff]  ;;  %314 = vmatpush1.msra.mxu0 %v206_v6  ;;  %385 = vmatpush1.msra.mxu1 %v208_v7  ;;  %v199_v12 = vld [vmem:[#allocation2 + $0x188] sm:$0xff]  ;;  %v201_v13 = vld [vmem:[#allocation2 + $0x198] sm:$0xff] }
  0x5a   :  { %315 = vmatprep.subr.mxu0 %v203_v8  ;;  %386 = vmatprep.subr.mxu1 %v205_v9  ;;  %v198_v14 = vld [vmem:[#allocation2 + $0x180] sm:$0xff]  ;;  %v200_v15 = vld [vmem:[#allocation2 + $0x190] sm:$0xff]  ;;  %v195_v16 = vld [vmem:[#allocation2 + $0x168] sm:$0xff] }
  0x5b   :  { %316 = vmatpush1.msra.mxu0 %v202_v10  ;;  %387 = vmatpush1.msra.mxu1 %v204_v11  ;;  %v197_v17 = vld [vmem:[#allocation2 + $0x178] sm:$0xff]  ;;  %v194_v18 = vld [vmem:[#allocation2 + $0x160] sm:$0xff]  ;;  %v196_v19 = vld [vmem:[#allocation2 + $0x170] sm:$0xff] }
  0x5c   :  { %317 = vmatprep.subr.mxu0 %v199_v12  ;;  %388 = vmatprep.subr.mxu1 %v201_v13  ;;  %v191_v20 = vld [vmem:[#allocation2 + $0x148] sm:$0xff]  ;;  %v193_v21 = vld [vmem:[#allocation2 + $0x158] sm:$0xff]  ;;  %v190_v22 = vld [vmem:[#allocation2 + $0x140] sm:$0xff] }
  0x5d   :  { %318 = vmatpush1.msra.mxu0 %v198_v14  ;;  %389 = vmatpush1.msra.mxu1 %v200_v15  ;;  %v192_v23 = vld [vmem:[#allocation2 + $0x150] sm:$0xff]  ;;  %v187_v24 = vld [vmem:[#allocation2 + $0x128] sm:$0xff]  ;;  %v189_v25 = vld [vmem:[#allocation2 + $0x138] sm:$0xff] }
  0x5e   :  { %319 = vmatprep.subr.mxu0 %v195_v16  ;;  %390 = vmatprep.subr.mxu1 %v197_v17  ;;  %v186_v26 = vld [vmem:[#allocation2 + $0x120] sm:$0xff]  ;;  %v188_v27 = vld [vmem:[#allocation2 + $0x130] sm:$0xff]  ;;  %v183_v28 = vld [vmem:[#allocation2 + $0x108] sm:$0xff] }
  0x5f   :  { %320 = vmatpush1.msra.mxu0 %v194_v18  ;;  %391 = vmatpush1.msra.mxu1 %v196_v19  ;;  %v185_v29 = vld [vmem:[#allocation2 + $0x118] sm:$0xff]  ;;  %v182_v30 = vld [vmem:[#allocation2 + $0x100] sm:$0xff]  ;;  %v184_v31 = vld [vmem:[#allocation2 + $0x110] sm:$0xff] }
  0x60   :  { %321 = vmatprep.subr.mxu0 %v191_v20  ;;  %392 = vmatprep.subr.mxu1 %v193_v21  ;;  %v179_v32 = vld [vmem:[#allocation2 + $0xe8] sm:$0xff]  ;;  %v181_v33 = vld [vmem:[#allocation2 + $0xf8] sm:$0xff]  ;;  %v178_v34 = vld [vmem:[#allocation2 + $0xe0] sm:$0xff] }
  0x61   :  { %322 = vmatpush1.msra.mxu0 %v190_v22  ;;  %393 = vmatpush1.msra.mxu1 %v192_v23  ;;  %v180_v35 = vld [vmem:[#allocation2 + $0xf0] sm:$0xff]  ;;  %v175_v36 = vld [vmem:[#allocation2 + $0xc8] sm:$0xff]  ;;  %v177_v37 = vld [vmem:[#allocation2 + $0xd8] sm:$0xff] }
  0x62   :  { %323 = vmatprep.subr.mxu0 %v187_v24  ;;  %394 = vmatprep.subr.mxu1 %v189_v25  ;;  %v174_v38 = vld [vmem:[#allocation2 + $0xc0] sm:$0xff]  ;;  %v176_v39 = vld [vmem:[#allocation2 + $0xd0] sm:$0xff]  ;;  %v171_v40 = vld [vmem:[#allocation2 + $0xa8] sm:$0xff] }
  0x63   :  { %324 = vmatpush1.msra.mxu0 %v186_v26  ;;  %395 = vmatpush1.msra.mxu1 %v188_v27  ;;  %v173_v41 = vld [vmem:[#allocation2 + $0xb8] sm:$0xff]  ;;  %v170_v42 = vld [vmem:[#allocation2 + $0xa0] sm:$0xff]  ;;  %v172_v43 = vld [vmem:[#allocation2 + $0xb0] sm:$0xff] }
  0x64   :  { %325 = vmatprep.subr.mxu0 %v183_v28  ;;  %396 = vmatprep.subr.mxu1 %v185_v29  ;;  %v167_v44 = vld [vmem:[#allocation2 + $0x88] sm:$0xff]  ;;  %v169_v45 = vld [vmem:[#allocation2 + $0x98] sm:$0xff]  ;;  %v166_v46 = vld [vmem:[#allocation2 + $0x80] sm:$0xff] }
  0x65   :  { %326 = vmatpush1.msra.mxu0 %v182_v30  ;;  %397 = vmatpush1.msra.mxu1 %v184_v31  ;;  %v168_v47 = vld [vmem:[#allocation2 + $0x90] sm:$0xff]  ;;  %v163_v48 = vld [vmem:[#allocation2 + $0x68] sm:$0xff]  ;;  %v165_v49 = vld [vmem:[#allocation2 + $0x78] sm:$0xff] }
  0x66   :  { %327 = vmatprep.subr.mxu0 %v179_v32  ;;  %398 = vmatprep.subr.mxu1 %v181_v33  ;;  %v162_v50 = vld [vmem:[#allocation2 + $0x60] sm:$0xff]  ;;  %v164_v51 = vld [vmem:[#allocation2 + $0x70] sm:$0xff]  ;;  %v159_v52 = vld [vmem:[#allocation2 + $0x48] sm:$0xff] }
  0x67   :  { %328 = vmatpush1.msra.mxu0 %v178_v34  ;;  %399 = vmatpush1.msra.mxu1 %v180_v35  ;;  %v161_v53 = vld [vmem:[#allocation2 + $0x58] sm:$0xff]  ;;  %v158_v54 = vld [vmem:[#allocation2 + $0x40] sm:$0xff]  ;;  %v160_v55 = vld [vmem:[#allocation2 + $0x50] sm:$0xff] }
  0x68   :  { %329 = vmatprep.subr.mxu0 %v175_v36  ;;  %400 = vmatprep.subr.mxu1 %v177_v37  ;;  %v155_v56 = vld [vmem:[#allocation2 + $0x28] sm:$0xff]  ;;  %v157_v57 = vld [vmem:[#allocation2 + $0x38] sm:$0xff]  ;;  %v154_v58 = vld [vmem:[#allocation2 + $0x20] sm:$0xff] }
  0x69   :  { %330 = vmatpush1.msra.mxu0 %v174_v38  ;;  %401 = vmatpush1.msra.mxu1 %v176_v39  ;;  %v156_v59 = vld [vmem:[#allocation2 + $0x30] sm:$0xff]  ;;  %v151_v60 = vld [vmem:[#allocation2 + $0x8] sm:$0xff]  ;;  %v153_v61 = vld [vmem:[#allocation2 + $0x18] sm:$0xff] }
  0x6a   :  { %331 = vmatprep.subr.mxu0 %v171_v40  ;;  %402 = vmatprep.subr.mxu1 %v173_v41  ;;  %v150_v62 = vld [vmem:[#allocation2] sm:$0xff]  ;;  %v152_v63 = vld [vmem:[#allocation2 + $0x10] sm:$0xff]  ;;  %v275_v0 = vld [vmem:[#allocation2 + $0x3e8] sm:$0xff] }
  0x6b   :  { %332 = vmatpush1.msra.mxu0 %v170_v42  ;;  %403 = vmatpush1.msra.mxu1 %v172_v43  ;;  %v277_v1 = vld [vmem:[#allocation2 + $0x3f8] sm:$0xff]  ;;  %v274_v2 = vld [vmem:[#allocation2 + $0x3e0] sm:$0xff]  ;;  %v276_v3 = vld [vmem:[#allocation2 + $0x3f0] sm:$0xff] }
  0x6c   :  { %333 = vmatprep.subr.mxu0 %v167_v44  ;;  %404 = vmatprep.subr.mxu1 %v169_v45  ;;  %v271_v4 = vld [vmem:[#allocation2 + $0x3c8] sm:$0xff]  ;;  %v273_v5 = vld [vmem:[#allocation2 + $0x3d8] sm:$0xff]  ;;  %v270_v6 = vld [vmem:[#allocation2 + $0x3c0] sm:$0xff] }
  0x6d   :  { %334 = vmatpush1.msra.mxu0 %v166_v46  ;;  %405 = vmatpush1.msra.mxu1 %v168_v47  ;;  %v272_v7 = vld [vmem:[#allocation2 + $0x3d0] sm:$0xff]  ;;  %v267_v8 = vld [vmem:[#allocation2 + $0x3a8] sm:$0xff]  ;;  %v269_v9 = vld [vmem:[#allocation2 + $0x3b8] sm:$0xff] }
  0x6e   :  { %335 = vmatprep.subr.mxu0 %v163_v48  ;;  %406 = vmatprep.subr.mxu1 %v165_v49  ;;  %v266_v10 = vld [vmem:[#allocation2 + $0x3a0] sm:$0xff]  ;;  %v268_v11 = vld [vmem:[#allocation2 + $0x3b0] sm:$0xff]  ;;  %v263_v12 = vld [vmem:[#allocation2 + $0x388] sm:$0xff] }
  0x6f   :  { %336 = vmatpush1.msra.mxu0 %v162_v50  ;;  %407 = vmatpush1.msra.mxu1 %v164_v51  ;;  %v265_v13 = vld [vmem:[#allocation2 + $0x398] sm:$0xff]  ;;  %v262_v14 = vld [vmem:[#allocation2 + $0x380] sm:$0xff]  ;;  %v264_v15 = vld [vmem:[#allocation2 + $0x390] sm:$0xff] }
  0x70   :  { %337 = vmatprep.subr.mxu0 %v159_v52  ;;  %408 = vmatprep.subr.mxu1 %v161_v53  ;;  %v259_v16 = vld [vmem:[#allocation2 + $0x368] sm:$0xff]  ;;  %v261_v17 = vld [vmem:[#allocation2 + $0x378] sm:$0xff]  ;;  %v258_v18 = vld [vmem:[#allocation2 + $0x360] sm:$0xff] }
  0x71   :  { %338 = vmatpush1.msra.mxu0 %v158_v54  ;;  %409 = vmatpush1.msra.mxu1 %v160_v55  ;;  %v260_v19 = vld [vmem:[#allocation2 + $0x370] sm:$0xff]  ;;  %v255_v20 = vld [vmem:[#allocation2 + $0x348] sm:$0xff]  ;;  %v257_v21 = vld [vmem:[#allocation2 + $0x358] sm:$0xff] }
  0x72   :  { %339 = vmatprep.subr.mxu0 %v155_v56  ;;  %410 = vmatprep.subr.mxu1 %v157_v57  ;;  %v254_v22 = vld [vmem:[#allocation2 + $0x340] sm:$0xff]  ;;  %v256_v23 = vld [vmem:[#allocation2 + $0x350] sm:$0xff]  ;;  %v251_v24 = vld [vmem:[#allocation2 + $0x328] sm:$0xff] }
  0x73   :  { %340 = vmatpush1.msra.mxu0 %v154_v58  ;;  %411 = vmatpush1.msra.mxu1 %v156_v59  ;;  %v253_v25 = vld [vmem:[#allocation2 + $0x338] sm:$0xff]  ;;  %v250_v26 = vld [vmem:[#allocation2 + $0x320] sm:$0xff]  ;;  %v252_v27 = vld [vmem:[#allocation2 + $0x330] sm:$0xff] }
  0x74   :  { %341 = vmatprep.subr.mxu0 %v151_v60  ;;  %412 = vmatprep.subr.mxu1 %v153_v61  ;;  %v247_v28 = vld [vmem:[#allocation2 + $0x308] sm:$0xff]  ;;  %v249_v29 = vld [vmem:[#allocation2 + $0x318] sm:$0xff]  ;;  %v246_v30 = vld [vmem:[#allocation2 + $0x300] sm:$0xff] }
  0x75   :  { %342 = vmatpush1.msra.mxu0 %v150_v62  ;;  %413 = vmatpush1.msra.mxu1 %v152_v63  ;;  %v248_v31 = vld [vmem:[#allocation2 + $0x310] sm:$0xff]  ;;  %v243_v32 = vld [vmem:[#allocation2 + $0x2e8] sm:$0xff]  ;;  %v245_v33 = vld [vmem:[#allocation2 + $0x2f8] sm:$0xff] }
  0x76   :  { %343 = vmatprep.subr.mxu0 %v275_v0  ;;  %414 = vmatprep.subr.mxu1 %v277_v1  ;;  %v242_v34 = vld [vmem:[#allocation2 + $0x2e0] sm:$0xff]  ;;  %v244_v35 = vld [vmem:[#allocation2 + $0x2f0] sm:$0xff]  ;;  %v239_v36 = vld [vmem:[#allocation2 + $0x2c8] sm:$0xff] }
  0x77   :  { %344 = vmatpush2.msra.mxu0 %v274_v2  ;;  %415 = vmatpush2.msra.mxu1 %v276_v3  ;;  %v241_v37 = vld [vmem:[#allocation2 + $0x2d8] sm:$0xff]  ;;  %v238_v38 = vld [vmem:[#allocation2 + $0x2c0] sm:$0xff]  ;;  %v240_v39 = vld [vmem:[#allocation2 + $0x2d0] sm:$0xff] }
  0x78   :  { %345 = vmatprep.subr.mxu0 %v271_v4  ;;  %416 = vmatprep.subr.mxu1 %v273_v5  ;;  %v235_v40 = vld [vmem:[#allocation2 + $0x2a8] sm:$0xff]  ;;  %v237_v41 = vld [vmem:[#allocation2 + $0x2b8] sm:$0xff]  ;;  %v234_v42 = vld [vmem:[#allocation2 + $0x2a0] sm:$0xff] }
  0x79   :  { %346 = vmatpush2.msra.mxu0 %v270_v6  ;;  %417 = vmatpush2.msra.mxu1 %v272_v7  ;;  %v236_v43 = vld [vmem:[#allocation2 + $0x2b0] sm:$0xff]  ;;  %v231_v44 = vld [vmem:[#allocation2 + $0x288] sm:$0xff]  ;;  %v233_v45 = vld [vmem:[#allocation2 + $0x298] sm:$0xff] }
  0x7a   :  { %347 = vmatprep.subr.mxu0 %v267_v8  ;;  %418 = vmatprep.subr.mxu1 %v269_v9  ;;  %v230_v46 = vld [vmem:[#allocation2 + $0x280] sm:$0xff]  ;;  %v232_v47 = vld [vmem:[#allocation2 + $0x290] sm:$0xff]  ;;  %v227_v48 = vld [vmem:[#allocation2 + $0x268] sm:$0xff] }
  0x7b   :  { %348 = vmatpush2.msra.mxu0 %v266_v10  ;;  %419 = vmatpush2.msra.mxu1 %v268_v11  ;;  %v229_v49 = vld [vmem:[#allocation2 + $0x278] sm:$0xff]  ;;  %v226_v50 = vld [vmem:[#allocation2 + $0x260] sm:$0xff]  ;;  %v228_v51 = vld [vmem:[#allocation2 + $0x270] sm:$0xff] }
  0x7c   :  { %349 = vmatprep.subr.mxu0 %v263_v12  ;;  %420 = vmatprep.subr.mxu1 %v265_v13  ;;  %v223_v52 = vld [vmem:[#allocation2 + $0x248] sm:$0xff]  ;;  %v225_v53 = vld [vmem:[#allocation2 + $0x258] sm:$0xff]  ;;  %v222_v54 = vld [vmem:[#allocation2 + $0x240] sm:$0xff] }
  0x7d   :  { %350 = vmatpush2.msra.mxu0 %v262_v14  ;;  %421 = vmatpush2.msra.mxu1 %v264_v15  ;;  %v224_v55 = vld [vmem:[#allocation2 + $0x250] sm:$0xff]  ;;  %v3998_v56 = vld.sshfl [vmem:[%s6962_s19] sm:$0x33 pattern:$0x76325410]  ;;  %v219_v57 = vld [vmem:[#allocation2 + $0x228] sm:$0xff] }
  0x7e   :  { %351 = vmatprep.subr.mxu0 %v259_v16  ;;  %422 = vmatprep.subr.mxu1 %v261_v17  ;;  %v221_v58 = vld [vmem:[#allocation2 + $0x238] sm:$0xff]  ;;  %v218_v59 = vld [vmem:[#allocation2 + $0x220] sm:$0xff]  ;;  %v220_v60 = vld [vmem:[#allocation2 + $0x230] sm:$0xff]  ;;  %v308_v63 = vcombine.high %v3998_v56, %v3998_v56 }
  0x7f   :  { %352 = vmatpush2.msra.mxu0 %v258_v18  ;;  %423 = vmatpush2.msra.mxu1 %v260_v19  ;;  %v215_v61 = vld [vmem:[#allocation2 + $0x208] sm:$0xff]  ;;  %v217_v62 = vld [vmem:[#allocation2 + $0x218] sm:$0xff]  ;;  %v214_v0 = vld [vmem:[#allocation2 + $0x200] sm:$0xff] }
  0x80   :  { %353 = vmatprep.subr.mxu0 %v255_v20  ;;  %424 = vmatprep.subr.mxu1 %v257_v21  ;;  %v216_v1 = vld [vmem:[#allocation2 + $0x210] sm:$0xff]  ;;  %v579_v2 = vld [vmem:[#allocation5 + $0x1e8] sm:$0xff]  ;;  %v578_v4 = vld [vmem:[#allocation5 + $0x1e0] sm:$0xff] }
  0x81   :  { %354 = vmatpush2.msra.mxu0 %v254_v22  ;;  %425 = vmatpush2.msra.mxu1 %v256_v23  ;;  %v707_v3 = vld [vmem:[#allocation5 + $0x5e8] sm:$0xff]  ;;  %v706_v5 = vld [vmem:[#allocation5 + $0x5e0] sm:$0xff] }
  0x82   :  { %355 = vmatprep.subr.mxu0 %v251_v24  ;;  %426 = vmatprep.subr.mxu1 %v253_v25  ;;  %v575_v6 = vld [vmem:[#allocation5 + $0x1c8] sm:$0xff]  ;;  %v574_v8 = vld [vmem:[#allocation5 + $0x1c0] sm:$0xff] }
  0x83   :  { %356 = vmatpush2.msra.mxu0 %v250_v26  ;;  %427 = vmatpush2.msra.mxu1 %v252_v27  ;;  %v703_v7 = vld [vmem:[#allocation5 + $0x5c8] sm:$0xff]  ;;  %v702_v9 = vld [vmem:[#allocation5 + $0x5c0] sm:$0xff] }
  0x84   :  { %357 = vmatprep.subr.mxu0 %v247_v28  ;;  %428 = vmatprep.subr.mxu1 %v249_v29  ;;  %v571_v10 = vld [vmem:[#allocation5 + $0x1a8] sm:$0xff]  ;;  %v570_v12 = vld [vmem:[#allocation5 + $0x1a0] sm:$0xff] }
  0x85   :  { %358 = vmatpush2.msra.mxu0 %v246_v30  ;;  %429 = vmatpush2.msra.mxu1 %v248_v31  ;;  %v699_v11 = vld [vmem:[#allocation5 + $0x5a8] sm:$0xff]  ;;  %v698_v13 = vld [vmem:[#allocation5 + $0x5a0] sm:$0xff] }
  0x86   :  { %359 = vmatprep.subr.mxu0 %v243_v32  ;;  %430 = vmatprep.subr.mxu1 %v245_v33  ;;  %v567_v14 = vld [vmem:[#allocation5 + $0x188] sm:$0xff]  ;;  %v566_v16 = vld [vmem:[#allocation5 + $0x180] sm:$0xff] }
  0x87   :  { %360 = vmatpush2.msra.mxu0 %v242_v34  ;;  %431 = vmatpush2.msra.mxu1 %v244_v35  ;;  %v695_v15 = vld [vmem:[#allocation5 + $0x588] sm:$0xff]  ;;  %v694_v17 = vld [vmem:[#allocation5 + $0x580] sm:$0xff] }
  0x88   :  { %361 = vmatprep.subr.mxu0 %v239_v36  ;;  %432 = vmatprep.subr.mxu1 %v241_v37  ;;  %v563_v18 = vld [vmem:[#allocation5 + $0x168] sm:$0xff]  ;;  %v562_v20 = vld [vmem:[#allocation5 + $0x160] sm:$0xff] }
  0x89   :  { %362 = vmatpush2.msra.mxu0 %v238_v38  ;;  %433 = vmatpush2.msra.mxu1 %v240_v39  ;;  %v691_v19 = vld [vmem:[#allocation5 + $0x568] sm:$0xff]  ;;  %v690_v21 = vld [vmem:[#allocation5 + $0x560] sm:$0xff] }
  0x8a   :  { %363 = vmatprep.subr.mxu0 %v235_v40  ;;  %434 = vmatprep.subr.mxu1 %v237_v41  ;;  %v559_v22 = vld [vmem:[#allocation5 + $0x148] sm:$0xff]  ;;  %v558_v24 = vld [vmem:[#allocation5 + $0x140] sm:$0xff] }
  0x8b   :  { %364 = vmatpush2.msra.mxu0 %v234_v42  ;;  %435 = vmatpush2.msra.mxu1 %v236_v43  ;;  %v687_v23 = vld [vmem:[#allocation5 + $0x548] sm:$0xff]  ;;  %v686_v25 = vld [vmem:[#allocation5 + $0x540] sm:$0xff] }
  0x8c   :  { %365 = vmatprep.subr.mxu0 %v231_v44  ;;  %436 = vmatprep.subr.mxu1 %v233_v45  ;;  %v555_v26 = vld [vmem:[#allocation5 + $0x128] sm:$0xff]  ;;  %v554_v28 = vld [vmem:[#allocation5 + $0x120] sm:$0xff] }
  0x8d   :  { %366 = vmatpush2.msra.mxu0 %v230_v46  ;;  %437 = vmatpush2.msra.mxu1 %v232_v47  ;;  %v683_v27 = vld [vmem:[#allocation5 + $0x528] sm:$0xff]  ;;  %v682_v29 = vld [vmem:[#allocation5 + $0x520] sm:$0xff] }
  0x8e   :  { %367 = vmatprep.subr.mxu0 %v227_v48  ;;  %438 = vmatprep.subr.mxu1 %v229_v49  ;;  %v551_v30 = vld [vmem:[#allocation5 + $0x108] sm:$0xff]  ;;  %v550_v32 = vld [vmem:[#allocation5 + $0x100] sm:$0xff] }
  0x8f   :  { %368 = vmatpush2.msra.mxu0 %v226_v50  ;;  %439 = vmatpush2.msra.mxu1 %v228_v51  ;;  %v679_v31 = vld [vmem:[#allocation5 + $0x508] sm:$0xff]  ;;  %v678_v33 = vld [vmem:[#allocation5 + $0x500] sm:$0xff] }
  0x90   :  { %369 = vmatprep.subr.mxu0 %v223_v52  ;;  %440 = vmatprep.subr.mxu1 %v225_v53  ;;  %v547_v34 = vld [vmem:[#allocation5 + $0xe8] sm:$0xff]  ;;  %v546_v36 = vld [vmem:[#allocation5 + $0xe0] sm:$0xff] }
  0x91   :  { %370 = vmatpush2.msra.mxu0 %v222_v54  ;;  %441 = vmatpush2.msra.mxu1 %v224_v55  ;;  %v675_v35 = vld [vmem:[#allocation5 + $0x4e8] sm:$0xff]  ;;  %v674_v37 = vld [vmem:[#allocation5 + $0x4e0] sm:$0xff] }
  0x92   :  { %371 = vmatprep.subr.mxu0 %v219_v57  ;;  %442 = vmatprep.subr.mxu1 %v221_v58  ;;  %v543_v38 = vld [vmem:[#allocation5 + $0xc8] sm:$0xff]  ;;  %v542_v40 = vld [vmem:[#allocation5 + $0xc0] sm:$0xff] }
  0x93   :  { %372 = vmatpush2.msra.mxu0 %v218_v59  ;;  %443 = vmatpush2.msra.mxu1 %v220_v60  ;;  %v671_v39 = vld [vmem:[#allocation5 + $0x4c8] sm:$0xff]  ;;  %v670_v41 = vld [vmem:[#allocation5 + $0x4c0] sm:$0xff] }
  0x94   :  { %373 = vmatprep.subr.mxu0 %v215_v61  ;;  %444 = vmatprep.subr.mxu1 %v217_v62  ;;  %v539_v42 = vld [vmem:[#allocation5 + $0xa8] sm:$0xff]  ;;  %v538_v44 = vld [vmem:[#allocation5 + $0xa0] sm:$0xff] }
  0x95   :  { %374 = vmatpush2.msra.mxu0 %v214_v0  ;;  %375 = vmatprep.mubr.f32.mxu0 %v308_v63  ;;  %v667_v43 = vld [vmem:[#allocation5 + $0x4a8] sm:$0xff]  ;;  %v666_v45 = vld [vmem:[#allocation5 + $0x4a0] sm:$0xff] }
  0x96   :  { %445 = vmatpush2.msra.mxu1 %v216_v1  ;;  %446 = vmatprep.mubr.f32.mxu1 %v308_v63  ;;  %v535_v46 = vld [vmem:[#allocation5 + $0x88] sm:$0xff]  ;;  %v534_v48 = vld [vmem:[#allocation5 + $0x80] sm:$0xff] }
  0x97   :  { %376 = vmatmul.mubr.f32.vlgmr.msra.gmra.mxu0 %v3998_v56  ;;  %447 = vmatmul.mubr.f32.vlgmr.msra.gmra.mxu1 %v3998_v56  ;;  %v663_v47 = vld [vmem:[#allocation5 + $0x488] sm:$0xff]  ;;  %v662_v49 = vld [vmem:[#allocation5 + $0x480] sm:$0xff] }
  0x98   :  { %774 = vmatprep.subr.mxu0 %v579_v2  ;;  %845 = vmatprep.subr.mxu1 %v707_v3  ;;  %v531_v50 = vld [vmem:[#allocation5 + $0x68] sm:$0xff]  ;;  %v530_v52 = vld [vmem:[#allocation5 + $0x60] sm:$0xff] }
  0x99   :  { %775 = vmatpush1.msra.mxu0 %v578_v4  ;;  %846 = vmatpush1.msra.mxu1 %v706_v5  ;;  %v659_v51 = vld [vmem:[#allocation5 + $0x468] sm:$0xff]  ;;  %v658_v53 = vld [vmem:[#allocation5 + $0x460] sm:$0xff] }
  0x9a   :  { %776 = vmatprep.subr.mxu0 %v575_v6  ;;  %847 = vmatprep.subr.mxu1 %v703_v7  ;;  %v527_v54 = vld [vmem:[#allocation5 + $0x48] sm:$0xff]  ;;  %v526_v56 = vld [vmem:[#allocation5 + $0x40] sm:$0xff] }
  0x9b   :  { %777 = vmatpush1.msra.mxu0 %v574_v8  ;;  %848 = vmatpush1.msra.mxu1 %v702_v9  ;;  %v655_v55 = vld [vmem:[#allocation5 + $0x448] sm:$0xff]  ;;  %v654_v57 = vld [vmem:[#allocation5 + $0x440] sm:$0xff] }
  0x9c   :  { %778 = vmatprep.subr.mxu0 %v571_v10  ;;  %849 = vmatprep.subr.mxu1 %v699_v11  ;;  %v523_v58 = vld [vmem:[#allocation5 + $0x28] sm:$0xff]  ;;  %v522_v60 = vld [vmem:[#allocation5 + $0x20] sm:$0xff] }
  0x9d   :  { %779 = vmatpush1.msra.mxu0 %v570_v12  ;;  %850 = vmatpush1.msra.mxu1 %v698_v13  ;;  %v651_v59 = vld [vmem:[#allocation5 + $0x428] sm:$0xff]  ;;  %v650_v61 = vld [vmem:[#allocation5 + $0x420] sm:$0xff] }
  0x9e   :  { %780 = vmatprep.subr.mxu0 %v567_v14  ;;  %851 = vmatprep.subr.mxu1 %v695_v15  ;;  %v519_v62 = vld [vmem:[#allocation5 + $0x8] sm:$0xff]  ;;  %v518_v0 = vld [vmem:[#allocation5] sm:$0xff] }
  0x9f   :  { %781 = vmatpush1.msra.mxu0 %v566_v16  ;;  %852 = vmatpush1.msra.mxu1 %v694_v17  ;;  %v647_v63 = vld [vmem:[#allocation5 + $0x408] sm:$0xff]  ;;  %v646_v1 = vld [vmem:[#allocation5 + $0x400] sm:$0xff] }
  0xa0   :  { %782 = vmatprep.subr.mxu0 %v563_v18  ;;  %853 = vmatprep.subr.mxu1 %v691_v19  ;;  %v643_v2 = vld [vmem:[#allocation5 + $0x3e8] sm:$0xff]  ;;  %v642_v4 = vld [vmem:[#allocation5 + $0x3e0] sm:$0xff] }
  0xa1   :  { %783 = vmatpush1.msra.mxu0 %v562_v20  ;;  %854 = vmatpush1.msra.mxu1 %v690_v21  ;;  %v771_v3 = vld [vmem:[#allocation5 + $0x7e8] sm:$0xff]  ;;  %v770_v5 = vld [vmem:[#allocation5 + $0x7e0] sm:$0xff] }
  0xa2   :  { %784 = vmatprep.subr.mxu0 %v559_v22  ;;  %855 = vmatprep.subr.mxu1 %v687_v23  ;;  %v639_v6 = vld [vmem:[#allocation5 + $0x3c8] sm:$0xff]  ;;  %v638_v8 = vld [vmem:[#allocation5 + $0x3c0] sm:$0xff] }
  0xa3   :  { %785 = vmatpush1.msra.mxu0 %v558_v24  ;;  %856 = vmatpush1.msra.mxu1 %v686_v25  ;;  %v767_v7 = vld [vmem:[#allocation5 + $0x7c8] sm:$0xff]  ;;  %v766_v9 = vld [vmem:[#allocation5 + $0x7c0] sm:$0xff] }
  0xa4   :  { %786 = vmatprep.subr.mxu0 %v555_v26  ;;  %857 = vmatprep.subr.mxu1 %v683_v27  ;;  %v635_v10 = vld [vmem:[#allocation5 + $0x3a8] sm:$0xff]  ;;  %v634_v12 = vld [vmem:[#allocation5 + $0x3a0] sm:$0xff] }
  0xa5   :  { %787 = vmatpush1.msra.mxu0 %v554_v28  ;;  %858 = vmatpush1.msra.mxu1 %v682_v29  ;;  %v763_v11 = vld [vmem:[#allocation5 + $0x7a8] sm:$0xff]  ;;  %v762_v13 = vld [vmem:[#allocation5 + $0x7a0] sm:$0xff] }
  0xa6   :  { %788 = vmatprep.subr.mxu0 %v551_v30  ;;  %859 = vmatprep.subr.mxu1 %v679_v31  ;;  %v631_v14 = vld [vmem:[#allocation5 + $0x388] sm:$0xff]  ;;  %v630_v16 = vld [vmem:[#allocation5 + $0x380] sm:$0xff] }
  0xa7   :  { %789 = vmatpush1.msra.mxu0 %v550_v32  ;;  %860 = vmatpush1.msra.mxu1 %v678_v33  ;;  %v759_v15 = vld [vmem:[#allocation5 + $0x788] sm:$0xff]  ;;  %v758_v17 = vld [vmem:[#allocation5 + $0x780] sm:$0xff] }
  0xa8   :  { %790 = vmatprep.subr.mxu0 %v547_v34  ;;  %861 = vmatprep.subr.mxu1 %v675_v35  ;;  %v627_v18 = vld [vmem:[#allocation5 + $0x368] sm:$0xff]  ;;  %v626_v20 = vld [vmem:[#allocation5 + $0x360] sm:$0xff] }
  0xa9   :  { %791 = vmatpush1.msra.mxu0 %v546_v36  ;;  %862 = vmatpush1.msra.mxu1 %v674_v37  ;;  %v755_v19 = vld [vmem:[#allocation5 + $0x768] sm:$0xff]  ;;  %v754_v21 = vld [vmem:[#allocation5 + $0x760] sm:$0xff] }
  0xaa   :  { %792 = vmatprep.subr.mxu0 %v543_v38  ;;  %863 = vmatprep.subr.mxu1 %v671_v39  ;;  %v623_v22 = vld [vmem:[#allocation5 + $0x348] sm:$0xff]  ;;  %v622_v24 = vld [vmem:[#allocation5 + $0x340] sm:$0xff] }
  0xab   :  { %793 = vmatpush1.msra.mxu0 %v542_v40  ;;  %864 = vmatpush1.msra.mxu1 %v670_v41  ;;  %v751_v23 = vld [vmem:[#allocation5 + $0x748] sm:$0xff]  ;;  %v750_v25 = vld [vmem:[#allocation5 + $0x740] sm:$0xff] }
  0xac   :  { %794 = vmatprep.subr.mxu0 %v539_v42  ;;  %865 = vmatprep.subr.mxu1 %v667_v43  ;;  %v4618_v26 = vld [vmem:[#allocation5 + $0x328] sm:$0xff]  ;;  %v4624_v28 = vld [vmem:[#allocation5 + $0x320] sm:$0xff] }
  0xad   :  { %795 = vmatpush1.msra.mxu0 %v538_v44  ;;  %866 = vmatpush1.msra.mxu1 %v666_v45  ;;  %v4620_v27 = vld [vmem:[#allocation5 + $0x728] sm:$0xff]  ;;  %v4626_v29 = vld [vmem:[#allocation5 + $0x720] sm:$0xff] }
  0xae   :  { %796 = vmatprep.subr.mxu0 %v535_v46  ;;  %867 = vmatprep.subr.mxu1 %v663_v47  ;;  %v4630_v30 = vld [vmem:[#allocation5 + $0x308] sm:$0xff]  ;;  %v4636_v32 = vld [vmem:[#allocation5 + $0x300] sm:$0xff] }
  0xaf   :  { %797 = vmatpush1.msra.mxu0 %v534_v48  ;;  %868 = vmatpush1.msra.mxu1 %v662_v49  ;;  %v4632_v31 = vld [vmem:[#allocation5 + $0x708] sm:$0xff]  ;;  %v4638_v33 = vld [vmem:[#allocation5 + $0x700] sm:$0xff] }
  0xb0   :  { %798 = vmatprep.subr.mxu0 %v531_v50  ;;  %869 = vmatprep.subr.mxu1 %v659_v51  ;;  %v4642_v34 = vld [vmem:[#allocation5 + $0x2e8] sm:$0xff]  ;;  %v4648_v36 = vld [vmem:[#allocation5 + $0x2e0] sm:$0xff] }
  0xb1   :  { %799 = vmatpush1.msra.mxu0 %v530_v52  ;;  %870 = vmatpush1.msra.mxu1 %v658_v53  ;;  %v4644_v35 = vld [vmem:[#allocation5 + $0x6e8] sm:$0xff]  ;;  %v4650_v37 = vld [vmem:[#allocation5 + $0x6e0] sm:$0xff] }
  0xb2   :  { %800 = vmatprep.subr.mxu0 %v527_v54  ;;  %871 = vmatprep.subr.mxu1 %v655_v55  ;;  %v4654_v38 = vld [vmem:[#allocation5 + $0x2c8] sm:$0xff]  ;;  %v4660_v40 = vld [vmem:[#allocation5 + $0x2c0] sm:$0xff] }
  0xb3   :  { %801 = vmatpush1.msra.mxu0 %v526_v56  ;;  %872 = vmatpush1.msra.mxu1 %v654_v57  ;;  %v4656_v39 = vld [vmem:[#allocation5 + $0x6c8] sm:$0xff]  ;;  %v4662_v41 = vld [vmem:[#allocation5 + $0x6c0] sm:$0xff] }
  0xb4   :  { %802 = vmatprep.subr.mxu0 %v523_v58  ;;  %873 = vmatprep.subr.mxu1 %v651_v59  ;;  %v4666_v42 = vld [vmem:[#allocation5 + $0x2a8] sm:$0xff]  ;;  %v4672_v44 = vld [vmem:[#allocation5 + $0x2a0] sm:$0xff] }
  0xb5   :  { %803 = vmatpush1.msra.mxu0 %v522_v60  ;;  %874 = vmatpush1.msra.mxu1 %v650_v61  ;;  %v4668_v43 = vld [vmem:[#allocation5 + $0x6a8] sm:$0xff]  ;;  %v4674_v45 = vld [vmem:[#allocation5 + $0x6a0] sm:$0xff] }
  0xb6   :  { %804 = vmatprep.subr.mxu0 %v519_v62  ;;  %875 = vmatprep.subr.mxu1 %v647_v63  ;;  %v4678_v46 = vld [vmem:[#allocation5 + $0x288] sm:$0xff]  ;;  %v4684_v48 = vld [vmem:[#allocation5 + $0x280] sm:$0xff] }
  0xb7   :  { %805 = vmatpush1.msra.mxu0 %v518_v0  ;;  %876 = vmatpush1.msra.mxu1 %v646_v1  ;;  %v4680_v47 = vld [vmem:[#allocation5 + $0x688] sm:$0xff]  ;;  %v4686_v49 = vld [vmem:[#allocation5 + $0x680] sm:$0xff] }
  0xb8   :  { %806 = vmatprep.subr.mxu0 %v643_v2  ;;  %877 = vmatprep.subr.mxu1 %v771_v3  ;;  %v4688_v50 = vld [vmem:[#allocation5 + $0x268] sm:$0xff]  ;;  %v4694_v52 = vld [vmem:[#allocation5 + $0x260] sm:$0xff]  ;;  %v4738_v2 = vld [vmem:[#allocation5 + $0x1f8] sm:$0xff] }
  0xb9   :  { %807 = vmatpush2.msra.mxu0 %v642_v4  ;;  %878 = vmatpush2.msra.mxu1 %v770_v5  ;;  %v4692_v51 = vld [vmem:[#allocation5 + $0x668] sm:$0xff]  ;;  %v4696_v53 = vld [vmem:[#allocation5 + $0x660] sm:$0xff]  ;;  %6968 = vst [vmem:[#allocation27_spill] sm:$0xff] %v4738_v2  ;;  %v4740_v3 = vld [vmem:[#allocation5 + $0x5f8] sm:$0xff]  ;;  %v280_v4 = vlaneseq }
  0xba   :  { %808 = vmatprep.subr.mxu0 %v639_v6  ;;  %879 = vmatprep.subr.mxu1 %v767_v7  ;;  %v4700_v54 = vld [vmem:[#allocation5 + $0x248] sm:$0xff]  ;;  %v4704_v56 = vld [vmem:[#allocation5 + $0x240] sm:$0xff]  ;;  %6969 = vst [vmem:[#allocation28_spill] sm:$0xff] %v4740_v3 }
  0xbb   :  { %809 = vmatpush2.msra.mxu0 %v638_v8  ;;  %880 = vmatpush2.msra.mxu1 %v766_v9  ;;  %v4702_v55 = vld [vmem:[#allocation5 + $0x648] sm:$0xff]  ;;  %v4708_v57 = vld [vmem:[#allocation5 + $0x640] sm:$0xff]  ;;  %v281_v5 = vshrl.u32 %v280_v4, 7 }
  0xbc   :  { %810 = vmatprep.subr.mxu0 %v635_v10  ;;  %881 = vmatprep.subr.mxu1 %v763_v11  ;;  %v4710_v58 = vld [vmem:[#allocation5 + $0x228] sm:$0xff]  ;;  %v4716_v60 = vld [vmem:[#allocation5 + $0x220] sm:$0xff] }
  0xbd   :  { %811 = vmatpush2.msra.mxu0 %v634_v12  ;;  %882 = vmatpush2.msra.mxu1 %v762_v13  ;;  %v4712_v59 = vld [vmem:[#allocation5 + $0x628] sm:$0xff]  ;;  %v4718_v61 = vld [vmem:[#allocation5 + $0x620] sm:$0xff]  ;;  %v4744_v6 = vsub.s32 0, %v281_v5  ;;  %v4746_v7 = vsub.s32 2, %v281_v5  ;;  %v4751_v9 = vsub.s32 1, %v281_v5  ;;  %v4753_v10 = vsub.s32 3, %v281_v5 }
  0xbe   :  { %812 = vmatprep.subr.mxu0 %v631_v14  ;;  %883 = vmatprep.subr.mxu1 %v759_v15  ;;  %6963 = vst [vmem:[#allocation22_spill] sm:$0xff] %v4718_v61  ;;  %v4722_v62 = vld [vmem:[#allocation5 + $0x208] sm:$0xff]  ;;  %v4728_v0 = vld [vmem:[#allocation5 + $0x200] sm:$0xff] }
  0xbf   :  { %813 = vmatpush2.msra.mxu0 %v630_v16  ;;  %884 = vmatpush2.msra.mxu1 %v758_v17  ;;  %6964 = vst [vmem:[#allocation23_spill] sm:$0xff] %v4722_v62  ;;  %v4724_v63 = vld [vmem:[#allocation5 + $0x608] sm:$0xff]  ;;  %6966 = vst [vmem:[#allocation25_spill] sm:$0xff] %v4728_v0  ;;  %v4730_v1 = vld [vmem:[#allocation5 + $0x600] sm:$0xff] }
  0xc0   :  { %814 = vmatprep.subr.mxu0 %v627_v18  ;;  %885 = vmatprep.subr.mxu1 %v755_v19  ;;  %6965 = vst [vmem:[#allocation24_spill] sm:$0xff] %v4724_v63  ;;  %6967 = vst [vmem:[#allocation26_spill] sm:$0xff] %v4730_v1  ;;  %v278_v8 = vld [vmem:[%s6972_s27] ss:$4 sm:$0xf] }
  0xc1   :  { %815 = vmatpush2.msra.mxu0 %v626_v20  ;;  %886 = vmatpush2.msra.mxu1 %v754_v21  ;;  %6970 = vst [vmem:[#allocation29_spill] sm:$0xff] %v4744_v6  ;;  %6971 = vst [vmem:[#allocation30_spill] sm:$0xff] %v4746_v7  ;;  %v283_v11 = vrot.slane %v278_v8, %v4744_v6  ;;  %v291_v12 = vrot.slane %v278_v8, %v4746_v7 }
  0xc2   :  { %816 = vmatprep.subr.mxu0 %v623_v22  ;;  %887 = vmatprep.subr.mxu1 %v751_v23  ;;  %6973 = vst [vmem:[#allocation31_spill] sm:$0xff] %v4751_v9  ;;  %6974 = vst [vmem:[#allocation32_spill] sm:$0xff] %v4753_v10  ;;  %v287_v13 = vrot.slane %v278_v8, %v4751_v9  ;;  %v295_v14 = vrot.slane %v278_v8, %v4753_v10 }
  0xc3   :  { %817 = vmatpush2.msra.mxu0 %v622_v24  ;;  %888 = vmatpush2.msra.mxu1 %v750_v25 }
  0xc4   :  { %818 = vmatprep.subr.mxu0 %v4618_v26  ;;  %889 = vmatprep.subr.mxu1 %v4620_v27 }
  0xc5   :  { %819 = vmatpush2.msra.mxu0 %v4624_v28  ;;  %890 = vmatpush2.msra.mxu1 %v4626_v29 }
  0xc6   :  { %820 = vmatprep.subr.mxu0 %v4630_v30  ;;  %891 = vmatprep.subr.mxu1 %v4632_v31 }
  0xc7   :  { %821 = vmatpush2.msra.mxu0 %v4636_v32  ;;  %892 = vmatpush2.msra.mxu1 %v4638_v33 }
  0xc8   :  { %822 = vmatprep.subr.mxu0 %v4642_v34  ;;  %893 = vmatprep.subr.mxu1 %v4644_v35 }
  0xc9   :  { %823 = vmatpush2.msra.mxu0 %v4648_v36  ;;  %894 = vmatpush2.msra.mxu1 %v4650_v37 }
  0xca   :  { %824 = vmatprep.subr.mxu0 %v4654_v38  ;;  %895 = vmatprep.subr.mxu1 %v4656_v39 }
  0xcb   :  { %825 = vmatpush2.msra.mxu0 %v4660_v40  ;;  %896 = vmatpush2.msra.mxu1 %v4662_v41 }
  0xcc   :  { %826 = vmatprep.subr.mxu0 %v4666_v42  ;;  %897 = vmatprep.subr.mxu1 %v4668_v43 }
  0xcd   :  { %827 = vmatpush2.msra.mxu0 %v4672_v44  ;;  %898 = vmatpush2.msra.mxu1 %v4674_v45 }
  0xce   :  { %828 = vmatprep.subr.mxu0 %v4678_v46  ;;  %899 = vmatprep.subr.mxu1 %v4680_v47 }
  0xcf   :  { %829 = vmatpush2.msra.mxu0 %v4684_v48  ;;  %900 = vmatpush2.msra.mxu1 %v4686_v49 }
  0xd0   :  { %830 = vmatprep.subr.mxu0 %v4688_v50  ;;  %901 = vmatprep.subr.mxu1 %v4692_v51 }
  0xd1   :  { %831 = vmatpush2.msra.mxu0 %v4694_v52  ;;  %902 = vmatpush2.msra.mxu1 %v4696_v53 }
  0xd2   :  { %832 = vmatprep.subr.mxu0 %v4700_v54  ;;  %903 = vmatprep.subr.mxu1 %v4702_v55 }
  0xd3   :  { %833 = vmatpush2.msra.mxu0 %v4704_v56  ;;  %904 = vmatpush2.msra.mxu1 %v4708_v57 }
  0xd4   :  { %834 = vmatprep.subr.mxu0 %v4710_v58  ;;  %905 = vmatprep.subr.mxu1 %v4712_v59 }
  0xd5   :  { %835 = vmatpush2.msra.mxu0 %v4716_v60  ;;  %906 = vmatpush2.msra.mxu1 %v4718_v61  ;;  %v4779_v61 = vld [vmem:[#allocation5 + $0x1f0] sm:$0xff] }
  0xd6   :  { %836 = vmatprep.subr.mxu0 %v4722_v62  ;;  %907 = vmatprep.subr.mxu1 %v4724_v63 }
  0xd7   :  { %837 = vmatpush2.msra.mxu0 %v4728_v0  ;;  %908 = vmatpush2.msra.mxu1 %v4730_v1 }
  0xd8   :  { %916 = vmatprep.subr.mxu0 %v4738_v2  ;;  %987 = vmatprep.subr.mxu1 %v4740_v3 }
 0x157   :  { %v377_v15 = vpop.f32.mrf.mxu0  ;;  %v448_v16 = vpop.f32.mrf.mxu1 }
 0x158   :  { %v378_v17 = vadd.f32 %v377_v15, %v283_v11  ;;  %v449_v18 = vadd.f32 %v448_v16, %v291_v12 }
 0x159   :  { %v379_v19 = vpop.f32.mrf.mxu0  ;;  %v450_v20 = vpop.f32.mrf.mxu1 }
 0x15a   :  { %v4759_v21 = vmax.f32 %v378_v17, 0.0  ;;  %v4761_v22 = vmax.f32 %v449_v18, 0.0  ;;  %v380_v23 = vadd.f32 %v379_v19, %v287_v13  ;;  %v451_v24 = vadd.f32 %v450_v20, %v295_v14 }
 0x15c   :  { %6975 = vst [vmem:[#allocation33_spill] sm:$0xff] %v4759_v21  ;;  %6976 = vst [vmem:[#allocation34_spill] sm:$0xff] %v4761_v22  ;;  %v458_v25 = vsel %vm457_vm0, %v4759_v21, 0.0  ;;  %v472_v4 = vsel %vm457_vm0, %v4761_v22, 0.0  ;;  %v4767_v10 = vmax.f32 %v380_v23, 0.0  ;;  %v4769_v11 = vmax.f32 %v451_v24, 0.0 }
 0x15d   :  { %v459_v5 = vrot.slane %v458_v25, 4  ;;  %v473_v8 = vrot.slane %v472_v4, 4 }
 0x15e   :  { %6977 = vst [vmem:[#allocation35_spill] sm:$0xff] %v4767_v10  ;;  %6978 = vst [vmem:[#allocation36_spill] sm:$0xff] %v4769_v11  ;;  %v465_v16 = vsel %vm457_vm0, %v4767_v10, 0.0  ;;  %v479_v13 = vsel %vm457_vm0, %v4769_v11, 0.0 }
 0x15f   :  { %v460_v12 = vadd.f32 %v459_v5, %v458_v25  ;;  %v474_v15 = vadd.f32 %v473_v8, %v472_v4  ;;  %v466_v18 = vrot.slane %v465_v16, 4  ;;  %v480_v19 = vrot.slane %v479_v13, 4 }
 0x161   :  { %v461_v14 = vrot.slane %v460_v12, 2  ;;  %v475_v17 = vrot.slane %v474_v15, 2  ;;  %v467_v20 = vadd.f32 %v466_v18, %v465_v16  ;;  %v481_v7 = vadd.f32 %v480_v19, %v479_v13  ;;  %v4781_v16 = vld [vmem:[#allocation5 + $0x5f0] sm:$0xff]  ;;  %v4821_v19 = vld [vmem:[#allocation5 + $0x578] sm:$0xff] }
 0x162   :  { %v4803_v13 = vld [vmem:[#allocation5 + $0x5b0] sm:$0xff]  ;;  %6985 = vst [vmem:[#allocation43_spill] sm:$0xff] %v4821_v19 }
 0x163   :  { %v462_v9 = vadd.f32 %v461_v14, %v460_v12  ;;  %v476_v6 = vadd.f32 %v475_v17, %v474_v15  ;;  %v468_v23 = vrot.slane %v467_v20, 2  ;;  %v482_v3 = vrot.slane %v481_v7, 2  ;;  %v4783_v12 = vld [vmem:[#allocation5 + $0x1d8] sm:$0xff]  ;;  %v4801_v15 = vld [vmem:[#allocation5 + $0x1b0] sm:$0xff]  ;;  %6979 = vst [vmem:[#allocation37_spill] sm:$0xff] %v4803_v13 }
 0x164   :  { %v4807_v14 = vld [vmem:[#allocation5 + $0x198] sm:$0xff]  ;;  %v4815_v18 = vld [vmem:[#allocation5 + $0x590] sm:$0xff] }
 0x165   :  { %v469_v24 = vadd.f32 %v468_v23, %v467_v20  ;;  %v483_v2 = vadd.f32 %v482_v3, %v481_v7  ;;  %v463_v25 = vrot.slane %v462_v9, 1  ;;  %v477_v4 = vrot.slane %v476_v6, 1  ;;  %v4787_v3 = vld [vmem:[#allocation5 + $0x5d8] sm:$0xff]  ;;  %6980 = vst [vmem:[#allocation38_spill] sm:$0xff] %v4807_v14  ;;  %6983 = vst [vmem:[#allocation41_spill] sm:$0xff] %v4815_v18  ;;  %v4825_v20 = vld [vmem:[#allocation5 + $0x170] sm:$0xff] }
 0x166   :  { %v4796_v7 = vld [vmem:[#allocation5 + $0x1b8] sm:$0xff]  ;;  %6986 = vst [vmem:[#allocation44_spill] sm:$0xff] %v4825_v20  ;;  %v4827_v23 = vld [vmem:[#allocation5 + $0x570] sm:$0xff] }
 0x167   :  { %v470_v5 = vrot.slane %v469_v24, 1  ;;  %v484_v8 = vrot.slane %v483_v2, 1  ;;  %v4775_v63 = vadd.f32 %v463_v25, %v462_v9  ;;  %v4777_v62 = vadd.f32 %v477_v4, %v476_v6  ;;  %v4793_v6 = vld [vmem:[#allocation5 + $0x5d0] sm:$0xff]  ;;  %v4798_v9 = vld [vmem:[#allocation5 + $0x5b8] sm:$0xff]  ;;  %6987 = vst [vmem:[#allocation45_spill] sm:$0xff] %v4827_v23 }
 0x168   :  { %v4809_v17 = vld [vmem:[#allocation5 + $0x598] sm:$0xff]  ;;  %v4837_v4 = vld [vmem:[#allocation5 + $0x150] sm:$0xff] }
 0x169   :  { %v471_v1 = vadd.f32 %v470_v5, %v469_v24  ;;  %v485_v0 = vadd.f32 %v484_v8, %v483_v2  ;;  %v4791_v2 = vld [vmem:[#allocation5 + $0x1d0] sm:$0xff]  ;;  %6981 = vst [vmem:[#allocation39_spill] sm:$0xff] %v4809_v17  ;;  %v4831_v24 = vld [vmem:[#allocation5 + $0x158] sm:$0xff]  ;;  %6990 = vst [vmem:[#allocation48_spill] sm:$0xff] %v4837_v4 }
 0x16a   :  { %6988 = vst [vmem:[#allocation46_spill] sm:$0xff] %v4831_v24  ;;  %v4833_v25 = vld [vmem:[#allocation5 + $0x558] sm:$0xff]  ;;  %v4839_v5 = vld [vmem:[#allocation5 + $0x550] sm:$0xff] }
 0x16b   :  { %838 = vmatprep.mubr.f32.mxu0 %v471_v1  ;;  %909 = vmatprep.mubr.f32.mxu1 %v485_v0  ;;  %6989 = vst [vmem:[#allocation47_spill] sm:$0xff] %v4833_v25  ;;  %6991 = vst [vmem:[#allocation49_spill] sm:$0xff] %v4839_v5  ;;  %v4843_v8 = vld [vmem:[#allocation5 + $0x138] sm:$0xff] }
 0x16c   :  { %839 = vmatmul.mubr.f32.vlgmr.msra.gmra.mxu0 %v4775_v63  ;;  %910 = vmatmul.mubr.f32.vlgmr.msra.gmra.mxu1 %v4777_v62  ;;  %6992 = vst [vmem:[#allocation50_spill] sm:$0xff] %v4843_v8 }
 0x16d   :  { %917 = vmatpush1.msra.mxu0 %v4779_v61  ;;  %988 = vmatpush1.msra.mxu1 %v4781_v16 }
 0x16e   :  { %918 = vmatprep.subr.mxu0 %v4783_v12  ;;  %980 = vmatprep.mubr.f32.mxu0 %v471_v1  ;;  %v4813_v1 = vld [vmem:[#allocation5 + $0x190] sm:$0xff] }
 0x16f   :  { %989 = vmatprep.subr.mxu1 %v4787_v3  ;;  %1051 = vmatprep.mubr.f32.mxu1 %v485_v0  ;;  %6982 = vst [vmem:[#allocation40_spill] sm:$0xff] %v4813_v1  ;;  %v4819_v0 = vld [vmem:[#allocation5 + $0x178] sm:$0xff] }
 0x170   :  { %919 = vmatpush1.msra.mxu0 %v4791_v2  ;;  %990 = vmatpush1.msra.mxu1 %v4793_v6  ;;  %6984 = vst [vmem:[#allocation42_spill] sm:$0xff] %v4819_v0 }
 0x171   :  { %920 = vmatprep.subr.mxu0 %v4796_v7  ;;  %991 = vmatprep.subr.mxu1 %v4798_v9 }
 0x172   :  { %921 = vmatpush1.msra.mxu0 %v4801_v15  ;;  %992 = vmatpush1.msra.mxu1 %v4803_v13 }
 0x173   :  { %922 = vmatprep.subr.mxu0 %v4807_v14  ;;  %993 = vmatprep.subr.mxu1 %v4809_v17  ;;  %v5023_v17 = vld [vmem:[#allocation5 + $0x770] sm:$0xff]  ;;  %v5077_v14 = vld [vmem:[#allocation5 + $0x2d8] sm:$0xff] }
 0x174   :  { %923 = vmatpush1.msra.mxu0 %v4813_v1  ;;  %994 = vmatpush1.msra.mxu1 %v4815_v18  ;;  %v4845_v1 = vld [vmem:[#allocation5 + $0x538] sm:$0xff]  ;;  %v4849_v18 = vld [vmem:[#allocation5 + $0x130] sm:$0xff]  ;;  %7051 = vst [vmem:[#allocation109_spill] sm:$0xff] %v5023_v17  ;;  %7068 = vst [vmem:[#allocation126_spill] sm:$0xff] %v5077_v14 }
 0x175   :  { %924 = vmatprep.subr.mxu0 %v4819_v0  ;;  %995 = vmatprep.subr.mxu1 %v4821_v19  ;;  %6993 = vst [vmem:[#allocation51_spill] sm:$0xff] %v4845_v1  ;;  %6994 = vst [vmem:[#allocation52_spill] sm:$0xff] %v4849_v18  ;;  %v4851_v0 = vld [vmem:[#allocation5 + $0x530] sm:$0xff]  ;;  %v4855_v19 = vld [vmem:[#allocation5 + $0x118] sm:$0xff] }
 0x176   :  { %925 = vmatpush1.msra.mxu0 %v4825_v20  ;;  %996 = vmatpush1.msra.mxu1 %v4827_v23  ;;  %6995 = vst [vmem:[#allocation53_spill] sm:$0xff] %v4851_v0  ;;  %6996 = vst [vmem:[#allocation54_spill] sm:$0xff] %v4855_v19  ;;  %v4857_v20 = vld [vmem:[#allocation5 + $0x518] sm:$0xff]  ;;  %v4861_v23 = vld [vmem:[#allocation5 + $0x110] sm:$0xff] }
 0x177   :  { %926 = vmatprep.subr.mxu0 %v4831_v24  ;;  %997 = vmatprep.subr.mxu1 %v4833_v25  ;;  %6997 = vst [vmem:[#allocation55_spill] sm:$0xff] %v4857_v20  ;;  %6998 = vst [vmem:[#allocation56_spill] sm:$0xff] %v4861_v23  ;;  %v4863_v24 = vld [vmem:[#allocation5 + $0x510] sm:$0xff]  ;;  %v4867_v25 = vld [vmem:[#allocation5 + $0xf8] sm:$0xff] }
 0x178   :  { %927 = vmatpush1.msra.mxu0 %v4837_v4  ;;  %998 = vmatpush1.msra.mxu1 %v4839_v5  ;;  %6999 = vst [vmem:[#allocation57_spill] sm:$0xff] %v4863_v24  ;;  %7000 = vst [vmem:[#allocation58_spill] sm:$0xff] %v4867_v25  ;;  %v4869_v4 = vld [vmem:[#allocation5 + $0x4f8] sm:$0xff]  ;;  %v4873_v5 = vld [vmem:[#allocation5 + $0xf0] sm:$0xff] }
 0x179   :  { %928 = vmatprep.subr.mxu0 %v4843_v8  ;;  %999 = vmatprep.subr.mxu1 %v4845_v1  ;;  %7001 = vst [vmem:[#allocation59_spill] sm:$0xff] %v4869_v4  ;;  %7002 = vst [vmem:[#allocation60_spill] sm:$0xff] %v4873_v5  ;;  %v4875_v8 = vld [vmem:[#allocation5 + $0x4f0] sm:$0xff]  ;;  %v4879_v1 = vld [vmem:[#allocation5 + $0xd8] sm:$0xff] }
 0x17a   :  { %929 = vmatpush1.msra.mxu0 %v4849_v18  ;;  %1000 = vmatpush1.msra.mxu1 %v4851_v0  ;;  %7003 = vst [vmem:[#allocation61_spill] sm:$0xff] %v4875_v8  ;;  %7004 = vst [vmem:[#allocation62_spill] sm:$0xff] %v4879_v1  ;;  %v4881_v18 = vld [vmem:[#allocation5 + $0x4d8] sm:$0xff]  ;;  %v4885_v0 = vld [vmem:[#allocation5 + $0xd0] sm:$0xff] }
 0x17b   :  { %930 = vmatprep.subr.mxu0 %v4855_v19  ;;  %1001 = vmatprep.subr.mxu1 %v4857_v20  ;;  %7005 = vst [vmem:[#allocation63_spill] sm:$0xff] %v4881_v18  ;;  %7006 = vst [vmem:[#allocation64_spill] sm:$0xff] %v4885_v0  ;;  %v4887_v19 = vld [vmem:[#allocation5 + $0x4d0] sm:$0xff]  ;;  %v4891_v20 = vld [vmem:[#allocation5 + $0xb8] sm:$0xff] }
 0x17c   :  { %931 = vmatpush1.msra.mxu0 %v4861_v23  ;;  %1002 = vmatpush1.msra.mxu1 %v4863_v24  ;;  %7007 = vst [vmem:[#allocation65_spill] sm:$0xff] %v4887_v19  ;;  %7008 = vst [vmem:[#allocation66_spill] sm:$0xff] %v4891_v20  ;;  %v4893_v23 = vld [vmem:[#allocation5 + $0x4b8] sm:$0xff]  ;;  %v4897_v24 = vld [vmem:[#allocation5 + $0xb0] sm:$0xff] }
 0x17d   :  { %932 = vmatprep.subr.mxu0 %v4867_v25  ;;  %1003 = vmatprep.subr.mxu1 %v4869_v4  ;;  %7009 = vst [vmem:[#allocation67_spill] sm:$0xff] %v4893_v23  ;;  %7010 = vst [vmem:[#allocation68_spill] sm:$0xff] %v4897_v24  ;;  %v4899_v25 = vld [vmem:[#allocation5 + $0x4b0] sm:$0xff]  ;;  %v4903_v4 = vld [vmem:[#allocation5 + $0x98] sm:$0xff] }
 0x17e   :  { %933 = vmatpush1.msra.mxu0 %v4873_v5  ;;  %1004 = vmatpush1.msra.mxu1 %v4875_v8  ;;  %7011 = vst [vmem:[#allocation69_spill] sm:$0xff] %v4899_v25  ;;  %7012 = vst [vmem:[#allocation70_spill] sm:$0xff] %v4903_v4  ;;  %v4905_v5 = vld [vmem:[#allocation5 + $0x498] sm:$0xff]  ;;  %v4909_v8 = vld [vmem:[#allocation5 + $0x90] sm:$0xff] }
 0x17f   :  { %934 = vmatprep.subr.mxu0 %v4879_v1  ;;  %1005 = vmatprep.subr.mxu1 %v4881_v18  ;;  %7013 = vst [vmem:[#allocation71_spill] sm:$0xff] %v4905_v5  ;;  %7014 = vst [vmem:[#allocation72_spill] sm:$0xff] %v4909_v8  ;;  %v4911_v1 = vld [vmem:[#allocation5 + $0x490] sm:$0xff]  ;;  %v4915_v18 = vld [vmem:[#allocation5 + $0x78] sm:$0xff] }
 0x180   :  { %935 = vmatpush1.msra.mxu0 %v4885_v0  ;;  %1006 = vmatpush1.msra.mxu1 %v4887_v19  ;;  %7015 = vst [vmem:[#allocation73_spill] sm:$0xff] %v4911_v1  ;;  %7016 = vst [vmem:[#allocation74_spill] sm:$0xff] %v4915_v18  ;;  %v4917_v0 = vld [vmem:[#allocation5 + $0x478] sm:$0xff]  ;;  %v4921_v19 = vld [vmem:[#allocation5 + $0x70] sm:$0xff] }
 0x181   :  { %936 = vmatprep.subr.mxu0 %v4891_v20  ;;  %1007 = vmatprep.subr.mxu1 %v4893_v23  ;;  %7017 = vst [vmem:[#allocation75_spill] sm:$0xff] %v4917_v0  ;;  %7018 = vst [vmem:[#allocation76_spill] sm:$0xff] %v4921_v19  ;;  %v4923_v20 = vld [vmem:[#allocation5 + $0x470] sm:$0xff]  ;;  %v4927_v23 = vld [vmem:[#allocation5 + $0x58] sm:$0xff] }
 0x182   :  { %937 = vmatpush1.msra.mxu0 %v4897_v24  ;;  %1008 = vmatpush1.msra.mxu1 %v4899_v25  ;;  %7019 = vst [vmem:[#allocation77_spill] sm:$0xff] %v4923_v20  ;;  %7020 = vst [vmem:[#allocation78_spill] sm:$0xff] %v4927_v23  ;;  %v4929_v24 = vld [vmem:[#allocation5 + $0x458] sm:$0xff]  ;;  %v4933_v25 = vld [vmem:[#allocation5 + $0x50] sm:$0xff] }
 0x183   :  { %938 = vmatprep.subr.mxu0 %v4903_v4  ;;  %1009 = vmatprep.subr.mxu1 %v4905_v5  ;;  %7021 = vst [vmem:[#allocation79_spill] sm:$0xff] %v4929_v24  ;;  %7022 = vst [vmem:[#allocation80_spill] sm:$0xff] %v4933_v25  ;;  %v4935_v4 = vld [vmem:[#allocation5 + $0x450] sm:$0xff]  ;;  %v4939_v5 = vld [vmem:[#allocation5 + $0x38] sm:$0xff] }
 0x184   :  { %939 = vmatpush1.msra.mxu0 %v4909_v8  ;;  %1010 = vmatpush1.msra.mxu1 %v4911_v1  ;;  %7023 = vst [vmem:[#allocation81_spill] sm:$0xff] %v4935_v4  ;;  %7024 = vst [vmem:[#allocation82_spill] sm:$0xff] %v4939_v5  ;;  %v4941_v8 = vld [vmem:[#allocation5 + $0x438] sm:$0xff]  ;;  %v4945_v1 = vld [vmem:[#allocation5 + $0x30] sm:$0xff] }
 0x185   :  { %940 = vmatprep.subr.mxu0 %v4915_v18  ;;  %1011 = vmatprep.subr.mxu1 %v4917_v0  ;;  %7025 = vst [vmem:[#allocation83_spill] sm:$0xff] %v4941_v8  ;;  %7026 = vst [vmem:[#allocation84_spill] sm:$0xff] %v4945_v1  ;;  %v4947_v18 = vld [vmem:[#allocation5 + $0x430] sm:$0xff]  ;;  %v4951_v0 = vld [vmem:[#allocation5 + $0x18] sm:$0xff] }
 0x186   :  { %941 = vmatpush1.msra.mxu0 %v4921_v19  ;;  %1012 = vmatpush1.msra.mxu1 %v4923_v20  ;;  %7027 = vst [vmem:[#allocation85_spill] sm:$0xff] %v4947_v18  ;;  %7028 = vst [vmem:[#allocation86_spill] sm:$0xff] %v4951_v0  ;;  %v4953_v19 = vld [vmem:[#allocation5 + $0x418] sm:$0xff]  ;;  %v4957_v20 = vld [vmem:[#allocation5 + $0x10] sm:$0xff] }
 0x187   :  { %942 = vmatprep.subr.mxu0 %v4927_v23  ;;  %1013 = vmatprep.subr.mxu1 %v4929_v24  ;;  %7029 = vst [vmem:[#allocation87_spill] sm:$0xff] %v4953_v19  ;;  %7030 = vst [vmem:[#allocation88_spill] sm:$0xff] %v4957_v20  ;;  %v4959_v23 = vld [vmem:[#allocation5 + $0x410] sm:$0xff]  ;;  %v4963_v24 = vld [vmem:[#allocation5 + $0x3f8] sm:$0xff] }
 0x188   :  { %943 = vmatpush1.msra.mxu0 %v4933_v25  ;;  %1014 = vmatpush1.msra.mxu1 %v4935_v4  ;;  %7031 = vst [vmem:[#allocation89_spill] sm:$0xff] %v4959_v23  ;;  %7032 = vst [vmem:[#allocation90_spill] sm:$0xff] %v4963_v24  ;;  %v4965_v25 = vld [vmem:[#allocation5 + $0x7f8] sm:$0xff]  ;;  %v4969_v4 = vld [vmem:[#allocation5 + $0x3f0] sm:$0xff] }
 0x189   :  { %944 = vmatprep.subr.mxu0 %v4939_v5  ;;  %1015 = vmatprep.subr.mxu1 %v4941_v8  ;;  %7033 = vst [vmem:[#allocation91_spill] sm:$0xff] %v4965_v25  ;;  %7034 = vst [vmem:[#allocation92_spill] sm:$0xff] %v4969_v4  ;;  %v4971_v5 = vld [vmem:[#allocation5 + $0x7f0] sm:$0xff]  ;;  %v4975_v8 = vld [vmem:[#allocation5 + $0x3d8] sm:$0xff] }
 0x18a   :  { %945 = vmatpush1.msra.mxu0 %v4945_v1  ;;  %1016 = vmatpush1.msra.mxu1 %v4947_v18  ;;  %7035 = vst [vmem:[#allocation93_spill] sm:$0xff] %v4971_v5  ;;  %7036 = vst [vmem:[#allocation94_spill] sm:$0xff] %v4975_v8  ;;  %v4977_v1 = vld [vmem:[#allocation5 + $0x7d8] sm:$0xff]  ;;  %v4981_v18 = vld [vmem:[#allocation5 + $0x3d0] sm:$0xff] }
 0x18b   :  { %946 = vmatprep.subr.mxu0 %v4951_v0  ;;  %1017 = vmatprep.subr.mxu1 %v4953_v19  ;;  %7037 = vst [vmem:[#allocation95_spill] sm:$0xff] %v4977_v1  ;;  %7038 = vst [vmem:[#allocation96_spill] sm:$0xff] %v4981_v18  ;;  %v4983_v0 = vld [vmem:[#allocation5 + $0x7d0] sm:$0xff]  ;;  %v4987_v19 = vld [vmem:[#allocation5 + $0x3b8] sm:$0xff] }
 0x18c   :  { %947 = vmatpush1.msra.mxu0 %v4957_v20  ;;  %1018 = vmatpush1.msra.mxu1 %v4959_v23  ;;  %7039 = vst [vmem:[#allocation97_spill] sm:$0xff] %v4983_v0  ;;  %7040 = vst [vmem:[#allocation98_spill] sm:$0xff] %v4987_v19  ;;  %v4989_v20 = vld [vmem:[#allocation5 + $0x7b8] sm:$0xff]  ;;  %v4993_v23 = vld [vmem:[#allocation5 + $0x3b0] sm:$0xff] }
 0x18d   :  { %948 = vmatprep.subr.mxu0 %v4963_v24  ;;  %1019 = vmatprep.subr.mxu1 %v4965_v25  ;;  %7041 = vst [vmem:[#allocation99_spill] sm:$0xff] %v4989_v20  ;;  %7042 = vst [vmem:[#allocation100_spill] sm:$0xff] %v4993_v23  ;;  %v4995_v24 = vld [vmem:[#allocation5 + $0x7b0] sm:$0xff]  ;;  %v4999_v25 = vld [vmem:[#allocation5 + $0x398] sm:$0xff] }
 0x18e   :  { %949 = vmatpush2.msra.mxu0 %v4969_v4  ;;  %1020 = vmatpush2.msra.mxu1 %v4971_v5  ;;  %7043 = vst [vmem:[#allocation101_spill] sm:$0xff] %v4995_v24  ;;  %7044 = vst [vmem:[#allocation102_spill] sm:$0xff] %v4999_v25  ;;  %v5001_v4 = vld [vmem:[#allocation5 + $0x798] sm:$0xff]  ;;  %v5005_v5 = vld [vmem:[#allocation5 + $0x390] sm:$0xff] }
 0x18f   :  { %950 = vmatprep.subr.mxu0 %v4975_v8  ;;  %1021 = vmatprep.subr.mxu1 %v4977_v1  ;;  %7045 = vst [vmem:[#allocation103_spill] sm:$0xff] %v5001_v4  ;;  %7046 = vst [vmem:[#allocation104_spill] sm:$0xff] %v5005_v5  ;;  %v5007_v8 = vld [vmem:[#allocation5 + $0x790] sm:$0xff]  ;;  %v487_v1 = vmul.f32 %v4767_v10, %v4767_v10  ;;  %v5027_v10 = vld [vmem:[#allocation5 + $0x358] sm:$0xff] }
 0x190   :  { %951 = vmatpush2.msra.mxu0 %v4981_v18  ;;  %1022 = vmatpush2.msra.mxu1 %v4983_v0  ;;  %7047 = vst [vmem:[#allocation105_spill] sm:$0xff] %v5007_v8  ;;  %v5013_v0 = vld [vmem:[#allocation5 + $0x378] sm:$0xff]  ;;  %7052 = vst [vmem:[#allocation110_spill] sm:$0xff] %v5027_v10 }
 0x191   :  { %952 = vmatprep.subr.mxu0 %v4987_v19  ;;  %1023 = vmatprep.subr.mxu1 %v4989_v20  ;;  %7048 = vst [vmem:[#allocation106_spill] sm:$0xff] %v5013_v0  ;;  %v5015_v18 = vld [vmem:[#allocation5 + $0x778] sm:$0xff]  ;;  %v489_v19 = vmul.f32 %v4769_v11, %v4769_v11  ;;  %v5021_v20 = vld [vmem:[#allocation5 + $0x370] sm:$0xff] }
 0x192   :  { %953 = vmatpush2.msra.mxu0 %v4993_v23  ;;  %1024 = vmatpush2.msra.mxu1 %v4995_v24  ;;  %7049 = vst [vmem:[#allocation107_spill] sm:$0xff] %v5015_v18  ;;  %7050 = vst [vmem:[#allocation108_spill] sm:$0xff] %v5021_v20  ;;  %v5029_v24 = vld [vmem:[#allocation5 + $0x758] sm:$0xff]  ;;  %v5033_v11 = vld [vmem:[#allocation5 + $0x350] sm:$0xff] }
 0x193   :  { %954 = vmatprep.subr.mxu0 %v4999_v25  ;;  %1025 = vmatprep.subr.mxu1 %v5001_v4  ;;  %7053 = vst [vmem:[#allocation111_spill] sm:$0xff] %v5029_v24  ;;  %7054 = vst [vmem:[#allocation112_spill] sm:$0xff] %v5033_v11  ;;  %v5035_v25 = vld [vmem:[#allocation5 + $0x750] sm:$0xff]  ;;  %v497_v4 = vsel %vm457_vm0, %v487_v1, 0.0  ;;  %v511_v23 = vsel %vm457_vm0, %v489_v19, 0.0  ;;  %v5053_v1 = vld [vmem:[#allocation5 + $0x318] sm:$0xff] }
 0x194   :  { %955 = vmatpush2.msra.mxu0 %v5005_v5  ;;  %1026 = vmatpush2.msra.mxu1 %v5007_v8  ;;  %7055 = vst [vmem:[#allocation113_spill] sm:$0xff] %v5035_v25  ;;  %v5040_v5 = vld [vmem:[#allocation5 + $0x338] sm:$0xff]  ;;  %7060 = vst [vmem:[#allocation118_spill] sm:$0xff] %v5053_v1  ;;  %v5059_v19 = vld [vmem:[#allocation5 + $0x310] sm:$0xff] }
 0x195   :  { %956 = vmatprep.subr.mxu0 %v5013_v0  ;;  %1027 = vmatprep.subr.mxu1 %v5015_v18  ;;  %7056 = vst [vmem:[#allocation114_spill] sm:$0xff] %v5040_v5  ;;  %v5042_v8 = vld [vmem:[#allocation5 + $0x738] sm:$0xff]  ;;  %v5047_v18 = vld [vmem:[#allocation5 + $0x330] sm:$0xff]  ;;  %7062 = vst [vmem:[#allocation120_spill] sm:$0xff] %v5059_v19 }
 0x196   :  { %957 = vmatpush2.msra.mxu0 %v5021_v20  ;;  %1028 = vmatpush2.msra.mxu1 %v5023_v17  ;;  %7057 = vst [vmem:[#allocation115_spill] sm:$0xff] %v5042_v8  ;;  %7058 = vst [vmem:[#allocation116_spill] sm:$0xff] %v5047_v18  ;;  %v5049_v0 = vld [vmem:[#allocation5 + $0x730] sm:$0xff]  ;;  %v5055_v17 = vld [vmem:[#allocation5 + $0x718] sm:$0xff]  ;;  %v498_v20 = vrot.slane %v497_v4, 4 }
 0x197   :  { %958 = vmatprep.subr.mxu0 %v5027_v10  ;;  %1029 = vmatprep.subr.mxu1 %v5029_v24  ;;  %7059 = vst [vmem:[#allocation117_spill] sm:$0xff] %v5049_v0  ;;  %7061 = vst [vmem:[#allocation119_spill] sm:$0xff] %v5055_v17  ;;  %v5061_v24 = vld [vmem:[#allocation5 + $0x710] sm:$0xff]  ;;  %v512_v10 = vrot.slane %v511_v23, 4 }
 0x198   :  { %959 = vmatpush2.msra.mxu0 %v5033_v11  ;;  %1030 = vmatpush2.msra.mxu1 %v5035_v25  ;;  %7063 = vst [vmem:[#allocation121_spill] sm:$0xff] %v5061_v24  ;;  %v5065_v11 = vld [vmem:[#allocation5 + $0x2f8] sm:$0xff] }
 0x199   :  { %960 = vmatprep.subr.mxu0 %v5040_v5  ;;  %1031 = vmatprep.subr.mxu1 %v5042_v8  ;;  %7064 = vst [vmem:[#allocation122_spill] sm:$0xff] %v5065_v11  ;;  %v5067_v25 = vld [vmem:[#allocation5 + $0x6f8] sm:$0xff]  ;;  %v5071_v5 = vld [vmem:[#allocation5 + $0x2f0] sm:$0xff]  ;;  %v513_v13 = vadd.f32 %v512_v10, %v511_v23 }
 0x19a   :  { %961 = vmatpush2.msra.mxu0 %v5047_v18  ;;  %1032 = vmatpush2.msra.mxu1 %v5049_v0  ;;  %7065 = vst [vmem:[#allocation123_spill] sm:$0xff] %v5067_v25  ;;  %7066 = vst [vmem:[#allocation124_spill] sm:$0xff] %v5071_v5  ;;  %v5073_v8 = vld [vmem:[#allocation5 + $0x6f0] sm:$0xff]  ;;  %v5079_v18 = vld [vmem:[#allocation5 + $0x6d8] sm:$0xff] }
 0x19b   :  { %962 = vmatprep.subr.mxu0 %v5053_v1  ;;  %1033 = vmatprep.subr.mxu1 %v5055_v17  ;;  %7067 = vst [vmem:[#allocation125_spill] sm:$0xff] %v5073_v8  ;;  %7069 = vst [vmem:[#allocation127_spill] sm:$0xff] %v5079_v18  ;;  %v5083_v0 = vld [vmem:[#allocation5 + $0x2d0] sm:$0xff]  ;;  %v499_v17 = vadd.f32 %v498_v20, %v497_v4  ;;  %v5101_v20 = vld [vmem:[#allocation5 + $0x298] sm:$0xff] }
 0x19c   :  { %963 = vmatpush2.msra.mxu0 %v5059_v19  ;;  %1034 = vmatpush2.msra.mxu1 %v5061_v24  ;;  %7070 = vst [vmem:[#allocation128_spill] sm:$0xff] %v5083_v0  ;;  %v5085_v1 = vld [vmem:[#allocation5 + $0x6d0] sm:$0xff]  ;;  %v5089_v19 = vld [vmem:[#allocation5 + $0x2b8] sm:$0xff]  ;;  %7076 = vst [vmem:[#allocation134_spill] sm:$0xff] %v5101_v20 }
 0x19d   :  { %964 = vmatprep.subr.mxu0 %v5065_v11  ;;  %1035 = vmatprep.subr.mxu1 %v5067_v25  ;;  %7071 = vst [vmem:[#allocation129_spill] sm:$0xff] %v5085_v1  ;;  %7072 = vst [vmem:[#allocation130_spill] sm:$0xff] %v5089_v19  ;;  %v5091_v24 = vld [vmem:[#allocation5 + $0x6b8] sm:$0xff]  ;;  %v5095_v11 = vld [vmem:[#allocation5 + $0x2b0] sm:$0xff] }
 0x19e   :  { %965 = vmatpush2.msra.mxu0 %v5071_v5  ;;  %1036 = vmatpush2.msra.mxu1 %v5073_v8  ;;  %7073 = vst [vmem:[#allocation131_spill] sm:$0xff] %v5091_v24  ;;  %7074 = vst [vmem:[#allocation132_spill] sm:$0xff] %v5095_v11  ;;  %v5097_v25 = vld [vmem:[#allocation5 + $0x6b0] sm:$0xff]  ;;  %v5103_v4 = vld [vmem:[#allocation5 + $0x698] sm:$0xff] }
 0x19f   :  { %966 = vmatprep.subr.mxu0 %v5077_v14  ;;  %1037 = vmatprep.subr.mxu1 %v5079_v18  ;;  %7075 = vst [vmem:[#allocation133_spill] sm:$0xff] %v5097_v25  ;;  %7077 = vst [vmem:[#allocation135_spill] sm:$0xff] %v5103_v4  ;;  %v5107_v10 = vld [vmem:[#allocation5 + $0x290] sm:$0xff]  ;;  %v500_v18 = vrot.slane %v499_v17, 2  ;;  %v514_v14 = vrot.slane %v513_v13, 2 }
 0x1a0   :  { %967 = vmatpush2.msra.mxu0 %v5083_v0  ;;  %1038 = vmatpush2.msra.mxu1 %v5085_v1  ;;  %7078 = vst [vmem:[#allocation136_spill] sm:$0xff] %v5107_v10  ;;  %v5109_v23 = vld [vmem:[#allocation5 + $0x690] sm:$0xff]  ;;  %v5113_v0 = vld [vmem:[#allocation5 + $0x278] sm:$0xff] }
 0x1a1   :  { %968 = vmatprep.subr.mxu0 %v5089_v19  ;;  %1039 = vmatprep.subr.mxu1 %v5091_v24  ;;  %7079 = vst [vmem:[#allocation137_spill] sm:$0xff] %v5109_v23  ;;  %7080 = vst [vmem:[#allocation138_spill] sm:$0xff] %v5113_v0  ;;  %v5115_v1 = vld [vmem:[#allocation5 + $0x678] sm:$0xff]  ;;  %v5119_v19 = vld [vmem:[#allocation5 + $0x270] sm:$0xff]  ;;  %v515_v5 = vadd.f32 %v514_v14, %v513_v13 }
 0x1a2   :  { %969 = vmatpush2.msra.mxu0 %v5095_v11  ;;  %1040 = vmatpush2.msra.mxu1 %v5097_v25  ;;  %7081 = vst [vmem:[#allocation139_spill] sm:$0xff] %v5115_v1  ;;  %v5121_v24 = vld [vmem:[#allocation5 + $0x670] sm:$0xff]  ;;  %v5125_v11 = vld [vmem:[#allocation5 + $0x258] sm:$0xff] }
 0x1a3   :  { %970 = vmatprep.subr.mxu0 %v5101_v20  ;;  %1041 = vmatprep.subr.mxu1 %v5103_v4  ;;  %v5127_v25 = vld [vmem:[#allocation5 + $0x658] sm:$0xff]  ;;  %v5131_v8 = vld [vmem:[#allocation5 + $0x250] sm:$0xff]  ;;  %v501_v4 = vadd.f32 %v500_v18, %v499_v17 }
 0x1a4   :  { %971 = vmatpush2.msra.mxu0 %v5107_v10  ;;  %1042 = vmatpush2.msra.mxu1 %v5109_v23  ;;  %7082 = vst [vmem:[#allocation140_spill] sm:$0xff] %v5127_v25  ;;  %7083 = vst [vmem:[#allocation141_spill] sm:$0xff] %v5131_v8  ;;  %v5133_v20 = vld [vmem:[#allocation5 + $0x650] sm:$0xff]  ;;  %v5137_v10 = vld [vmem:[#allocation5 + $0x238] sm:$0xff] }
 0x1a5   :  { %972 = vmatprep.subr.mxu0 %v5113_v0  ;;  %1043 = vmatprep.subr.mxu1 %v5115_v1  ;;  %7084 = vst [vmem:[#allocation142_spill] sm:$0xff] %v5133_v20  ;;  %7085 = vst [vmem:[#allocation143_spill] sm:$0xff] %v5137_v10  ;;  %v5139_v23 = vld [vmem:[#allocation5 + $0x638] sm:$0xff]  ;;  %v5143_v0 = vld [vmem:[#allocation5 + $0x230] sm:$0xff] }
 0x1a6   :  { %973 = vmatpush2.msra.mxu0 %v5119_v19  ;;  %1044 = vmatpush2.msra.mxu1 %v5121_v24  ;;  %7086 = vst [vmem:[#allocation144_spill] sm:$0xff] %v5139_v23  ;;  %7087 = vst [vmem:[#allocation145_spill] sm:$0xff] %v5143_v0  ;;  %v5145_v1 = vld [vmem:[#allocation5 + $0x630] sm:$0xff]  ;;  %v5149_v17 = vld [vmem:[#allocation5 + $0x218] sm:$0xff] }
 0x1a7   :  { %974 = vmatprep.subr.mxu0 %v5125_v11  ;;  %1045 = vmatprep.subr.mxu1 %v5127_v25  ;;  %7088 = vst [vmem:[#allocation146_spill] sm:$0xff] %v5145_v1  ;;  %v5151_v18 = vld [vmem:[#allocation5 + $0x618] sm:$0xff]  ;;  %v5155_v13 = vld [vmem:[#allocation5 + $0x210] sm:$0xff]  ;;  %v502_v25 = vrot.slane %v501_v4, 1 }
 0x1a8   :  { %975 = vmatpush2.msra.mxu0 %v5131_v8  ;;  %1046 = vmatpush2.msra.mxu1 %v5133_v20  ;;  %7089 = vst [vmem:[#allocation147_spill] sm:$0xff] %v5151_v18  ;;  %7090 = vst [vmem:[#allocation148_spill] sm:$0xff] %v5155_v13  ;;  %v5157_v14 = vld [vmem:[#allocation5 + $0x610] sm:$0xff]  ;;  %v516_v8 = vrot.slane %v515_v5, 1  ;;  %v4124_v20 = vld [vmem:[#allocation5 + $0x1e0] sm:$0xff] }
 0x1a9   :  { %976 = vmatprep.subr.mxu0 %v5137_v10  ;;  %1047 = vmatprep.subr.mxu1 %v5139_v23  ;;  %7091 = vst [vmem:[#allocation149_spill] sm:$0xff] %v5157_v14  ;;  %v5167_v23 = vadd.f32 %v502_v25, %v501_v4  ;;  %v4122_v10 = vld [vmem:[#allocation5 + $0x1e8] sm:$0xff]  ;;  %v4129_v25 = vld [vmem:[#allocation5 + $0x5c0] sm:$0xff] }
 0x1aa   :  { %977 = vmatpush2.msra.mxu0 %v5143_v0  ;;  %1048 = vmatpush2.msra.mxu1 %v5145_v1  ;;  %v4123_v0 = vld [vmem:[#allocation5 + $0x5e8] sm:$0xff]  ;;  %v5169_v1 = vadd.f32 %v516_v8, %v515_v5  ;;  %v4132_v5 = vld [vmem:[#allocation5 + $0x1a0] sm:$0xff] }
 0x1ab   :  { %978 = vmatprep.subr.mxu0 %v5149_v17  ;;  %1049 = vmatprep.subr.mxu1 %v5151_v18  ;;  %v4125_v18 = vld [vmem:[#allocation5 + $0x5e0] sm:$0xff]  ;;  %v4130_v4 = vld [vmem:[#allocation5 + $0x1a8] sm:$0xff] }
 0x1ac   :  { %979 = vmatpush2.msra.mxu0 %v5155_v13  ;;  %1050 = vmatpush2.msra.mxu1 %v5157_v14  ;;  %v4126_v14 = vld [vmem:[#allocation5 + $0x1c8] sm:$0xff]  ;;  %v4133_v8 = vld [vmem:[#allocation5 + $0x5a0] sm:$0xff] }
 0x1ad   :  { %981 = vmatmul.mubr.f32.vlgmr.msra.gmra.mxu0 %v4775_v63  ;;  %1052 = vmatmul.mubr.f32.vlgmr.msra.gmra.mxu1 %v4777_v62  ;;  %v4127_v63 = vld [vmem:[#allocation5 + $0x5c8] sm:$0xff]  ;;  %v4128_v62 = vld [vmem:[#allocation5 + $0x1c0] sm:$0xff] }
 0x1ae   :  { %1062 = vmatprep.subr.mxu0 %v4122_v10  ;;  %1133 = vmatprep.subr.mxu1 %v4123_v0  ;;  %v4131_v0 = vld [vmem:[#allocation5 + $0x5a8] sm:$0xff] }
 0x1af   :  { %1063 = vmatpush1.msra.mxu0 %v4124_v20  ;;  %1126 = vmatprep.mubr.f32.mxu0 %v5167_v23  ;;  %v4134_v20 = vld [vmem:[#allocation5 + $0x188] sm:$0xff] }
 0x1b0   :  { %1134 = vmatpush1.msra.mxu1 %v4125_v18  ;;  %1197 = vmatprep.mubr.f32.mxu1 %v5169_v1  ;;  %v4135_v10 = vld [vmem:[#allocation5 + $0x588] sm:$0xff]  ;;  %v4136_v18 = vld [vmem:[#allocation5 + $0x180] sm:$0xff] }
 0x1b1   :  { %1064 = vmatprep.subr.mxu0 %v4126_v14  ;;  %1135 = vmatprep.subr.mxu1 %v4127_v63  ;;  %v4137_v14 = vld [vmem:[#allocation5 + $0x580] sm:$0xff]  ;;  %v4138_v63 = vld [vmem:[#allocation5 + $0x168] sm:$0xff] }
 0x1b2   :  { %1065 = vmatpush1.msra.mxu0 %v4128_v62  ;;  %1136 = vmatpush1.msra.mxu1 %v4129_v25  ;;  %v4139_v62 = vld [vmem:[#allocation5 + $0x568] sm:$0xff]  ;;  %v4140_v25 = vld [vmem:[#allocation5 + $0x160] sm:$0xff] }
 0x1b3   :  { %1066 = vmatprep.subr.mxu0 %v4130_v4  ;;  %1137 = vmatprep.subr.mxu1 %v4131_v0  ;;  %v4141_v4 = vld [vmem:[#allocation5 + $0x560] sm:$0xff]  ;;  %v4142_v0 = vld [vmem:[#allocation5 + $0x148] sm:$0xff] }
 0x1b4   :  { %1067 = vmatpush1.msra.mxu0 %v4132_v5  ;;  %1138 = vmatpush1.msra.mxu1 %v4133_v8  ;;  %v4143_v5 = vld [vmem:[#allocation5 + $0x548] sm:$0xff]  ;;  %v4144_v8 = vld [vmem:[#allocation5 + $0x140] sm:$0xff] }
 0x1b5   :  { %1068 = vmatprep.subr.mxu0 %v4134_v20  ;;  %1139 = vmatprep.subr.mxu1 %v4135_v10  ;;  %v4145_v20 = vld [vmem:[#allocation5 + $0x540] sm:$0xff]  ;;  %v4146_v10 = vld [vmem:[#allocation5 + $0x128] sm:$0xff] }
 0x1b6   :  { %1069 = vmatpush1.msra.mxu0 %v4136_v18  ;;  %1140 = vmatpush1.msra.mxu1 %v4137_v14  ;;  %v4147_v18 = vld [vmem:[#allocation5 + $0x528] sm:$0xff]  ;;  %v4148_v14 = vld [vmem:[#allocation5 + $0x120] sm:$0xff] }
 0x1b7   :  { %1070 = vmatprep.subr.mxu0 %v4138_v63  ;;  %1141 = vmatprep.subr.mxu1 %v4139_v62  ;;  %v4149_v63 = vld [vmem:[#allocation5 + $0x520] sm:$0xff]  ;;  %v4150_v62 = vld [vmem:[#allocation5 + $0x108] sm:$0xff] }
 0x1b8   :  { %1071 = vmatpush1.msra.mxu0 %v4140_v25  ;;  %1142 = vmatpush1.msra.mxu1 %v4141_v4  ;;  %v4151_v25 = vld [vmem:[#allocation5 + $0x508] sm:$0xff]  ;;  %v4152_v4 = vld [vmem:[#allocation5 + $0x100] sm:$0xff] }
 0x1b9   :  { %1072 = vmatprep.subr.mxu0 %v4142_v0  ;;  %1143 = vmatprep.subr.mxu1 %v4143_v5  ;;  %v4153_v0 = vld [vmem:[#allocation5 + $0x500] sm:$0xff]  ;;  %v4154_v5 = vld [vmem:[#allocation5 + $0xe8] sm:$0xff] }
 0x1ba   :  { %1073 = vmatpush1.msra.mxu0 %v4144_v8  ;;  %1144 = vmatpush1.msra.mxu1 %v4145_v20  ;;  %v4155_v8 = vld [vmem:[#allocation5 + $0x4e8] sm:$0xff]  ;;  %v4156_v20 = vld [vmem:[#allocation5 + $0xe0] sm:$0xff] }
 0x1bb   :  { %1074 = vmatprep.subr.mxu0 %v4146_v10  ;;  %1145 = vmatprep.subr.mxu1 %v4147_v18  ;;  %v4157_v10 = vld [vmem:[#allocation5 + $0x4e0] sm:$0xff]  ;;  %v4158_v18 = vld [vmem:[#allocation5 + $0xc8] sm:$0xff] }
 0x1bc   :  { %1075 = vmatpush1.msra.mxu0 %v4148_v14  ;;  %1146 = vmatpush1.msra.mxu1 %v4149_v63  ;;  %v4159_v14 = vld [vmem:[#allocation5 + $0x4c8] sm:$0xff]  ;;  %v4160_v63 = vld [vmem:[#allocation5 + $0xc0] sm:$0xff] }
 0x1bd   :  { %1076 = vmatprep.subr.mxu0 %v4150_v62  ;;  %1147 = vmatprep.subr.mxu1 %v4151_v25  ;;  %v4161_v62 = vld [vmem:[#allocation5 + $0x4c0] sm:$0xff]  ;;  %v4162_v25 = vld [vmem:[#allocation5 + $0xa8] sm:$0xff] }
 0x1be   :  { %1077 = vmatpush1.msra.mxu0 %v4152_v4  ;;  %1148 = vmatpush1.msra.mxu1 %v4153_v0  ;;  %v4163_v4 = vld [vmem:[#allocation5 + $0x4a8] sm:$0xff]  ;;  %v4164_v0 = vld [vmem:[#allocation5 + $0xa0] sm:$0xff] }
 0x1bf   :  { %1078 = vmatprep.subr.mxu0 %v4154_v5  ;;  %1149 = vmatprep.subr.mxu1 %v4155_v8  ;;  %v4165_v5 = vld [vmem:[#allocation5 + $0x4a0] sm:$0xff]  ;;  %v4166_v8 = vld [vmem:[#allocation5 + $0x88] sm:$0xff] }
 0x1c0   :  { %1079 = vmatpush1.msra.mxu0 %v4156_v20  ;;  %1150 = vmatpush1.msra.mxu1 %v4157_v10  ;;  %v4167_v20 = vld [vmem:[#allocation5 + $0x488] sm:$0xff]  ;;  %v4168_v10 = vld [vmem:[#allocation5 + $0x80] sm:$0xff] }
 0x1c1   :  { %1080 = vmatprep.subr.mxu0 %v4158_v18  ;;  %1151 = vmatprep.subr.mxu1 %v4159_v14  ;;  %v4169_v18 = vld [vmem:[#allocation5 + $0x480] sm:$0xff]  ;;  %v4170_v14 = vld [vmem:[#allocation5 + $0x68] sm:$0xff] }
 0x1c2   :  { %1081 = vmatpush1.msra.mxu0 %v4160_v63  ;;  %1152 = vmatpush1.msra.mxu1 %v4161_v62  ;;  %v4171_v63 = vld [vmem:[#allocation5 + $0x468] sm:$0xff]  ;;  %v4172_v62 = vld [vmem:[#allocation5 + $0x60] sm:$0xff] }
 0x1c3   :  { %1082 = vmatprep.subr.mxu0 %v4162_v25  ;;  %1153 = vmatprep.subr.mxu1 %v4163_v4  ;;  %v4173_v25 = vld [vmem:[#allocation5 + $0x460] sm:$0xff]  ;;  %v4174_v4 = vld [vmem:[#allocation5 + $0x48] sm:$0xff] }
 0x1c4   :  { %1083 = vmatpush1.msra.mxu0 %v4164_v0  ;;  %1154 = vmatpush1.msra.mxu1 %v4165_v5  ;;  %v4175_v0 = vld [vmem:[#allocation5 + $0x448] sm:$0xff]  ;;  %v4176_v5 = vld [vmem:[#allocation5 + $0x40] sm:$0xff] }
 0x1c5   :  { %1084 = vmatprep.subr.mxu0 %v4166_v8  ;;  %1155 = vmatprep.subr.mxu1 %v4167_v20  ;;  %v4177_v8 = vld [vmem:[#allocation5 + $0x440] sm:$0xff]  ;;  %v4178_v20 = vld [vmem:[#allocation5 + $0x28] sm:$0xff] }
 0x1c6   :  { %1085 = vmatpush1.msra.mxu0 %v4168_v10  ;;  %1156 = vmatpush1.msra.mxu1 %v4169_v18  ;;  %v4179_v10 = vld [vmem:[#allocation5 + $0x428] sm:$0xff]  ;;  %v4180_v18 = vld [vmem:[#allocation5 + $0x20] sm:$0xff] }
 0x1c7   :  { %1086 = vmatprep.subr.mxu0 %v4170_v14  ;;  %1157 = vmatprep.subr.mxu1 %v4171_v63  ;;  %v4181_v14 = vld [vmem:[#allocation5 + $0x420] sm:$0xff]  ;;  %v4182_v63 = vld [vmem:[#allocation5 + $0x8] sm:$0xff] }
 0x1c8   :  { %1087 = vmatpush1.msra.mxu0 %v4172_v62  ;;  %1158 = vmatpush1.msra.mxu1 %v4173_v25  ;;  %v4183_v62 = vld [vmem:[#allocation5 + $0x408] sm:$0xff]  ;;  %v4184_v25 = vld [vmem:[#allocation5] sm:$0xff] }
 0x1c9   :  { %1088 = vmatprep.subr.mxu0 %v4174_v4  ;;  %1159 = vmatprep.subr.mxu1 %v4175_v0  ;;  %v4185_v4 = vld [vmem:[#allocation5 + $0x400] sm:$0xff]  ;;  %v4186_v0 = vld [vmem:[#allocation5 + $0x3e8] sm:$0xff] }
 0x1ca   :  { %1089 = vmatpush1.msra.mxu0 %v4176_v5  ;;  %1160 = vmatpush1.msra.mxu1 %v4177_v8  ;;  %v4187_v5 = vld [vmem:[#allocation5 + $0x7e8] sm:$0xff]  ;;  %v4188_v8 = vld [vmem:[#allocation5 + $0x3e0] sm:$0xff] }
 0x1cb   :  { %1090 = vmatprep.subr.mxu0 %v4178_v20  ;;  %1161 = vmatprep.subr.mxu1 %v4179_v10  ;;  %v4189_v20 = vld [vmem:[#allocation5 + $0x7e0] sm:$0xff]  ;;  %v4190_v10 = vld [vmem:[#allocation5 + $0x3c8] sm:$0xff] }
 0x1cc   :  { %1091 = vmatpush1.msra.mxu0 %v4180_v18  ;;  %1162 = vmatpush1.msra.mxu1 %v4181_v14  ;;  %v4191_v18 = vld [vmem:[#allocation5 + $0x7c8] sm:$0xff]  ;;  %v486_v14 = vmul.f32 %v4759_v21, %v4759_v21  ;;  %v4200_v21 = vld [vmem:[#allocation5 + $0x380] sm:$0xff] }
 0x1cd   :  { %1092 = vmatprep.subr.mxu0 %v4182_v63  ;;  %1163 = vmatprep.subr.mxu1 %v4183_v62  ;;  %v488_v63 = vmul.f32 %v4761_v22, %v4761_v22  ;;  %v4192_v62 = vld [vmem:[#allocation5 + $0x3c0] sm:$0xff]  ;;  %v4206_v13 = vld [vmem:[#allocation5 + $0x348] sm:$0xff] }
 0x1ce   :  { %1093 = vmatpush1.msra.mxu0 %v4184_v25  ;;  %1164 = vmatpush1.msra.mxu1 %v4185_v4  ;;  %v4193_v25 = vld [vmem:[#allocation5 + $0x7c0] sm:$0xff]  ;;  %v4194_v4 = vld [vmem:[#allocation5 + $0x3a8] sm:$0xff] }
 0x1cf   :  { %1094 = vmatprep.subr.mxu0 %v4186_v0  ;;  %1165 = vmatprep.subr.mxu1 %v4187_v5  ;;  %v4195_v0 = vld [vmem:[#allocation5 + $0x7a8] sm:$0xff]  ;;  %v4196_v5 = vld [vmem:[#allocation5 + $0x3a0] sm:$0xff]  ;;  %v504_v22 = vsel %vm457_vm0, %v488_v63, 0.0 }
 0x1d0   :  { %1095 = vmatpush2.msra.mxu0 %v4188_v8  ;;  %1166 = vmatpush2.msra.mxu1 %v4189_v20  ;;  %v4197_v8 = vld [vmem:[#allocation5 + $0x7a0] sm:$0xff]  ;;  %v4198_v20 = vld [vmem:[#allocation5 + $0x388] sm:$0xff] }
 0x1d1   :  { %1096 = vmatprep.subr.mxu0 %v4190_v10  ;;  %1167 = vmatprep.subr.mxu1 %v4191_v18  ;;  %v4199_v10 = vld [vmem:[#allocation5 + $0x788] sm:$0xff]  ;;  %v490_v18 = vsel %vm457_vm0, %v486_v14, 0.0  ;;  %v4208_v14 = vld [vmem:[#allocation5 + $0x340] sm:$0xff] }
 0x1d2   :  { %1097 = vmatpush2.msra.mxu0 %v4192_v62  ;;  %1168 = vmatpush2.msra.mxu1 %v4193_v25  ;;  %v4201_v62 = vld [vmem:[#allocation5 + $0x780] sm:$0xff]  ;;  %v4202_v25 = vld [vmem:[#allocation5 + $0x368] sm:$0xff] }
 0x1d3   :  { %1098 = vmatprep.subr.mxu0 %v4194_v4  ;;  %1169 = vmatprep.subr.mxu1 %v4195_v0  ;;  %v4203_v4 = vld [vmem:[#allocation5 + $0x768] sm:$0xff]  ;;  %v4204_v0 = vld [vmem:[#allocation5 + $0x360] sm:$0xff] }
 0x1d4   :  { %1099 = vmatpush2.msra.mxu0 %v4196_v5  ;;  %1170 = vmatpush2.msra.mxu1 %v4197_v8  ;;  %v4205_v5 = vld [vmem:[#allocation5 + $0x760] sm:$0xff]  ;;  %v491_v8 = vrot.slane %v490_v18, 4 }
 0x1d5   :  { %1100 = vmatprep.subr.mxu0 %v4198_v20  ;;  %1171 = vmatprep.subr.mxu1 %v4199_v10  ;;  %v505_v20 = vrot.slane %v504_v22, 4  ;;  %v4207_v10 = vld [vmem:[#allocation5 + $0x748] sm:$0xff]  ;;  %v4209_v63 = vld [vmem:[#allocation5 + $0x740] sm:$0xff] }
 0x1d6   :  { %1101 = vmatpush2.msra.mxu0 %v4200_v21  ;;  %1172 = vmatpush2.msra.mxu1 %v4201_v62  ;;  %v492_v21 = vadd.f32 %v491_v8, %v490_v18  ;;  %v7132_v18 = vld [vmem:[#allocation70_spill] sm:$0xff]  ;;  %v7137_v8 = vld [vmem:[#allocation75_spill] sm:$0xff] }
 0x1d7   :  { %1102 = vmatprep.subr.mxu0 %v4202_v25  ;;  %1173 = vmatprep.subr.mxu1 %v4203_v4  ;;  %v506_v62 = vadd.f32 %v505_v20, %v504_v22  ;;  %v7120_v22 = vld [vmem:[#allocation58_spill] sm:$0xff]  ;;  %v7133_v25 = vld [vmem:[#allocation71_spill] sm:$0xff]  ;;  %v7134_v4 = vld [vmem:[#allocation72_spill] sm:$0xff] }
 0x1d8   :  { %1103 = vmatpush2.msra.mxu0 %v4204_v0  ;;  %1174 = vmatpush2.msra.mxu1 %v4205_v5  ;;  %v7135_v0 = vld [vmem:[#allocation73_spill] sm:$0xff]  ;;  %v7136_v5 = vld [vmem:[#allocation74_spill] sm:$0xff]  ;;  %v7138_v20 = vld [vmem:[#allocation76_spill] sm:$0xff] }
 0x1d9   :  { %1104 = vmatprep.subr.mxu0 %v4206_v13  ;;  %1175 = vmatprep.subr.mxu1 %v4207_v10  ;;  %v7131_v13 = vld [vmem:[#allocation69_spill] sm:$0xff] }
 0x1da   :  { %1105 = vmatpush2.msra.mxu0 %v4208_v14  ;;  %1176 = vmatpush2.msra.mxu1 %v4209_v63  ;;  %v7139_v10 = vld [vmem:[#allocation77_spill] sm:$0xff]  ;;  %v7140_v14 = vld [vmem:[#allocation78_spill] sm:$0xff]  ;;  %v7141_v63 = vld [vmem:[#allocation79_spill] sm:$0xff] }
 0x1db   :  { %1106 = vmatprep.subr.mxu0 %v4618_v26  ;;  %1177 = vmatprep.subr.mxu1 %v4620_v27  ;;  %v493_v26 = vrot.slane %v492_v21, 2  ;;  %v507_v27 = vrot.slane %v506_v62, 2 }
 0x1dc   :  { %1107 = vmatpush2.msra.mxu0 %v4624_v28  ;;  %1178 = vmatpush2.msra.mxu1 %v4626_v29 }
 0x1dd   :  { %1108 = vmatprep.subr.mxu0 %v4630_v30  ;;  %1179 = vmatprep.subr.mxu1 %v4632_v31  ;;  %v494_v28 = vadd.f32 %v493_v26, %v492_v21  ;;  %v508_v29 = vadd.f32 %v507_v27, %v506_v62  ;;  %v7142_v21 = vld [vmem:[#allocation80_spill] sm:$0xff]  ;;  %v7143_v62 = vld [vmem:[#allocation81_spill] sm:$0xff]  ;;  %v7144_v26 = vld [vmem:[#allocation82_spill] sm:$0xff] }
 0x1de   :  { %1109 = vmatpush2.msra.mxu0 %v4636_v32  ;;  %1180 = vmatpush2.msra.mxu1 %v4638_v33  ;;  %v7092_v32 = vld [vmem:[#allocation22_spill] sm:$0xff]  ;;  %v7093_v33 = vld [vmem:[#allocation23_spill] sm:$0xff] }
 0x1df   :  { %1110 = vmatprep.subr.mxu0 %v4642_v34  ;;  %1181 = vmatprep.subr.mxu1 %v4644_v35  ;;  %v495_v30 = vrot.slane %v494_v28, 1  ;;  %v509_v31 = vrot.slane %v508_v29, 1  ;;  %v7094_v34 = vld [vmem:[#allocation24_spill] sm:$0xff]  ;;  %v7145_v27 = vld [vmem:[#allocation83_spill] sm:$0xff] }
 0x1e0   :  { %1111 = vmatpush2.msra.mxu0 %v4648_v36  ;;  %1182 = vmatpush2.msra.mxu1 %v4650_v37  ;;  %v7095_v37 = vld [vmem:[#allocation25_spill] sm:$0xff] }
 0x1e1   :  { %1112 = vmatprep.subr.mxu0 %v4654_v38  ;;  %1183 = vmatprep.subr.mxu1 %v4656_v39  ;;  %v5217_v35 = vadd.f32 %v495_v30, %v494_v28  ;;  %v5219_v36 = vadd.f32 %v509_v31, %v508_v29  ;;  %v7096_v38 = vld [vmem:[#allocation26_spill] sm:$0xff]  ;;  %v7097_v39 = vld [vmem:[#allocation27_spill] sm:$0xff]  ;;  %v7146_v28 = vld [vmem:[#allocation84_spill] sm:$0xff] }
 0x1e2   :  { %1113 = vmatpush2.msra.mxu0 %v4660_v40  ;;  %1184 = vmatpush2.msra.mxu1 %v4662_v41  ;;  %v7098_v40 = vld [vmem:[#allocation28_spill] sm:$0xff]  ;;  %v7099_v41 = vld [vmem:[#allocation37_spill] sm:$0xff]  ;;  %v7148_v30 = vld [vmem:[#allocation86_spill] sm:$0xff] }
 0x1e3   :  { %1114 = vmatprep.subr.mxu0 %v4666_v42  ;;  %1185 = vmatprep.subr.mxu1 %v4668_v43  ;;  %v7100_v42 = vld [vmem:[#allocation38_spill] sm:$0xff]  ;;  %v7101_v43 = vld [vmem:[#allocation39_spill] sm:$0xff]  ;;  %v7147_v29 = vld [vmem:[#allocation85_spill] sm:$0xff] }
 0x1e4   :  { %1115 = vmatpush2.msra.mxu0 %v4672_v44  ;;  %1186 = vmatpush2.msra.mxu1 %v4674_v45  ;;  %v7102_v44 = vld [vmem:[#allocation40_spill] sm:$0xff]  ;;  %v7103_v45 = vld [vmem:[#allocation41_spill] sm:$0xff]  ;;  %v7149_v31 = vld [vmem:[#allocation87_spill] sm:$0xff] }
 0x1e5   :  { %1116 = vmatprep.subr.mxu0 %v4678_v46  ;;  %1187 = vmatprep.subr.mxu1 %v4680_v47  ;;  %v7104_v46 = vld [vmem:[#allocation42_spill] sm:$0xff]  ;;  %v7105_v47 = vld [vmem:[#allocation43_spill] sm:$0xff] }
 0x1e6   :  { %1117 = vmatpush2.msra.mxu0 %v4684_v48  ;;  %1188 = vmatpush2.msra.mxu1 %v4686_v49  ;;  %v7106_v48 = vld [vmem:[#allocation44_spill] sm:$0xff]  ;;  %v7107_v49 = vld [vmem:[#allocation45_spill] sm:$0xff] }
 0x1e7   :  { %1118 = vmatprep.subr.mxu0 %v4688_v50  ;;  %1189 = vmatprep.subr.mxu1 %v4692_v51  ;;  %v7108_v50 = vld [vmem:[#allocation46_spill] sm:$0xff]  ;;  %v7109_v51 = vld [vmem:[#allocation47_spill] sm:$0xff] }
 0x1e8   :  { %1119 = vmatpush2.msra.mxu0 %v4694_v52  ;;  %1190 = vmatpush2.msra.mxu1 %v4696_v53  ;;  %v7110_v52 = vld [vmem:[#allocation48_spill] sm:$0xff]  ;;  %v7111_v53 = vld [vmem:[#allocation49_spill] sm:$0xff] }
 0x1e9   :  { %1120 = vmatprep.subr.mxu0 %v4700_v54  ;;  %1191 = vmatprep.subr.mxu1 %v4702_v55  ;;  %v7112_v54 = vld [vmem:[#allocation50_spill] sm:$0xff]  ;;  %v7113_v55 = vld [vmem:[#allocation51_spill] sm:$0xff] }
 0x1ea   :  { %1121 = vmatpush2.msra.mxu0 %v4704_v56  ;;  %1192 = vmatpush2.msra.mxu1 %v4708_v57  ;;  %v7114_v56 = vld [vmem:[#allocation52_spill] sm:$0xff]  ;;  %v7115_v57 = vld [vmem:[#allocation53_spill] sm:$0xff] }
 0x1eb   :  { %1122 = vmatprep.subr.mxu0 %v4710_v58  ;;  %1193 = vmatprep.subr.mxu1 %v4712_v59  ;;  %v7116_v58 = vld [vmem:[#allocation54_spill] sm:$0xff]  ;;  %v7117_v59 = vld [vmem:[#allocation55_spill] sm:$0xff] }
 0x1ec   :  { %1123 = vmatpush2.msra.mxu0 %v4716_v60  ;;  %1194 = vmatpush2.msra.mxu1 %v7092_v32  ;;  %v7118_v60 = vld [vmem:[#allocation56_spill] sm:$0xff] }
 0x1ed   :  { %1124 = vmatprep.subr.mxu0 %v7093_v33  ;;  %1195 = vmatprep.subr.mxu1 %v7094_v34  ;;  %v7150_v32 = vld [vmem:[#allocation88_spill] sm:$0xff]  ;;  %v7151_v33 = vld [vmem:[#allocation89_spill] sm:$0xff]  ;;  %v7152_v34 = vld [vmem:[#allocation90_spill] sm:$0xff] }
 0x1ee   :  { %1125 = vmatpush2.msra.mxu0 %v7095_v37  ;;  %1196 = vmatpush2.msra.mxu1 %v7096_v38  ;;  %v7153_v37 = vld [vmem:[#allocation91_spill] sm:$0xff]  ;;  %v7154_v38 = vld [vmem:[#allocation92_spill] sm:$0xff] }
 0x1ef   :  { %1127 = vmatmul.mubr.f32.vlgmr.msra.gmra.mxu0 %v5217_v35  ;;  %1198 = vmatmul.mubr.f32.vlgmr.msra.gmra.mxu1 %v5219_v36 }
 0x1f0   :  { %1204 = vmatprep.subr.mxu0 %v7097_v39  ;;  %1275 = vmatprep.subr.mxu1 %v7098_v40  ;;  %v7155_v39 = vld [vmem:[#allocation93_spill] sm:$0xff]  ;;  %v7156_v40 = vld [vmem:[#allocation94_spill] sm:$0xff] }
 0x1f1   :  { %1205 = vmatpush1.msra.mxu0 %v4779_v61  ;;  %1268 = vmatprep.mubr.f32.mxu0 %v5167_v23  ;;  %v7119_v61 = vld [vmem:[#allocation57_spill] sm:$0xff]  ;;  %v7130_v23 = vld [vmem:[#allocation68_spill] sm:$0xff] }
 0x1f2   :  { %1276 = vmatpush1.msra.mxu1 %v4781_v16  ;;  %1339 = vmatprep.mubr.f32.mxu1 %v5169_v1  ;;  %v7121_v16 = vld [vmem:[#allocation59_spill] sm:$0xff] }
 0x1f3   :  { %1206 = vmatprep.subr.mxu0 %v4783_v12  ;;  %1277 = vmatprep.subr.mxu1 %v4787_v3  ;;  %v7122_v12 = vld [vmem:[#allocation60_spill] sm:$0xff]  ;;  %v7123_v3 = vld [vmem:[#allocation61_spill] sm:$0xff]  ;;  %v7129_v1 = vld [vmem:[#allocation67_spill] sm:$0xff] }
 0x1f4   :  { %1207 = vmatpush1.msra.mxu0 %v4791_v2  ;;  %1278 = vmatpush1.msra.mxu1 %v4793_v6  ;;  %v7124_v2 = vld [vmem:[#allocation62_spill] sm:$0xff]  ;;  %v7125_v6 = vld [vmem:[#allocation63_spill] sm:$0xff] }
 0x1f5   :  { %1208 = vmatprep.subr.mxu0 %v4796_v7  ;;  %1279 = vmatprep.subr.mxu1 %v4798_v9  ;;  %v7126_v7 = vld [vmem:[#allocation64_spill] sm:$0xff]  ;;  %v7127_v9 = vld [vmem:[#allocation65_spill] sm:$0xff] }
 0x1f6   :  { %1209 = vmatpush1.msra.mxu0 %v4801_v15  ;;  %1280 = vmatpush1.msra.mxu1 %v7099_v41  ;;  %v7128_v15 = vld [vmem:[#allocation66_spill] sm:$0xff]  ;;  %v7157_v41 = vld [vmem:[#allocation95_spill] sm:$0xff] }
 0x1f7   :  { %1210 = vmatprep.subr.mxu0 %v7100_v42  ;;  %1281 = vmatprep.subr.mxu1 %v7101_v43  ;;  %v7158_v42 = vld [vmem:[#allocation96_spill] sm:$0xff]  ;;  %v7159_v43 = vld [vmem:[#allocation97_spill] sm:$0xff] }
 0x1f8   :  { %1211 = vmatpush1.msra.mxu0 %v7102_v44  ;;  %1282 = vmatpush1.msra.mxu1 %v7103_v45  ;;  %v7160_v44 = vld [vmem:[#allocation98_spill] sm:$0xff]  ;;  %v7161_v45 = vld [vmem:[#allocation99_spill] sm:$0xff] }
 0x1f9   :  { %1212 = vmatprep.subr.mxu0 %v7104_v46  ;;  %1283 = vmatprep.subr.mxu1 %v7105_v47  ;;  %v7162_v46 = vld [vmem:[#allocation100_spill] sm:$0xff]  ;;  %v7163_v47 = vld [vmem:[#allocation101_spill] sm:$0xff] }
 0x1fa   :  { %1213 = vmatpush1.msra.mxu0 %v7106_v48  ;;  %1284 = vmatpush1.msra.mxu1 %v7107_v49  ;;  %v7164_v48 = vld [vmem:[#allocation102_spill] sm:$0xff]  ;;  %v7165_v49 = vld [vmem:[#allocation103_spill] sm:$0xff] }
 0x1fb   :  { %1214 = vmatprep.subr.mxu0 %v7108_v50  ;;  %1285 = vmatprep.subr.mxu1 %v7109_v51  ;;  %v7166_v50 = vld [vmem:[#allocation104_spill] sm:$0xff]  ;;  %v7167_v51 = vld [vmem:[#allocation105_spill] sm:$0xff] }
 0x1fc   :  { %1215 = vmatpush1.msra.mxu0 %v7110_v52  ;;  %1286 = vmatpush1.msra.mxu1 %v7111_v53  ;;  %v7168_v52 = vld [vmem:[#allocation106_spill] sm:$0xff]  ;;  %v7169_v53 = vld [vmem:[#allocation107_spill] sm:$0xff] }
 0x1fd   :  { %1216 = vmatprep.subr.mxu0 %v7112_v54  ;;  %1287 = vmatprep.subr.mxu1 %v7113_v55  ;;  %v7170_v54 = vld [vmem:[#allocation108_spill] sm:$0xff]  ;;  %v7171_v55 = vld [vmem:[#allocation109_spill] sm:$0xff] }
 0x1fe   :  { %1217 = vmatpush1.msra.mxu0 %v7114_v56  ;;  %1288 = vmatpush1.msra.mxu1 %v7115_v57  ;;  %v7172_v56 = vld [vmem:[#allocation110_spill] sm:$0xff]  ;;  %v7173_v57 = vld [vmem:[#allocation111_spill] sm:$0xff] }
 0x1ff   :  { %1218 = vmatprep.subr.mxu0 %v7116_v58  ;;  %1289 = vmatprep.subr.mxu1 %v7117_v59  ;;  %v7174_v58 = vld [vmem:[#allocation112_spill] sm:$0xff]  ;;  %v7175_v59 = vld [vmem:[#allocation113_spill] sm:$0xff] }
 0x200   :  { %1219 = vmatpush1.msra.mxu0 %v7118_v60  ;;  %1290 = vmatpush1.msra.mxu1 %v7119_v61  ;;  %v7176_v60 = vld [vmem:[#allocation114_spill] sm:$0xff]  ;;  %v7177_v61 = vld [vmem:[#allocation115_spill] sm:$0xff] }
 0x201   :  { %1220 = vmatprep.subr.mxu0 %v7120_v22  ;;  %1291 = vmatprep.subr.mxu1 %v7121_v16  ;;  %v7178_v22 = vld [vmem:[#allocation116_spill] sm:$0xff]  ;;  %v7179_v16 = vld [vmem:[#allocation117_spill] sm:$0xff] }
 0x202   :  { %1221 = vmatpush1.msra.mxu0 %v7122_v12  ;;  %1292 = vmatpush1.msra.mxu1 %v7123_v3  ;;  %v7180_v12 = vld [vmem:[#allocation118_spill] sm:$0xff]  ;;  %v7181_v3 = vld [vmem:[#allocation119_spill] sm:$0xff] }
 0x203   :  { %1222 = vmatprep.subr.mxu0 %v7124_v2  ;;  %1293 = vmatprep.subr.mxu1 %v7125_v6  ;;  %v7182_v2 = vld [vmem:[#allocation120_spill] sm:$0xff]  ;;  %v7183_v6 = vld [vmem:[#allocation121_spill] sm:$0xff] }
 0x204   :  { %1223 = vmatpush1.msra.mxu0 %v7126_v7  ;;  %1294 = vmatpush1.msra.mxu1 %v7127_v9  ;;  %v7184_v7 = vld [vmem:[#allocation122_spill] sm:$0xff]  ;;  %v7185_v9 = vld [vmem:[#allocation123_spill] sm:$0xff] }
 0x205   :  { %1224 = vmatprep.subr.mxu0 %v7128_v15  ;;  %1295 = vmatprep.subr.mxu1 %v7129_v1  ;;  %v7186_v15 = vld [vmem:[#allocation124_spill] sm:$0xff]  ;;  %v7187_v1 = vld [vmem:[#allocation125_spill] sm:$0xff] }
 0x206   :  { %1225 = vmatpush1.msra.mxu0 %v7130_v23  ;;  %1296 = vmatpush1.msra.mxu1 %v7131_v13  ;;  %v7188_v23 = vld [vmem:[#allocation126_spill] sm:$0xff]  ;;  %v7189_v13 = vld [vmem:[#allocation127_spill] sm:$0xff] }
 0x207   :  { %1226 = vmatprep.subr.mxu0 %v7132_v18  ;;  %1297 = vmatprep.subr.mxu1 %v7133_v25  ;;  %v7190_v18 = vld [vmem:[#allocation128_spill] sm:$0xff]  ;;  %v7191_v25 = vld [vmem:[#allocation129_spill] sm:$0xff] }
 0x208   :  { %1227 = vmatpush1.msra.mxu0 %v7134_v4  ;;  %1298 = vmatpush1.msra.mxu1 %v7135_v0  ;;  %v7192_v4 = vld [vmem:[#allocation130_spill] sm:$0xff]  ;;  %v7193_v0 = vld [vmem:[#allocation131_spill] sm:$0xff] }
 0x209   :  { %1228 = vmatprep.subr.mxu0 %v7136_v5  ;;  %1299 = vmatprep.subr.mxu1 %v7137_v8  ;;  %v7194_v5 = vld [vmem:[#allocation132_spill] sm:$0xff]  ;;  %v7195_v8 = vld [vmem:[#allocation133_spill] sm:$0xff] }
 0x20a   :  { %1229 = vmatpush1.msra.mxu0 %v7138_v20  ;;  %1300 = vmatpush1.msra.mxu1 %v7139_v10  ;;  %v7196_v20 = vld [vmem:[#allocation134_spill] sm:$0xff]  ;;  %v7197_v10 = vld [vmem:[#allocation135_spill] sm:$0xff] }
 0x20b   :  { %1230 = vmatprep.subr.mxu0 %v7140_v14  ;;  %1301 = vmatprep.subr.mxu1 %v7141_v63  ;;  %v7198_v14 = vld [vmem:[#allocation136_spill] sm:$0xff]  ;;  %v7199_v63 = vld [vmem:[#allocation137_spill] sm:$0xff] }
 0x20c   :  { %1231 = vmatpush1.msra.mxu0 %v7142_v21  ;;  %1302 = vmatpush1.msra.mxu1 %v7143_v62  ;;  %v7200_v21 = vld [vmem:[#allocation138_spill] sm:$0xff]  ;;  %v7201_v62 = vld [vmem:[#allocation139_spill] sm:$0xff] }
 0x20d   :  { %1232 = vmatprep.subr.mxu0 %v7144_v26  ;;  %1303 = vmatprep.subr.mxu1 %v7145_v27  ;;  %v7202_v26 = vld [vmem:[#allocation140_spill] sm:$0xff]  ;;  %v7203_v27 = vld [vmem:[#allocation141_spill] sm:$0xff] }
 0x20e   :  { %1233 = vmatpush1.msra.mxu0 %v7146_v28  ;;  %1304 = vmatpush1.msra.mxu1 %v7147_v29  ;;  %v7204_v28 = vld [vmem:[#allocation142_spill] sm:$0xff]  ;;  %v7205_v29 = vld [vmem:[#allocation143_spill] sm:$0xff] }
 0x20f   :  { %1234 = vmatprep.subr.mxu0 %v7148_v30  ;;  %1305 = vmatprep.subr.mxu1 %v7149_v31  ;;  %v7206_v30 = vld [vmem:[#allocation144_spill] sm:$0xff]  ;;  %v7207_v31 = vld [vmem:[#allocation145_spill] sm:$0xff] }
 0x210   :  { %1235 = vmatpush1.msra.mxu0 %v7150_v32  ;;  %1306 = vmatpush1.msra.mxu1 %v7151_v33  ;;  %v7208_v32 = vld [vmem:[#allocation146_spill] sm:$0xff]  ;;  %v7211_v33 = vld [vmem:[#allocation149_spill] sm:$0xff] }
 0x211   :  { %1236 = vmatprep.subr.mxu0 %v7152_v34  ;;  %1307 = vmatprep.subr.mxu1 %v7153_v37  ;;  %v1490_v34 = vld [vmem:[#allocation7 + $0xf0] sm:$0xff]  ;;  %v1489_v37 = vld [vmem:[#allocation7 + $0xe8] sm:$0xff] }
 0x212   :  { %1237 = vmatpush2.msra.mxu0 %v7154_v38  ;;  %1308 = vmatpush2.msra.mxu1 %v7155_v39  ;;  %v1488_v38 = vld [vmem:[#allocation7 + $0xe0] sm:$0xff]  ;;  %v1487_v39 = vld [vmem:[#allocation7 + $0xd8] sm:$0xff] }
 0x213   :  { %1238 = vmatprep.subr.mxu0 %v7156_v40  ;;  %1309 = vmatprep.subr.mxu1 %v7157_v41  ;;  %v1486_v40 = vld [vmem:[#allocation7 + $0xd0] sm:$0xff]  ;;  %v1484_v41 = vld [vmem:[#allocation7 + $0xc0] sm:$0xff] }
 0x214   :  { %1239 = vmatpush2.msra.mxu0 %v7158_v42  ;;  %1310 = vmatpush2.msra.mxu1 %v7159_v43  ;;  %v1483_v42 = vld [vmem:[#allocation7 + $0xb8] sm:$0xff]  ;;  %v1482_v43 = vld [vmem:[#allocation7 + $0xb0] sm:$0xff] }
 0x215   :  { %1240 = vmatprep.subr.mxu0 %v7160_v44  ;;  %1311 = vmatprep.subr.mxu1 %v7161_v45  ;;  %v1481_v44 = vld [vmem:[#allocation7 + $0xa8] sm:$0xff]  ;;  %v1478_v45 = vld [vmem:[#allocation7 + $0x90] sm:$0xff] }
 0x216   :  { %1241 = vmatpush2.msra.mxu0 %v7162_v46  ;;  %1312 = vmatpush2.msra.mxu1 %v7163_v47  ;;  %v1477_v46 = vld [vmem:[#allocation7 + $0x88] sm:$0xff]  ;;  %v1476_v47 = vld [vmem:[#allocation7 + $0x80] sm:$0xff] }
 0x217   :  { %1242 = vmatprep.subr.mxu0 %v7164_v48  ;;  %1313 = vmatprep.subr.mxu1 %v7165_v49  ;;  %v1475_v48 = vld [vmem:[#allocation7 + $0x78] sm:$0xff]  ;;  %v1474_v49 = vld [vmem:[#allocation7 + $0x70] sm:$0xff] }
 0x218   :  { %1243 = vmatpush2.msra.mxu0 %v7166_v50  ;;  %1314 = vmatpush2.msra.mxu1 %v7167_v51  ;;  %v1473_v50 = vld [vmem:[#allocation7 + $0x68] sm:$0xff]  ;;  %v1472_v51 = vld [vmem:[#allocation7 + $0x60] sm:$0xff] }
 0x219   :  { %1244 = vmatprep.subr.mxu0 %v7168_v52  ;;  %1315 = vmatprep.subr.mxu1 %v7169_v53  ;;  %v1471_v52 = vld [vmem:[#allocation7 + $0x58] sm:$0xff]  ;;  %v1470_v53 = vld [vmem:[#allocation7 + $0x50] sm:$0xff] }
 0x21a   :  { %1245 = vmatpush2.msra.mxu0 %v7170_v54  ;;  %1316 = vmatpush2.msra.mxu1 %v7171_v55  ;;  %v1469_v54 = vld [vmem:[#allocation7 + $0x48] sm:$0xff]  ;;  %v1468_v55 = vld [vmem:[#allocation7 + $0x40] sm:$0xff] }
 0x21b   :  { %1246 = vmatprep.subr.mxu0 %v7172_v56  ;;  %1317 = vmatprep.subr.mxu1 %v7173_v57  ;;  %v1467_v56 = vld [vmem:[#allocation7 + $0x38] sm:$0xff]  ;;  %v1466_v57 = vld [vmem:[#allocation7 + $0x30] sm:$0xff] }
 0x21c   :  { %1247 = vmatpush2.msra.mxu0 %v7174_v58  ;;  %1318 = vmatpush2.msra.mxu1 %v7175_v59  ;;  %v1465_v58 = vld [vmem:[#allocation7 + $0x28] sm:$0xff]  ;;  %v1464_v59 = vld [vmem:[#allocation7 + $0x20] sm:$0xff] }
 0x21d   :  { %1248 = vmatprep.subr.mxu0 %v7176_v60  ;;  %1319 = vmatprep.subr.mxu1 %v7177_v61  ;;  %v1463_v60 = vld [vmem:[#allocation7 + $0x18] sm:$0xff]  ;;  %v1462_v61 = vld [vmem:[#allocation7 + $0x10] sm:$0xff] }
 0x21e   :  { %1249 = vmatpush2.msra.mxu0 %v7178_v22  ;;  %1320 = vmatpush2.msra.mxu1 %v7179_v16  ;;  %v1461_v22 = vld [vmem:[#allocation7 + $0x8] sm:$0xff]  ;;  %v1460_v16 = vld [vmem:[#allocation7] sm:$0xff] }
 0x21f   :  { %1250 = vmatprep.subr.mxu0 %v7180_v12  ;;  %1321 = vmatprep.subr.mxu1 %v7181_v3  ;;  %v1523_v12 = vld [vmem:[#allocation7 + $0x1f8] sm:$0xff]  ;;  %v1522_v3 = vld [vmem:[#allocation7 + $0x1f0] sm:$0xff] }
 0x220   :  { %1251 = vmatpush2.msra.mxu0 %v7182_v2  ;;  %1322 = vmatpush2.msra.mxu1 %v7183_v6  ;;  %v1521_v2 = vld [vmem:[#allocation7 + $0x1e8] sm:$0xff]  ;;  %v1555_v6 = vld [vmem:[#allocation7 + $0x2f8] sm:$0xff] }
 0x221   :  { %1252 = vmatprep.subr.mxu0 %v7184_v7  ;;  %1323 = vmatprep.subr.mxu1 %v7185_v9  ;;  %v1554_v7 = vld [vmem:[#allocation7 + $0x2f0] sm:$0xff]  ;;  %v1553_v9 = vld [vmem:[#allocation7 + $0x2e8] sm:$0xff] }
 0x222   :  { %1253 = vmatpush2.msra.mxu0 %v7186_v15  ;;  %1324 = vmatpush2.msra.mxu1 %v7187_v1  ;;  %v1520_v15 = vld [vmem:[#allocation7 + $0x1e0] sm:$0xff] }
 0x223   :  { %1254 = vmatprep.subr.mxu0 %v7188_v23  ;;  %1325 = vmatprep.subr.mxu1 %v7189_v13  ;;  %v1552_v1 = vld [vmem:[#allocation7 + $0x2e0] sm:$0xff]  ;;  %v1519_v23 = vld [vmem:[#allocation7 + $0x1d8] sm:$0xff] }
 0x224   :  { %1255 = vmatpush2.msra.mxu0 %v7190_v18  ;;  %1326 = vmatpush2.msra.mxu1 %v7191_v25  ;;  %v1551_v13 = vld [vmem:[#allocation7 + $0x2d8] sm:$0xff]  ;;  %v1518_v18 = vld [vmem:[#allocation7 + $0x1d0] sm:$0xff] }
 0x225   :  { %1256 = vmatprep.subr.mxu0 %v7192_v4  ;;  %1327 = vmatprep.subr.mxu1 %v7193_v0  ;;  %v1550_v25 = vld [vmem:[#allocation7 + $0x2d0] sm:$0xff]  ;;  %v1517_v4 = vld [vmem:[#allocation7 + $0x1c8] sm:$0xff] }
 0x226   :  { %1257 = vmatpush2.msra.mxu0 %v7194_v5  ;;  %1328 = vmatpush2.msra.mxu1 %v7195_v8  ;;  %v1549_v0 = vld [vmem:[#allocation7 + $0x2c8] sm:$0xff]  ;;  %v1516_v5 = vld [vmem:[#allocation7 + $0x1c0] sm:$0xff] }
 0x227   :  { %1258 = vmatprep.subr.mxu0 %v7196_v20  ;;  %1329 = vmatprep.subr.mxu1 %v7197_v10  ;;  %v1548_v8 = vld [vmem:[#allocation7 + $0x2c0] sm:$0xff]  ;;  %v1515_v20 = vld [vmem:[#allocation7 + $0x1b8] sm:$0xff] }
 0x228   :  { %1259 = vmatpush2.msra.mxu0 %v7198_v14  ;;  %1330 = vmatpush2.msra.mxu1 %v7199_v63  ;;  %v1547_v10 = vld [vmem:[#allocation7 + $0x2b8] sm:$0xff]  ;;  %v1514_v14 = vld [vmem:[#allocation7 + $0x1b0] sm:$0xff] }
 0x229   :  { %1260 = vmatprep.subr.mxu0 %v7200_v21  ;;  %1331 = vmatprep.subr.mxu1 %v7201_v62  ;;  %v1546_v63 = vld [vmem:[#allocation7 + $0x2b0] sm:$0xff]  ;;  %v1513_v21 = vld [vmem:[#allocation7 + $0x1a8] sm:$0xff] }
 0x22a   :  { %1261 = vmatpush2.msra.mxu0 %v5119_v19  ;;  %1332 = vmatpush2.msra.mxu1 %v5121_v24  ;;  %v7209_v19 = vld [vmem:[#allocation147_spill] sm:$0xff]  ;;  %v1491_v24 = vld [vmem:[#allocation7 + $0xf8] sm:$0xff] }
 0x22b   :  { %1262 = vmatprep.subr.mxu0 %v5125_v11  ;;  %1333 = vmatprep.subr.mxu1 %v7202_v26  ;;  %v7210_v11 = vld [vmem:[#allocation148_spill] sm:$0xff]  ;;  %v1545_v62 = vld [vmem:[#allocation7 + $0x2a8] sm:$0xff]  ;;  %v1512_v26 = vld [vmem:[#allocation7 + $0x1a0] sm:$0xff] }
 0x22c   :  { %1263 = vmatpush2.msra.mxu0 %v7203_v27  ;;  %1334 = vmatpush2.msra.mxu1 %v7204_v28  ;;  %v1544_v27 = vld [vmem:[#allocation7 + $0x2a0] sm:$0xff]  ;;  %v1511_v28 = vld [vmem:[#allocation7 + $0x198] sm:$0xff] }
 0x22d   :  { %1264 = vmatprep.subr.mxu0 %v7205_v29  ;;  %1335 = vmatprep.subr.mxu1 %v7206_v30  ;;  %v1543_v29 = vld [vmem:[#allocation7 + $0x298] sm:$0xff]  ;;  %v1510_v30 = vld [vmem:[#allocation7 + $0x190] sm:$0xff] }
 0x22e   :  { %1265 = vmatpush2.msra.mxu0 %v7207_v31  ;;  %1336 = vmatpush2.msra.mxu1 %v7208_v32  ;;  %v1542_v31 = vld [vmem:[#allocation7 + $0x290] sm:$0xff]  ;;  %v1509_v32 = vld [vmem:[#allocation7 + $0x188] sm:$0xff] }
 0x22f   :  { %1266 = vmatprep.subr.mxu0 %v5149_v17  ;;  %1337 = vmatprep.subr.mxu1 %v7209_v19  ;;  %v1485_v17 = vld [vmem:[#allocation7 + $0xc8] sm:$0xff] }
 0x230   :  { %1267 = vmatpush2.msra.mxu0 %v7210_v11  ;;  %1338 = vmatpush2.msra.mxu1 %v7211_v33  ;;  %v1541_v19 = vld [vmem:[#allocation7 + $0x288] sm:$0xff]  ;;  %v1540_v11 = vld [vmem:[#allocation7 + $0x280] sm:$0xff]  ;;  %v1507_v33 = vld [vmem:[#allocation7 + $0x178] sm:$0xff] }
 0x231   :  { %1269 = vmatmul.mubr.f32.vlgmr.msra.gmra.mxu0 %v5217_v35  ;;  %1340 = vmatmul.mubr.f32.vlgmr.msra.gmra.mxu1 %v5219_v36  ;;  %v1480_v35 = vld [vmem:[#allocation7 + $0xa0] sm:$0xff]  ;;  %v1479_v36 = vld [vmem:[#allocation7 + $0x98] sm:$0xff] }
 0x232   :  { %1600 = vmatprep.subr.mxu0 %v1491_v24  ;;  %1671 = vmatprep.subr.mxu1 %v1555_v6  ;;  %v1508_v24 = vld [vmem:[#allocation7 + $0x180] sm:$0xff] }
 0x233   :  { %1601 = vmatpush1.msra.mxu0 %v1490_v34  ;;  %1672 = vmatpush1.msra.mxu1 %v1554_v7  ;;  %v1539_v34 = vld [vmem:[#allocation7 + $0x278] sm:$0xff]  ;;  %v1492_v7 = vld [vmem:[#allocation7 + $0x100] sm:$0xff] }
 0x234   :  { %1602 = vmatprep.subr.mxu0 %v1489_v37  ;;  %1673 = vmatprep.subr.mxu1 %v1553_v9  ;;  %v1506_v37 = vld [vmem:[#allocation7 + $0x170] sm:$0xff] }
 0x235   :  { %1603 = vmatpush1.msra.mxu0 %v1488_v38  ;;  %1674 = vmatpush1.msra.mxu1 %v1552_v1  ;;  %v1538_v38 = vld [vmem:[#allocation7 + $0x270] sm:$0xff] }
 0x236   :  { %1604 = vmatprep.subr.mxu0 %v1487_v39  ;;  %1675 = vmatprep.subr.mxu1 %v1551_v13  ;;  %v1505_v39 = vld [vmem:[#allocation7 + $0x168] sm:$0xff]  ;;  %v1524_v13 = vld [vmem:[#allocation7 + $0x200] sm:$0xff] }
 0x237   :  { %1605 = vmatpush1.msra.mxu0 %v1486_v40  ;;  %1676 = vmatpush1.msra.mxu1 %v1550_v25  ;;  %v1537_v40 = vld [vmem:[#allocation7 + $0x268] sm:$0xff]  ;;  %v1586_v25 = vld [vmem:[#allocation7 + $0x3f0] sm:$0xff] }
 0x238   :  { %1606 = vmatprep.subr.mxu0 %v1485_v17  ;;  %1677 = vmatprep.subr.mxu1 %v1549_v0  ;;  %v1504_v17 = vld [vmem:[#allocation7 + $0x160] sm:$0xff] }
 0x239   :  { %1607 = vmatpush1.msra.mxu0 %v1484_v41  ;;  %1678 = vmatpush1.msra.mxu1 %v1548_v8  ;;  %v1536_v41 = vld [vmem:[#allocation7 + $0x260] sm:$0xff]  ;;  %v1582_v8 = vld [vmem:[#allocation7 + $0x3d0] sm:$0xff] }
 0x23a   :  { %1608 = vmatprep.subr.mxu0 %v1483_v42  ;;  %1679 = vmatprep.subr.mxu1 %v1547_v10  ;;  %v1503_v42 = vld [vmem:[#allocation7 + $0x158] sm:$0xff]  ;;  %v1584_v0 = vld [vmem:[#allocation7 + $0x3e0] sm:$0xff] }
 0x23b   :  { %1609 = vmatpush1.msra.mxu0 %v1482_v43  ;;  %1680 = vmatpush1.msra.mxu1 %v1546_v63  ;;  %v1535_v43 = vld [vmem:[#allocation7 + $0x258] sm:$0xff]  ;;  %v1580_v10 = vld [vmem:[#allocation7 + $0x3c0] sm:$0xff]  ;;  %v1578_v63 = vld [vmem:[#allocation7 + $0x3b0] sm:$0xff] }
 0x23c   :  { %1610 = vmatprep.subr.mxu0 %v1481_v44  ;;  %1681 = vmatprep.subr.mxu1 %v1545_v62  ;;  %v1502_v44 = vld [vmem:[#allocation7 + $0x150] sm:$0xff]  ;;  %v1576_v62 = vld [vmem:[#allocation7 + $0x3a0] sm:$0xff] }
 0x23d   :  { %1611 = vmatpush1.msra.mxu0 %v1480_v35  ;;  %1682 = vmatpush1.msra.mxu1 %v1544_v27  ;;  %v1534_v35 = vld [vmem:[#allocation7 + $0x250] sm:$0xff] }
 0x23e   :  { %1612 = vmatprep.subr.mxu0 %v1479_v36  ;;  %1683 = vmatprep.subr.mxu1 %v1543_v29  ;;  %v1501_v36 = vld [vmem:[#allocation7 + $0x148] sm:$0xff]  ;;  %v1574_v27 = vld [vmem:[#allocation7 + $0x390] sm:$0xff]  ;;  %v1572_v29 = vld [vmem:[#allocation7 + $0x380] sm:$0xff] }
 0x23f   :  { %1613 = vmatpush1.msra.mxu0 %v1478_v45  ;;  %1684 = vmatpush1.msra.mxu1 %v1542_v31  ;;  %v1533_v45 = vld [vmem:[#allocation7 + $0x248] sm:$0xff]  ;;  %v1570_v31 = vld [vmem:[#allocation7 + $0x370] sm:$0xff] }
 0x240   :  { %1614 = vmatprep.subr.mxu0 %v1477_v46  ;;  %1685 = vmatprep.subr.mxu1 %v1541_v19  ;;  %v1500_v46 = vld [vmem:[#allocation7 + $0x140] sm:$0xff] }
 0x241   :  { %1615 = vmatpush1.msra.mxu0 %v1476_v47  ;;  %1686 = vmatpush1.msra.mxu1 %v1540_v11  ;;  %v1532_v47 = vld [vmem:[#allocation7 + $0x240] sm:$0xff]  ;;  %v1566_v11 = vld [vmem:[#allocation7 + $0x350] sm:$0xff] }
 0x242   :  { %1616 = vmatprep.subr.mxu0 %v1475_v48  ;;  %1687 = vmatprep.subr.mxu1 %v1539_v34  ;;  %v5357_v48 = vpop.f32.mrf.mxu0  ;;  %v1568_v19 = vld [vmem:[#allocation7 + $0x360] sm:$0xff] }
 0x243   :  { %1617 = vmatpush1.msra.mxu0 %v1474_v49  ;;  %1688 = vmatpush1.msra.mxu1 %v1538_v38  ;;  %v5359_v49 = vpop.f32.mrf.mxu1  ;;  %v1564_v34 = vld [vmem:[#allocation7 + $0x340] sm:$0xff]  ;;  %v1562_v38 = vld [vmem:[#allocation7 + $0x330] sm:$0xff] }
 0x244   :  { %1618 = vmatprep.subr.mxu0 %v1473_v50  ;;  %1689 = vmatprep.subr.mxu1 %v1537_v40  ;;  %v1499_v50 = vld [vmem:[#allocation7 + $0x138] sm:$0xff]  ;;  %v1560_v40 = vld [vmem:[#allocation7 + $0x320] sm:$0xff] }
 0x245   :  { %1619 = vmatpush1.msra.mxu0 %v1472_v51  ;;  %1690 = vmatpush1.msra.mxu1 %v1536_v41  ;;  %v1531_v51 = vld [vmem:[#allocation7 + $0x238] sm:$0xff]  ;;  %v1558_v41 = vld [vmem:[#allocation7 + $0x310] sm:$0xff] }
 0x246   :  { %1620 = vmatprep.subr.mxu0 %v1471_v52  ;;  %1691 = vmatprep.subr.mxu1 %v1535_v43  ;;  %v1498_v52 = vld [vmem:[#allocation7 + $0x130] sm:$0xff]  ;;  %v1556_v43 = vld [vmem:[#allocation7 + $0x300] sm:$0xff] }
 0x247   :  { %1621 = vmatpush1.msra.mxu0 %v1470_v53  ;;  %1692 = vmatpush1.msra.mxu1 %v1534_v35  ;;  %v1530_v53 = vld [vmem:[#allocation7 + $0x230] sm:$0xff] }
 0x248   :  { %1622 = vmatprep.subr.mxu0 %v1469_v54  ;;  %1693 = vmatprep.subr.mxu1 %v1533_v45  ;;  %v1497_v54 = vld [vmem:[#allocation7 + $0x128] sm:$0xff] }
 0x249   :  { %1623 = vmatpush1.msra.mxu0 %v1468_v55  ;;  %1694 = vmatpush1.msra.mxu1 %v1532_v47  ;;  %v1529_v55 = vld [vmem:[#allocation7 + $0x228] sm:$0xff] }
 0x24a   :  { %1624 = vmatprep.subr.mxu0 %v1467_v56  ;;  %v1496_v56 = vld [vmem:[#allocation7 + $0x120] sm:$0xff]  ;;  %1695 = vmatprep.subr.mxu1 %v1531_v51 }
 0x24b   :  { %1625 = vmatpush1.msra.mxu0 %v1466_v57  ;;  %v1528_v57 = vld [vmem:[#allocation7 + $0x220] sm:$0xff]  ;;  %1696 = vmatpush1.msra.mxu1 %v1530_v53 }
 0x24c   :  { %1626 = vmatprep.subr.mxu0 %v1465_v58  ;;  %v5361_v58 = vpop.f32.mrf.mxu0  ;;  %1697 = vmatprep.subr.mxu1 %v1529_v55 }
 0x24d   :  { %1627 = vmatpush1.msra.mxu0 %v1464_v59  ;;  %v5363_v59 = vpop.f32.mrf.mxu1  ;;  %1698 = vmatpush1.msra.mxu1 %v1528_v57 }
 0x24e   :  { %1628 = vmatprep.subr.mxu0 %v1463_v60  ;;  %v1495_v60 = vld [vmem:[#allocation7 + $0x118] sm:$0xff]  ;;  %v914_v35 = vadd.f32 %v5363_v59, %v5361_v58 }
 0x24f   :  { %1629 = vmatpush1.msra.mxu0 %v1462_v61  ;;  %v1527_v61 = vld [vmem:[#allocation7 + $0x218] sm:$0xff] }
 0x250   :  { %1630 = vmatprep.subr.mxu0 %v1461_v22  ;;  %v1494_v22 = vld [vmem:[#allocation7 + $0x110] sm:$0xff]  ;;  %1699 = vmatprep.subr.mxu1 %v1527_v61  ;;  %v1059_v47 = vmul.f32 0.5, %v914_v35  ;;  %v7217_v35 = vld [vmem:[#allocation30_spill] sm:$0xff] }
 0x251   :  { %1631 = vmatpush1.msra.mxu0 %v1460_v16  ;;  %v1526_v16 = vld [vmem:[#allocation7 + $0x210] sm:$0xff] }
 0x252   :  { %1632 = vmatprep.subr.mxu0 %v1523_v12  ;;  %1700 = vmatpush1.msra.mxu1 %v1526_v16  ;;  %v3999_v16 = vld [vmem:[%s6972_s27 + $0x1] ss:$4 sm:$0xf] }
 0x253   :  { %1633 = vmatpush2.msra.mxu0 %v1522_v3 }
 0x254   :  { %1634 = vmatprep.subr.mxu0 %v1521_v2  ;;  %v1493_v2 = vld [vmem:[#allocation7 + $0x108] sm:$0xff] }
 0x255   :  { %1635 = vmatpush2.msra.mxu0 %v1520_v15 }
 0x256   :  { %1636 = vmatprep.subr.mxu0 %v1519_v23  ;;  %v1525_v23 = vld [vmem:[#allocation7 + $0x208] sm:$0xff] }
 0x257   :  { %1637 = vmatpush2.msra.mxu0 %v1518_v18  ;;  %1701 = vmatprep.subr.mxu1 %v1525_v23  ;;  %v1587_v18 = vld [vmem:[#allocation7 + $0x3f8] sm:$0xff]  ;;  %v7214_v23 = vld [vmem:[#allocation35_spill] sm:$0xff] }
 0x258   :  { %1638 = vmatprep.subr.mxu0 %v1517_v4  ;;  %1702 = vmatpush1.msra.mxu1 %v1524_v13  ;;  %v1585_v4 = vld [vmem:[#allocation7 + $0x3e8] sm:$0xff] }
 0x259   :  { %1639 = vmatpush2.msra.mxu0 %v1516_v5  ;;  %1703 = vmatprep.subr.mxu1 %v1587_v18  ;;  %v1583_v5 = vld [vmem:[#allocation7 + $0x3d8] sm:$0xff] }
 0x25a   :  { %1640 = vmatprep.subr.mxu0 %v1515_v20  ;;  %1704 = vmatpush2.msra.mxu1 %v1586_v25  ;;  %v1581_v20 = vld [vmem:[#allocation7 + $0x3c8] sm:$0xff] }
 0x25b   :  { %1641 = vmatpush2.msra.mxu0 %v1514_v14  ;;  %1705 = vmatprep.subr.mxu1 %v1585_v4  ;;  %v1579_v14 = vld [vmem:[#allocation7 + $0x3b8] sm:$0xff]  ;;  %v7215_v25 = vld [vmem:[#allocation31_spill] sm:$0xff] }
 0x25c   :  { %1642 = vmatprep.subr.mxu0 %v1513_v21  ;;  %1706 = vmatpush2.msra.mxu1 %v1584_v0  ;;  %v1577_v21 = vld [vmem:[#allocation7 + $0x3a8] sm:$0xff]  ;;  %v1416_v4 = vrot.slane %v3999_v16, %v7215_v25 }
 0x25d   :  { %1643 = vmatpush2.msra.mxu0 %v1512_v26  ;;  %1707 = vmatprep.subr.mxu1 %v1583_v5  ;;  %v1575_v26 = vld [vmem:[#allocation7 + $0x398] sm:$0xff]  ;;  %v4000_v0 = vld [vmem:[%s6972_s27 + $0x2] ss:$4 sm:$0xf]  ;;  %s4474_s27 = smov [#allocation14]  }
 0x25e   :  { %1644 = vmatprep.subr.mxu0 %v1511_v28  ;;  %1708 = vmatpush2.msra.mxu1 %v1582_v8  ;;  %v1573_v28 = vld [vmem:[#allocation7 + $0x388] sm:$0xff]  ;;  %s3980_s30 = sshll.u32 %s4474_s27, 4  ;;  %s3981_s30 = int_to_ptr.vmem [resolvable:$true] %s3980_s30 }
 0x25f   :  { %1645 = vmatpush2.msra.mxu0 %v1510_v30  ;;  %1709 = vmatprep.subr.mxu1 %v1581_v20  ;;  %v1571_v30 = vld [vmem:[#allocation7 + $0x378] sm:$0xff]  ;;  %v1443_v20 = vrot.slane %v4000_v0, %v7215_v25 }
 0x260   :  { %1646 = vmatprep.subr.mxu0 %v1509_v32  ;;  %1710 = vmatpush2.msra.mxu1 %v1580_v10  ;;  %v1569_v32 = vld [vmem:[#allocation7 + $0x368] sm:$0xff] }
 0x261   :  { %1647 = vmatpush2.msra.mxu0 %v1508_v24  ;;  %1711 = vmatprep.subr.mxu1 %v1579_v14  ;;  %v1567_v24 = vld [vmem:[#allocation7 + $0x358] sm:$0xff] }
 0x262   :  { %1648 = vmatprep.subr.mxu0 %v1507_v33  ;;  %1712 = vmatpush2.msra.mxu1 %v1578_v63  ;;  %v1565_v33 = vld [vmem:[#allocation7 + $0x348] sm:$0xff] }
 0x263   :  { %1649 = vmatpush2.msra.mxu0 %v1506_v37  ;;  %1713 = vmatprep.subr.mxu1 %v1577_v21  ;;  %v1563_v37 = vld [vmem:[#allocation7 + $0x338] sm:$0xff] }
 0x264   :  { %1650 = vmatprep.subr.mxu0 %v1505_v39  ;;  %1714 = vmatpush2.msra.mxu1 %v1576_v62  ;;  %v1561_v39 = vld [vmem:[#allocation7 + $0x328] sm:$0xff] }
 0x265   :  { %1651 = vmatpush2.msra.mxu0 %v1504_v17  ;;  %1715 = vmatprep.subr.mxu1 %v1575_v26  ;;  %v1559_v17 = vld [vmem:[#allocation7 + $0x318] sm:$0xff] }
 0x266   :  { %1652 = vmatprep.subr.mxu0 %v1503_v42  ;;  %1716 = vmatpush2.msra.mxu1 %v1574_v27  ;;  %v1557_v42 = vld [vmem:[#allocation7 + $0x308] sm:$0xff] }
 0x267   :  { %1653 = vmatpush2.msra.mxu0 %v1502_v44  ;;  %1717 = vmatprep.subr.mxu1 %v1573_v28  ;;  %v912_v44 = vadd.f32 %v5359_v49, %v5357_v48  ;;  %v7212_v49 = vld [vmem:[#allocation29_spill] sm:$0xff] }
 0x268   :  { %1654 = vmatprep.subr.mxu0 %v1501_v36  ;;  %1718 = vmatpush2.msra.mxu1 %v1572_v29  ;;  %v1373_v59 = vrot.slane %v1059_v47, %v7212_v49  ;;  %v1439_v14 = vrot.slane %v4000_v0, %v7212_v49 }
 0x269   :  { %1655 = vmatpush2.msra.mxu0 %v1500_v46  ;;  %1719 = vmatprep.subr.mxu1 %v1571_v30  ;;  %v1058_v36 = vmul.f32 0.5, %v912_v44 }
 0x26a   :  { %1656 = vmatprep.subr.mxu0 %v1499_v50  ;;  %1720 = vmatpush2.msra.mxu1 %v1570_v31  ;;  %v1383_v13 = vsub.f32 %v7214_v23, %v1373_v59  ;;  %v1802_v59 = vld [vmem:[%s7220_s25 + $0xe0] sm:$0xff] }
 0x26b   :  { %1657 = vmatpush2.msra.mxu0 %v1498_v52  ;;  %1721 = vmatprep.subr.mxu1 %v1569_v32  ;;  %v1350_v53 = vmul.f32 %v1058_v36, %v1058_v36  ;;  %v1369_v58 = vrot.slane %v1058_v36, %v7212_v49  ;;  %v1420_v36 = vrot.slane %v3999_v16, %v7217_v35  ;;  %v1794_v23 = vld [vmem:[%s7220_s25 + $0xa0] sm:$0xff] }
 0x26c   :  { %1658 = vmatprep.subr.mxu0 %v1497_v54  ;;  %1722 = vmatpush2.msra.mxu1 %v1568_v19 }
 0x26d   :  { %v982_v12 = vpop.f32.mrf.mxu0  ;;  %v1053_v3 = vpop.f32.mrf.mxu1  ;;  %1659 = vmatpush2.msra.mxu0 %v1496_v56  ;;  %1723 = vmatprep.subr.mxu1 %v1567_v24  ;;  %v1351_v56 = vmul.f32 %v1059_v47, %v1059_v47 }
 0x26e   :  { %v5365_v6 = vadd.f32 %v1053_v3, %v982_v12  ;;  %1660 = vmatprep.subr.mxu0 %v1495_v60  ;;  %1724 = vmatpush2.msra.mxu1 %v1566_v11  ;;  %v7213_v3 = vld [vmem:[#allocation33_spill] sm:$0xff] }
 0x26f   :  { %v984_v9 = vpop.f32.mrf.mxu0  ;;  %v1055_v15 = vpop.f32.mrf.mxu1  ;;  %1661 = vmatpush2.msra.mxu0 %v1494_v22  ;;  %1725 = vmatprep.subr.mxu1 %v1565_v33 }
 0x270   :  { %v5367_v1 = vadd.f32 %v1055_v15, %v984_v9  ;;  %1662 = vmatprep.subr.mxu0 %v1493_v2  ;;  %1726 = vmatpush2.msra.mxu1 %v1564_v34  ;;  %v1382_v2 = vsub.f32 %v7213_v3, %v1369_v58  ;;  %v1412_v15 = vrot.slane %v3999_v16, %v7212_v49  ;;  %v1060_v26 = vmul.f32 0.5, %v5365_v6  ;;  %v1803_v58 = vld [vmem:[%s7220_s25 + $0xe8] sm:$0xff] }
 0x271   :  { %1663 = vmatpush2.msra.mxu0 %v1492_v7  ;;  %1727 = vmatprep.subr.mxu1 %v1563_v37  ;;  %v1799_v3 = vld [vmem:[%s7220_s25 + $0xc8] sm:$0xff] }
 0x272   :  { %1728 = vmatpush2.msra.mxu1 %v1562_v38  ;;  %v1061_v29 = vmul.f32 0.5, %v5367_v1  ;;  %v1352_v19 = vmul.f32 %v1060_v26, %v1060_v26  ;;  %v1377_v6 = vrot.slane %v1060_v26, %v7212_v49  ;;  %v7216_v1 = vld [vmem:[#allocation34_spill] sm:$0xff]  ;;  %v1781_v26 = vld [vmem:[%s7220_s25 + $0x38] sm:$0xff] }
 0x273   :  { %1729 = vmatprep.subr.mxu1 %v1561_v39 }
 0x274   :  { %1730 = vmatpush2.msra.mxu1 %v1560_v40  ;;  %v1353_v33 = vmul.f32 %v1061_v29, %v1061_v29 }
 0x275   :  { %1731 = vmatprep.subr.mxu1 %v1559_v17  ;;  %v1381_v17 = vrot.slane %v1061_v29, %v7212_v49  ;;  %v1778_v29 = vld [vmem:[%s7220_s25 + $0x20] sm:$0xff] }
 0x276   :  { %1732 = vmatpush2.msra.mxu1 %v1558_v41 }
 0x277   :  { %1733 = vmatprep.subr.mxu1 %v1557_v42  ;;  %v1384_v42 = vsub.f32 %v7216_v1, %v1377_v6  ;;  %v1829_v6 = vld [vmem:[%s7220_s25 + $0x1b8] sm:$0xff]  ;;  %v1826_v1 = vld [vmem:[%s7220_s25 + $0x1a0] sm:$0xff] }
 0x278   :  { %1734 = vmatpush2.msra.mxu1 %v1556_v43 }
 0x2af   :  { %v1128_v45 = vpop.f32.mrf.mxu0  ;;  %v1199_v46 = vpop.f32.mrf.mxu1 }
 0x2b0   :  { %v1200_v50 = vadd.f32 %v1199_v46, %v1128_v45  ;;  %v7218_v45 = vld [vmem:[#allocation36_spill] sm:$0xff] }
 0x2b1   :  { %v1130_v51 = vpop.f32.mrf.mxu0  ;;  %v1201_v52 = vpop.f32.mrf.mxu1  ;;  %v1385_v46 = vsub.f32 %v7218_v45, %v1381_v17  ;;  %v1828_v17 = vld [vmem:[%s7220_s25 + $0x1b0] sm:$0xff]  ;;  %v1821_v45 = vld [vmem:[%s7220_s25 + $0x178] sm:$0xff] }
 0x2b2   :  { %v1346_v54 = vmul.f32 0.5, %v1200_v50  ;;  %v1202_v55 = vadd.f32 %v1201_v52, %v1130_v51  ;;  %v7219_v50 = vld [vmem:[#allocation32_spill] sm:$0xff] }
 0x2b3   :  { %v1424_v51 = vrot.slane %v3999_v16, %v7219_v50  ;;  %v1801_v16 = vld [vmem:[%s7220_s25 + $0xd8] sm:$0xff] }
 0x2b4   :  { %v1354_v57 = vsub.f32 %v1346_v54, %v1350_v53  ;;  %v1347_v60 = vmul.f32 0.5, %v1202_v55  ;;  %v1451_v54 = vrot.slane %v4000_v0, %v7219_v50 }
 0x2b6   :  { %v1358_v61 = vadd.f32 1e-05, %v1354_v57  ;;  %v1355_v22 = vsub.f32 %v1347_v60, %v1351_v56  ;;  %v1447_v56 = vrot.slane %v4000_v0, %v7217_v35  ;;  %v1790_v0 = vld [vmem:[%s7220_s25 + $0x80] sm:$0xff] }
 0x2b8   :  { %4092 = vrsqrt.f32 %v1358_v61  ;;  %v1359_v48 = vadd.f32 1e-05, %v1355_v22  ;;  %v1805_v22 = vld [vmem:[%s7220_s25 + $0xf8] sm:$0xff] }
 0x2b9   :  { %1838 = vmatprep.subr.mxu0 %v1805_v22  ;;  %1911 = vmatprep.subr.mxu1 %v1805_v22  ;;  %v1809_v22 = vld [vmem:[%s7220_s25 + $0x118] sm:$0xff] }
 0x2ba   :  { %4094 = vrsqrt.f32 %v1359_v48  ;;  %v1804_v48 = vld [vmem:[%s7220_s25 + $0xf0] sm:$0xff] }
 0x2c5   :  { %v4093_v12 = vpop.eup %4092 }
 0x2c6   :  { %v1389_v7 = vrot.slane %v4093_v12, %v7212_v49  ;;  %v1800_v12 = vld [vmem:[%s7220_s25 + $0xd0] sm:$0xff] }
 0x2c7   :  { %v4095_v9 = vpop.eup %4094 }
 0x2c8   :  { %v1393_v18 = vrot.slane %v4095_v9, %v7212_v49  ;;  %v1402_v5 = vmul.f32 %v1389_v7, %v1382_v2  ;;  %v1798_v2 = vld [vmem:[%s7220_s25 + $0xc0] sm:$0xff]  ;;  %v1797_v7 = vld [vmem:[%s7220_s25 + $0xb8] sm:$0xff]  ;;  %v1796_v9 = vld [vmem:[%s7220_s25 + $0xb0] sm:$0xff] }
 0x2ca   :  { %v1403_v8 = vmul.f32 %v1393_v18, %v1383_v13  ;;  %v1429_v10 = vmul.f32 %v1412_v15, %v1402_v5  ;;  %v1795_v15 = vld [vmem:[%s7220_s25 + $0xa8] sm:$0xff]  ;;  %v1793_v13 = vld [vmem:[%s7220_s25 + $0x98] sm:$0xff]  ;;  %v1792_v18 = vld [vmem:[%s7220_s25 + $0x90] sm:$0xff] }
 0x2cb   :  { %v1789_v5 = vld [vmem:[%s7220_s25 + $0x78] sm:$0xff] }
 0x2cc   :  { %v1430_v63 = vmul.f32 %v1416_v4, %v1403_v8  ;;  %v1456_v62 = vadd.f32 %v1439_v14, %v1429_v10  ;;  %v1791_v4 = vld [vmem:[%s7220_s25 + $0x88] sm:$0xff]  ;;  %v1788_v8 = vld [vmem:[%s7220_s25 + $0x70] sm:$0xff]  ;;  %v1786_v10 = vld [vmem:[%s7220_s25 + $0x60] sm:$0xff] }
 0x2cd   :  { %v1785_v14 = vld [vmem:[%s7220_s25 + $0x58] sm:$0xff] }
 0x2ce   :  { %v1457_v21 = vadd.f32 %v1443_v20, %v1430_v63  ;;  %v1787_v20 = vld [vmem:[%s7220_s25 + $0x68] sm:$0xff]  ;;  %v1784_v63 = vld [vmem:[%s7220_s25 + $0x50] sm:$0xff] }
 0x2d0   :  { %1664 = vmatprep.mubr.f32.mxu0 %v1457_v21  ;;  %v1783_v21 = vld [vmem:[%s7220_s25 + $0x48] sm:$0xff] }
 0x2d1   :  { %1665 = vmatmul.mubr.f32.vlgmr.msra.gmra.mxu0 %v1456_v62  ;;  %v1782_v62 = vld [vmem:[%s7220_s25 + $0x40] sm:$0xff] }
 0x2d2   :  { %1839 = vmatpush1.msra.mxu0 %v1804_v48 }
 0x2d3   :  { %1840 = vmatprep.subr.mxu0 %v1803_v58 }
 0x2d4   :  { %1841 = vmatpush1.msra.mxu0 %v1802_v59 }
 0x2d5   :  { %1842 = vmatprep.subr.mxu0 %v1801_v16 }
 0x2d6   :  { %1843 = vmatpush1.msra.mxu0 %v1800_v12 }
 0x2d7   :  { %1844 = vmatprep.subr.mxu0 %v1799_v3 }
 0x2d8   :  { %1845 = vmatpush1.msra.mxu0 %v1798_v2 }
 0x2d9   :  { %1846 = vmatprep.subr.mxu0 %v1797_v7 }
 0x2da   :  { %1847 = vmatpush1.msra.mxu0 %v1796_v9 }
 0x2db   :  { %1848 = vmatprep.subr.mxu0 %v1795_v15 }
 0x2dc   :  { %1849 = vmatpush1.msra.mxu0 %v1794_v23 }
 0x2dd   :  { %1850 = vmatprep.subr.mxu0 %v1793_v13 }
 0x2de   :  { %1851 = vmatpush1.msra.mxu0 %v1792_v18 }
 0x2df   :  { %1852 = vmatprep.subr.mxu0 %v1791_v4 }
 0x2e0   :  { %1853 = vmatpush1.msra.mxu0 %v1790_v0 }
 0x2e1   :  { %1854 = vmatprep.subr.mxu0 %v1789_v5 }
 0x2e2   :  { %1855 = vmatpush1.msra.mxu0 %v1788_v8 }
 0x2e3   :  { %1856 = vmatprep.subr.mxu0 %v1787_v20 }
 0x2e4   :  { %1857 = vmatpush1.msra.mxu0 %v1786_v10 }
 0x2e5   :  { %1858 = vmatprep.subr.mxu0 %v1785_v14 }
 0x2e6   :  { %1859 = vmatpush1.msra.mxu0 %v1784_v63 }
 0x2e7   :  { %1860 = vmatprep.subr.mxu0 %v1783_v21 }
 0x2e8   :  { %1861 = vmatpush1.msra.mxu0 %v1782_v62 }
 0x2e9   :  { %1862 = vmatprep.subr.mxu0 %v1781_v26 }
 0x2f1   :  { %v1270_v27 = vpop.f32.mrf.mxu0  ;;  %v1341_v28 = vpop.f32.mrf.mxu1 }
 0x2f2   :  { %v1342_v30 = vadd.f32 %v1341_v28, %v1270_v27  ;;  %v1780_v27 = vld [vmem:[%s7220_s25 + $0x30] sm:$0xff]  ;;  %v1779_v28 = vld [vmem:[%s7220_s25 + $0x28] sm:$0xff] }
 0x2f3   :  { %v1272_v31 = vpop.f32.mrf.mxu0  ;;  %v1343_v32 = vpop.f32.mrf.mxu1  ;;  %1863 = vmatpush1.msra.mxu0 %v1780_v27 }
 0x2f4   :  { %v1348_v24 = vmul.f32 0.5, %v1342_v30  ;;  %v1344_v11 = vadd.f32 %v1343_v32, %v1272_v31  ;;  %v1777_v30 = vld [vmem:[%s7220_s25 + $0x18] sm:$0xff]  ;;  %1864 = vmatprep.subr.mxu0 %v1779_v28  ;;  %v1776_v31 = vld [vmem:[%s7220_s25 + $0x10] sm:$0xff]  ;;  %v1775_v32 = vld [vmem:[%s7220_s25 + $0x8] sm:$0xff] }
 0x2f5   :  { %1865 = vmatpush1.msra.mxu0 %v1778_v29 }
 0x2f6   :  { %v1356_v34 = vsub.f32 %v1348_v24, %v1352_v19  ;;  %v1349_v37 = vmul.f32 0.5, %v1344_v11  ;;  %1866 = vmatprep.subr.mxu0 %v1777_v30  ;;  %v1774_v19 = vld [vmem:[%s7220_s25] sm:$0xff]  ;;  %v1837_v24 = vld [vmem:[%s7220_s25 + $0x1f8] sm:$0xff]  ;;  %v1836_v11 = vld [vmem:[%s7220_s25 + $0x1f0] sm:$0xff] }
 0x2f7   :  { %1867 = vmatpush1.msra.mxu0 %v1776_v31 }
 0x2f8   :  { %v1360_v38 = vadd.f32 1e-05, %v1356_v34  ;;  %v1357_v39 = vsub.f32 %v1349_v37, %v1353_v33  ;;  %1868 = vmatprep.subr.mxu0 %v1775_v32  ;;  %v1835_v33 = vld [vmem:[%s7220_s25 + $0x1e8] sm:$0xff]  ;;  %v1834_v34 = vld [vmem:[%s7220_s25 + $0x1e0] sm:$0xff]  ;;  %v1833_v37 = vld [vmem:[%s7220_s25 + $0x1d8] sm:$0xff] }
 0x2f9   :  { %1869 = vmatpush1.msra.mxu0 %v1774_v19 }
 0x2fa   :  { %4096 = vrsqrt.f32 %v1360_v38  ;;  %v1361_v40 = vadd.f32 1e-05, %v1357_v39  ;;  %1870 = vmatprep.subr.mxu0 %v1837_v24  ;;  %v1832_v38 = vld [vmem:[%s7220_s25 + $0x1d0] sm:$0xff]  ;;  %v1831_v39 = vld [vmem:[%s7220_s25 + $0x1c8] sm:$0xff] }
 0x2fb   :  { %1871 = vmatpush2.msra.mxu0 %v1836_v11 }
 0x2fc   :  { %4098 = vrsqrt.f32 %v1361_v40  ;;  %1872 = vmatprep.subr.mxu0 %v1835_v33  ;;  %v1830_v40 = vld [vmem:[%s7220_s25 + $0x1c0] sm:$0xff] }
 0x2fd   :  { %1873 = vmatpush2.msra.mxu0 %v1834_v34 }
 0x2fe   :  { %1874 = vmatprep.subr.mxu0 %v1833_v37 }
 0x2ff   :  { %1875 = vmatpush2.msra.mxu0 %v1832_v38 }
 0x300   :  { %1876 = vmatprep.subr.mxu0 %v1831_v39 }
 0x301   :  { %1877 = vmatpush2.msra.mxu0 %v1830_v40 }
 0x302   :  { %1878 = vmatprep.subr.mxu0 %v1829_v6 }
 0x303   :  { %1879 = vmatpush2.msra.mxu0 %v1828_v17 }
 0x307   :  { %v4097_v41 = vpop.eup %4096 }
 0x308   :  { %v1397_v43 = vrot.slane %v4097_v41, %v7212_v49  ;;  %v1827_v41 = vld [vmem:[%s7220_s25 + $0x1a8] sm:$0xff] }
 0x309   :  { %v4099_v44 = vpop.eup %4098  ;;  %1880 = vmatprep.subr.mxu0 %v1827_v41 }
 0x30a   :  { %v1401_v47 = vrot.slane %v4099_v44, %v7212_v49  ;;  %v1404_v52 = vmul.f32 %v1397_v43, %v1384_v42  ;;  %1881 = vmatpush2.msra.mxu0 %v1826_v1  ;;  %v1825_v42 = vld [vmem:[%s7220_s25 + $0x198] sm:$0xff]  ;;  %v1824_v43 = vld [vmem:[%s7220_s25 + $0x190] sm:$0xff]  ;;  %v1823_v44 = vld [vmem:[%s7220_s25 + $0x188] sm:$0xff] }
 0x30b   :  { %1882 = vmatprep.subr.mxu0 %v1825_v42 }
 0x30c   :  { %v1405_v53 = vmul.f32 %v1401_v47, %v1385_v46  ;;  %v1431_v55 = vmul.f32 %v1420_v36, %v1404_v52  ;;  %1883 = vmatpush2.msra.mxu0 %v1824_v43  ;;  %v1822_v36 = vld [vmem:[%s7220_s25 + $0x180] sm:$0xff]  ;;  %v1820_v46 = vld [vmem:[%s7220_s25 + $0x170] sm:$0xff]  ;;  %v1819_v47 = vld [vmem:[%s7220_s25 + $0x168] sm:$0xff] }
 0x30d   :  { %1884 = vmatprep.subr.mxu0 %v1823_v44  ;;  %v1817_v52 = vld [vmem:[%s7220_s25 + $0x158] sm:$0xff] }
 0x30e   :  { %v1432_v57 = vmul.f32 %v1424_v51, %v1405_v53  ;;  %v1458_v61 = vadd.f32 %v1447_v56, %v1431_v55  ;;  %1885 = vmatpush2.msra.mxu0 %v1822_v36  ;;  %v1818_v51 = vld [vmem:[%s7220_s25 + $0x160] sm:$0xff]  ;;  %v1816_v53 = vld [vmem:[%s7220_s25 + $0x150] sm:$0xff]  ;;  %v1813_v56 = vld [vmem:[%s7220_s25 + $0x138] sm:$0xff] }
 0x30f   :  { %1886 = vmatprep.subr.mxu0 %v1821_v45  ;;  %v1814_v55 = vld [vmem:[%s7220_s25 + $0x140] sm:$0xff] }
 0x310   :  { %v1459_v60 = vadd.f32 %v1451_v54, %v1432_v57  ;;  %1887 = vmatpush2.msra.mxu0 %v1820_v46  ;;  %v1815_v54 = vld [vmem:[%s7220_s25 + $0x148] sm:$0xff]  ;;  %v1812_v57 = vld [vmem:[%s7220_s25 + $0x130] sm:$0xff] }
 0x311   :  { %1888 = vmatprep.subr.mxu0 %v1819_v47 }
 0x312   :  { %1735 = vmatprep.mubr.f32.mxu1 %v1459_v60  ;;  %1889 = vmatpush2.msra.mxu0 %v1818_v51  ;;  %v1811_v60 = vld [vmem:[%s7220_s25 + $0x128] sm:$0xff] }
 0x313   :  { %1736 = vmatmul.mubr.f32.vlgmr.msra.gmra.mxu1 %v1458_v61  ;;  %1890 = vmatprep.subr.mxu0 %v1817_v52  ;;  %v1810_v61 = vld [vmem:[%s7220_s25 + $0x120] sm:$0xff] }
 0x314   :  { %1912 = vmatpush1.msra.mxu1 %v1804_v48  ;;  %1891 = vmatpush2.msra.mxu0 %v1816_v53  ;;  %v1808_v48 = vld [vmem:[%s7220_s25 + $0x110] sm:$0xff] }
 0x315   :  { %1913 = vmatprep.subr.mxu1 %v1803_v58  ;;  %1892 = vmatprep.subr.mxu0 %v1815_v54  ;;  %v1807_v58 = vld [vmem:[%s7220_s25 + $0x108] sm:$0xff] }
 0x316   :  { %1914 = vmatpush1.msra.mxu1 %v1802_v59  ;;  %1893 = vmatpush2.msra.mxu0 %v1814_v55  ;;  %v1806_v59 = vld [vmem:[%s7220_s25 + $0x100] sm:$0xff] }
 0x317   :  { %1915 = vmatprep.subr.mxu1 %v1801_v16  ;;  %1894 = vmatprep.subr.mxu0 %v1813_v56  ;;  %v1588_v16 = vld [vmem:[%s6667_s6] ss:$4 sm:$0x3] }
 0x318   :  { %1916 = vmatpush1.msra.mxu1 %v1800_v12  ;;  %1895 = vmatpush2.msra.mxu0 %v1812_v57 }
 0x319   :  { %1917 = vmatprep.subr.mxu1 %v1799_v3  ;;  %1896 = vmatprep.subr.mxu0 %v1811_v60  ;;  %v1593_v3 = vrot.slane %v1588_v16, %v7212_v49 }
 0x31a   :  { %1918 = vmatpush1.msra.mxu1 %v1798_v2  ;;  %1897 = vmatpush2.msra.mxu0 %v1810_v61  ;;  %v1597_v2 = vrot.slane %v1588_v16, %v7215_v25  ;;  %v2178_v16 = vld [vmem:[%s6670_s9 + $0xd8] sm:$0xff] }
 0x31b   :  { %1919 = vmatprep.subr.mxu1 %v1797_v7  ;;  %1898 = vmatprep.subr.mxu0 %v1809_v22 }
 0x31c   :  { %1920 = vmatpush1.msra.mxu1 %v1796_v9  ;;  %1899 = vmatpush2.msra.mxu0 %v1808_v48 }
 0x31d   :  { %1921 = vmatprep.subr.mxu1 %v1795_v15  ;;  %1900 = vmatprep.subr.mxu0 %v1807_v58 }
 0x31e   :  { %1922 = vmatpush1.msra.mxu1 %v1794_v23  ;;  %1901 = vmatpush2.msra.mxu0 %v1806_v59 }
 0x31f   :  { %1923 = vmatprep.subr.mxu1 %v1793_v13 }
 0x320   :  { %1924 = vmatpush1.msra.mxu1 %v1792_v18 }
 0x321   :  { %1925 = vmatprep.subr.mxu1 %v1791_v4 }
 0x322   :  { %1926 = vmatpush1.msra.mxu1 %v1790_v0 }
 0x323   :  { %1927 = vmatprep.subr.mxu1 %v1789_v5 }
 0x324   :  { %1928 = vmatpush1.msra.mxu1 %v1788_v8 }
 0x325   :  { %1929 = vmatprep.subr.mxu1 %v1787_v20 }
 0x326   :  { %1930 = vmatpush1.msra.mxu1 %v1786_v10 }
 0x327   :  { %1931 = vmatprep.subr.mxu1 %v1785_v14 }
 0x328   :  { %1932 = vmatpush1.msra.mxu1 %v1784_v63 }
 0x329   :  { %1933 = vmatprep.subr.mxu1 %v1783_v21 }
 0x32a   :  { %1934 = vmatpush1.msra.mxu1 %v1782_v62 }
 0x32b   :  { %1935 = vmatprep.subr.mxu1 %v1781_v26 }
 0x32c   :  { %1936 = vmatpush1.msra.mxu1 %v1780_v27 }
 0x32d   :  { %1937 = vmatprep.subr.mxu1 %v1779_v28 }
 0x32e   :  { %1938 = vmatpush1.msra.mxu1 %v1778_v29 }
 0x32f   :  { %1939 = vmatprep.subr.mxu1 %v1777_v30 }
 0x330   :  { %1940 = vmatpush1.msra.mxu1 %v1776_v31 }
 0x331   :  { %1941 = vmatprep.subr.mxu1 %v1775_v32 }
 0x332   :  { %1942 = vmatpush1.msra.mxu1 %v1774_v19 }
 0x333   :  { %1943 = vmatprep.subr.mxu1 %v1837_v24 }
 0x334   :  { %1944 = vmatpush2.msra.mxu1 %v1836_v11 }
 0x335   :  { %1945 = vmatprep.subr.mxu1 %v1835_v33 }
 0x336   :  { %1946 = vmatpush2.msra.mxu1 %v1834_v34 }
 0x337   :  { %1947 = vmatprep.subr.mxu1 %v1833_v37 }
 0x338   :  { %1948 = vmatpush2.msra.mxu1 %v1832_v38 }
 0x339   :  { %1949 = vmatprep.subr.mxu1 %v1831_v39 }
 0x33a   :  { %1950 = vmatpush2.msra.mxu1 %v1830_v40 }
 0x33b   :  { %1951 = vmatprep.subr.mxu1 %v1829_v6 }
 0x33c   :  { %1952 = vmatpush2.msra.mxu1 %v1828_v17 }
 0x33d   :  { %1953 = vmatprep.subr.mxu1 %v1827_v41 }
 0x33e   :  { %1954 = vmatpush2.msra.mxu1 %v1826_v1 }
 0x33f   :  { %1955 = vmatprep.subr.mxu1 %v1825_v42 }
 0x340   :  { %1956 = vmatpush2.msra.mxu1 %v1824_v43 }
 0x341   :  { %1957 = vmatprep.subr.mxu1 %v1823_v44 }
 0x342   :  { %1958 = vmatpush2.msra.mxu1 %v1822_v36  ;;  %v2073_v36 = vld [vmem:[%s6668_s7 + $0xf8] sm:$0xff] }
 0x343   :  { %1959 = vmatprep.subr.mxu1 %v1821_v45  ;;  %v2182_v45 = vld [vmem:[%s6670_s9 + $0xf8] sm:$0xff]  ;;  %4009 = vmatprep.subr.mxu0 %v2073_v36  ;;  %v2043_v36 = vld [vmem:[%s6668_s7 + $0x8] sm:$0xff] }
 0x344   :  { %1960 = vmatpush2.msra.mxu1 %v1820_v46  ;;  %v2057_v46 = vld [vmem:[%s6668_s7 + $0x78] sm:$0xff] }
 0x345   :  { %1961 = vmatprep.subr.mxu1 %v1819_v47  ;;  %v2166_v47 = vld [vmem:[%s6670_s9 + $0x78] sm:$0xff] }
 0x346   :  { %1962 = vmatpush2.msra.mxu1 %v1818_v51  ;;  %v2072_v51 = vld [vmem:[%s6668_s7 + $0xf0] sm:$0xff] }
 0x347   :  { %1963 = vmatprep.subr.mxu1 %v1817_v52  ;;  %v2181_v52 = vld [vmem:[%s6670_s9 + $0xf0] sm:$0xff] }
 0x348   :  { %1964 = vmatpush2.msra.mxu1 %v1816_v53  ;;  %v2056_v53 = vld [vmem:[%s6668_s7 + $0x70] sm:$0xff] }
 0x349   :  { %1965 = vmatprep.subr.mxu1 %v1815_v54  ;;  %v2165_v54 = vld [vmem:[%s6670_s9 + $0x70] sm:$0xff] }
 0x34a   :  { %1966 = vmatpush2.msra.mxu1 %v1814_v55  ;;  %v2071_v55 = vld [vmem:[%s6668_s7 + $0xe8] sm:$0xff] }
 0x34b   :  { %1967 = vmatprep.subr.mxu1 %v1813_v56  ;;  %v2180_v56 = vld [vmem:[%s6670_s9 + $0xe8] sm:$0xff] }
 0x34c   :  { %1968 = vmatpush2.msra.mxu1 %v1812_v57  ;;  %v2055_v57 = vld [vmem:[%s6668_s7 + $0x68] sm:$0xff] }
 0x34d   :  { %1969 = vmatprep.subr.mxu1 %v1811_v60  ;;  %v2164_v60 = vld [vmem:[%s6670_s9 + $0x68] sm:$0xff] }
 0x34e   :  { %1970 = vmatpush2.msra.mxu1 %v1810_v61  ;;  %v2070_v61 = vld [vmem:[%s6668_s7 + $0xe0] sm:$0xff] }
 0x34f   :  { %1971 = vmatprep.subr.mxu1 %v1809_v22  ;;  %v2179_v22 = vld [vmem:[%s6670_s9 + $0xe0] sm:$0xff] }
 0x350   :  { %1972 = vmatpush2.msra.mxu1 %v1808_v48  ;;  %v2054_v48 = vld [vmem:[%s6668_s7 + $0x60] sm:$0xff] }
 0x351   :  { %1973 = vmatprep.subr.mxu1 %v1807_v58  ;;  %v2163_v58 = vld [vmem:[%s6670_s9 + $0x60] sm:$0xff] }
 0x352   :  { %1974 = vmatpush2.msra.mxu1 %v1806_v59  ;;  %v2069_v59 = vld [vmem:[%s6668_s7 + $0xd8] sm:$0xff] }
 0x353   :  { %4044 = vmatprep.subr.mxu1 %v2182_v45  ;;  %v2152_v45 = vld [vmem:[%s6670_s9 + $0x8] sm:$0xff] }
 0x391   :  { %v1666_v12 = vpop.f32.mrf.mxu0 }
 0x392   :  { %v1667_v9 = vadd.f32 %v1666_v12, %v1593_v3  ;;  %v2053_v12 = vld [vmem:[%s6668_s7 + $0x58] sm:$0xff] }
 0x393   :  { %v1668_v7 = vpop.f32.mrf.mxu0  ;;  %v2162_v3 = vld [vmem:[%s6670_s9 + $0x58] sm:$0xff] }
 0x394   :  { %v1669_v23 = vadd.f32 %v1668_v7, %v1597_v2  ;;  %v2068_v2 = vld [vmem:[%s6668_s7 + $0xd0] sm:$0xff] }
 0x395   :  { %v2177_v7 = vld [vmem:[%s6670_s9 + $0xd0] sm:$0xff] }
 0x3d3   :  { %v1737_v15 = vpop.f32.mrf.mxu1 }
 0x3d4   :  { %v1738_v13 = vadd.f32 %v1737_v15, %v1667_v9  ;;  %v2052_v9 = vld [vmem:[%s6668_s7 + $0x50] sm:$0xff] }
 0x3d5   :  { %v1739_v18 = vpop.f32.mrf.mxu1  ;;  %v2161_v15 = vld [vmem:[%s6670_s9 + $0x50] sm:$0xff] }
 0x3d6   :  { %v5598_v4 = vmax.f32 %v1738_v13, 0.0  ;;  %v1740_v0 = vadd.f32 %v1739_v18, %v1669_v23  ;;  %v2067_v23 = vld [vmem:[%s6668_s7 + $0xc8] sm:$0xff] }
 0x3d7   :  { %v2176_v13 = vld [vmem:[%s6670_s9 + $0xc8] sm:$0xff] }
 0x3d8   :  { %v1744_v5 = vsel %vm457_vm0, %v5598_v4, 0.0  ;;  %v1758_v8 = vmul.f32 %v5598_v4, %v5598_v4  ;;  %v5604_v20 = vmax.f32 %v1740_v0, 0.0  ;;  %v2051_v18 = vld [vmem:[%s6668_s7 + $0x48] sm:$0xff] }
 0x3d9   :  { %v1745_v10 = vrot.slane %v1744_v5, 4  ;;  %v2160_v0 = vld [vmem:[%s6670_s9 + $0x48] sm:$0xff] }
 0x3da   :  { %v1760_v14 = vsel %vm457_vm0, %v1758_v8, 0.0  ;;  %v1751_v63 = vsel %vm457_vm0, %v5604_v20, 0.0  ;;  %v1759_v21 = vmul.f32 %v5604_v20, %v5604_v20  ;;  %v2175_v8 = vld [vmem:[%s6670_s9 + $0xc0] sm:$0xff] }
 0x3db   :  { %v1746_v62 = vadd.f32 %v1745_v10, %v1744_v5  ;;  %v1761_v26 = vrot.slane %v1760_v14, 4  ;;  %v1752_v27 = vrot.slane %v1751_v63, 4  ;;  %v2066_v5 = vld [vmem:[%s6668_s7 + $0xc0] sm:$0xff] }
 0x3dc   :  { %v1767_v28 = vsel %vm457_vm0, %v1759_v21, 0.0  ;;  %v2050_v10 = vld [vmem:[%s6668_s7 + $0x40] sm:$0xff]  ;;  %v2174_v21 = vld [vmem:[%s6670_s9 + $0xb8] sm:$0xff] }
 0x3dd   :  { %v1747_v29 = vrot.slane %v1746_v62, 2  ;;  %v1762_v30 = vadd.f32 %v1761_v26, %v1760_v14  ;;  %v1753_v31 = vadd.f32 %v1752_v27, %v1751_v63  ;;  %v1768_v32 = vrot.slane %v1767_v28, 4  ;;  %v2159_v14 = vld [vmem:[%s6670_s9 + $0x40] sm:$0xff]  ;;  %v2065_v63 = vld [vmem:[%s6668_s7 + $0xb8] sm:$0xff]  ;;  %v2064_v27 = vld [vmem:[%s6668_s7 + $0xb0] sm:$0xff] }
 0x3de   :  { %v2158_v26 = vld [vmem:[%s6670_s9 + $0x38] sm:$0xff] }
 0x3df   :  { %v1748_v19 = vadd.f32 %v1747_v29, %v1746_v62  ;;  %v1763_v24 = vrot.slane %v1762_v30, 2  ;;  %v1754_v11 = vrot.slane %v1753_v31, 2  ;;  %v1769_v33 = vadd.f32 %v1768_v32, %v1767_v28  ;;  %v2049_v62 = vld [vmem:[%s6668_s7 + $0x38] sm:$0xff]  ;;  %v2173_v28 = vld [vmem:[%s6670_s9 + $0xb0] sm:$0xff]  ;;  %v2172_v32 = vld [vmem:[%s6670_s9 + $0xa8] sm:$0xff] }
 0x3e0   :  { %v2048_v29 = vld [vmem:[%s6668_s7 + $0x30] sm:$0xff] }
 0x3e1   :  { %v1755_v34 = vadd.f32 %v1754_v11, %v1753_v31  ;;  %v1770_v37 = vrot.slane %v1769_v33, 2  ;;  %v1764_v38 = vadd.f32 %v1763_v24, %v1762_v30  ;;  %v1749_v39 = vrot.slane %v1748_v19, 1  ;;  %v2157_v30 = vld [vmem:[%s6670_s9 + $0x30] sm:$0xff]  ;;  %v2063_v31 = vld [vmem:[%s6668_s7 + $0xa8] sm:$0xff]  ;;  %v2062_v11 = vld [vmem:[%s6668_s7 + $0xa0] sm:$0xff] }
 0x3e2   :  { %v2156_v24 = vld [vmem:[%s6670_s9 + $0x28] sm:$0xff] }
 0x3e3   :  { %v1756_v40 = vrot.slane %v1755_v34, 1  ;;  %v1771_v6 = vadd.f32 %v1770_v37, %v1769_v33  ;;  %v1765_v17 = vrot.slane %v1764_v38, 1  ;;  %v1750_v42 = vadd.f32 %v1749_v39, %v1748_v19  ;;  %v2047_v19 = vld [vmem:[%s6668_s7 + $0x28] sm:$0xff]  ;;  %v2171_v33 = vld [vmem:[%s6670_s9 + $0xa0] sm:$0xff]  ;;  %v2170_v39 = vld [vmem:[%s6670_s9 + $0x98] sm:$0xff] }
 0x3e4   :  { %v2155_v37 = vld [vmem:[%s6670_s9 + $0x20] sm:$0xff] }
 0x3e5   :  { %v1757_v41 = vadd.f32 %v1756_v40, %v1755_v34  ;;  %v1772_v1 = vrot.slane %v1771_v6, 1  ;;  %v1766_v44 = vadd.f32 %v1765_v17, %v1764_v38  ;;  %v2046_v34 = vld [vmem:[%s6668_s7 + $0x20] sm:$0xff]  ;;  %v2061_v38 = vld [vmem:[%s6668_s7 + $0x98] sm:$0xff]  ;;  %v2060_v17 = vld [vmem:[%s6668_s7 + $0x90] sm:$0xff] }
 0x3e6   :  { %v2045_v40 = vld [vmem:[%s6668_s7 + $0x18] sm:$0xff] }
 0x3e7   :  { %1902 = vmatprep.mubr.f32.mxu0 %v1757_v41  ;;  %v1773_v43 = vadd.f32 %v1772_v1, %v1771_v6  ;;  %v2154_v6 = vld [vmem:[%s6670_s9 + $0x18] sm:$0xff]  ;;  %v2169_v41 = vld [vmem:[%s6670_s9 + $0x90] sm:$0xff] }
 0x3e8   :  { %1903 = vmatmul.mubr.f32.vlgmr.msra.gmra.mxu0 %v1750_v42  ;;  %v2044_v1 = vld [vmem:[%s6668_s7 + $0x10] sm:$0xff] }
 0x3e9   :  { %1975 = vmatprep.mubr.f32.mxu1 %v1773_v43  ;;  %4010 = vmatpush3.msra.mxu0 %v2057_v46  ;;  %v2153_v42 = vld [vmem:[%s6670_s9 + $0x10] sm:$0xff]  ;;  %v2059_v43 = vld [vmem:[%s6668_s7 + $0x88] sm:$0xff]  ;;  %v2058_v46 = vld [vmem:[%s6668_s7 + $0x80] sm:$0xff] }
 0x3ea   :  { %1976 = vmatmul.mubr.f32.vlgmr.msra.gmra.mxu1 %v1766_v44  ;;  %4011 = vmatprep.subr.mxu0 %v2072_v51  ;;  %v2168_v44 = vld [vmem:[%s6670_s9 + $0x88] sm:$0xff]  ;;  %v2042_v51 = vld [vmem:[%s6668_s7] sm:$0xff] }
 0x3eb   :  { %4045 = vmatpush3.msra.mxu1 %v2166_v47  ;;  %4012 = vmatpush3.msra.mxu0 %v2056_v53  ;;  %v2167_v47 = vld [vmem:[%s6670_s9 + $0x80] sm:$0xff] }
 0x3ec   :  { %4046 = vmatprep.subr.mxu1 %v2181_v52  ;;  %4013 = vmatprep.subr.mxu0 %v2071_v55  ;;  %v2151_v52 = vld [vmem:[%s6670_s9] sm:$0xff] }
 0x3ed   :  { %4047 = vmatpush3.msra.mxu1 %v2165_v54  ;;  %4014 = vmatpush3.msra.mxu0 %v2055_v57 }
 0x3ee   :  { %4048 = vmatprep.subr.mxu1 %v2180_v56  ;;  %4015 = vmatprep.subr.mxu0 %v2070_v61 }
 0x3ef   :  { %4049 = vmatpush3.msra.mxu1 %v2164_v60  ;;  %4016 = vmatpush3.msra.mxu0 %v2054_v48 }
 0x3f0   :  { %4050 = vmatprep.subr.mxu1 %v2179_v22  ;;  %4017 = vmatprep.subr.mxu0 %v2069_v59 }
 0x3f1   :  { %4051 = vmatpush3.msra.mxu1 %v2163_v58  ;;  %4018 = vmatpush3.msra.mxu0 %v2053_v12 }
 0x3f2   :  { %4052 = vmatprep.subr.mxu1 %v2178_v16  ;;  %4019 = vmatprep.subr.mxu0 %v2068_v2 }
 0x3f3   :  { %4053 = vmatpush3.msra.mxu1 %v2162_v3  ;;  %4020 = vmatpush3.msra.mxu0 %v2052_v9 }
 0x3f4   :  { %4054 = vmatprep.subr.mxu1 %v2177_v7  ;;  %4021 = vmatprep.subr.mxu0 %v2067_v23 }
 0x3f5   :  { %4055 = vmatpush3.msra.mxu1 %v2161_v15  ;;  %4022 = vmatpush3.msra.mxu0 %v2051_v18  ;;  %v4001_v15 = vld [vmem:[%s6667_s6 + $0x1] ss:$4 sm:$0x3] }
 0x3f6   :  { %4056 = vmatprep.subr.mxu1 %v2176_v13  ;;  %4023 = vmatprep.subr.mxu0 %v2066_v5 }
 0x3f7   :  { %4057 = vmatpush3.msra.mxu1 %v2160_v0  ;;  %4024 = vmatpush3.msra.mxu0 %v2050_v10  ;;  %v2018_v0 = vrot.slane %v4001_v15, %v7212_v49 }
 0x3f8   :  { %4058 = vmatprep.subr.mxu1 %v2175_v8  ;;  %4025 = vmatprep.subr.mxu0 %v2065_v63  ;;  %v4002_v63 = vld [vmem:[%s6667_s6 + $0x2] ss:$4 sm:$0x3] }
 0x3f9   :  { %4059 = vmatpush3.msra.mxu1 %v2159_v14  ;;  %4026 = vmatpush3.msra.mxu0 %v2049_v62  ;;  %v2022_v14 = vrot.slane %v4001_v15, %v7215_v25  ;;  %v2037_v62 = vrot.slane %v4002_v63, %v7215_v25  ;;  %v2467_v15 = vld [vmem:[#allocation8 + $0x380] sm:$0xff] }
 0x3fa   :  { %4060 = vmatprep.subr.mxu1 %v2174_v21  ;;  %4027 = vmatprep.subr.mxu0 %v2064_v27 }
 0x3fb   :  { %4061 = vmatpush3.msra.mxu1 %v2158_v26  ;;  %4028 = vmatpush3.msra.mxu0 %v2048_v29 }
 0x3fc   :  { %4062 = vmatprep.subr.mxu1 %v2173_v28  ;;  %4029 = vmatprep.subr.mxu0 %v2063_v31  ;;  %v4472_v31 = vmov 0.0  }
 0x3fd   :  { %4063 = vmatpush3.msra.mxu1 %v2157_v30  ;;  %4030 = vmatpush3.msra.mxu0 %v2047_v19  ;;  %v2266_v30 = vld [vmem:[%s6673_s12] sm:$0xff]  ;;  %v2418_v19 = vld [vmem:[#allocation8 + $0x1f8] sm:$0xff] }
 0x3fe   :  { %4064 = vmatprep.subr.mxu1 %v2172_v32  ;;  %4031 = vmatprep.subr.mxu0 %v2062_v11  ;;  %v2416_v32 = vld [vmem:[#allocation8 + $0x1e8] sm:$0xff] }
 0x3ff   :  { %4065 = vmatpush3.msra.mxu1 %v2156_v24  ;;  %4032 = vmatpush3.msra.mxu0 %v2046_v34  ;;  %v2415_v24 = vld [vmem:[#allocation8 + $0x1e0] sm:$0xff]  ;;  %v2412_v11 = vld [vmem:[#allocation8 + $0x1c8] sm:$0xff] }
 0x400   :  { %4066 = vmatprep.subr.mxu1 %v2171_v33  ;;  %4033 = vmatprep.subr.mxu0 %v2061_v38  ;;  %v2411_v33 = vld [vmem:[#allocation8 + $0x1c0] sm:$0xff]  ;;  %v2408_v34 = vld [vmem:[#allocation8 + $0x1a8] sm:$0xff] }
 0x401   :  { %4067 = vmatpush3.msra.mxu1 %v2155_v37  ;;  %4034 = vmatpush3.msra.mxu0 %v2045_v40  ;;  %v2407_v37 = vld [vmem:[#allocation8 + $0x1a0] sm:$0xff]  ;;  %v2404_v38 = vld [vmem:[#allocation8 + $0x188] sm:$0xff] }
 0x402   :  { %4068 = vmatprep.subr.mxu1 %v2170_v39  ;;  %4035 = vmatprep.subr.mxu0 %v2060_v17  ;;  %v2403_v39 = vld [vmem:[#allocation8 + $0x180] sm:$0xff]  ;;  %v2400_v40 = vld [vmem:[#allocation8 + $0x168] sm:$0xff] }
 0x403   :  { %4069 = vmatpush3.msra.mxu1 %v2154_v6  ;;  %4036 = vmatpush3.msra.mxu0 %v2044_v1  ;;  %v2399_v6 = vld [vmem:[#allocation8 + $0x160] sm:$0xff]  ;;  %v2396_v17 = vld [vmem:[#allocation8 + $0x148] sm:$0xff] }
 0x404   :  { %4070 = vmatprep.subr.mxu1 %v2169_v41  ;;  %4037 = vmatprep.subr.mxu0 %v2059_v43  ;;  %v2395_v41 = vld [vmem:[#allocation8 + $0x140] sm:$0xff]  ;;  %v2392_v1 = vld [vmem:[#allocation8 + $0x128] sm:$0xff] }
 0x405   :  { %4071 = vmatpush3.msra.mxu1 %v2153_v42  ;;  %4038 = vmatpush3.msra.mxu0 %v2043_v36  ;;  %v2391_v42 = vld [vmem:[#allocation8 + $0x120] sm:$0xff]  ;;  %v2388_v43 = vld [vmem:[#allocation8 + $0x108] sm:$0xff] }
 0x406   :  { %4072 = vmatprep.subr.mxu1 %v2168_v44  ;;  %4039 = vmatprep.subr.mxu0 %v2058_v46  ;;  %v2387_v44 = vld [vmem:[#allocation8 + $0x100] sm:$0xff]  ;;  %v2384_v36 = vld [vmem:[#allocation8 + $0xe8] sm:$0xff] }
 0x407   :  { %4073 = vmatpush3.msra.mxu1 %v2152_v45  ;;  %4040 = vmatpush3.msra.mxu0 %v2042_v51  ;;  %v2383_v45 = vld [vmem:[#allocation8 + $0xe0] sm:$0xff]  ;;  %v2380_v46 = vld [vmem:[#allocation8 + $0xc8] sm:$0xff] }
 0x408   :  { %4074 = vmatprep.subr.mxu1 %v2167_v47  ;;  %v2379_v47 = vld [vmem:[#allocation8 + $0xc0] sm:$0xff]  ;;  %v2376_v51 = vld [vmem:[#allocation8 + $0xa8] sm:$0xff] }
 0x409   :  { %4075 = vmatpush3.msra.mxu1 %v2151_v52  ;;  %v2375_v52 = vld [vmem:[#allocation8 + $0xa0] sm:$0xff] }
 0x40a   :  { %2505 = vmatprep.subr.mxu1 %v2416_v32 }
 0x4a8   :  { %v1904_v53 = vpop.f32.mrf.mxu0 }
 0x4a9   :  { %v1909_v54 = vmul.f32 0.5, %v1904_v53  ;;  %v2372_v53 = vld [vmem:[#allocation8 + $0x88] sm:$0xff] }
 0x4aa   :  { %v1906_v55 = vpop.f32.mrf.mxu0  ;;  %v1977_v56 = vpop.f32.mrf.mxu1 }
 0x4ab   :  { %v1984_v57 = vmul.f32 %v1909_v54, %v1909_v54  ;;  %v1910_v60 = vmul.f32 0.5, %v1906_v55  ;;  %v1982_v61 = vmul.f32 0.5, %v1977_v56  ;;  %v1995_v2 = vrot.slane %v1909_v54, %v7212_v49  ;;  %v2371_v54 = vld [vmem:[#allocation8 + $0x80] sm:$0xff]  ;;  %v2368_v55 = vld [vmem:[#allocation8 + $0x68] sm:$0xff] }
 0x4ac   :  { %v1979_v22 = vpop.f32.mrf.mxu1  ;;  %v2367_v56 = vld [vmem:[#allocation8 + $0x60] sm:$0xff] }
 0x4ad   :  { %v1985_v48 = vmul.f32 %v1910_v60, %v1910_v60  ;;  %v1986_v58 = vsub.f32 %v1982_v61, %v1984_v57  ;;  %v1983_v59 = vmul.f32 0.5, %v1979_v22  ;;  %v1999_v9 = vrot.slane %v1910_v60, %v7212_v49  ;;  %v2364_v57 = vld [vmem:[#allocation8 + $0x48] sm:$0xff]  ;;  %v2363_v60 = vld [vmem:[#allocation8 + $0x40] sm:$0xff] }
 0x4ae   :  { %v2000_v23 = vsub.f32 %v5598_v4, %v1995_v2  ;;  %v2033_v4 = vrot.slane %v4002_v63, %v7212_v49  ;;  %v2360_v61 = vld [vmem:[#allocation8 + $0x28] sm:$0xff]  ;;  %v2359_v22 = vld [vmem:[#allocation8 + $0x20] sm:$0xff] }
 0x4af   :  { %v1988_v16 = vadd.f32 1e-05, %v1986_v58  ;;  %v1987_v12 = vsub.f32 %v1983_v59, %v1985_v48  ;;  %v2001_v8 = vsub.f32 %v5604_v20, %v1999_v9  ;;  %v2267_v20 = vld [vmem:[%s6673_s12 + $0x8] sm:$0xff]  ;;  %v2355_v58 = vld [vmem:[#allocation8] sm:$0xff] }
 0x4b0   :  { %2314 = vmatprep.subr.mxu0 %v2267_v20  ;;  %v2356_v48 = vld [vmem:[#allocation8 + $0x8] sm:$0xff] }
 0x4b1   :  { %4100 = vrsqrt.f32 %v1988_v16  ;;  %v1989_v3 = vadd.f32 1e-05, %v1987_v12  ;;  %v2480_v59 = vld [vmem:[#allocation8 + $0x3e8] sm:$0xff]  ;;  %v2479_v16 = vld [vmem:[#allocation8 + $0x3e0] sm:$0xff] }
 0x4b2   :  { %v2476_v12 = vld [vmem:[#allocation8 + $0x3c8] sm:$0xff] }
 0x4b3   :  { %4102 = vrsqrt.f32 %v1989_v3  ;;  %v2475_v3 = vld [vmem:[#allocation8 + $0x3c0] sm:$0xff]  ;;  %v2472_v2 = vld [vmem:[#allocation8 + $0x3a8] sm:$0xff] }
 0x4b4   :  { %v2468_v9 = vld [vmem:[#allocation8 + $0x388] sm:$0xff] }
 0x4b5   :  { %v2448_v63 = vld [vmem:[#allocation8 + $0x2e8] sm:$0xff] }
 0x4b6   :  { %v2432_v20 = vld [vmem:[#allocation8 + $0x268] sm:$0xff] }
 0x4be   :  { %v4101_v7 = vpop.eup %4100 }
 0x4bf   :  { %v2005_v13 = vrot.slane %v4101_v7, %v7212_v49  ;;  %v2471_v7 = vld [vmem:[#allocation8 + $0x3a0] sm:$0xff] }
 0x4c0   :  { %v4103_v18 = vpop.eup %4102 }
 0x4c1   :  { %v2010_v5 = vmul.f32 %v2005_v13, %v2000_v23  ;;  %v2009_v10 = vrot.slane %v4103_v18, %v7212_v49  ;;  %v2464_v23 = vld [vmem:[#allocation8 + $0x368] sm:$0xff]  ;;  %v2463_v13 = vld [vmem:[#allocation8 + $0x360] sm:$0xff] }
 0x4c2   :  { %v2460_v18 = vld [vmem:[#allocation8 + $0x348] sm:$0xff] }
 0x4c3   :  { %v2011_v21 = vmul.f32 %v2009_v10, %v2001_v8  ;;  %v2025_v26 = vmul.f32 %v2018_v0, %v2010_v5  ;;  %v2459_v0 = vld [vmem:[#allocation8 + $0x340] sm:$0xff]  ;;  %v2456_v5 = vld [vmem:[#allocation8 + $0x328] sm:$0xff] }
 0x4c4   :  { %v2455_v8 = vld [vmem:[#allocation8 + $0x320] sm:$0xff]  ;;  %v2452_v10 = vld [vmem:[#allocation8 + $0x308] sm:$0xff] }
 0x4c5   :  { %v2026_v27 = vmul.f32 %v2022_v14, %v2011_v21  ;;  %v2040_v29 = vadd.f32 %v2033_v4, %v2025_v26  ;;  %v2451_v14 = vld [vmem:[#allocation8 + $0x300] sm:$0xff]  ;;  %v2440_v26 = vld [vmem:[#allocation8 + $0x2a8] sm:$0xff] }
 0x4c6   :  { %v2447_v21 = vld [vmem:[#allocation8 + $0x2e0] sm:$0xff] }
 0x4c7   :  { %v2041_v28 = vadd.f32 %v2037_v62, %v2026_v27  ;;  %v2444_v62 = vld [vmem:[#allocation8 + $0x2c8] sm:$0xff]  ;;  %v2443_v4 = vld [vmem:[#allocation8 + $0x2c0] sm:$0xff] }
 0x4c8   :  { %v2439_v27 = vld [vmem:[#allocation8 + $0x2a0] sm:$0xff] }
 0x4c9   :  { %2145 = vmatprep.mubr.f32.mxu0 %v2041_v28  ;;  %2254 = vmatprep.mubr.f32.mxu1 %v2041_v28  ;;  %v2436_v28 = vld [vmem:[#allocation8 + $0x288] sm:$0xff] }
 0x4ca   :  { %2146 = vmatmul.mubr.f32.vlgmr.msra.gmra.mxu0 %v2040_v29  ;;  %2255 = vmatmul.mubr.f32.vlgmr.msra.gmra.mxu1 %v2040_v29  ;;  %v2435_v29 = vld [vmem:[#allocation8 + $0x280] sm:$0xff] }
 0x4cb   :  { %2348 = vmatprep.mubr.f32.mxu0 %v4472_v31  ;;  %2315 = vmatpush1.msra.mxu0 %v2266_v30  ;;  %v2431_v30 = vld [vmem:[#allocation8 + $0x260] sm:$0xff] }
 0x4cc   :  { %2576 = vmatprep.subr.mxu0 %v2418_v19  ;;  %2506 = vmatpush1.msra.mxu1 %v2415_v24  ;;  %v4003_v19 = vld [vmem:[%s6669_s8] ss:$0 sm:$0xff] }
 0x4cd   :  { %2507 = vmatprep.subr.mxu1 %v2412_v11  ;;  %v4004_v11 = vld [vmem:[%s6671_s10] ss:$0 sm:$0xff] }
 0x4ce   :  { %2508 = vmatpush1.msra.mxu1 %v2411_v33 }
 0x4cf   :  { %2509 = vmatprep.subr.mxu1 %v2408_v34 }
 0x4d0   :  { %2510 = vmatpush1.msra.mxu1 %v2407_v37 }
 0x4d1   :  { %2511 = vmatprep.subr.mxu1 %v2404_v38 }
 0x4d2   :  { %2512 = vmatpush1.msra.mxu1 %v2403_v39 }
 0x4d3   :  { %2513 = vmatprep.subr.mxu1 %v2400_v40 }
 0x4d4   :  { %2514 = vmatpush1.msra.mxu1 %v2399_v6 }
 0x4d5   :  { %2515 = vmatprep.subr.mxu1 %v2396_v17  ;;  %v2263_v17 = vld [vmem:[%s6672_s11] sm:$0x3] }
 0x4d6   :  { %2516 = vmatpush1.msra.mxu1 %v2395_v41 }
 0x4d7   :  { %2517 = vmatprep.subr.mxu1 %v2392_v1 }
 0x4d8   :  { %2518 = vmatpush1.msra.mxu1 %v2391_v42 }
 0x4d9   :  { %2519 = vmatprep.subr.mxu1 %v2388_v43  ;;  %v2417_v43 = vld [vmem:[#allocation8 + $0x1f0] sm:$0xff] }
 0x4da   :  { %2520 = vmatpush1.msra.mxu1 %v2387_v44  ;;  %v2414_v44 = vld [vmem:[#allocation8 + $0x1d8] sm:$0xff] }
 0x4db   :  { %2521 = vmatprep.subr.mxu1 %v2384_v36  ;;  %v2413_v36 = vld [vmem:[#allocation8 + $0x1d0] sm:$0xff] }
 0x4dc   :  { %2522 = vmatpush1.msra.mxu1 %v2383_v45  ;;  %v2410_v45 = vld [vmem:[#allocation8 + $0x1b8] sm:$0xff] }
 0x4dd   :  { %2523 = vmatprep.subr.mxu1 %v2380_v46  ;;  %v2409_v46 = vld [vmem:[#allocation8 + $0x1b0] sm:$0xff] }
 0x4de   :  { %2524 = vmatpush1.msra.mxu1 %v2379_v47  ;;  %v2406_v47 = vld [vmem:[#allocation8 + $0x198] sm:$0xff] }
 0x4df   :  { %2525 = vmatprep.subr.mxu1 %v2376_v51  ;;  %v2405_v51 = vld [vmem:[#allocation8 + $0x190] sm:$0xff] }
 0x4e0   :  { %2526 = vmatpush1.msra.mxu1 %v2375_v52  ;;  %v2402_v52 = vld [vmem:[#allocation8 + $0x178] sm:$0xff] }
 0x4e1   :  { %2527 = vmatprep.subr.mxu1 %v2372_v53  ;;  %v2401_v53 = vld [vmem:[#allocation8 + $0x170] sm:$0xff] }
 0x4e2   :  { %2528 = vmatpush1.msra.mxu1 %v2371_v54  ;;  %v2398_v54 = vld [vmem:[#allocation8 + $0x158] sm:$0xff] }
 0x4e3   :  { %2529 = vmatprep.subr.mxu1 %v2368_v55  ;;  %v2397_v55 = vld [vmem:[#allocation8 + $0x150] sm:$0xff] }
 0x4e4   :  { %2530 = vmatpush1.msra.mxu1 %v2367_v56  ;;  %v2394_v56 = vld [vmem:[#allocation8 + $0x138] sm:$0xff] }
 0x4e5   :  { %2531 = vmatprep.subr.mxu1 %v2364_v57  ;;  %v2393_v57 = vld [vmem:[#allocation8 + $0x130] sm:$0xff] }
 0x4e6   :  { %2532 = vmatpush1.msra.mxu1 %v2363_v60  ;;  %v2390_v60 = vld [vmem:[#allocation8 + $0x118] sm:$0xff] }
 0x4e7   :  { %2533 = vmatprep.subr.mxu1 %v2360_v61  ;;  %v2389_v61 = vld [vmem:[#allocation8 + $0x110] sm:$0xff] }
 0x4e8   :  { %2534 = vmatpush1.msra.mxu1 %v2359_v22  ;;  %v2386_v22 = vld [vmem:[#allocation8 + $0xf8] sm:$0xff] }
 0x4e9   :  { %2535 = vmatprep.subr.mxu1 %v2356_v48  ;;  %v2385_v48 = vld [vmem:[#allocation8 + $0xf0] sm:$0xff] }
 0x4ea   :  { %2536 = vmatpush1.msra.mxu1 %v2355_v58  ;;  %v2382_v58 = vld [vmem:[#allocation8 + $0xd8] sm:$0xff] }
 0x4eb   :  { %2537 = vmatprep.subr.mxu1 %v2480_v59  ;;  %v2381_v59 = vld [vmem:[#allocation8 + $0xd0] sm:$0xff] }
 0x4ec   :  { %2538 = vmatpush2.msra.mxu1 %v2479_v16  ;;  %v2378_v16 = vld [vmem:[#allocation8 + $0xb8] sm:$0xff] }
 0x4ed   :  { %2539 = vmatprep.subr.mxu1 %v2476_v12  ;;  %v2377_v12 = vld [vmem:[#allocation8 + $0xb0] sm:$0xff] }
 0x4ee   :  { %2540 = vmatpush2.msra.mxu1 %v2475_v3  ;;  %v2374_v3 = vld [vmem:[#allocation8 + $0x98] sm:$0xff] }
 0x4ef   :  { %2541 = vmatprep.subr.mxu1 %v2472_v2  ;;  %v2373_v2 = vld [vmem:[#allocation8 + $0x90] sm:$0xff] }
 0x4f0   :  { %2542 = vmatpush2.msra.mxu1 %v2471_v7  ;;  %v2370_v7 = vld [vmem:[#allocation8 + $0x78] sm:$0xff] }
 0x4f1   :  { %2543 = vmatprep.subr.mxu1 %v2468_v9  ;;  %v2369_v9 = vld [vmem:[#allocation8 + $0x70] sm:$0xff] }
 0x4f2   :  { %2544 = vmatpush2.msra.mxu1 %v2467_v15  ;;  %v2366_v15 = vld [vmem:[#allocation8 + $0x58] sm:$0xff] }
 0x4f3   :  { %2545 = vmatprep.subr.mxu1 %v2464_v23  ;;  %v2365_v23 = vld [vmem:[#allocation8 + $0x50] sm:$0xff] }
 0x4f4   :  { %2546 = vmatpush2.msra.mxu1 %v2463_v13  ;;  %v2362_v13 = vld [vmem:[#allocation8 + $0x38] sm:$0xff] }
 0x4f5   :  { %2547 = vmatprep.subr.mxu1 %v2460_v18  ;;  %v2361_v18 = vld [vmem:[#allocation8 + $0x30] sm:$0xff] }
 0x4f6   :  { %2548 = vmatpush2.msra.mxu1 %v2459_v0  ;;  %v2358_v0 = vld [vmem:[#allocation8 + $0x18] sm:$0xff] }
 0x4f7   :  { %2549 = vmatprep.subr.mxu1 %v2456_v5  ;;  %v2357_v5 = vld [vmem:[#allocation8 + $0x10] sm:$0xff] }
 0x4f8   :  { %2550 = vmatpush2.msra.mxu1 %v2455_v8  ;;  %v2482_v8 = vld [vmem:[#allocation8 + $0x3f8] sm:$0xff] }
 0x4f9   :  { %2551 = vmatprep.subr.mxu1 %v2452_v10  ;;  %v2481_v10 = vld [vmem:[#allocation8 + $0x3f0] sm:$0xff] }
 0x4fa   :  { %2552 = vmatpush2.msra.mxu1 %v2451_v14  ;;  %v2478_v14 = vld [vmem:[#allocation8 + $0x3d8] sm:$0xff] }
 0x4fb   :  { %2553 = vmatprep.subr.mxu1 %v2448_v63  ;;  %v2477_v63 = vld [vmem:[#allocation8 + $0x3d0] sm:$0xff] }
 0x4fc   :  { %2554 = vmatpush2.msra.mxu1 %v2447_v21  ;;  %v2474_v21 = vld [vmem:[#allocation8 + $0x3b8] sm:$0xff] }
 0x4fd   :  { %2555 = vmatprep.subr.mxu1 %v2444_v62  ;;  %v2473_v62 = vld [vmem:[#allocation8 + $0x3b0] sm:$0xff] }
 0x4fe   :  { %2556 = vmatpush2.msra.mxu1 %v2443_v4  ;;  %v2470_v4 = vld [vmem:[#allocation8 + $0x398] sm:$0xff] }
 0x4ff   :  { %2557 = vmatprep.subr.mxu1 %v2440_v26  ;;  %v2469_v26 = vld [vmem:[#allocation8 + $0x390] sm:$0xff] }
 0x500   :  { %2558 = vmatpush2.msra.mxu1 %v2439_v27  ;;  %v2466_v27 = vld [vmem:[#allocation8 + $0x378] sm:$0xff] }
 0x501   :  { %2559 = vmatprep.subr.mxu1 %v2436_v28  ;;  %v2465_v28 = vld [vmem:[#allocation8 + $0x370] sm:$0xff] }
 0x502   :  { %2560 = vmatpush2.msra.mxu1 %v2435_v29  ;;  %v2462_v29 = vld [vmem:[#allocation8 + $0x358] sm:$0xff] }
 0x503   :  { %2561 = vmatprep.subr.mxu1 %v2432_v20  ;;  %v2461_v20 = vld [vmem:[#allocation8 + $0x350] sm:$0xff] }
 0x504   :  { %2562 = vmatpush2.msra.mxu1 %v2431_v30  ;;  %v2458_v30 = vld [vmem:[#allocation8 + $0x338] sm:$0xff] }
 0x58a   :  { %v4041_v31 = vpop.f32.mrf.mxu0  ;;  %v4076_v32 = vpop.f32.mrf.mxu1 }
 0x58c   :  { %v4042_v24 = vpop.f32.mrf.mxu0  ;;  %v4077_v33 = vpop.f32.mrf.mxu1 }
 0x58d   :  { %v4043_v34 = vadd.f32 %v4042_v24, %v4041_v31  ;;  %v4078_v37 = vadd.f32 %v4077_v33, %v4076_v32  ;;  %v2457_v31 = vld [vmem:[#allocation8 + $0x330] sm:$0xff]  ;;  %v2454_v32 = vld [vmem:[#allocation8 + $0x318] sm:$0xff] }
 0x58e   :  { %v2450_v24 = vld [vmem:[#allocation8 + $0x2f8] sm:$0xff] }
 0x58f   :  { %v2148_v38 = vadd.f32 %v4043_v34, %v4003_v19  ;;  %v2257_v39 = vadd.f32 %v4078_v37, %v4004_v11  ;;  %v2453_v19 = vld [vmem:[#allocation8 + $0x310] sm:$0xff]  ;;  %v2446_v33 = vld [vmem:[#allocation8 + $0x2d8] sm:$0xff] }
 0x590   :  { %v2449_v11 = vld [vmem:[#allocation8 + $0x2f0] sm:$0xff]  ;;  %v2442_v37 = vld [vmem:[#allocation8 + $0x2b8] sm:$0xff] }
 0x591   :  { %v2260_v40 = vmul.f32 0.5, %v2257_v39  ;;  %3960 = vst.msk [vmem:[#allocation13] sm:$0x3] %vm3959_vm1, %v2148_v38  ;;  %3961 = vst.msk [vmem:[#allocation14] sm:$0x3] %vm3959_vm1, %v2257_v39  ;;  %v2445_v34 = vld [vmem:[#allocation8 + $0x2d0] sm:$0xff] }
 0x592   :  { %v2438_v39 = vld [vmem:[#allocation8 + $0x298] sm:$0xff] }
 0x593   :  { %v2261_v6 = vmul.f32 1.442695, %v2260_v40  ;;  %v2437_v40 = vld [vmem:[#allocation8 + $0x290] sm:$0xff] }
 0x595   :  { %4104 = vpow2.f32 %v2261_v6  ;;  %v2434_v6 = vld [vmem:[#allocation8 + $0x278] sm:$0xff] }
 0x5a2   :  { %v4105_v41 = vpop.eup %4104 }
 0x5a3   :  { %v2264_v1 = vmul.f32 %v4105_v41, %v2263_v17  ;;  %v2433_v17 = vld [vmem:[#allocation8 + $0x270] sm:$0xff]  ;;  %v2428_v41 = vld [vmem:[#allocation8 + $0x248] sm:$0xff] }
 0x5a4   :  { %2563 = vmatprep.subr.mxu1 %v2428_v41  ;;  %v2860_v41 = vld [vmem:[#allocation10 + $0x4a8] sm:$0xff] }
 0x5a5   :  { %v2265_v42 = vadd.f32 %v2264_v1, %v2148_v38  ;;  %v2441_v38 = vld [vmem:[#allocation8 + $0x2b0] sm:$0xff]  ;;  %v2430_v1 = vld [vmem:[#allocation8 + $0x258] sm:$0xff] }
 0x5a7   :  { %4005 = vmatmul.mubr.msk.f32.vlgmr.msra.gmra.mxu0 %vm2280_vm2, %v2265_v42  ;;  %v2427_v42 = vld [vmem:[#allocation8 + $0x240] sm:$0xff] }
 0x5a8   :  { %2577 = vmatpush1.msra.mxu0 %v2417_v43  ;;  %v2429_v43 = vld [vmem:[#allocation8 + $0x250] sm:$0xff]  ;;  %2564 = vmatpush2.msra.mxu1 %v2427_v42  ;;  %v2859_v42 = vld [vmem:[#allocation10 + $0x4a0] sm:$0xff] }
 0x5a9   :  { %2578 = vmatprep.subr.mxu0 %v2414_v44  ;;  %v2424_v44 = vld [vmem:[#allocation8 + $0x228] sm:$0xff] }
 0x5aa   :  { %2579 = vmatpush1.msra.mxu0 %v2413_v36  ;;  %v2426_v36 = vld [vmem:[#allocation8 + $0x238] sm:$0xff]  ;;  %2565 = vmatprep.subr.mxu1 %v2424_v44  ;;  %v2856_v44 = vld [vmem:[#allocation10 + $0x488] sm:$0xff] }
 0x5ab   :  { %2580 = vmatprep.subr.mxu0 %v2410_v45  ;;  %v2423_v45 = vld [vmem:[#allocation8 + $0x220] sm:$0xff] }
 0x5ac   :  { %2581 = vmatpush1.msra.mxu0 %v2409_v46  ;;  %v2425_v46 = vld [vmem:[#allocation8 + $0x230] sm:$0xff]  ;;  %2566 = vmatpush2.msra.mxu1 %v2423_v45  ;;  %v2855_v45 = vld [vmem:[#allocation10 + $0x480] sm:$0xff] }
 0x5ad   :  { %2582 = vmatprep.subr.mxu0 %v2406_v47  ;;  %v2420_v47 = vld [vmem:[#allocation8 + $0x208] sm:$0xff] }
 0x5ae   :  { %2583 = vmatpush1.msra.mxu0 %v2405_v51  ;;  %v2422_v51 = vld [vmem:[#allocation8 + $0x218] sm:$0xff]  ;;  %2567 = vmatprep.subr.mxu1 %v2420_v47  ;;  %v2852_v47 = vld [vmem:[#allocation10 + $0x468] sm:$0xff] }
 0x5af   :  { %2584 = vmatprep.subr.mxu0 %v2402_v52  ;;  %v2419_v52 = vld [vmem:[#allocation8 + $0x200] sm:$0xff] }
 0x5b0   :  { %2585 = vmatpush1.msra.mxu0 %v2401_v53  ;;  %v2421_v53 = vld [vmem:[#allocation8 + $0x210] sm:$0xff]  ;;  %2568 = vmatpush2.msra.mxu1 %v2419_v52  ;;  %v2851_v52 = vld [vmem:[#allocation10 + $0x460] sm:$0xff] }
 0x5b1   :  { %2586 = vmatprep.subr.mxu0 %v2398_v54  ;;  %v2772_v54 = vld [vmem:[#allocation10 + $0x1e8] sm:$0xff] }
 0x5b2   :  { %2587 = vmatpush1.msra.mxu0 %v2397_v55  ;;  %v2900_v55 = vld [vmem:[#allocation10 + $0x5e8] sm:$0xff]  ;;  %2967 = vmatprep.subr.mxu1 %v2772_v54 }
 0x5b3   :  { %2588 = vmatprep.subr.mxu0 %v2394_v56  ;;  %v2268_v56 = vld [vmem:[%s6674_s13] sm:$0x3]  ;;  %v2848_v54 = vld [vmem:[#allocation10 + $0x448] sm:$0xff] }
 0x5b4   :  { %2589 = vmatpush1.msra.mxu0 %v2393_v57  ;;  %v2277_v57 = vrot.slane %v2268_v56, %v7215_v25 }
 0x5b5   :  { %2590 = vmatprep.subr.mxu0 %v2390_v60  ;;  %v2273_v60 = vrot.slane %v2268_v56, %v7212_v49  ;;  %v2847_v56 = vld [vmem:[#allocation10 + $0x440] sm:$0xff] }
 0x5b6   :  { %2591 = vmatpush1.msra.mxu0 %v2389_v61 }
 0x5b7   :  { %2592 = vmatprep.subr.mxu0 %v2386_v22 }
 0x5b8   :  { %2593 = vmatpush1.msra.mxu0 %v2385_v48 }
 0x5b9   :  { %2594 = vmatprep.subr.mxu0 %v2382_v58 }
 0x5ba   :  { %2595 = vmatpush1.msra.mxu0 %v2381_v59  ;;  %v2771_v59 = vld [vmem:[#allocation10 + $0x1e0] sm:$0xff] }
 0x5bb   :  { %2596 = vmatprep.subr.mxu0 %v2378_v16  ;;  %v2899_v16 = vld [vmem:[#allocation10 + $0x5e0] sm:$0xff] }
 0x5bc   :  { %2597 = vmatpush1.msra.mxu0 %v2377_v12  ;;  %v2768_v12 = vld [vmem:[#allocation10 + $0x1c8] sm:$0xff] }
 0x5bd   :  { %2598 = vmatprep.subr.mxu0 %v2374_v3  ;;  %v2896_v3 = vld [vmem:[#allocation10 + $0x5c8] sm:$0xff] }
 0x5be   :  { %2599 = vmatpush1.msra.mxu0 %v2373_v2  ;;  %v2767_v2 = vld [vmem:[#allocation10 + $0x1c0] sm:$0xff] }
 0x5bf   :  { %2600 = vmatprep.subr.mxu0 %v2370_v7  ;;  %v2895_v7 = vld [vmem:[#allocation10 + $0x5c0] sm:$0xff] }
 0x5c0   :  { %2601 = vmatpush1.msra.mxu0 %v2369_v9  ;;  %v2764_v9 = vld [vmem:[#allocation10 + $0x1a8] sm:$0xff] }
 0x5c1   :  { %2602 = vmatprep.subr.mxu0 %v2366_v15  ;;  %v2892_v15 = vld [vmem:[#allocation10 + $0x5a8] sm:$0xff] }
 0x5c2   :  { %2603 = vmatpush1.msra.mxu0 %v2365_v23  ;;  %v2763_v23 = vld [vmem:[#allocation10 + $0x1a0] sm:$0xff] }
 0x5c3   :  { %2604 = vmatprep.subr.mxu0 %v2362_v13  ;;  %v2891_v13 = vld [vmem:[#allocation10 + $0x5a0] sm:$0xff] }
 0x5c4   :  { %2605 = vmatpush1.msra.mxu0 %v2361_v18  ;;  %v2760_v18 = vld [vmem:[#allocation10 + $0x188] sm:$0xff] }
 0x5c5   :  { %2606 = vmatprep.subr.mxu0 %v2358_v0  ;;  %v2888_v0 = vld [vmem:[#allocation10 + $0x588] sm:$0xff] }
 0x5c6   :  { %2607 = vmatpush1.msra.mxu0 %v2357_v5  ;;  %v2759_v5 = vld [vmem:[#allocation10 + $0x180] sm:$0xff] }
 0x5c7   :  { %2608 = vmatprep.subr.mxu0 %v2482_v8  ;;  %v2887_v8 = vld [vmem:[#allocation10 + $0x580] sm:$0xff] }
 0x5c8   :  { %2609 = vmatpush2.msra.mxu0 %v2481_v10  ;;  %v2756_v10 = vld [vmem:[#allocation10 + $0x168] sm:$0xff] }
 0x5c9   :  { %2610 = vmatprep.subr.mxu0 %v2478_v14  ;;  %v2884_v14 = vld [vmem:[#allocation10 + $0x568] sm:$0xff] }
 0x5ca   :  { %2611 = vmatpush2.msra.mxu0 %v2477_v63  ;;  %v2755_v63 = vld [vmem:[#allocation10 + $0x160] sm:$0xff] }
 0x5cb   :  { %2612 = vmatprep.subr.mxu0 %v2474_v21  ;;  %v2883_v21 = vld [vmem:[#allocation10 + $0x560] sm:$0xff] }
 0x5cc   :  { %2613 = vmatpush2.msra.mxu0 %v2473_v62  ;;  %v2752_v62 = vld [vmem:[#allocation10 + $0x148] sm:$0xff] }
 0x5cd   :  { %2614 = vmatprep.subr.mxu0 %v2470_v4  ;;  %v2880_v4 = vld [vmem:[#allocation10 + $0x548] sm:$0xff] }
 0x5ce   :  { %2615 = vmatpush2.msra.mxu0 %v2469_v26  ;;  %v2751_v26 = vld [vmem:[#allocation10 + $0x140] sm:$0xff] }
 0x5cf   :  { %2616 = vmatprep.subr.mxu0 %v2466_v27  ;;  %v2879_v27 = vld [vmem:[#allocation10 + $0x540] sm:$0xff] }
 0x5d0   :  { %2617 = vmatpush2.msra.mxu0 %v2465_v28  ;;  %v2748_v28 = vld [vmem:[#allocation10 + $0x128] sm:$0xff] }
 0x5d1   :  { %2618 = vmatprep.subr.mxu0 %v2462_v29  ;;  %v2876_v29 = vld [vmem:[#allocation10 + $0x528] sm:$0xff] }
 0x5d2   :  { %2619 = vmatpush2.msra.mxu0 %v2461_v20  ;;  %v2747_v20 = vld [vmem:[#allocation10 + $0x120] sm:$0xff] }
 0x5d3   :  { %2620 = vmatprep.subr.mxu0 %v2458_v30  ;;  %v2875_v30 = vld [vmem:[#allocation10 + $0x520] sm:$0xff] }
 0x5d4   :  { %2621 = vmatpush2.msra.mxu0 %v2457_v31  ;;  %v2744_v31 = vld [vmem:[#allocation10 + $0x108] sm:$0xff] }
 0x5d5   :  { %2622 = vmatprep.subr.mxu0 %v2454_v32  ;;  %v2872_v32 = vld [vmem:[#allocation10 + $0x508] sm:$0xff] }
 0x5d6   :  { %2623 = vmatpush2.msra.mxu0 %v2453_v19  ;;  %v2743_v19 = vld [vmem:[#allocation10 + $0x100] sm:$0xff] }
 0x5d7   :  { %2624 = vmatprep.subr.mxu0 %v2450_v24  ;;  %v2871_v24 = vld [vmem:[#allocation10 + $0x500] sm:$0xff] }
 0x5d8   :  { %2625 = vmatpush2.msra.mxu0 %v2449_v11  ;;  %v2740_v11 = vld [vmem:[#allocation10 + $0xe8] sm:$0xff] }
 0x5d9   :  { %2626 = vmatprep.subr.mxu0 %v2446_v33  ;;  %v2868_v33 = vld [vmem:[#allocation10 + $0x4e8] sm:$0xff] }
 0x5da   :  { %2627 = vmatpush2.msra.mxu0 %v2445_v34  ;;  %v2739_v34 = vld [vmem:[#allocation10 + $0xe0] sm:$0xff] }
 0x5db   :  { %2628 = vmatprep.subr.mxu0 %v2442_v37  ;;  %v2867_v37 = vld [vmem:[#allocation10 + $0x4e0] sm:$0xff] }
 0x5dc   :  { %2629 = vmatpush2.msra.mxu0 %v2441_v38  ;;  %v2736_v38 = vld [vmem:[#allocation10 + $0xc8] sm:$0xff] }
 0x5dd   :  { %2630 = vmatprep.subr.mxu0 %v2438_v39  ;;  %v2864_v39 = vld [vmem:[#allocation10 + $0x4c8] sm:$0xff] }
 0x5de   :  { %2631 = vmatpush2.msra.mxu0 %v2437_v40  ;;  %v2735_v40 = vld [vmem:[#allocation10 + $0xc0] sm:$0xff] }
 0x5df   :  { %2632 = vmatprep.subr.mxu0 %v2434_v6  ;;  %v2863_v6 = vld [vmem:[#allocation10 + $0x4c0] sm:$0xff] }
 0x5e0   :  { %2633 = vmatpush2.msra.mxu0 %v2433_v17  ;;  %v2732_v17 = vld [vmem:[#allocation10 + $0xa8] sm:$0xff] }
 0x5e1   :  { %2634 = vmatprep.subr.mxu0 %v2430_v1  ;;  %v2731_v1 = vld [vmem:[#allocation10 + $0xa0] sm:$0xff] }
 0x5e2   :  { %2635 = vmatpush2.msra.mxu0 %v2429_v43  ;;  %v2728_v43 = vld [vmem:[#allocation10 + $0x88] sm:$0xff] }
 0x5e3   :  { %2636 = vmatprep.subr.mxu0 %v2426_v36  ;;  %v2727_v36 = vld [vmem:[#allocation10 + $0x80] sm:$0xff] }
 0x5e4   :  { %2637 = vmatpush2.msra.mxu0 %v2425_v46  ;;  %v2724_v46 = vld [vmem:[#allocation10 + $0x68] sm:$0xff] }
 0x5e5   :  { %2638 = vmatprep.subr.mxu0 %v2422_v51  ;;  %v2723_v51 = vld [vmem:[#allocation10 + $0x60] sm:$0xff] }
 0x5e6   :  { %2639 = vmatpush2.msra.mxu0 %v2421_v53  ;;  %v2720_v53 = vld [vmem:[#allocation10 + $0x48] sm:$0xff] }
 0x5e7   :  { %3038 = vmatprep.subr.mxu0 %v2900_v55  ;;  %v2719_v55 = vld [vmem:[#allocation10 + $0x40] sm:$0xff] }
 0x667   :  { %v2350_v61 = vpop.f32.mrf.mxu0 }
 0x668   :  { %v2351_v58 = vadd.f32 %v2350_v61, %v2273_v60  ;;  %v2844_v60 = vld [vmem:[#allocation10 + $0x428] sm:$0xff]  ;;  %v2715_v61 = vld [vmem:[#allocation10 + $0x20] sm:$0xff] }
 0x669   :  { %v2352_v22 = vpop.f32.mrf.mxu0 }
 0x66a   :  { %v2353_v48 = vadd.f32 %v2352_v22, %v2277_v57  ;;  %v2716_v57 = vld [vmem:[#allocation10 + $0x28] sm:$0xff]  ;;  %v2843_v22 = vld [vmem:[#allocation10 + $0x420] sm:$0xff] }
 0x66c   :  { %2569 = vmatprep.mubr.f32.mxu1 %v2353_v48  ;;  %2640 = vmatprep.mubr.f32.mxu0 %v2353_v48  ;;  %v2712_v48 = vld [vmem:[#allocation10 + $0x8] sm:$0xff] }
 0x66d   :  { %2570 = vmatmul.mubr.f32.vlgmr.msra.gmra.mxu1 %v2351_v58  ;;  %2641 = vmatmul.mubr.f32.vlgmr.msra.gmra.mxu0 %v2351_v58  ;;  %v2840_v58 = vld [vmem:[#allocation10 + $0x408] sm:$0xff] }
 0x66e   :  { %2968 = vmatpush1.msra.mxu1 %v2771_v59  ;;  %3039 = vmatpush1.msra.mxu0 %v2899_v16  ;;  %v2711_v59 = vld [vmem:[#allocation10] sm:$0xff] }
 0x66f   :  { %2969 = vmatprep.subr.mxu1 %v2768_v12  ;;  %3040 = vmatprep.subr.mxu0 %v2896_v3  ;;  %v2839_v16 = vld [vmem:[#allocation10 + $0x400] sm:$0xff]  ;;  %v2836_v12 = vld [vmem:[#allocation10 + $0x3e8] sm:$0xff] }
 0x670   :  { %2970 = vmatpush1.msra.mxu1 %v2767_v2  ;;  %3041 = vmatpush1.msra.mxu0 %v2895_v7  ;;  %v2964_v3 = vld [vmem:[#allocation10 + $0x7e8] sm:$0xff]  ;;  %v2835_v2 = vld [vmem:[#allocation10 + $0x3e0] sm:$0xff] }
 0x671   :  { %2971 = vmatprep.subr.mxu1 %v2764_v9  ;;  %3042 = vmatprep.subr.mxu0 %v2892_v15  ;;  %v2963_v7 = vld [vmem:[#allocation10 + $0x7e0] sm:$0xff]  ;;  %v2832_v9 = vld [vmem:[#allocation10 + $0x3c8] sm:$0xff] }
 0x672   :  { %2972 = vmatpush1.msra.mxu1 %v2763_v23  ;;  %3043 = vmatpush1.msra.mxu0 %v2891_v13  ;;  %v2960_v15 = vld [vmem:[#allocation10 + $0x7c8] sm:$0xff]  ;;  %v2831_v23 = vld [vmem:[#allocation10 + $0x3c0] sm:$0xff] }
 0x673   :  { %2973 = vmatprep.subr.mxu1 %v2760_v18  ;;  %3044 = vmatprep.subr.mxu0 %v2888_v0  ;;  %v2959_v13 = vld [vmem:[#allocation10 + $0x7c0] sm:$0xff]  ;;  %v2828_v18 = vld [vmem:[#allocation10 + $0x3a8] sm:$0xff] }
 0x674   :  { %2974 = vmatpush1.msra.mxu1 %v2759_v5  ;;  %3045 = vmatpush1.msra.mxu0 %v2887_v8  ;;  %v2956_v0 = vld [vmem:[#allocation10 + $0x7a8] sm:$0xff]  ;;  %v2827_v5 = vld [vmem:[#allocation10 + $0x3a0] sm:$0xff] }
 0x675   :  { %2975 = vmatprep.subr.mxu1 %v2756_v10  ;;  %3046 = vmatprep.subr.mxu0 %v2884_v14  ;;  %v2955_v8 = vld [vmem:[#allocation10 + $0x7a0] sm:$0xff]  ;;  %v2824_v10 = vld [vmem:[#allocation10 + $0x388] sm:$0xff] }
 0x676   :  { %2976 = vmatpush1.msra.mxu1 %v2755_v63  ;;  %3047 = vmatpush1.msra.mxu0 %v2883_v21  ;;  %v2952_v14 = vld [vmem:[#allocation10 + $0x788] sm:$0xff]  ;;  %v2823_v63 = vld [vmem:[#allocation10 + $0x380] sm:$0xff] }
 0x677   :  { %2977 = vmatprep.subr.mxu1 %v2752_v62  ;;  %3048 = vmatprep.subr.mxu0 %v2880_v4  ;;  %v2951_v21 = vld [vmem:[#allocation10 + $0x780] sm:$0xff]  ;;  %v5840_v62 = vld [vmem:[#allocation10 + $0x368] sm:$0xff] }
 0x678   :  { %2978 = vmatpush1.msra.mxu1 %v2751_v26  ;;  %3049 = vmatpush1.msra.mxu0 %v2879_v27  ;;  %v5842_v4 = vld [vmem:[#allocation10 + $0x768] sm:$0xff]  ;;  %v5844_v26 = vld [vmem:[#allocation10 + $0x360] sm:$0xff] }
 0x679   :  { %2979 = vmatprep.subr.mxu1 %v2748_v28  ;;  %3050 = vmatprep.subr.mxu0 %v2876_v29  ;;  %v5846_v27 = vld [vmem:[#allocation10 + $0x760] sm:$0xff]  ;;  %v5848_v28 = vld [vmem:[#allocation10 + $0x348] sm:$0xff] }
 0x67a   :  { %2980 = vmatpush1.msra.mxu1 %v2747_v20  ;;  %3051 = vmatpush1.msra.mxu0 %v2875_v30  ;;  %v5850_v29 = vld [vmem:[#allocation10 + $0x748] sm:$0xff]  ;;  %v5854_v20 = vld [vmem:[#allocation10 + $0x340] sm:$0xff] }
 0x67b   :  { %2981 = vmatprep.subr.mxu1 %v2744_v31  ;;  %3052 = vmatprep.subr.mxu0 %v2872_v32  ;;  %v5856_v30 = vld [vmem:[#allocation10 + $0x740] sm:$0xff]  ;;  %v5864_v31 = vld [vmem:[#allocation10 + $0x328] sm:$0xff] }
 0x67c   :  { %2982 = vmatpush1.msra.mxu1 %v2743_v19  ;;  %3053 = vmatpush1.msra.mxu0 %v2871_v24  ;;  %v5866_v32 = vld [vmem:[#allocation10 + $0x728] sm:$0xff]  ;;  %v5870_v19 = vld [vmem:[#allocation10 + $0x320] sm:$0xff] }
 0x67d   :  { %2983 = vmatprep.subr.mxu1 %v2740_v11  ;;  %3054 = vmatprep.subr.mxu0 %v2868_v33  ;;  %v5872_v24 = vld [vmem:[#allocation10 + $0x720] sm:$0xff]  ;;  %v5876_v11 = vld [vmem:[#allocation10 + $0x308] sm:$0xff] }
 0x67e   :  { %2984 = vmatpush1.msra.mxu1 %v2739_v34  ;;  %3055 = vmatpush1.msra.mxu0 %v2867_v37  ;;  %v5878_v33 = vld [vmem:[#allocation10 + $0x708] sm:$0xff]  ;;  %v5882_v34 = vld [vmem:[#allocation10 + $0x300] sm:$0xff] }
 0x67f   :  { %2985 = vmatprep.subr.mxu1 %v2736_v38  ;;  %3056 = vmatprep.subr.mxu0 %v2864_v39  ;;  %v5884_v37 = vld [vmem:[#allocation10 + $0x700] sm:$0xff]  ;;  %v5888_v38 = vld [vmem:[#allocation10 + $0x2e8] sm:$0xff] }
 0x680   :  { %2986 = vmatpush1.msra.mxu1 %v2735_v40  ;;  %3057 = vmatpush1.msra.mxu0 %v2863_v6  ;;  %v5890_v39 = vld [vmem:[#allocation10 + $0x6e8] sm:$0xff]  ;;  %v5894_v40 = vld [vmem:[#allocation10 + $0x2e0] sm:$0xff] }
 0x681   :  { %2987 = vmatprep.subr.mxu1 %v2732_v17  ;;  %3058 = vmatprep.subr.mxu0 %v2860_v41  ;;  %v5896_v6 = vld [vmem:[#allocation10 + $0x6e0] sm:$0xff]  ;;  %v5900_v17 = vld [vmem:[#allocation10 + $0x2c8] sm:$0xff] }
 0x682   :  { %2988 = vmatpush1.msra.mxu1 %v2731_v1  ;;  %3059 = vmatpush1.msra.mxu0 %v2859_v42  ;;  %v5902_v41 = vld [vmem:[#allocation10 + $0x6c8] sm:$0xff]  ;;  %v5906_v1 = vld [vmem:[#allocation10 + $0x2c0] sm:$0xff] }
 0x683   :  { %2989 = vmatprep.subr.mxu1 %v2728_v43  ;;  %3060 = vmatprep.subr.mxu0 %v2856_v44  ;;  %v5908_v42 = vld [vmem:[#allocation10 + $0x6c0] sm:$0xff]  ;;  %v5912_v43 = vld [vmem:[#allocation10 + $0x2a8] sm:$0xff] }
 0x684   :  { %2990 = vmatpush1.msra.mxu1 %v2727_v36  ;;  %3061 = vmatpush1.msra.mxu0 %v2855_v45  ;;  %v5914_v44 = vld [vmem:[#allocation10 + $0x6a8] sm:$0xff]  ;;  %v5918_v36 = vld [vmem:[#allocation10 + $0x2a0] sm:$0xff] }
 0x685   :  { %2991 = vmatprep.subr.mxu1 %v2724_v46  ;;  %3062 = vmatprep.subr.mxu0 %v2852_v47  ;;  %v5920_v45 = vld [vmem:[#allocation10 + $0x6a0] sm:$0xff]  ;;  %v5924_v46 = vld [vmem:[#allocation10 + $0x288] sm:$0xff] }
 0x686   :  { %2992 = vmatpush1.msra.mxu1 %v2723_v51  ;;  %3063 = vmatpush1.msra.mxu0 %v2851_v52  ;;  %v5926_v47 = vld [vmem:[#allocation10 + $0x688] sm:$0xff]  ;;  %v5930_v51 = vld [vmem:[#allocation10 + $0x280] sm:$0xff] }
 0x687   :  { %2993 = vmatprep.subr.mxu1 %v2720_v53  ;;  %3064 = vmatprep.subr.mxu0 %v2848_v54  ;;  %v5932_v52 = vld [vmem:[#allocation10 + $0x680] sm:$0xff]  ;;  %v5934_v53 = vld [vmem:[#allocation10 + $0x268] sm:$0xff] }
 0x688   :  { %2994 = vmatpush1.msra.mxu1 %v2719_v55  ;;  %3065 = vmatpush1.msra.mxu0 %v2847_v56  ;;  %v5938_v54 = vld [vmem:[#allocation10 + $0x668] sm:$0xff]  ;;  %v5940_v55 = vld [vmem:[#allocation10 + $0x260] sm:$0xff] }
 0x689   :  { %2995 = vmatprep.subr.mxu1 %v2716_v57  ;;  %3066 = vmatprep.subr.mxu0 %v2844_v60  ;;  %v5942_v56 = vld [vmem:[#allocation10 + $0x660] sm:$0xff]  ;;  %v5946_v57 = vld [vmem:[#allocation10 + $0x248] sm:$0xff] }
 0x68a   :  { %2996 = vmatpush1.msra.mxu1 %v2715_v61  ;;  %3067 = vmatpush1.msra.mxu0 %v2843_v22  ;;  %7221 = vst [vmem:[#allocation22_spill] sm:$0xff] %v5942_v56  ;;  %7222 = vst [vmem:[#allocation23_spill] sm:$0xff] %v5946_v57  ;;  %v5948_v60 = vld [vmem:[#allocation10 + $0x648] sm:$0xff]  ;;  %v5950_v61 = vld [vmem:[#allocation10 + $0x240] sm:$0xff] }
 0x68b   :  { %2997 = vmatprep.subr.mxu1 %v2712_v48  ;;  %3068 = vmatprep.subr.mxu0 %v2840_v58  ;;  %7223 = vst [vmem:[#allocation24_spill] sm:$0xff] %v5948_v60  ;;  %7224 = vst [vmem:[#allocation25_spill] sm:$0xff] %v5950_v61  ;;  %v5954_v22 = vld [vmem:[#allocation10 + $0x640] sm:$0xff]  ;;  %v5956_v48 = vld [vmem:[#allocation10 + $0x228] sm:$0xff] }
 0x68c   :  { %2998 = vmatpush1.msra.mxu1 %v2711_v59  ;;  %3069 = vmatpush1.msra.mxu0 %v2839_v16  ;;  %7225 = vst [vmem:[#allocation26_spill] sm:$0xff] %v5954_v22  ;;  %7226 = vst [vmem:[#allocation27_spill] sm:$0xff] %v5956_v48  ;;  %v5958_v58 = vld [vmem:[#allocation10 + $0x628] sm:$0xff]  ;;  %v5962_v59 = vld [vmem:[#allocation10 + $0x220] sm:$0xff] }
 0x68d   :  { %2999 = vmatprep.subr.mxu1 %v2836_v12  ;;  %3070 = vmatprep.subr.mxu0 %v2964_v3  ;;  %7227 = vst [vmem:[#allocation28_spill] sm:$0xff] %v5958_v58  ;;  %7228 = vst [vmem:[#allocation37_spill] sm:$0xff] %v5962_v59  ;;  %v5964_v16 = vld [vmem:[#allocation10 + $0x620] sm:$0xff]  ;;  %v5968_v12 = vld [vmem:[#allocation10 + $0x208] sm:$0xff] }
 0x68e   :  { %3000 = vmatpush2.msra.mxu1 %v2835_v2  ;;  %3071 = vmatpush2.msra.mxu0 %v2963_v7  ;;  %7229 = vst [vmem:[#allocation38_spill] sm:$0xff] %v5964_v16  ;;  %7230 = vst [vmem:[#allocation39_spill] sm:$0xff] %v5968_v12  ;;  %v5970_v3 = vld [vmem:[#allocation10 + $0x608] sm:$0xff]  ;;  %v5974_v2 = vld [vmem:[#allocation10 + $0x200] sm:$0xff] }
 0x68f   :  { %3001 = vmatprep.subr.mxu1 %v2832_v9  ;;  %3072 = vmatprep.subr.mxu0 %v2960_v15  ;;  %7231 = vst [vmem:[#allocation40_spill] sm:$0xff] %v5970_v3  ;;  %7232 = vst [vmem:[#allocation41_spill] sm:$0xff] %v5974_v2  ;;  %v5976_v7 = vld [vmem:[#allocation10 + $0x600] sm:$0xff]  ;;  %v5984_v9 = vld [vmem:[#allocation10 + $0x1f8] sm:$0xff] }
 0x690   :  { %3002 = vmatpush2.msra.mxu1 %v2831_v23  ;;  %3073 = vmatpush2.msra.mxu0 %v2959_v13  ;;  %7233 = vst [vmem:[#allocation42_spill] sm:$0xff] %v5976_v7  ;;  %7234 = vst [vmem:[#allocation43_spill] sm:$0xff] %v5984_v9  ;;  %v5986_v15 = vld [vmem:[#allocation10 + $0x5f8] sm:$0xff]  ;;  %v2483_v23 = vld [vmem:[%s6677_s16] ss:$4 sm:$0xf] }
 0x691   :  { %3003 = vmatprep.subr.mxu1 %v2828_v18  ;;  %3074 = vmatprep.subr.mxu0 %v2956_v0  ;;  %7235 = vst [vmem:[#allocation44_spill] sm:$0xff] %v5986_v15  ;;  %v2488_v13 = vrot.slane %v2483_v23, %v7212_v49  ;;  %v2496_v18 = vrot.slane %v2483_v23, %v7217_v35 }
 0x692   :  { %3004 = vmatpush2.msra.mxu1 %v2827_v5  ;;  %3075 = vmatpush2.msra.mxu0 %v2955_v8  ;;  %v2492_v0 = vrot.slane %v2483_v23, %v7215_v25  ;;  %v2500_v5 = vrot.slane %v2483_v23, %v7219_v50 }
 0x693   :  { %3005 = vmatprep.subr.mxu1 %v2824_v10  ;;  %3076 = vmatprep.subr.mxu0 %v2952_v14 }
 0x694   :  { %3006 = vmatpush2.msra.mxu1 %v2823_v63  ;;  %3077 = vmatpush2.msra.mxu0 %v2951_v21 }
 0x695   :  { %3007 = vmatprep.subr.mxu1 %v5840_v62  ;;  %3078 = vmatprep.subr.mxu0 %v5842_v4 }
 0x696   :  { %3008 = vmatpush2.msra.mxu1 %v5844_v26  ;;  %3079 = vmatpush2.msra.mxu0 %v5846_v27 }
 0x697   :  { %3009 = vmatprep.subr.mxu1 %v5848_v28  ;;  %3080 = vmatprep.subr.mxu0 %v5850_v29 }
 0x698   :  { %3010 = vmatpush2.msra.mxu1 %v5854_v20  ;;  %3081 = vmatpush2.msra.mxu0 %v5856_v30 }
 0x699   :  { %3011 = vmatprep.subr.mxu1 %v5864_v31  ;;  %3082 = vmatprep.subr.mxu0 %v5866_v32 }
 0x69a   :  { %3012 = vmatpush2.msra.mxu1 %v5870_v19  ;;  %3083 = vmatpush2.msra.mxu0 %v5872_v24 }
 0x69b   :  { %3013 = vmatprep.subr.mxu1 %v5876_v11  ;;  %3084 = vmatprep.subr.mxu0 %v5878_v33 }
 0x69c   :  { %3014 = vmatpush2.msra.mxu1 %v5882_v34  ;;  %3085 = vmatpush2.msra.mxu0 %v5884_v37 }
 0x69d   :  { %3015 = vmatprep.subr.mxu1 %v5888_v38  ;;  %3086 = vmatprep.subr.mxu0 %v5890_v39 }
 0x69e   :  { %3016 = vmatpush2.msra.mxu1 %v5894_v40  ;;  %3087 = vmatpush2.msra.mxu0 %v5896_v6 }
 0x69f   :  { %3017 = vmatprep.subr.mxu1 %v5900_v17  ;;  %3088 = vmatprep.subr.mxu0 %v5902_v41 }
 0x6a0   :  { %3018 = vmatpush2.msra.mxu1 %v5906_v1  ;;  %3089 = vmatpush2.msra.mxu0 %v5908_v42 }
 0x6a1   :  { %3019 = vmatprep.subr.mxu1 %v5912_v43  ;;  %3090 = vmatprep.subr.mxu0 %v5914_v44 }
 0x6a2   :  { %3020 = vmatpush2.msra.mxu1 %v5918_v36  ;;  %3091 = vmatpush2.msra.mxu0 %v5920_v45 }
 0x6a3   :  { %3021 = vmatprep.subr.mxu1 %v5924_v46  ;;  %3092 = vmatprep.subr.mxu0 %v5926_v47 }
 0x6a4   :  { %3022 = vmatpush2.msra.mxu1 %v5930_v51  ;;  %3093 = vmatpush2.msra.mxu0 %v5932_v52 }
 0x6a5   :  { %3023 = vmatprep.subr.mxu1 %v5934_v53  ;;  %3094 = vmatprep.subr.mxu0 %v5938_v54 }
 0x6a6   :  { %3024 = vmatpush2.msra.mxu1 %v5940_v55  ;;  %3095 = vmatpush2.msra.mxu0 %v5942_v56  ;;  %v6017_v56 = vld [vmem:[#allocation10 + $0x1f0] sm:$0xff] }
 0x6a7   :  { %3025 = vmatprep.subr.mxu1 %v5946_v57  ;;  %3096 = vmatprep.subr.mxu0 %v5948_v60 }
 0x6a8   :  { %3026 = vmatpush2.msra.mxu1 %v5950_v61  ;;  %3097 = vmatpush2.msra.mxu0 %v5954_v22 }
 0x6a9   :  { %3027 = vmatprep.subr.mxu1 %v5956_v48  ;;  %3098 = vmatprep.subr.mxu0 %v5958_v58 }
 0x6aa   :  { %3028 = vmatpush2.msra.mxu1 %v5962_v59  ;;  %3099 = vmatpush2.msra.mxu0 %v5964_v16 }
 0x6ab   :  { %3029 = vmatprep.subr.mxu1 %v5968_v12  ;;  %3100 = vmatprep.subr.mxu0 %v5970_v3 }
 0x6ac   :  { %3030 = vmatpush2.msra.mxu1 %v5974_v2  ;;  %3101 = vmatpush2.msra.mxu0 %v5976_v7 }
 0x6ad   :  { %3109 = vmatprep.subr.mxu1 %v5984_v9  ;;  %3180 = vmatprep.subr.mxu0 %v5986_v15 }
 0x72d   :  { %v2571_v8 = vpop.f32.mrf.mxu1  ;;  %v2642_v10 = vpop.f32.mrf.mxu0 }
 0x72e   :  { %v2572_v14 = vadd.f32 %v2571_v8, %v2488_v13  ;;  %v2643_v63 = vadd.f32 %v2642_v10, %v2496_v18 }
 0x72f   :  { %v2573_v21 = vpop.f32.mrf.mxu1  ;;  %v2644_v9 = vpop.f32.mrf.mxu0 }
 0x730   :  { %v5997_v7 = vmax.f32 %v2572_v14, 0.0  ;;  %v5999_v15 = vmax.f32 %v2643_v63, 0.0  ;;  %v2574_v2 = vadd.f32 %v2573_v21, %v2492_v0  ;;  %v2645_v3 = vadd.f32 %v2644_v9, %v2500_v5 }
 0x732   :  { %7236 = vst [vmem:[#allocation45_spill] sm:$0xff] %v5997_v7  ;;  %7237 = vst [vmem:[#allocation46_spill] sm:$0xff] %v5999_v15  ;;  %v2651_v49 = vsel %vm457_vm0, %v5997_v7, 0.0  ;;  %v2665_v35 = vsel %vm457_vm0, %v5999_v15, 0.0  ;;  %v6005_v50 = vmax.f32 %v2574_v2, 0.0  ;;  %v6007_v13 = vmax.f32 %v2645_v3, 0.0 }
 0x733   :  { %v2652_v25 = vrot.slane %v2651_v49, 4  ;;  %v2666_v23 = vrot.slane %v2665_v35, 4 }
 0x734   :  { %7238 = vst [vmem:[#allocation47_spill] sm:$0xff] %v6005_v50  ;;  %7239 = vst [vmem:[#allocation48_spill] sm:$0xff] %v6007_v13  ;;  %v2658_v10 = vsel %vm457_vm0, %v6005_v50, 0.0  ;;  %v2672_v9 = vsel %vm457_vm0, %v6007_v13, 0.0 }
 0x735   :  { %v2653_v18 = vadd.f32 %v2652_v25, %v2651_v49  ;;  %v2667_v8 = vadd.f32 %v2666_v23, %v2665_v35  ;;  %v2659_v14 = vrot.slane %v2658_v10, 4  ;;  %v2673_v63 = vrot.slane %v2672_v9, 4 }
 0x737   :  { %v2654_v0 = vrot.slane %v2653_v18, 2  ;;  %v2668_v5 = vrot.slane %v2667_v8, 2  ;;  %v2660_v21 = vadd.f32 %v2659_v14, %v2658_v10  ;;  %v2674_v12 = vadd.f32 %v2673_v63, %v2672_v9  ;;  %v6019_v10 = vld [vmem:[#allocation10 + $0x5f0] sm:$0xff]  ;;  %v6059_v63 = vld [vmem:[#allocation10 + $0x578] sm:$0xff] }
 0x738   :  { %v6041_v9 = vld [vmem:[#allocation10 + $0x5b0] sm:$0xff]  ;;  %7246 = vst [vmem:[#allocation55_spill] sm:$0xff] %v6059_v63 }
 0x739   :  { %v2655_v16 = vadd.f32 %v2654_v0, %v2653_v18  ;;  %v2669_v59 = vadd.f32 %v2668_v5, %v2667_v8  ;;  %v2661_v2 = vrot.slane %v2660_v21, 2  ;;  %v2675_v58 = vrot.slane %v2674_v12, 2  ;;  %v6021_v18 = vld [vmem:[#allocation10 + $0x1d8] sm:$0xff]  ;;  %v6039_v8 = vld [vmem:[#allocation10 + $0x1b0] sm:$0xff]  ;;  %7240 = vst [vmem:[#allocation49_spill] sm:$0xff] %v6041_v9 }
 0x73a   :  { %v6045_v0 = vld [vmem:[#allocation10 + $0x198] sm:$0xff]  ;;  %v6053_v14 = vld [vmem:[#allocation10 + $0x590] sm:$0xff] }
 0x73b   :  { %v2662_v3 = vadd.f32 %v2661_v2, %v2660_v21  ;;  %v2676_v48 = vadd.f32 %v2675_v58, %v2674_v12  ;;  %v2656_v49 = vrot.slane %v2655_v16, 1  ;;  %v2670_v25 = vrot.slane %v2669_v59, 1  ;;  %v6025_v58 = vld [vmem:[#allocation10 + $0x5d8] sm:$0xff]  ;;  %7241 = vst [vmem:[#allocation50_spill] sm:$0xff] %v6045_v0  ;;  %7244 = vst [vmem:[#allocation53_spill] sm:$0xff] %v6053_v14  ;;  %v6063_v21 = vld [vmem:[#allocation10 + $0x170] sm:$0xff] }
 0x73c   :  { %v6036_v12 = vld [vmem:[#allocation10 + $0x5b8] sm:$0xff]  ;;  %7247 = vst [vmem:[#allocation56_spill] sm:$0xff] %v6063_v21  ;;  %v6065_v2 = vld [vmem:[#allocation10 + $0x570] sm:$0xff] }
 0x73d   :  { %v2663_v35 = vrot.slane %v2662_v3, 1  ;;  %v2677_v23 = vrot.slane %v2676_v48, 1  ;;  %v6013_v60 = vadd.f32 %v2656_v49, %v2655_v16  ;;  %v6015_v57 = vadd.f32 %v2670_v25, %v2669_v59  ;;  %v6031_v59 = vld [vmem:[#allocation10 + $0x5d0] sm:$0xff]  ;;  %v6034_v16 = vld [vmem:[#allocation10 + $0x1b8] sm:$0xff]  ;;  %7248 = vst [vmem:[#allocation57_spill] sm:$0xff] %v6065_v2 }
 0x73e   :  { %v6047_v5 = vld [vmem:[#allocation10 + $0x598] sm:$0xff]  ;;  %v6075_v25 = vld [vmem:[#allocation10 + $0x150] sm:$0xff] }
 0x73f   :  { %v2664_v22 = vadd.f32 %v2663_v35, %v2662_v3  ;;  %v2678_v61 = vadd.f32 %v2677_v23, %v2676_v48  ;;  %v6029_v48 = vld [vmem:[#allocation10 + $0x1d0] sm:$0xff]  ;;  %7242 = vst [vmem:[#allocation51_spill] sm:$0xff] %v6047_v5  ;;  %v6069_v3 = vld [vmem:[#allocation10 + $0x158] sm:$0xff]  ;;  %7251 = vst [vmem:[#allocation60_spill] sm:$0xff] %v6075_v25 }
 0x740   :  { %7249 = vst [vmem:[#allocation58_spill] sm:$0xff] %v6069_v3  ;;  %v6071_v49 = vld [vmem:[#allocation10 + $0x558] sm:$0xff]  ;;  %v6077_v35 = vld [vmem:[#allocation10 + $0x550] sm:$0xff] }
 0x741   :  { %3031 = vmatprep.mubr.f32.mxu1 %v2664_v22  ;;  %3102 = vmatprep.mubr.f32.mxu0 %v2678_v61  ;;  %7250 = vst [vmem:[#allocation59_spill] sm:$0xff] %v6071_v49  ;;  %7252 = vst [vmem:[#allocation61_spill] sm:$0xff] %v6077_v35  ;;  %v6081_v23 = vld [vmem:[#allocation10 + $0x138] sm:$0xff] }
 0x742   :  { %3032 = vmatmul.mubr.f32.vlgmr.msra.gmra.mxu1 %v6013_v60  ;;  %3103 = vmatmul.mubr.f32.vlgmr.msra.gmra.mxu0 %v6015_v57  ;;  %7253 = vst [vmem:[#allocation62_spill] sm:$0xff] %v6081_v23 }
 0x743   :  { %3110 = vmatpush1.msra.mxu1 %v6017_v56  ;;  %3181 = vmatpush1.msra.mxu0 %v6019_v10 }
 0x744   :  { %3111 = vmatprep.subr.mxu1 %v6021_v18  ;;  %3173 = vmatprep.mubr.f32.mxu1 %v2664_v22  ;;  %v6051_v22 = vld [vmem:[#allocation10 + $0x190] sm:$0xff] }
 0x745   :  { %3182 = vmatprep.subr.mxu0 %v6025_v58  ;;  %3244 = vmatprep.mubr.f32.mxu0 %v2678_v61  ;;  %7243 = vst [vmem:[#allocation52_spill] sm:$0xff] %v6051_v22  ;;  %v6057_v61 = vld [vmem:[#allocation10 + $0x178] sm:$0xff] }
 0x746   :  { %3112 = vmatpush1.msra.mxu1 %v6029_v48  ;;  %3183 = vmatpush1.msra.mxu0 %v6031_v59  ;;  %7245 = vst [vmem:[#allocation54_spill] sm:$0xff] %v6057_v61 }
 0x747   :  { %3113 = vmatprep.subr.mxu1 %v6034_v16  ;;  %3184 = vmatprep.subr.mxu0 %v6036_v12 }
 0x748   :  { %3114 = vmatpush1.msra.mxu1 %v6039_v8  ;;  %3185 = vmatpush1.msra.mxu0 %v6041_v9 }
 0x749   :  { %3115 = vmatprep.subr.mxu1 %v6045_v0  ;;  %3186 = vmatprep.subr.mxu0 %v6047_v5  ;;  %v6261_v5 = vld [vmem:[#allocation10 + $0x770] sm:$0xff]  ;;  %v6315_v0 = vld [vmem:[#allocation10 + $0x2d8] sm:$0xff] }
 0x74a   :  { %3116 = vmatpush1.msra.mxu1 %v6051_v22  ;;  %3187 = vmatpush1.msra.mxu0 %v6053_v14  ;;  %v6083_v22 = vld [vmem:[#allocation10 + $0x538] sm:$0xff]  ;;  %v6087_v14 = vld [vmem:[#allocation10 + $0x130] sm:$0xff]  ;;  %7312 = vst [vmem:[#allocation121_spill] sm:$0xff] %v6261_v5  ;;  %7329 = vst [vmem:[#allocation138_spill] sm:$0xff] %v6315_v0 }
 0x74b   :  { %3117 = vmatprep.subr.mxu1 %v6057_v61  ;;  %3188 = vmatprep.subr.mxu0 %v6059_v63  ;;  %7254 = vst [vmem:[#allocation63_spill] sm:$0xff] %v6083_v22  ;;  %7255 = vst [vmem:[#allocation64_spill] sm:$0xff] %v6087_v14  ;;  %v6089_v61 = vld [vmem:[#allocation10 + $0x530] sm:$0xff]  ;;  %v6093_v63 = vld [vmem:[#allocation10 + $0x118] sm:$0xff] }
 0x74c   :  { %3118 = vmatpush1.msra.mxu1 %v6063_v21  ;;  %3189 = vmatpush1.msra.mxu0 %v6065_v2  ;;  %7256 = vst [vmem:[#allocation65_spill] sm:$0xff] %v6089_v61  ;;  %7257 = vst [vmem:[#allocation66_spill] sm:$0xff] %v6093_v63  ;;  %v6095_v21 = vld [vmem:[#allocation10 + $0x518] sm:$0xff]  ;;  %v6099_v2 = vld [vmem:[#allocation10 + $0x110] sm:$0xff] }
 0x74d   :  { %3119 = vmatprep.subr.mxu1 %v6069_v3  ;;  %3190 = vmatprep.subr.mxu0 %v6071_v49  ;;  %7258 = vst [vmem:[#allocation67_spill] sm:$0xff] %v6095_v21  ;;  %7259 = vst [vmem:[#allocation68_spill] sm:$0xff] %v6099_v2  ;;  %v6101_v3 = vld [vmem:[#allocation10 + $0x510] sm:$0xff]  ;;  %v6105_v49 = vld [vmem:[#allocation10 + $0xf8] sm:$0xff] }
 0x74e   :  { %3120 = vmatpush1.msra.mxu1 %v6075_v25  ;;  %3191 = vmatpush1.msra.mxu0 %v6077_v35  ;;  %7260 = vst [vmem:[#allocation69_spill] sm:$0xff] %v6101_v3  ;;  %7261 = vst [vmem:[#allocation70_spill] sm:$0xff] %v6105_v49  ;;  %v6107_v25 = vld [vmem:[#allocation10 + $0x4f8] sm:$0xff]  ;;  %v6111_v35 = vld [vmem:[#allocation10 + $0xf0] sm:$0xff] }
 0x74f   :  { %3121 = vmatprep.subr.mxu1 %v6081_v23  ;;  %3192 = vmatprep.subr.mxu0 %v6083_v22  ;;  %7262 = vst [vmem:[#allocation71_spill] sm:$0xff] %v6107_v25  ;;  %7263 = vst [vmem:[#allocation72_spill] sm:$0xff] %v6111_v35  ;;  %v6113_v23 = vld [vmem:[#allocation10 + $0x4f0] sm:$0xff]  ;;  %v6117_v22 = vld [vmem:[#allocation10 + $0xd8] sm:$0xff] }
 0x750   :  { %3122 = vmatpush1.msra.mxu1 %v6087_v14  ;;  %3193 = vmatpush1.msra.mxu0 %v6089_v61  ;;  %7264 = vst [vmem:[#allocation73_spill] sm:$0xff] %v6113_v23  ;;  %7265 = vst [vmem:[#allocation74_spill] sm:$0xff] %v6117_v22  ;;  %v6119_v14 = vld [vmem:[#allocation10 + $0x4d8] sm:$0xff]  ;;  %v6123_v61 = vld [vmem:[#allocation10 + $0xd0] sm:$0xff] }
 0x751   :  { %3123 = vmatprep.subr.mxu1 %v6093_v63  ;;  %3194 = vmatprep.subr.mxu0 %v6095_v21  ;;  %7266 = vst [vmem:[#allocation75_spill] sm:$0xff] %v6119_v14  ;;  %7267 = vst [vmem:[#allocation76_spill] sm:$0xff] %v6123_v61  ;;  %v6125_v63 = vld [vmem:[#allocation10 + $0x4d0] sm:$0xff]  ;;  %v6129_v21 = vld [vmem:[#allocation10 + $0xb8] sm:$0xff] }
 0x752   :  { %3124 = vmatpush1.msra.mxu1 %v6099_v2  ;;  %3195 = vmatpush1.msra.mxu0 %v6101_v3  ;;  %7268 = vst [vmem:[#allocation77_spill] sm:$0xff] %v6125_v63  ;;  %7269 = vst [vmem:[#allocation78_spill] sm:$0xff] %v6129_v21  ;;  %v6131_v2 = vld [vmem:[#allocation10 + $0x4b8] sm:$0xff]  ;;  %v6135_v3 = vld [vmem:[#allocation10 + $0xb0] sm:$0xff] }
 0x753   :  { %3125 = vmatprep.subr.mxu1 %v6105_v49  ;;  %3196 = vmatprep.subr.mxu0 %v6107_v25  ;;  %7270 = vst [vmem:[#allocation79_spill] sm:$0xff] %v6131_v2  ;;  %7271 = vst [vmem:[#allocation80_spill] sm:$0xff] %v6135_v3  ;;  %v6137_v49 = vld [vmem:[#allocation10 + $0x4b0] sm:$0xff]  ;;  %v6141_v25 = vld [vmem:[#allocation10 + $0x98] sm:$0xff] }
 0x754   :  { %3126 = vmatpush1.msra.mxu1 %v6111_v35  ;;  %3197 = vmatpush1.msra.mxu0 %v6113_v23  ;;  %7272 = vst [vmem:[#allocation81_spill] sm:$0xff] %v6137_v49  ;;  %7273 = vst [vmem:[#allocation82_spill] sm:$0xff] %v6141_v25  ;;  %v6143_v35 = vld [vmem:[#allocation10 + $0x498] sm:$0xff]  ;;  %v6147_v23 = vld [vmem:[#allocation10 + $0x90] sm:$0xff] }
 0x755   :  { %3127 = vmatprep.subr.mxu1 %v6117_v22  ;;  %3198 = vmatprep.subr.mxu0 %v6119_v14  ;;  %7274 = vst [vmem:[#allocation83_spill] sm:$0xff] %v6143_v35  ;;  %7275 = vst [vmem:[#allocation84_spill] sm:$0xff] %v6147_v23  ;;  %v6149_v22 = vld [vmem:[#allocation10 + $0x490] sm:$0xff]  ;;  %v6153_v14 = vld [vmem:[#allocation10 + $0x78] sm:$0xff] }
 0x756   :  { %3128 = vmatpush1.msra.mxu1 %v6123_v61  ;;  %3199 = vmatpush1.msra.mxu0 %v6125_v63  ;;  %7276 = vst [vmem:[#allocation85_spill] sm:$0xff] %v6149_v22  ;;  %7277 = vst [vmem:[#allocation86_spill] sm:$0xff] %v6153_v14  ;;  %v6155_v61 = vld [vmem:[#allocation10 + $0x478] sm:$0xff]  ;;  %v6159_v63 = vld [vmem:[#allocation10 + $0x70] sm:$0xff] }
 0x757   :  { %3129 = vmatprep.subr.mxu1 %v6129_v21  ;;  %3200 = vmatprep.subr.mxu0 %v6131_v2  ;;  %7278 = vst [vmem:[#allocation87_spill] sm:$0xff] %v6155_v61  ;;  %7279 = vst [vmem:[#allocation88_spill] sm:$0xff] %v6159_v63  ;;  %v6161_v21 = vld [vmem:[#allocation10 + $0x470] sm:$0xff]  ;;  %v6165_v2 = vld [vmem:[#allocation10 + $0x58] sm:$0xff] }
 0x758   :  { %3130 = vmatpush1.msra.mxu1 %v6135_v3  ;;  %3201 = vmatpush1.msra.mxu0 %v6137_v49  ;;  %7280 = vst [vmem:[#allocation89_spill] sm:$0xff] %v6161_v21  ;;  %7281 = vst [vmem:[#allocation90_spill] sm:$0xff] %v6165_v2  ;;  %v6167_v3 = vld [vmem:[#allocation10 + $0x458] sm:$0xff]  ;;  %v6171_v49 = vld [vmem:[#allocation10 + $0x50] sm:$0xff] }
 0x759   :  { %3131 = vmatprep.subr.mxu1 %v6141_v25  ;;  %3202 = vmatprep.subr.mxu0 %v6143_v35  ;;  %7282 = vst [vmem:[#allocation91_spill] sm:$0xff] %v6167_v3  ;;  %7283 = vst [vmem:[#allocation92_spill] sm:$0xff] %v6171_v49  ;;  %v6173_v25 = vld [vmem:[#allocation10 + $0x450] sm:$0xff]  ;;  %v6177_v35 = vld [vmem:[#allocation10 + $0x38] sm:$0xff] }
 0x75a   :  { %3132 = vmatpush1.msra.mxu1 %v6147_v23  ;;  %3203 = vmatpush1.msra.mxu0 %v6149_v22  ;;  %7284 = vst [vmem:[#allocation93_spill] sm:$0xff] %v6173_v25  ;;  %7285 = vst [vmem:[#allocation94_spill] sm:$0xff] %v6177_v35  ;;  %v6179_v23 = vld [vmem:[#allocation10 + $0x438] sm:$0xff]  ;;  %v6183_v22 = vld [vmem:[#allocation10 + $0x30] sm:$0xff] }
 0x75b   :  { %3133 = vmatprep.subr.mxu1 %v6153_v14  ;;  %3204 = vmatprep.subr.mxu0 %v6155_v61  ;;  %7286 = vst [vmem:[#allocation95_spill] sm:$0xff] %v6179_v23  ;;  %7287 = vst [vmem:[#allocation96_spill] sm:$0xff] %v6183_v22  ;;  %v6185_v14 = vld [vmem:[#allocation10 + $0x430] sm:$0xff]  ;;  %v6189_v61 = vld [vmem:[#allocation10 + $0x18] sm:$0xff] }
 0x75c   :  { %3134 = vmatpush1.msra.mxu1 %v6159_v63  ;;  %3205 = vmatpush1.msra.mxu0 %v6161_v21  ;;  %7288 = vst [vmem:[#allocation97_spill] sm:$0xff] %v6185_v14  ;;  %7289 = vst [vmem:[#allocation98_spill] sm:$0xff] %v6189_v61  ;;  %v6191_v63 = vld [vmem:[#allocation10 + $0x418] sm:$0xff]  ;;  %v6195_v21 = vld [vmem:[#allocation10 + $0x10] sm:$0xff] }
 0x75d   :  { %3135 = vmatprep.subr.mxu1 %v6165_v2  ;;  %3206 = vmatprep.subr.mxu0 %v6167_v3  ;;  %7290 = vst [vmem:[#allocation99_spill] sm:$0xff] %v6191_v63  ;;  %7291 = vst [vmem:[#allocation100_spill] sm:$0xff] %v6195_v21  ;;  %v6197_v2 = vld [vmem:[#allocation10 + $0x410] sm:$0xff]  ;;  %v6201_v3 = vld [vmem:[#allocation10 + $0x3f8] sm:$0xff] }
 0x75e   :  { %3136 = vmatpush1.msra.mxu1 %v6171_v49  ;;  %3207 = vmatpush1.msra.mxu0 %v6173_v25  ;;  %7292 = vst [vmem:[#allocation101_spill] sm:$0xff] %v6197_v2  ;;  %7293 = vst [vmem:[#allocation102_spill] sm:$0xff] %v6201_v3  ;;  %v6203_v49 = vld [vmem:[#allocation10 + $0x7f8] sm:$0xff]  ;;  %v6207_v25 = vld [vmem:[#allocation10 + $0x3f0] sm:$0xff] }
 0x75f   :  { %3137 = vmatprep.subr.mxu1 %v6177_v35  ;;  %3208 = vmatprep.subr.mxu0 %v6179_v23  ;;  %7294 = vst [vmem:[#allocation103_spill] sm:$0xff] %v6203_v49  ;;  %7295 = vst [vmem:[#allocation104_spill] sm:$0xff] %v6207_v25  ;;  %v6209_v35 = vld [vmem:[#allocation10 + $0x7f0] sm:$0xff]  ;;  %v6213_v23 = vld [vmem:[#allocation10 + $0x3d8] sm:$0xff] }
 0x760   :  { %3138 = vmatpush1.msra.mxu1 %v6183_v22  ;;  %3209 = vmatpush1.msra.mxu0 %v6185_v14  ;;  %7296 = vst [vmem:[#allocation105_spill] sm:$0xff] %v6209_v35  ;;  %7297 = vst [vmem:[#allocation106_spill] sm:$0xff] %v6213_v23  ;;  %v6215_v22 = vld [vmem:[#allocation10 + $0x7d8] sm:$0xff]  ;;  %v6219_v14 = vld [vmem:[#allocation10 + $0x3d0] sm:$0xff] }
 0x761   :  { %3139 = vmatprep.subr.mxu1 %v6189_v61  ;;  %3210 = vmatprep.subr.mxu0 %v6191_v63  ;;  %7298 = vst [vmem:[#allocation107_spill] sm:$0xff] %v6215_v22  ;;  %7299 = vst [vmem:[#allocation108_spill] sm:$0xff] %v6219_v14  ;;  %v6221_v61 = vld [vmem:[#allocation10 + $0x7d0] sm:$0xff]  ;;  %v6225_v63 = vld [vmem:[#allocation10 + $0x3b8] sm:$0xff] }
 0x762   :  { %3140 = vmatpush1.msra.mxu1 %v6195_v21  ;;  %3211 = vmatpush1.msra.mxu0 %v6197_v2  ;;  %7300 = vst [vmem:[#allocation109_spill] sm:$0xff] %v6221_v61  ;;  %7301 = vst [vmem:[#allocation110_spill] sm:$0xff] %v6225_v63  ;;  %v6227_v21 = vld [vmem:[#allocation10 + $0x7b8] sm:$0xff]  ;;  %v6231_v2 = vld [vmem:[#allocation10 + $0x3b0] sm:$0xff] }
 0x763   :  { %3141 = vmatprep.subr.mxu1 %v6201_v3  ;;  %3212 = vmatprep.subr.mxu0 %v6203_v49  ;;  %7302 = vst [vmem:[#allocation111_spill] sm:$0xff] %v6227_v21  ;;  %7303 = vst [vmem:[#allocation112_spill] sm:$0xff] %v6231_v2  ;;  %v6233_v3 = vld [vmem:[#allocation10 + $0x7b0] sm:$0xff]  ;;  %v6237_v49 = vld [vmem:[#allocation10 + $0x398] sm:$0xff] }
 0x764   :  { %3142 = vmatpush2.msra.mxu1 %v6207_v25  ;;  %3213 = vmatpush2.msra.mxu0 %v6209_v35  ;;  %7304 = vst [vmem:[#allocation113_spill] sm:$0xff] %v6233_v3  ;;  %7305 = vst [vmem:[#allocation114_spill] sm:$0xff] %v6237_v49  ;;  %v6239_v25 = vld [vmem:[#allocation10 + $0x798] sm:$0xff]  ;;  %v6243_v35 = vld [vmem:[#allocation10 + $0x390] sm:$0xff] }
 0x765   :  { %3143 = vmatprep.subr.mxu1 %v6213_v23  ;;  %3214 = vmatprep.subr.mxu0 %v6215_v22  ;;  %7306 = vst [vmem:[#allocation115_spill] sm:$0xff] %v6239_v25  ;;  %7307 = vst [vmem:[#allocation116_spill] sm:$0xff] %v6243_v35  ;;  %v6245_v23 = vld [vmem:[#allocation10 + $0x790] sm:$0xff]  ;;  %v2680_v22 = vmul.f32 %v6005_v50, %v6005_v50  ;;  %v6265_v50 = vld [vmem:[#allocation10 + $0x358] sm:$0xff] }
 0x766   :  { %3144 = vmatpush2.msra.mxu1 %v6219_v14  ;;  %3215 = vmatpush2.msra.mxu0 %v6221_v61  ;;  %7308 = vst [vmem:[#allocation117_spill] sm:$0xff] %v6245_v23  ;;  %v6251_v61 = vld [vmem:[#allocation10 + $0x378] sm:$0xff]  ;;  %7313 = vst [vmem:[#allocation122_spill] sm:$0xff] %v6265_v50 }
 0x767   :  { %3145 = vmatprep.subr.mxu1 %v6225_v63  ;;  %3216 = vmatprep.subr.mxu0 %v6227_v21  ;;  %7309 = vst [vmem:[#allocation118_spill] sm:$0xff] %v6251_v61  ;;  %v6253_v14 = vld [vmem:[#allocation10 + $0x778] sm:$0xff]  ;;  %v2682_v63 = vmul.f32 %v6007_v13, %v6007_v13  ;;  %v6259_v21 = vld [vmem:[#allocation10 + $0x370] sm:$0xff] }
 0x768   :  { %3146 = vmatpush2.msra.mxu1 %v6231_v2  ;;  %3217 = vmatpush2.msra.mxu0 %v6233_v3  ;;  %7310 = vst [vmem:[#allocation119_spill] sm:$0xff] %v6253_v14  ;;  %7311 = vst [vmem:[#allocation120_spill] sm:$0xff] %v6259_v21  ;;  %v6267_v3 = vld [vmem:[#allocation10 + $0x758] sm:$0xff]  ;;  %v6271_v13 = vld [vmem:[#allocation10 + $0x350] sm:$0xff] }
 0x769   :  { %3147 = vmatprep.subr.mxu1 %v6237_v49  ;;  %3218 = vmatprep.subr.mxu0 %v6239_v25  ;;  %7314 = vst [vmem:[#allocation123_spill] sm:$0xff] %v6267_v3  ;;  %7315 = vst [vmem:[#allocation124_spill] sm:$0xff] %v6271_v13  ;;  %v6273_v49 = vld [vmem:[#allocation10 + $0x750] sm:$0xff]  ;;  %v2690_v25 = vsel %vm457_vm0, %v2680_v22, 0.0  ;;  %v2704_v2 = vsel %vm457_vm0, %v2682_v63, 0.0  ;;  %v6291_v22 = vld [vmem:[#allocation10 + $0x318] sm:$0xff] }
 0x76a   :  { %3148 = vmatpush2.msra.mxu1 %v6243_v35  ;;  %3219 = vmatpush2.msra.mxu0 %v6245_v23  ;;  %7316 = vst [vmem:[#allocation125_spill] sm:$0xff] %v6273_v49  ;;  %v6278_v35 = vld [vmem:[#allocation10 + $0x338] sm:$0xff]  ;;  %7321 = vst [vmem:[#allocation130_spill] sm:$0xff] %v6291_v22  ;;  %v6297_v63 = vld [vmem:[#allocation10 + $0x310] sm:$0xff] }
 0x76b   :  { %3149 = vmatprep.subr.mxu1 %v6251_v61  ;;  %3220 = vmatprep.subr.mxu0 %v6253_v14  ;;  %7317 = vst [vmem:[#allocation126_spill] sm:$0xff] %v6278_v35  ;;  %v6280_v23 = vld [vmem:[#allocation10 + $0x738] sm:$0xff]  ;;  %v6285_v14 = vld [vmem:[#allocation10 + $0x330] sm:$0xff]  ;;  %7323 = vst [vmem:[#allocation132_spill] sm:$0xff] %v6297_v63 }
 0x76c   :  { %3150 = vmatpush2.msra.mxu1 %v6259_v21  ;;  %3221 = vmatpush2.msra.mxu0 %v6261_v5  ;;  %7318 = vst [vmem:[#allocation127_spill] sm:$0xff] %v6280_v23  ;;  %7319 = vst [vmem:[#allocation128_spill] sm:$0xff] %v6285_v14  ;;  %v6287_v61 = vld [vmem:[#allocation10 + $0x730] sm:$0xff]  ;;  %v6293_v5 = vld [vmem:[#allocation10 + $0x718] sm:$0xff]  ;;  %v2691_v21 = vrot.slane %v2690_v25, 4 }
 0x76d   :  { %3151 = vmatprep.subr.mxu1 %v6265_v50  ;;  %3222 = vmatprep.subr.mxu0 %v6267_v3  ;;  %7320 = vst [vmem:[#allocation129_spill] sm:$0xff] %v6287_v61  ;;  %7322 = vst [vmem:[#allocation131_spill] sm:$0xff] %v6293_v5  ;;  %v6299_v3 = vld [vmem:[#allocation10 + $0x710] sm:$0xff]  ;;  %v2705_v50 = vrot.slane %v2704_v2, 4 }
 0x76e   :  { %3152 = vmatpush2.msra.mxu1 %v6271_v13  ;;  %3223 = vmatpush2.msra.mxu0 %v6273_v49  ;;  %7324 = vst [vmem:[#allocation133_spill] sm:$0xff] %v6299_v3  ;;  %v6303_v13 = vld [vmem:[#allocation10 + $0x2f8] sm:$0xff] }
 0x76f   :  { %3153 = vmatprep.subr.mxu1 %v6278_v35  ;;  %3224 = vmatprep.subr.mxu0 %v6280_v23  ;;  %7325 = vst [vmem:[#allocation134_spill] sm:$0xff] %v6303_v13  ;;  %v6305_v49 = vld [vmem:[#allocation10 + $0x6f8] sm:$0xff]  ;;  %v6309_v35 = vld [vmem:[#allocation10 + $0x2f0] sm:$0xff]  ;;  %v2706_v9 = vadd.f32 %v2705_v50, %v2704_v2 }
 0x770   :  { %3154 = vmatpush2.msra.mxu1 %v6285_v14  ;;  %3225 = vmatpush2.msra.mxu0 %v6287_v61  ;;  %7326 = vst [vmem:[#allocation135_spill] sm:$0xff] %v6305_v49  ;;  %7327 = vst [vmem:[#allocation136_spill] sm:$0xff] %v6309_v35  ;;  %v6311_v23 = vld [vmem:[#allocation10 + $0x6f0] sm:$0xff]  ;;  %v6317_v14 = vld [vmem:[#allocation10 + $0x6d8] sm:$0xff] }
 0x771   :  { %3155 = vmatprep.subr.mxu1 %v6291_v22  ;;  %3226 = vmatprep.subr.mxu0 %v6293_v5  ;;  %7328 = vst [vmem:[#allocation137_spill] sm:$0xff] %v6311_v23  ;;  %7330 = vst [vmem:[#allocation139_spill] sm:$0xff] %v6317_v14  ;;  %v6321_v61 = vld [vmem:[#allocation10 + $0x2d0] sm:$0xff]  ;;  %v2692_v5 = vadd.f32 %v2691_v21, %v2690_v25  ;;  %v6339_v21 = vld [vmem:[#allocation10 + $0x298] sm:$0xff] }
 0x772   :  { %3156 = vmatpush2.msra.mxu1 %v6297_v63  ;;  %3227 = vmatpush2.msra.mxu0 %v6299_v3  ;;  %7331 = vst [vmem:[#allocation140_spill] sm:$0xff] %v6321_v61  ;;  %v6323_v22 = vld [vmem:[#allocation10 + $0x6d0] sm:$0xff]  ;;  %v6327_v63 = vld [vmem:[#allocation10 + $0x2b8] sm:$0xff]  ;;  %7337 = vst [vmem:[#allocation146_spill] sm:$0xff] %v6339_v21 }
 0x773   :  { %3157 = vmatprep.subr.mxu1 %v6303_v13  ;;  %3228 = vmatprep.subr.mxu0 %v6305_v49  ;;  %7332 = vst [vmem:[#allocation141_spill] sm:$0xff] %v6323_v22  ;;  %7333 = vst [vmem:[#allocation142_spill] sm:$0xff] %v6327_v63  ;;  %v6329_v3 = vld [vmem:[#allocation10 + $0x6b8] sm:$0xff]  ;;  %v6333_v13 = vld [vmem:[#allocation10 + $0x2b0] sm:$0xff] }
 0x774   :  { %3158 = vmatpush2.msra.mxu1 %v6309_v35  ;;  %3229 = vmatpush2.msra.mxu0 %v6311_v23  ;;  %7334 = vst [vmem:[#allocation143_spill] sm:$0xff] %v6329_v3  ;;  %7335 = vst [vmem:[#allocation144_spill] sm:$0xff] %v6333_v13  ;;  %v6335_v49 = vld [vmem:[#allocation10 + $0x6b0] sm:$0xff]  ;;  %v6341_v25 = vld [vmem:[#allocation10 + $0x698] sm:$0xff] }
 0x775   :  { %3159 = vmatprep.subr.mxu1 %v6315_v0  ;;  %3230 = vmatprep.subr.mxu0 %v6317_v14  ;;  %7336 = vst [vmem:[#allocation145_spill] sm:$0xff] %v6335_v49  ;;  %7338 = vst [vmem:[#allocation147_spill] sm:$0xff] %v6341_v25  ;;  %v6345_v50 = vld [vmem:[#allocation10 + $0x290] sm:$0xff]  ;;  %v2693_v14 = vrot.slane %v2692_v5, 2  ;;  %v2707_v0 = vrot.slane %v2706_v9, 2 }
 0x776   :  { %3160 = vmatpush2.msra.mxu1 %v6321_v61  ;;  %3231 = vmatpush2.msra.mxu0 %v6323_v22  ;;  %7339 = vst [vmem:[#allocation148_spill] sm:$0xff] %v6345_v50  ;;  %v6347_v2 = vld [vmem:[#allocation10 + $0x690] sm:$0xff]  ;;  %v6351_v61 = vld [vmem:[#allocation10 + $0x278] sm:$0xff] }
 0x777   :  { %3161 = vmatprep.subr.mxu1 %v6327_v63  ;;  %3232 = vmatprep.subr.mxu0 %v6329_v3  ;;  %7340 = vst [vmem:[#allocation149_spill] sm:$0xff] %v6347_v2  ;;  %7341 = vst [vmem:[#allocation33_spill] sm:$0xff] %v6351_v61  ;;  %v6353_v22 = vld [vmem:[#allocation10 + $0x678] sm:$0xff]  ;;  %v6357_v63 = vld [vmem:[#allocation10 + $0x270] sm:$0xff]  ;;  %v2708_v35 = vadd.f32 %v2707_v0, %v2706_v9 }
 0x778   :  { %3162 = vmatpush2.msra.mxu1 %v6333_v13  ;;  %3233 = vmatpush2.msra.mxu0 %v6335_v49  ;;  %7342 = vst [vmem:[#allocation35_spill] sm:$0xff] %v6353_v22  ;;  %v6359_v3 = vld [vmem:[#allocation10 + $0x670] sm:$0xff]  ;;  %v6363_v13 = vld [vmem:[#allocation10 + $0x258] sm:$0xff] }
 0x779   :  { %3163 = vmatprep.subr.mxu1 %v6339_v21  ;;  %3234 = vmatprep.subr.mxu0 %v6341_v25  ;;  %v6365_v49 = vld [vmem:[#allocation10 + $0x658] sm:$0xff]  ;;  %v6369_v23 = vld [vmem:[#allocation10 + $0x250] sm:$0xff]  ;;  %v2694_v25 = vadd.f32 %v2693_v14, %v2692_v5 }
 0x77a   :  { %3164 = vmatpush2.msra.mxu1 %v6345_v50  ;;  %3235 = vmatpush2.msra.mxu0 %v6347_v2  ;;  %7343 = vst [vmem:[#allocation34_spill] sm:$0xff] %v6365_v49  ;;  %7344 = vst [vmem:[#allocation36_spill] sm:$0xff] %v6369_v23  ;;  %v6371_v21 = vld [vmem:[#allocation10 + $0x650] sm:$0xff]  ;;  %v6375_v50 = vld [vmem:[#allocation10 + $0x238] sm:$0xff] }
 0x77b   :  { %3165 = vmatprep.subr.mxu1 %v6351_v61  ;;  %3236 = vmatprep.subr.mxu0 %v6353_v22  ;;  %7345 = vst [vmem:[#allocation150_spill] sm:$0xff] %v6371_v21  ;;  %7346 = vst [vmem:[#allocation151_spill] sm:$0xff] %v6375_v50  ;;  %v6377_v2 = vld [vmem:[#allocation10 + $0x638] sm:$0xff]  ;;  %v6381_v61 = vld [vmem:[#allocation10 + $0x230] sm:$0xff] }
 0x77c   :  { %3166 = vmatpush2.msra.mxu1 %v6357_v63  ;;  %3237 = vmatpush2.msra.mxu0 %v6359_v3  ;;  %7347 = vst [vmem:[#allocation152_spill] sm:$0xff] %v6377_v2  ;;  %7348 = vst [vmem:[#allocation153_spill] sm:$0xff] %v6381_v61  ;;  %v6383_v22 = vld [vmem:[#allocation10 + $0x630] sm:$0xff]  ;;  %v6387_v5 = vld [vmem:[#allocation10 + $0x218] sm:$0xff] }
 0x77d   :  { %3167 = vmatprep.subr.mxu1 %v6363_v13  ;;  %3238 = vmatprep.subr.mxu0 %v6365_v49  ;;  %7349 = vst [vmem:[#allocation154_spill] sm:$0xff] %v6383_v22  ;;  %v6389_v14 = vld [vmem:[#allocation10 + $0x618] sm:$0xff]  ;;  %v6393_v9 = vld [vmem:[#allocation10 + $0x210] sm:$0xff]  ;;  %v2695_v49 = vrot.slane %v2694_v25, 1 }
 0x77e   :  { %3168 = vmatpush2.msra.mxu1 %v6369_v23  ;;  %3239 = vmatpush2.msra.mxu0 %v6371_v21  ;;  %7350 = vst [vmem:[#allocation155_spill] sm:$0xff] %v6389_v14  ;;  %v6395_v0 = vld [vmem:[#allocation10 + $0x610] sm:$0xff]  ;;  %v2709_v23 = vrot.slane %v2708_v35, 1  ;;  %v4212_v21 = vld [vmem:[#allocation10 + $0x1e0] sm:$0xff] }
 0x77f   :  { %3169 = vmatprep.subr.mxu1 %v6375_v50  ;;  %3240 = vmatprep.subr.mxu0 %v6377_v2  ;;  %7351 = vst [vmem:[#allocation156_spill] sm:$0xff] %v6395_v0  ;;  %v6405_v2 = vadd.f32 %v2695_v49, %v2694_v25  ;;  %v4210_v50 = vld [vmem:[#allocation10 + $0x1e8] sm:$0xff]  ;;  %v4217_v49 = vld [vmem:[#allocation10 + $0x5c0] sm:$0xff] }
 0x780   :  { %3170 = vmatpush2.msra.mxu1 %v6381_v61  ;;  %3241 = vmatpush2.msra.mxu0 %v6383_v22  ;;  %v4211_v61 = vld [vmem:[#allocation10 + $0x5e8] sm:$0xff]  ;;  %v6407_v22 = vadd.f32 %v2709_v23, %v2708_v35  ;;  %v4220_v35 = vld [vmem:[#allocation10 + $0x1a0] sm:$0xff] }
 0x781   :  { %3171 = vmatprep.subr.mxu1 %v6387_v5  ;;  %3242 = vmatprep.subr.mxu0 %v6389_v14  ;;  %v4213_v14 = vld [vmem:[#allocation10 + $0x5e0] sm:$0xff]  ;;  %v4218_v25 = vld [vmem:[#allocation10 + $0x1a8] sm:$0xff] }
 0x782   :  { %3172 = vmatpush2.msra.mxu1 %v6393_v9  ;;  %3243 = vmatpush2.msra.mxu0 %v6395_v0  ;;  %v4214_v0 = vld [vmem:[#allocation10 + $0x1c8] sm:$0xff]  ;;  %v4221_v23 = vld [vmem:[#allocation10 + $0x5a0] sm:$0xff] }
 0x783   :  { %3174 = vmatmul.mubr.f32.vlgmr.msra.gmra.mxu1 %v6013_v60  ;;  %3245 = vmatmul.mubr.f32.vlgmr.msra.gmra.mxu0 %v6015_v57  ;;  %v4215_v60 = vld [vmem:[#allocation10 + $0x5c8] sm:$0xff]  ;;  %v4216_v57 = vld [vmem:[#allocation10 + $0x1c0] sm:$0xff] }
 0x784   :  { %3255 = vmatprep.subr.mxu1 %v4210_v50  ;;  %3326 = vmatprep.subr.mxu0 %v4211_v61  ;;  %v4219_v61 = vld [vmem:[#allocation10 + $0x5a8] sm:$0xff] }
 0x785   :  { %3256 = vmatpush1.msra.mxu1 %v4212_v21  ;;  %3319 = vmatprep.mubr.f32.mxu1 %v6405_v2  ;;  %v4222_v21 = vld [vmem:[#allocation10 + $0x188] sm:$0xff] }
 0x786   :  { %3327 = vmatpush1.msra.mxu0 %v4213_v14  ;;  %3390 = vmatprep.mubr.f32.mxu0 %v6407_v22  ;;  %v4223_v50 = vld [vmem:[#allocation10 + $0x588] sm:$0xff]  ;;  %v4224_v14 = vld [vmem:[#allocation10 + $0x180] sm:$0xff] }
 0x787   :  { %3257 = vmatprep.subr.mxu1 %v4214_v0  ;;  %3328 = vmatprep.subr.mxu0 %v4215_v60  ;;  %v4225_v0 = vld [vmem:[#allocation10 + $0x580] sm:$0xff]  ;;  %v4226_v60 = vld [vmem:[#allocation10 + $0x168] sm:$0xff] }
 0x788   :  { %3258 = vmatpush1.msra.mxu1 %v4216_v57  ;;  %3329 = vmatpush1.msra.mxu0 %v4217_v49  ;;  %v4227_v57 = vld [vmem:[#allocation10 + $0x568] sm:$0xff]  ;;  %v4228_v49 = vld [vmem:[#allocation10 + $0x160] sm:$0xff] }
 0x789   :  { %3259 = vmatprep.subr.mxu1 %v4218_v25  ;;  %3330 = vmatprep.subr.mxu0 %v4219_v61  ;;  %v4229_v25 = vld [vmem:[#allocation10 + $0x560] sm:$0xff]  ;;  %v4230_v61 = vld [vmem:[#allocation10 + $0x148] sm:$0xff] }
 0x78a   :  { %3260 = vmatpush1.msra.mxu1 %v4220_v35  ;;  %3331 = vmatpush1.msra.mxu0 %v4221_v23  ;;  %v4231_v35 = vld [vmem:[#allocation10 + $0x548] sm:$0xff]  ;;  %v4232_v23 = vld [vmem:[#allocation10 + $0x140] sm:$0xff] }
 0x78b   :  { %3261 = vmatprep.subr.mxu1 %v4222_v21  ;;  %3332 = vmatprep.subr.mxu0 %v4223_v50  ;;  %v4233_v21 = vld [vmem:[#allocation10 + $0x540] sm:$0xff]  ;;  %v4234_v50 = vld [vmem:[#allocation10 + $0x128] sm:$0xff] }
 0x78c   :  { %3262 = vmatpush1.msra.mxu1 %v4224_v14  ;;  %3333 = vmatpush1.msra.mxu0 %v4225_v0  ;;  %v4235_v14 = vld [vmem:[#allocation10 + $0x528] sm:$0xff]  ;;  %v4236_v0 = vld [vmem:[#allocation10 + $0x120] sm:$0xff] }
 0x78d   :  { %3263 = vmatprep.subr.mxu1 %v4226_v60  ;;  %3334 = vmatprep.subr.mxu0 %v4227_v57  ;;  %v4237_v60 = vld [vmem:[#allocation10 + $0x520] sm:$0xff]  ;;  %v4238_v57 = vld [vmem:[#allocation10 + $0x108] sm:$0xff] }
 0x78e   :  { %3264 = vmatpush1.msra.mxu1 %v4228_v49  ;;  %3335 = vmatpush1.msra.mxu0 %v4229_v25  ;;  %v4239_v49 = vld [vmem:[#allocation10 + $0x508] sm:$0xff]  ;;  %v4240_v25 = vld [vmem:[#allocation10 + $0x100] sm:$0xff] }
 0x78f   :  { %3265 = vmatprep.subr.mxu1 %v4230_v61  ;;  %3336 = vmatprep.subr.mxu0 %v4231_v35  ;;  %v4241_v61 = vld [vmem:[#allocation10 + $0x500] sm:$0xff]  ;;  %v4242_v35 = vld [vmem:[#allocation10 + $0xe8] sm:$0xff] }
 0x790   :  { %3266 = vmatpush1.msra.mxu1 %v4232_v23  ;;  %3337 = vmatpush1.msra.mxu0 %v4233_v21  ;;  %v4243_v23 = vld [vmem:[#allocation10 + $0x4e8] sm:$0xff]  ;;  %v4244_v21 = vld [vmem:[#allocation10 + $0xe0] sm:$0xff] }
 0x791   :  { %3267 = vmatprep.subr.mxu1 %v4234_v50  ;;  %3338 = vmatprep.subr.mxu0 %v4235_v14  ;;  %v4245_v50 = vld [vmem:[#allocation10 + $0x4e0] sm:$0xff]  ;;  %v4246_v14 = vld [vmem:[#allocation10 + $0xc8] sm:$0xff] }
 0x792   :  { %3268 = vmatpush1.msra.mxu1 %v4236_v0  ;;  %3339 = vmatpush1.msra.mxu0 %v4237_v60  ;;  %v4247_v0 = vld [vmem:[#allocation10 + $0x4c8] sm:$0xff]  ;;  %v4248_v60 = vld [vmem:[#allocation10 + $0xc0] sm:$0xff] }
 0x793   :  { %3269 = vmatprep.subr.mxu1 %v4238_v57  ;;  %3340 = vmatprep.subr.mxu0 %v4239_v49  ;;  %v4249_v57 = vld [vmem:[#allocation10 + $0x4c0] sm:$0xff]  ;;  %v4250_v49 = vld [vmem:[#allocation10 + $0xa8] sm:$0xff] }
 0x794   :  { %3270 = vmatpush1.msra.mxu1 %v4240_v25  ;;  %3341 = vmatpush1.msra.mxu0 %v4241_v61  ;;  %v4251_v25 = vld [vmem:[#allocation10 + $0x4a8] sm:$0xff]  ;;  %v4252_v61 = vld [vmem:[#allocation10 + $0xa0] sm:$0xff] }
 0x795   :  { %3271 = vmatprep.subr.mxu1 %v4242_v35  ;;  %3342 = vmatprep.subr.mxu0 %v4243_v23  ;;  %v4253_v35 = vld [vmem:[#allocation10 + $0x4a0] sm:$0xff]  ;;  %v4254_v23 = vld [vmem:[#allocation10 + $0x88] sm:$0xff] }
 0x796   :  { %3272 = vmatpush1.msra.mxu1 %v4244_v21  ;;  %3343 = vmatpush1.msra.mxu0 %v4245_v50  ;;  %v4255_v21 = vld [vmem:[#allocation10 + $0x488] sm:$0xff]  ;;  %v4256_v50 = vld [vmem:[#allocation10 + $0x80] sm:$0xff] }
 0x797   :  { %3273 = vmatprep.subr.mxu1 %v4246_v14  ;;  %3344 = vmatprep.subr.mxu0 %v4247_v0  ;;  %v4257_v14 = vld [vmem:[#allocation10 + $0x480] sm:$0xff]  ;;  %v4258_v0 = vld [vmem:[#allocation10 + $0x68] sm:$0xff] }
 0x798   :  { %3274 = vmatpush1.msra.mxu1 %v4248_v60  ;;  %3345 = vmatpush1.msra.mxu0 %v4249_v57  ;;  %v4259_v60 = vld [vmem:[#allocation10 + $0x468] sm:$0xff]  ;;  %v4260_v57 = vld [vmem:[#allocation10 + $0x60] sm:$0xff] }
 0x799   :  { %3275 = vmatprep.subr.mxu1 %v4250_v49  ;;  %3346 = vmatprep.subr.mxu0 %v4251_v25  ;;  %v4261_v49 = vld [vmem:[#allocation10 + $0x460] sm:$0xff]  ;;  %v4262_v25 = vld [vmem:[#allocation10 + $0x48] sm:$0xff] }
 0x79a   :  { %3276 = vmatpush1.msra.mxu1 %v4252_v61  ;;  %3347 = vmatpush1.msra.mxu0 %v4253_v35  ;;  %v4263_v61 = vld [vmem:[#allocation10 + $0x448] sm:$0xff]  ;;  %v4264_v35 = vld [vmem:[#allocation10 + $0x40] sm:$0xff] }
 0x79b   :  { %3277 = vmatprep.subr.mxu1 %v4254_v23  ;;  %3348 = vmatprep.subr.mxu0 %v4255_v21  ;;  %v4265_v23 = vld [vmem:[#allocation10 + $0x440] sm:$0xff]  ;;  %v4266_v21 = vld [vmem:[#allocation10 + $0x28] sm:$0xff] }
 0x79c   :  { %3278 = vmatpush1.msra.mxu1 %v4256_v50  ;;  %3349 = vmatpush1.msra.mxu0 %v4257_v14  ;;  %v4267_v50 = vld [vmem:[#allocation10 + $0x428] sm:$0xff]  ;;  %v4268_v14 = vld [vmem:[#allocation10 + $0x20] sm:$0xff] }
 0x79d   :  { %3279 = vmatprep.subr.mxu1 %v4258_v0  ;;  %3350 = vmatprep.subr.mxu0 %v4259_v60  ;;  %v4269_v0 = vld [vmem:[#allocation10 + $0x420] sm:$0xff]  ;;  %v4270_v60 = vld [vmem:[#allocation10 + $0x8] sm:$0xff] }
 0x79e   :  { %3280 = vmatpush1.msra.mxu1 %v4260_v57  ;;  %3351 = vmatpush1.msra.mxu0 %v4261_v49  ;;  %v4271_v57 = vld [vmem:[#allocation10 + $0x408] sm:$0xff]  ;;  %v4272_v49 = vld [vmem:[#allocation10] sm:$0xff] }
 0x79f   :  { %3281 = vmatprep.subr.mxu1 %v4262_v25  ;;  %3352 = vmatprep.subr.mxu0 %v4263_v61  ;;  %v4273_v25 = vld [vmem:[#allocation10 + $0x400] sm:$0xff]  ;;  %v4274_v61 = vld [vmem:[#allocation10 + $0x3e8] sm:$0xff] }
 0x7a0   :  { %3282 = vmatpush1.msra.mxu1 %v4264_v35  ;;  %3353 = vmatpush1.msra.mxu0 %v4265_v23  ;;  %v4275_v35 = vld [vmem:[#allocation10 + $0x7e8] sm:$0xff]  ;;  %v4276_v23 = vld [vmem:[#allocation10 + $0x3e0] sm:$0xff] }
 0x7a1   :  { %3283 = vmatprep.subr.mxu1 %v4266_v21  ;;  %3354 = vmatprep.subr.mxu0 %v4267_v50  ;;  %v4277_v21 = vld [vmem:[#allocation10 + $0x7e0] sm:$0xff]  ;;  %v4278_v50 = vld [vmem:[#allocation10 + $0x3c8] sm:$0xff] }
 0x7a2   :  { %3284 = vmatpush1.msra.mxu1 %v4268_v14  ;;  %3355 = vmatpush1.msra.mxu0 %v4269_v0  ;;  %v4279_v14 = vld [vmem:[#allocation10 + $0x7c8] sm:$0xff]  ;;  %v2679_v0 = vmul.f32 %v5997_v7, %v5997_v7  ;;  %v4288_v7 = vld [vmem:[#allocation10 + $0x380] sm:$0xff] }
 0x7a3   :  { %3285 = vmatprep.subr.mxu1 %v4270_v60  ;;  %3356 = vmatprep.subr.mxu0 %v4271_v57  ;;  %v2681_v60 = vmul.f32 %v5999_v15, %v5999_v15  ;;  %v4280_v57 = vld [vmem:[#allocation10 + $0x3c0] sm:$0xff] }
 0x7a4   :  { %3286 = vmatpush1.msra.mxu1 %v4272_v49  ;;  %3357 = vmatpush1.msra.mxu0 %v4273_v25  ;;  %v4281_v49 = vld [vmem:[#allocation10 + $0x7c0] sm:$0xff]  ;;  %v4282_v25 = vld [vmem:[#allocation10 + $0x3a8] sm:$0xff] }
 0x7a5   :  { %3287 = vmatprep.subr.mxu1 %v4274_v61  ;;  %3358 = vmatprep.subr.mxu0 %v4275_v35  ;;  %v4283_v61 = vld [vmem:[#allocation10 + $0x7a8] sm:$0xff]  ;;  %v4284_v35 = vld [vmem:[#allocation10 + $0x3a0] sm:$0xff]  ;;  %v2697_v15 = vsel %vm457_vm0, %v2681_v60, 0.0 }
 0x7a6   :  { %3288 = vmatpush2.msra.mxu1 %v4276_v23  ;;  %3359 = vmatpush2.msra.mxu0 %v4277_v21  ;;  %v4285_v23 = vld [vmem:[#allocation10 + $0x7a0] sm:$0xff]  ;;  %v4286_v21 = vld [vmem:[#allocation10 + $0x388] sm:$0xff] }
 0x7a7   :  { %3289 = vmatprep.subr.mxu1 %v4278_v50  ;;  %3360 = vmatprep.subr.mxu0 %v4279_v14  ;;  %v4287_v50 = vld [vmem:[#allocation10 + $0x788] sm:$0xff]  ;;  %v2683_v14 = vsel %vm457_vm0, %v2679_v0, 0.0  ;;  %v7390_v0 = vld [vmem:[#allocation72_spill] sm:$0xff]  ;;  %v7391_v60 = vld [vmem:[#allocation73_spill] sm:$0xff] }
 0x7a8   :  { %3290 = vmatpush2.msra.mxu1 %v4280_v57  ;;  %3361 = vmatpush2.msra.mxu0 %v4281_v49  ;;  %v4289_v57 = vld [vmem:[#allocation10 + $0x780] sm:$0xff]  ;;  %v2684_v49 = vrot.slane %v2683_v14, 4 }
 0x7a9   :  { %3291 = vmatprep.subr.mxu1 %v4282_v25  ;;  %3362 = vmatprep.subr.mxu0 %v4283_v61  ;;  %v2698_v25 = vrot.slane %v2697_v15, 4  ;;  %v7392_v61 = vld [vmem:[#allocation74_spill] sm:$0xff] }
 0x7aa   :  { %3292 = vmatpush2.msra.mxu1 %v4284_v35  ;;  %3363 = vmatpush2.msra.mxu0 %v4285_v23  ;;  %v7393_v35 = vld [vmem:[#allocation75_spill] sm:$0xff]  ;;  %v7394_v23 = vld [vmem:[#allocation76_spill] sm:$0xff] }
 0x7ab   :  { %3293 = vmatprep.subr.mxu1 %v4286_v21  ;;  %3364 = vmatprep.subr.mxu0 %v4287_v50  ;;  %v7395_v21 = vld [vmem:[#allocation77_spill] sm:$0xff]  ;;  %v7396_v50 = vld [vmem:[#allocation78_spill] sm:$0xff] }
 0x7ac   :  { %3294 = vmatpush2.msra.mxu1 %v4288_v7  ;;  %3365 = vmatpush2.msra.mxu0 %v4289_v57  ;;  %v7378_v7 = vld [vmem:[#allocation60_spill] sm:$0xff] }
 0x7ad   :  { %3295 = vmatprep.subr.mxu1 %v5840_v62  ;;  %3366 = vmatprep.subr.mxu0 %v5842_v4  ;;  %v2685_v62 = vadd.f32 %v2684_v49, %v2683_v14  ;;  %v2699_v4 = vadd.f32 %v2698_v25, %v2697_v15  ;;  %v7379_v15 = vld [vmem:[#allocation61_spill] sm:$0xff]  ;;  %v7397_v14 = vld [vmem:[#allocation79_spill] sm:$0xff]  ;;  %v7398_v57 = vld [vmem:[#allocation80_spill] sm:$0xff] }
 0x7ae   :  { %3296 = vmatpush2.msra.mxu1 %v5844_v26  ;;  %3367 = vmatpush2.msra.mxu0 %v5846_v27  ;;  %v7399_v49 = vld [vmem:[#allocation81_spill] sm:$0xff]  ;;  %v7400_v25 = vld [vmem:[#allocation82_spill] sm:$0xff] }
 0x7af   :  { %3297 = vmatprep.subr.mxu1 %v5848_v28  ;;  %3368 = vmatprep.subr.mxu0 %v5850_v29  ;;  %v2686_v26 = vrot.slane %v2685_v62, 2  ;;  %v2700_v27 = vrot.slane %v2699_v4, 2 }
 0x7b0   :  { %3298 = vmatpush2.msra.mxu1 %v5854_v20  ;;  %3369 = vmatpush2.msra.mxu0 %v5856_v30  ;;  %v7352_v20 = vld [vmem:[#allocation22_spill] sm:$0xff]  ;;  %v7353_v30 = vld [vmem:[#allocation23_spill] sm:$0xff] }
 0x7b1   :  { %3299 = vmatprep.subr.mxu1 %v5864_v31  ;;  %3370 = vmatprep.subr.mxu0 %v5866_v32  ;;  %v2687_v28 = vadd.f32 %v2686_v26, %v2685_v62  ;;  %v2701_v29 = vadd.f32 %v2700_v27, %v2699_v4  ;;  %v7354_v31 = vld [vmem:[#allocation24_spill] sm:$0xff]  ;;  %v7401_v62 = vld [vmem:[#allocation83_spill] sm:$0xff]  ;;  %v7403_v26 = vld [vmem:[#allocation85_spill] sm:$0xff] }
 0x7b2   :  { %3300 = vmatpush2.msra.mxu1 %v5870_v19  ;;  %3371 = vmatpush2.msra.mxu0 %v5872_v24  ;;  %v7355_v24 = vld [vmem:[#allocation25_spill] sm:$0xff]  ;;  %v7402_v4 = vld [vmem:[#allocation84_spill] sm:$0xff]  ;;  %v7404_v27 = vld [vmem:[#allocation86_spill] sm:$0xff] }
 0x7b3   :  { %3301 = vmatprep.subr.mxu1 %v5876_v11  ;;  %3372 = vmatprep.subr.mxu0 %v5878_v33  ;;  %v2688_v32 = vrot.slane %v2687_v28, 1  ;;  %v2702_v19 = vrot.slane %v2701_v29, 1  ;;  %v7356_v11 = vld [vmem:[#allocation26_spill] sm:$0xff]  ;;  %v7357_v33 = vld [vmem:[#allocation27_spill] sm:$0xff] }
 0x7b4   :  { %3302 = vmatpush2.msra.mxu1 %v5882_v34  ;;  %3373 = vmatpush2.msra.mxu0 %v5884_v37  ;;  %v7358_v34 = vld [vmem:[#allocation28_spill] sm:$0xff]  ;;  %v7359_v37 = vld [vmem:[#allocation37_spill] sm:$0xff] }
 0x7b5   :  { %3303 = vmatprep.subr.mxu1 %v5888_v38  ;;  %3374 = vmatprep.subr.mxu0 %v5890_v39  ;;  %v7360_v38 = vld [vmem:[#allocation38_spill] sm:$0xff]  ;;  %v7361_v39 = vld [vmem:[#allocation39_spill] sm:$0xff] }
 0x7b6   :  { %3304 = vmatpush2.msra.mxu1 %v5894_v40  ;;  %3375 = vmatpush2.msra.mxu0 %v5896_v6  ;;  %v7362_v40 = vld [vmem:[#allocation40_spill] sm:$0xff]  ;;  %v6463_v6 = vadd.f32 %v2688_v32, %v2687_v28  ;;  %v7405_v28 = vld [vmem:[#allocation87_spill] sm:$0xff] }
 0x7b7   :  { %3305 = vmatprep.subr.mxu1 %v5900_v17  ;;  %3376 = vmatprep.subr.mxu0 %v5902_v41  ;;  %v6465_v17 = vadd.f32 %v2702_v19, %v2701_v29  ;;  %v7363_v41 = vld [vmem:[#allocation41_spill] sm:$0xff]  ;;  %v7406_v29 = vld [vmem:[#allocation88_spill] sm:$0xff] }
 0x7b8   :  { %3306 = vmatpush2.msra.mxu1 %v5906_v1  ;;  %3377 = vmatpush2.msra.mxu0 %v5908_v42  ;;  %v7364_v1 = vld [vmem:[#allocation42_spill] sm:$0xff]  ;;  %v7365_v42 = vld [vmem:[#allocation43_spill] sm:$0xff]  ;;  %v7410_v32 = vld [vmem:[#allocation92_spill] sm:$0xff] }
 0x7b9   :  { %3307 = vmatprep.subr.mxu1 %v5912_v43  ;;  %3378 = vmatprep.subr.mxu0 %v5914_v44  ;;  %v7366_v43 = vld [vmem:[#allocation44_spill] sm:$0xff]  ;;  %v7367_v44 = vld [vmem:[#allocation49_spill] sm:$0xff] }
 0x7ba   :  { %3308 = vmatpush2.msra.mxu1 %v5918_v36  ;;  %3379 = vmatpush2.msra.mxu0 %v5920_v45  ;;  %v7368_v36 = vld [vmem:[#allocation50_spill] sm:$0xff]  ;;  %v7369_v45 = vld [vmem:[#allocation51_spill] sm:$0xff]  ;;  %v7411_v19 = vld [vmem:[#allocation93_spill] sm:$0xff] }
 0x7bb   :  { %3309 = vmatprep.subr.mxu1 %v5924_v46  ;;  %3380 = vmatprep.subr.mxu0 %v5926_v47  ;;  %v7370_v46 = vld [vmem:[#allocation52_spill] sm:$0xff]  ;;  %v7371_v47 = vld [vmem:[#allocation53_spill] sm:$0xff] }
 0x7bc   :  { %3310 = vmatpush2.msra.mxu1 %v5930_v51  ;;  %3381 = vmatpush2.msra.mxu0 %v5932_v52  ;;  %v7372_v51 = vld [vmem:[#allocation54_spill] sm:$0xff]  ;;  %v7373_v52 = vld [vmem:[#allocation55_spill] sm:$0xff] }
 0x7bd   :  { %3311 = vmatprep.subr.mxu1 %v5934_v53  ;;  %3382 = vmatprep.subr.mxu0 %v5938_v54  ;;  %v7374_v53 = vld [vmem:[#allocation56_spill] sm:$0xff]  ;;  %v7375_v54 = vld [vmem:[#allocation57_spill] sm:$0xff] }
 0x7be   :  { %3312 = vmatpush2.msra.mxu1 %v5940_v55  ;;  %3383 = vmatpush2.msra.mxu0 %v7352_v20  ;;  %v7376_v55 = vld [vmem:[#allocation58_spill] sm:$0xff]  ;;  %v7407_v20 = vld [vmem:[#allocation89_spill] sm:$0xff] }
 0x7bf   :  { %3313 = vmatprep.subr.mxu1 %v7353_v30  ;;  %3384 = vmatprep.subr.mxu0 %v7354_v31  ;;  %v7408_v30 = vld [vmem:[#allocation90_spill] sm:$0xff]  ;;  %v7409_v31 = vld [vmem:[#allocation91_spill] sm:$0xff] }
 0x7c0   :  { %3314 = vmatpush2.msra.mxu1 %v7355_v24  ;;  %3385 = vmatpush2.msra.mxu0 %v7356_v11  ;;  %v7412_v24 = vld [vmem:[#allocation94_spill] sm:$0xff]  ;;  %v7413_v11 = vld [vmem:[#allocation95_spill] sm:$0xff] }
 0x7c1   :  { %3315 = vmatprep.subr.mxu1 %v7357_v33  ;;  %3386 = vmatprep.subr.mxu0 %v7358_v34  ;;  %v7414_v33 = vld [vmem:[#allocation96_spill] sm:$0xff]  ;;  %v7415_v34 = vld [vmem:[#allocation97_spill] sm:$0xff] }
 0x7c2   :  { %3316 = vmatpush2.msra.mxu1 %v7359_v37  ;;  %3387 = vmatpush2.msra.mxu0 %v7360_v38  ;;  %v7416_v37 = vld [vmem:[#allocation98_spill] sm:$0xff]  ;;  %v7417_v38 = vld [vmem:[#allocation99_spill] sm:$0xff] }
 0x7c3   :  { %3317 = vmatprep.subr.mxu1 %v7361_v39  ;;  %3388 = vmatprep.subr.mxu0 %v7362_v40  ;;  %v7418_v39 = vld [vmem:[#allocation100_spill] sm:$0xff]  ;;  %v7419_v40 = vld [vmem:[#allocation101_spill] sm:$0xff] }
 0x7c4   :  { %3318 = vmatpush2.msra.mxu1 %v7363_v41  ;;  %3389 = vmatpush2.msra.mxu0 %v7364_v1  ;;  %v7420_v41 = vld [vmem:[#allocation102_spill] sm:$0xff]  ;;  %v7421_v1 = vld [vmem:[#allocation103_spill] sm:$0xff] }
 0x7c5   :  { %3320 = vmatmul.mubr.f32.vlgmr.msra.gmra.mxu1 %v6463_v6  ;;  %3391 = vmatmul.mubr.f32.vlgmr.msra.gmra.mxu0 %v6465_v17 }
 0x7c6   :  { %3397 = vmatprep.subr.mxu1 %v7365_v42  ;;  %3468 = vmatprep.subr.mxu0 %v7366_v43  ;;  %v7422_v42 = vld [vmem:[#allocation104_spill] sm:$0xff]  ;;  %v7423_v43 = vld [vmem:[#allocation105_spill] sm:$0xff] }
 0x7c7   :  { %3398 = vmatpush1.msra.mxu1 %v6017_v56  ;;  %3461 = vmatprep.mubr.f32.mxu1 %v6405_v2  ;;  %v7377_v56 = vld [vmem:[#allocation59_spill] sm:$0xff] }
 0x7c8   :  { %3469 = vmatpush1.msra.mxu0 %v6019_v10  ;;  %3532 = vmatprep.mubr.f32.mxu0 %v6407_v22  ;;  %v7380_v10 = vld [vmem:[#allocation62_spill] sm:$0xff]  ;;  %v7389_v2 = vld [vmem:[#allocation71_spill] sm:$0xff] }
 0x7c9   :  { %3399 = vmatprep.subr.mxu1 %v6021_v18  ;;  %3470 = vmatprep.subr.mxu0 %v6025_v58  ;;  %v7381_v18 = vld [vmem:[#allocation63_spill] sm:$0xff]  ;;  %v7382_v58 = vld [vmem:[#allocation64_spill] sm:$0xff]  ;;  %v7388_v22 = vld [vmem:[#allocation70_spill] sm:$0xff] }
 0x7ca   :  { %3400 = vmatpush1.msra.mxu1 %v6029_v48  ;;  %3471 = vmatpush1.msra.mxu0 %v6031_v59  ;;  %v7383_v48 = vld [vmem:[#allocation65_spill] sm:$0xff]  ;;  %v7384_v59 = vld [vmem:[#allocation66_spill] sm:$0xff] }
 0x7cb   :  { %3401 = vmatprep.subr.mxu1 %v6034_v16  ;;  %3472 = vmatprep.subr.mxu0 %v6036_v12  ;;  %v7385_v16 = vld [vmem:[#allocation67_spill] sm:$0xff]  ;;  %v7386_v12 = vld [vmem:[#allocation68_spill] sm:$0xff] }
 0x7cc   :  { %3402 = vmatpush1.msra.mxu1 %v6039_v8  ;;  %3473 = vmatpush1.msra.mxu0 %v7367_v44  ;;  %v7387_v8 = vld [vmem:[#allocation69_spill] sm:$0xff]  ;;  %v7424_v44 = vld [vmem:[#allocation106_spill] sm:$0xff] }
 0x7cd   :  { %3403 = vmatprep.subr.mxu1 %v7368_v36  ;;  %3474 = vmatprep.subr.mxu0 %v7369_v45  ;;  %v7425_v36 = vld [vmem:[#allocation107_spill] sm:$0xff]  ;;  %v7426_v45 = vld [vmem:[#allocation108_spill] sm:$0xff] }
 0x7ce   :  { %3404 = vmatpush1.msra.mxu1 %v7370_v46  ;;  %3475 = vmatpush1.msra.mxu0 %v7371_v47  ;;  %v7427_v46 = vld [vmem:[#allocation109_spill] sm:$0xff]  ;;  %v7428_v47 = vld [vmem:[#allocation110_spill] sm:$0xff] }
 0x7cf   :  { %3405 = vmatprep.subr.mxu1 %v7372_v51  ;;  %3476 = vmatprep.subr.mxu0 %v7373_v52  ;;  %v7429_v51 = vld [vmem:[#allocation111_spill] sm:$0xff]  ;;  %v7430_v52 = vld [vmem:[#allocation112_spill] sm:$0xff] }
 0x7d0   :  { %3406 = vmatpush1.msra.mxu1 %v7374_v53  ;;  %3477 = vmatpush1.msra.mxu0 %v7375_v54  ;;  %v7431_v53 = vld [vmem:[#allocation113_spill] sm:$0xff]  ;;  %v7432_v54 = vld [vmem:[#allocation114_spill] sm:$0xff] }
 0x7d1   :  { %3407 = vmatprep.subr.mxu1 %v7376_v55  ;;  %3478 = vmatprep.subr.mxu0 %v7377_v56  ;;  %v7433_v55 = vld [vmem:[#allocation115_spill] sm:$0xff]  ;;  %v7434_v56 = vld [vmem:[#allocation116_spill] sm:$0xff] }
 0x7d2   :  { %3408 = vmatpush1.msra.mxu1 %v7378_v7  ;;  %3479 = vmatpush1.msra.mxu0 %v7379_v15  ;;  %v7435_v7 = vld [vmem:[#allocation117_spill] sm:$0xff]  ;;  %v7436_v15 = vld [vmem:[#allocation118_spill] sm:$0xff] }
 0x7d3   :  { %3409 = vmatprep.subr.mxu1 %v7380_v10  ;;  %3480 = vmatprep.subr.mxu0 %v7381_v18  ;;  %v7437_v10 = vld [vmem:[#allocation119_spill] sm:$0xff]  ;;  %v7438_v18 = vld [vmem:[#allocation120_spill] sm:$0xff] }
 0x7d4   :  { %3410 = vmatpush1.msra.mxu1 %v7382_v58  ;;  %3481 = vmatpush1.msra.mxu0 %v7383_v48  ;;  %v7439_v58 = vld [vmem:[#allocation121_spill] sm:$0xff]  ;;  %v7440_v48 = vld [vmem:[#allocation122_spill] sm:$0xff] }
 0x7d5   :  { %3411 = vmatprep.subr.mxu1 %v7384_v59  ;;  %3482 = vmatprep.subr.mxu0 %v7385_v16  ;;  %v7441_v59 = vld [vmem:[#allocation123_spill] sm:$0xff]  ;;  %v7442_v16 = vld [vmem:[#allocation124_spill] sm:$0xff] }
 0x7d6   :  { %3412 = vmatpush1.msra.mxu1 %v7386_v12  ;;  %3483 = vmatpush1.msra.mxu0 %v7387_v8  ;;  %v7443_v12 = vld [vmem:[#allocation125_spill] sm:$0xff]  ;;  %v7444_v8 = vld [vmem:[#allocation126_spill] sm:$0xff] }
 0x7d7   :  { %3413 = vmatprep.subr.mxu1 %v7388_v22  ;;  %3484 = vmatprep.subr.mxu0 %v7389_v2  ;;  %v7445_v22 = vld [vmem:[#allocation127_spill] sm:$0xff]  ;;  %v7446_v2 = vld [vmem:[#allocation128_spill] sm:$0xff] }
 0x7d8   :  { %3414 = vmatpush1.msra.mxu1 %v7390_v0  ;;  %3485 = vmatpush1.msra.mxu0 %v7391_v60  ;;  %v7447_v0 = vld [vmem:[#allocation129_spill] sm:$0xff]  ;;  %v7448_v60 = vld [vmem:[#allocation130_spill] sm:$0xff] }
 0x7d9   :  { %3415 = vmatprep.subr.mxu1 %v7392_v61  ;;  %3486 = vmatprep.subr.mxu0 %v7393_v35  ;;  %v7449_v61 = vld [vmem:[#allocation131_spill] sm:$0xff]  ;;  %v7450_v35 = vld [vmem:[#allocation132_spill] sm:$0xff] }
 0x7da   :  { %3416 = vmatpush1.msra.mxu1 %v7394_v23  ;;  %3487 = vmatpush1.msra.mxu0 %v7395_v21  ;;  %v7451_v23 = vld [vmem:[#allocation133_spill] sm:$0xff]  ;;  %v7452_v21 = vld [vmem:[#allocation134_spill] sm:$0xff] }
 0x7db   :  { %3417 = vmatprep.subr.mxu1 %v7396_v50  ;;  %3488 = vmatprep.subr.mxu0 %v7397_v14  ;;  %v7453_v50 = vld [vmem:[#allocation135_spill] sm:$0xff]  ;;  %v7454_v14 = vld [vmem:[#allocation136_spill] sm:$0xff] }
 0x7dc   :  { %3418 = vmatpush1.msra.mxu1 %v7398_v57  ;;  %3489 = vmatpush1.msra.mxu0 %v7399_v49  ;;  %v7455_v57 = vld [vmem:[#allocation137_spill] sm:$0xff]  ;;  %v7456_v49 = vld [vmem:[#allocation138_spill] sm:$0xff] }
 0x7dd   :  { %3419 = vmatprep.subr.mxu1 %v7400_v25  ;;  %3490 = vmatprep.subr.mxu0 %v7401_v62  ;;  %v7457_v25 = vld [vmem:[#allocation139_spill] sm:$0xff]  ;;  %v7458_v62 = vld [vmem:[#allocation140_spill] sm:$0xff] }
 0x7de   :  { %3420 = vmatpush1.msra.mxu1 %v7402_v4  ;;  %3491 = vmatpush1.msra.mxu0 %v7403_v26  ;;  %v7459_v4 = vld [vmem:[#allocation141_spill] sm:$0xff]  ;;  %v7460_v26 = vld [vmem:[#allocation142_spill] sm:$0xff] }
 0x7df   :  { %3421 = vmatprep.subr.mxu1 %v7404_v27  ;;  %3492 = vmatprep.subr.mxu0 %v7405_v28  ;;  %v7461_v27 = vld [vmem:[#allocation143_spill] sm:$0xff]  ;;  %v7462_v28 = vld [vmem:[#allocation144_spill] sm:$0xff] }
 0x7e0   :  { %3422 = vmatpush1.msra.mxu1 %v7406_v29  ;;  %3493 = vmatpush1.msra.mxu0 %v7407_v20  ;;  %v7463_v29 = vld [vmem:[#allocation145_spill] sm:$0xff]  ;;  %v7464_v20 = vld [vmem:[#allocation146_spill] sm:$0xff] }
 0x7e1   :  { %3423 = vmatprep.subr.mxu1 %v7408_v30  ;;  %3494 = vmatprep.subr.mxu0 %v7409_v31  ;;  %v7465_v30 = vld [vmem:[#allocation147_spill] sm:$0xff]  ;;  %v7466_v31 = vld [vmem:[#allocation148_spill] sm:$0xff] }
 0x7e2   :  { %3424 = vmatpush1.msra.mxu1 %v7410_v32  ;;  %3495 = vmatpush1.msra.mxu0 %v7411_v19  ;;  %v7467_v32 = vld [vmem:[#allocation149_spill] sm:$0xff] }
 0x7e3   :  { %3425 = vmatprep.subr.mxu1 %v7412_v24  ;;  %3496 = vmatprep.subr.mxu0 %v7413_v11  ;;  %v7468_v19 = vld [vmem:[#allocation33_spill] sm:$0xff]  ;;  %v7469_v24 = vld [vmem:[#allocation35_spill] sm:$0xff]  ;;  %v7470_v11 = vld [vmem:[#allocation34_spill] sm:$0xff] }
 0x7e4   :  { %3426 = vmatpush1.msra.mxu1 %v7414_v33  ;;  %3497 = vmatpush1.msra.mxu0 %v7415_v34  ;;  %v7471_v33 = vld [vmem:[#allocation36_spill] sm:$0xff]  ;;  %v7472_v34 = vld [vmem:[#allocation150_spill] sm:$0xff] }
 0x7e5   :  { %3427 = vmatprep.subr.mxu1 %v7416_v37  ;;  %3498 = vmatprep.subr.mxu0 %v7417_v38  ;;  %v7473_v37 = vld [vmem:[#allocation151_spill] sm:$0xff]  ;;  %v7474_v38 = vld [vmem:[#allocation152_spill] sm:$0xff] }
 0x7e6   :  { %3428 = vmatpush1.msra.mxu1 %v7418_v39  ;;  %3499 = vmatpush1.msra.mxu0 %v7419_v40  ;;  %v7475_v39 = vld [vmem:[#allocation153_spill] sm:$0xff]  ;;  %v7476_v40 = vld [vmem:[#allocation154_spill] sm:$0xff] }
 0x7e7   :  { %3429 = vmatprep.subr.mxu1 %v7420_v41  ;;  %3500 = vmatprep.subr.mxu0 %v7421_v1  ;;  %v3683_v41 = vld [vmem:[#allocation11 + $0xf0] sm:$0xff]  ;;  %v3682_v1 = vld [vmem:[#allocation11 + $0xe8] sm:$0xff] }
 0x7e8   :  { %3430 = vmatpush2.msra.mxu1 %v7422_v42  ;;  %3501 = vmatpush2.msra.mxu0 %v7423_v43  ;;  %v3681_v42 = vld [vmem:[#allocation11 + $0xe0] sm:$0xff]  ;;  %v3680_v43 = vld [vmem:[#allocation11 + $0xd8] sm:$0xff] }
 0x7e9   :  { %3431 = vmatprep.subr.mxu1 %v7424_v44  ;;  %3502 = vmatprep.subr.mxu0 %v7425_v36  ;;  %v3679_v44 = vld [vmem:[#allocation11 + $0xd0] sm:$0xff]  ;;  %v3677_v36 = vld [vmem:[#allocation11 + $0xc0] sm:$0xff] }
 0x7ea   :  { %3432 = vmatpush2.msra.mxu1 %v7426_v45  ;;  %3503 = vmatpush2.msra.mxu0 %v7427_v46  ;;  %v3675_v45 = vld [vmem:[#allocation11 + $0xb0] sm:$0xff]  ;;  %v3674_v46 = vld [vmem:[#allocation11 + $0xa8] sm:$0xff] }
 0x7eb   :  { %3433 = vmatprep.subr.mxu1 %v7428_v47  ;;  %3504 = vmatprep.subr.mxu0 %v7429_v51  ;;  %v3671_v47 = vld [vmem:[#allocation11 + $0x90] sm:$0xff]  ;;  %v3670_v51 = vld [vmem:[#allocation11 + $0x88] sm:$0xff] }
 0x7ec   :  { %3434 = vmatpush2.msra.mxu1 %v7430_v52  ;;  %3505 = vmatpush2.msra.mxu0 %v7431_v53  ;;  %v3669_v52 = vld [vmem:[#allocation11 + $0x80] sm:$0xff]  ;;  %v3668_v53 = vld [vmem:[#allocation11 + $0x78] sm:$0xff] }
 0x7ed   :  { %3435 = vmatprep.subr.mxu1 %v7432_v54  ;;  %3506 = vmatprep.subr.mxu0 %v7433_v55  ;;  %v3667_v54 = vld [vmem:[#allocation11 + $0x70] sm:$0xff]  ;;  %v3666_v55 = vld [vmem:[#allocation11 + $0x68] sm:$0xff] }
 0x7ee   :  { %3436 = vmatpush2.msra.mxu1 %v7434_v56  ;;  %3507 = vmatpush2.msra.mxu0 %v7435_v7  ;;  %v3665_v56 = vld [vmem:[#allocation11 + $0x60] sm:$0xff]  ;;  %v3664_v7 = vld [vmem:[#allocation11 + $0x58] sm:$0xff] }
 0x7ef   :  { %3437 = vmatprep.subr.mxu1 %v7436_v15  ;;  %3508 = vmatprep.subr.mxu0 %v7437_v10  ;;  %v3663_v15 = vld [vmem:[#allocation11 + $0x50] sm:$0xff]  ;;  %v3662_v10 = vld [vmem:[#allocation11 + $0x48] sm:$0xff] }
 0x7f0   :  { %3438 = vmatpush2.msra.mxu1 %v7438_v18  ;;  %3509 = vmatpush2.msra.mxu0 %v7439_v58  ;;  %v3661_v18 = vld [vmem:[#allocation11 + $0x40] sm:$0xff]  ;;  %v3660_v58 = vld [vmem:[#allocation11 + $0x38] sm:$0xff] }
 0x7f1   :  { %3439 = vmatprep.subr.mxu1 %v7440_v48  ;;  %3510 = vmatprep.subr.mxu0 %v7441_v59  ;;  %v3659_v48 = vld [vmem:[#allocation11 + $0x30] sm:$0xff]  ;;  %v3658_v59 = vld [vmem:[#allocation11 + $0x28] sm:$0xff] }
 0x7f2   :  { %3440 = vmatpush2.msra.mxu1 %v7442_v16  ;;  %3511 = vmatpush2.msra.mxu0 %v7443_v12  ;;  %v3657_v16 = vld [vmem:[#allocation11 + $0x20] sm:$0xff]  ;;  %v3656_v12 = vld [vmem:[#allocation11 + $0x18] sm:$0xff] }
 0x7f3   :  { %3441 = vmatprep.subr.mxu1 %v7444_v8  ;;  %3512 = vmatprep.subr.mxu0 %v7445_v22  ;;  %v3655_v8 = vld [vmem:[#allocation11 + $0x10] sm:$0xff]  ;;  %v3654_v22 = vld [vmem:[#allocation11 + $0x8] sm:$0xff] }
 0x7f4   :  { %3442 = vmatpush2.msra.mxu1 %v7446_v2  ;;  %3513 = vmatpush2.msra.mxu0 %v7447_v0  ;;  %v3653_v2 = vld [vmem:[#allocation11] sm:$0xff]  ;;  %v3716_v0 = vld [vmem:[#allocation11 + $0x1f8] sm:$0xff] }
 0x7f5   :  { %3443 = vmatprep.subr.mxu1 %v7448_v60  ;;  %3514 = vmatprep.subr.mxu0 %v7449_v61  ;;  %v3715_v60 = vld [vmem:[#allocation11 + $0x1f0] sm:$0xff]  ;;  %v3714_v61 = vld [vmem:[#allocation11 + $0x1e8] sm:$0xff] }
 0x7f6   :  { %3444 = vmatpush2.msra.mxu1 %v7450_v35  ;;  %3515 = vmatpush2.msra.mxu0 %v7451_v23  ;;  %v3748_v35 = vld [vmem:[#allocation11 + $0x2f8] sm:$0xff]  ;;  %v3747_v23 = vld [vmem:[#allocation11 + $0x2f0] sm:$0xff] }
 0x7f7   :  { %3445 = vmatprep.subr.mxu1 %v7452_v21  ;;  %3516 = vmatprep.subr.mxu0 %v7453_v50  ;;  %v3746_v21 = vld [vmem:[#allocation11 + $0x2e8] sm:$0xff]  ;;  %v3713_v50 = vld [vmem:[#allocation11 + $0x1e0] sm:$0xff] }
 0x7f8   :  { %3446 = vmatpush2.msra.mxu1 %v7454_v14  ;;  %3517 = vmatpush2.msra.mxu0 %v7455_v57  ;;  %v3745_v14 = vld [vmem:[#allocation11 + $0x2e0] sm:$0xff]  ;;  %v3712_v57 = vld [vmem:[#allocation11 + $0x1d8] sm:$0xff] }
 0x7f9   :  { %3447 = vmatprep.subr.mxu1 %v7456_v49  ;;  %3518 = vmatprep.subr.mxu0 %v7457_v25  ;;  %v3744_v49 = vld [vmem:[#allocation11 + $0x2d8] sm:$0xff]  ;;  %v3711_v25 = vld [vmem:[#allocation11 + $0x1d0] sm:$0xff] }
 0x7fa   :  { %3448 = vmatpush2.msra.mxu1 %v7458_v62  ;;  %3519 = vmatpush2.msra.mxu0 %v7459_v4  ;;  %v3743_v62 = vld [vmem:[#allocation11 + $0x2d0] sm:$0xff]  ;;  %v3710_v4 = vld [vmem:[#allocation11 + $0x1c8] sm:$0xff] }
 0x7fb   :  { %3449 = vmatprep.subr.mxu1 %v7460_v26  ;;  %3520 = vmatprep.subr.mxu0 %v7461_v27  ;;  %v3742_v26 = vld [vmem:[#allocation11 + $0x2c8] sm:$0xff]  ;;  %v3709_v27 = vld [vmem:[#allocation11 + $0x1c0] sm:$0xff] }
 0x7fc   :  { %3450 = vmatpush2.msra.mxu1 %v7462_v28  ;;  %3521 = vmatpush2.msra.mxu0 %v7463_v29  ;;  %v3741_v28 = vld [vmem:[#allocation11 + $0x2c0] sm:$0xff]  ;;  %v3708_v29 = vld [vmem:[#allocation11 + $0x1b8] sm:$0xff] }
 0x7fd   :  { %3451 = vmatprep.subr.mxu1 %v7464_v20  ;;  %3522 = vmatprep.subr.mxu0 %v7465_v30  ;;  %v3740_v20 = vld [vmem:[#allocation11 + $0x2b8] sm:$0xff]  ;;  %v3707_v30 = vld [vmem:[#allocation11 + $0x1b0] sm:$0xff] }
 0x7fe   :  { %3452 = vmatpush2.msra.mxu1 %v7466_v31  ;;  %3523 = vmatpush2.msra.mxu0 %v7467_v32  ;;  %v3739_v31 = vld [vmem:[#allocation11 + $0x2b0] sm:$0xff]  ;;  %v3706_v32 = vld [vmem:[#allocation11 + $0x1a8] sm:$0xff] }
 0x7ff   :  { %3453 = vmatprep.subr.mxu1 %v7468_v19  ;;  %3524 = vmatprep.subr.mxu0 %v7469_v24  ;;  %v3738_v19 = vld [vmem:[#allocation11 + $0x2a8] sm:$0xff]  ;;  %v3705_v24 = vld [vmem:[#allocation11 + $0x1a0] sm:$0xff] }
 0x800   :  { %3454 = vmatpush2.msra.mxu1 %v6357_v63  ;;  %3525 = vmatpush2.msra.mxu0 %v6359_v3  ;;  %v7477_v63 = vld [vmem:[#allocation155_spill] sm:$0xff]  ;;  %v3684_v3 = vld [vmem:[#allocation11 + $0xf8] sm:$0xff] }
 0x801   :  { %3455 = vmatprep.subr.mxu1 %v6363_v13  ;;  %3526 = vmatprep.subr.mxu0 %v7470_v11  ;;  %v7478_v13 = vld [vmem:[#allocation156_spill] sm:$0xff]  ;;  %v3737_v11 = vld [vmem:[#allocation11 + $0x2a0] sm:$0xff] }
 0x802   :  { %3456 = vmatpush2.msra.mxu1 %v7471_v33  ;;  %3527 = vmatpush2.msra.mxu0 %v7472_v34  ;;  %v3704_v33 = vld [vmem:[#allocation11 + $0x198] sm:$0xff] }
 0x803   :  { %3457 = vmatprep.subr.mxu1 %v7473_v37  ;;  %3528 = vmatprep.subr.mxu0 %v7474_v38  ;;  %v3736_v34 = vld [vmem:[#allocation11 + $0x298] sm:$0xff]  ;;  %v3703_v37 = vld [vmem:[#allocation11 + $0x190] sm:$0xff] }
 0x804   :  { %3458 = vmatpush2.msra.mxu1 %v7475_v39  ;;  %3529 = vmatpush2.msra.mxu0 %v7476_v40  ;;  %v3735_v38 = vld [vmem:[#allocation11 + $0x290] sm:$0xff]  ;;  %v3702_v39 = vld [vmem:[#allocation11 + $0x188] sm:$0xff] }
 0x805   :  { %3459 = vmatprep.subr.mxu1 %v6387_v5  ;;  %3530 = vmatprep.subr.mxu0 %v7477_v63  ;;  %v3678_v5 = vld [vmem:[#allocation11 + $0xc8] sm:$0xff]  ;;  %v3701_v63 = vld [vmem:[#allocation11 + $0x180] sm:$0xff] }
 0x806   :  { %3460 = vmatpush2.msra.mxu1 %v6393_v9  ;;  %3531 = vmatpush2.msra.mxu0 %v7478_v13  ;;  %v3676_v9 = vld [vmem:[#allocation11 + $0xb8] sm:$0xff]  ;;  %v3734_v40 = vld [vmem:[#allocation11 + $0x288] sm:$0xff] }
 0x807   :  { %3462 = vmatmul.mubr.f32.vlgmr.msra.gmra.mxu1 %v6463_v6  ;;  %3533 = vmatmul.mubr.f32.vlgmr.msra.gmra.mxu0 %v6465_v17  ;;  %v3673_v6 = vld [vmem:[#allocation11 + $0xa0] sm:$0xff]  ;;  %v3672_v17 = vld [vmem:[#allocation11 + $0x98] sm:$0xff] }
 0x808   :  { %3793 = vmatprep.subr.mxu1 %v3684_v3  ;;  %3864 = vmatprep.subr.mxu0 %v3748_v35  ;;  %v3733_v3 = vld [vmem:[#allocation11 + $0x280] sm:$0xff]  ;;  %v3700_v13 = vld [vmem:[#allocation11 + $0x178] sm:$0xff] }
 0x809   :  { %3794 = vmatpush1.msra.mxu1 %v3683_v41  ;;  %3865 = vmatpush1.msra.mxu0 %v3747_v23  ;;  %v3732_v41 = vld [vmem:[#allocation11 + $0x278] sm:$0xff]  ;;  %v3685_v23 = vld [vmem:[#allocation11 + $0x100] sm:$0xff] }
 0x80a   :  { %3795 = vmatprep.subr.mxu1 %v3682_v1  ;;  %3866 = vmatprep.subr.mxu0 %v3746_v21  ;;  %v3699_v1 = vld [vmem:[#allocation11 + $0x170] sm:$0xff] }
 0x80b   :  { %3796 = vmatpush1.msra.mxu1 %v3681_v42  ;;  %3867 = vmatpush1.msra.mxu0 %v3745_v14  ;;  %v3731_v42 = vld [vmem:[#allocation11 + $0x270] sm:$0xff] }
 0x80c   :  { %3797 = vmatprep.subr.mxu1 %v3680_v43  ;;  %3868 = vmatprep.subr.mxu0 %v3744_v49  ;;  %v3698_v43 = vld [vmem:[#allocation11 + $0x168] sm:$0xff]  ;;  %v3717_v49 = vld [vmem:[#allocation11 + $0x200] sm:$0xff] }
 0x80d   :  { %3798 = vmatpush1.msra.mxu1 %v3679_v44  ;;  %3869 = vmatpush1.msra.mxu0 %v3743_v62  ;;  %v3730_v44 = vld [vmem:[#allocation11 + $0x268] sm:$0xff]  ;;  %v3779_v62 = vld [vmem:[#allocation11 + $0x3f0] sm:$0xff] }
 0x80e   :  { %3799 = vmatprep.subr.mxu1 %v3678_v5  ;;  %3870 = vmatprep.subr.mxu0 %v3742_v26  ;;  %v3697_v5 = vld [vmem:[#allocation11 + $0x160] sm:$0xff] }
 0x80f   :  { %3800 = vmatpush1.msra.mxu1 %v3677_v36  ;;  %3871 = vmatpush1.msra.mxu0 %v3741_v28  ;;  %v3729_v36 = vld [vmem:[#allocation11 + $0x260] sm:$0xff]  ;;  %v3775_v28 = vld [vmem:[#allocation11 + $0x3d0] sm:$0xff] }
 0x810   :  { %3801 = vmatprep.subr.mxu1 %v3676_v9  ;;  %3872 = vmatprep.subr.mxu0 %v3740_v20  ;;  %v3696_v9 = vld [vmem:[#allocation11 + $0x158] sm:$0xff]  ;;  %v3777_v26 = vld [vmem:[#allocation11 + $0x3e0] sm:$0xff] }
 0x811   :  { %3802 = vmatpush1.msra.mxu1 %v3675_v45  ;;  %3873 = vmatpush1.msra.mxu0 %v3739_v31  ;;  %v3728_v45 = vld [vmem:[#allocation11 + $0x258] sm:$0xff]  ;;  %v3773_v20 = vld [vmem:[#allocation11 + $0x3c0] sm:$0xff]  ;;  %v3771_v31 = vld [vmem:[#allocation11 + $0x3b0] sm:$0xff] }
 0x812   :  { %3803 = vmatprep.subr.mxu1 %v3674_v46  ;;  %3874 = vmatprep.subr.mxu0 %v3738_v19  ;;  %v3695_v46 = vld [vmem:[#allocation11 + $0x150] sm:$0xff]  ;;  %v3769_v19 = vld [vmem:[#allocation11 + $0x3a0] sm:$0xff] }
 0x813   :  { %3804 = vmatpush1.msra.mxu1 %v3673_v6  ;;  %3875 = vmatpush1.msra.mxu0 %v3737_v11  ;;  %v3727_v6 = vld [vmem:[#allocation11 + $0x250] sm:$0xff] }
 0x814   :  { %3805 = vmatprep.subr.mxu1 %v3672_v17  ;;  %3876 = vmatprep.subr.mxu0 %v3736_v34  ;;  %v3694_v17 = vld [vmem:[#allocation11 + $0x148] sm:$0xff]  ;;  %v3767_v11 = vld [vmem:[#allocation11 + $0x390] sm:$0xff]  ;;  %v3765_v34 = vld [vmem:[#allocation11 + $0x380] sm:$0xff] }
 0x815   :  { %3806 = vmatpush1.msra.mxu1 %v3671_v47  ;;  %3877 = vmatpush1.msra.mxu0 %v3735_v38  ;;  %v3726_v47 = vld [vmem:[#allocation11 + $0x248] sm:$0xff]  ;;  %v3763_v38 = vld [vmem:[#allocation11 + $0x370] sm:$0xff] }
 0x816   :  { %3807 = vmatprep.subr.mxu1 %v3670_v51  ;;  %3878 = vmatprep.subr.mxu0 %v3734_v40  ;;  %v3693_v51 = vld [vmem:[#allocation11 + $0x140] sm:$0xff] }
 0x817   :  { %3808 = vmatpush1.msra.mxu1 %v3669_v52  ;;  %3879 = vmatpush1.msra.mxu0 %v3733_v3  ;;  %v3725_v52 = vld [vmem:[#allocation11 + $0x240] sm:$0xff]  ;;  %v3759_v3 = vld [vmem:[#allocation11 + $0x350] sm:$0xff] }
 0x818   :  { %3809 = vmatprep.subr.mxu1 %v3668_v53  ;;  %3880 = vmatprep.subr.mxu0 %v3732_v41  ;;  %v6603_v53 = vpop.f32.mrf.mxu1  ;;  %v3761_v40 = vld [vmem:[#allocation11 + $0x360] sm:$0xff] }
 0x819   :  { %3810 = vmatpush1.msra.mxu1 %v3667_v54  ;;  %3881 = vmatpush1.msra.mxu0 %v3731_v42  ;;  %v6605_v54 = vpop.f32.mrf.mxu0  ;;  %v3757_v41 = vld [vmem:[#allocation11 + $0x340] sm:$0xff]  ;;  %v3755_v42 = vld [vmem:[#allocation11 + $0x330] sm:$0xff] }
 0x81a   :  { %3811 = vmatprep.subr.mxu1 %v3666_v55  ;;  %3882 = vmatprep.subr.mxu0 %v3730_v44  ;;  %v3692_v55 = vld [vmem:[#allocation11 + $0x138] sm:$0xff]  ;;  %v3753_v44 = vld [vmem:[#allocation11 + $0x320] sm:$0xff] }
 0x81b   :  { %3812 = vmatpush1.msra.mxu1 %v3665_v56  ;;  %3883 = vmatpush1.msra.mxu0 %v3729_v36  ;;  %v3724_v56 = vld [vmem:[#allocation11 + $0x238] sm:$0xff]  ;;  %v3751_v36 = vld [vmem:[#allocation11 + $0x310] sm:$0xff] }
 0x81c   :  { %3813 = vmatprep.subr.mxu1 %v3664_v7  ;;  %3884 = vmatprep.subr.mxu0 %v3728_v45  ;;  %v3691_v7 = vld [vmem:[#allocation11 + $0x130] sm:$0xff]  ;;  %v3749_v45 = vld [vmem:[#allocation11 + $0x300] sm:$0xff] }
 0x81d   :  { %3814 = vmatpush1.msra.mxu1 %v3663_v15  ;;  %3885 = vmatpush1.msra.mxu0 %v3727_v6  ;;  %v3723_v15 = vld [vmem:[#allocation11 + $0x230] sm:$0xff] }
 0x81e   :  { %3815 = vmatprep.subr.mxu1 %v3662_v10  ;;  %3886 = vmatprep.subr.mxu0 %v3726_v47  ;;  %v3690_v10 = vld [vmem:[#allocation11 + $0x128] sm:$0xff] }
 0x81f   :  { %3816 = vmatpush1.msra.mxu1 %v3661_v18  ;;  %3887 = vmatpush1.msra.mxu0 %v3725_v52  ;;  %v3722_v18 = vld [vmem:[#allocation11 + $0x228] sm:$0xff] }
 0x820   :  { %3817 = vmatprep.subr.mxu1 %v3660_v58  ;;  %v3689_v58 = vld [vmem:[#allocation11 + $0x120] sm:$0xff]  ;;  %3888 = vmatprep.subr.mxu0 %v3724_v56 }
 0x821   :  { %3818 = vmatpush1.msra.mxu1 %v3659_v48  ;;  %v3721_v48 = vld [vmem:[#allocation11 + $0x220] sm:$0xff]  ;;  %3889 = vmatpush1.msra.mxu0 %v3723_v15 }
 0x822   :  { %3819 = vmatprep.subr.mxu1 %v3658_v59  ;;  %v6607_v59 = vpop.f32.mrf.mxu1  ;;  %3890 = vmatprep.subr.mxu0 %v3722_v18 }
 0x823   :  { %3820 = vmatpush1.msra.mxu1 %v3657_v16  ;;  %v6609_v16 = vpop.f32.mrf.mxu0  ;;  %3891 = vmatpush1.msra.mxu0 %v3721_v48 }
 0x824   :  { %3821 = vmatprep.subr.mxu1 %v3656_v12  ;;  %v3688_v12 = vld [vmem:[#allocation11 + $0x118] sm:$0xff]  ;;  %v3107_v6 = vadd.f32 %v6609_v16, %v6607_v59 }
 0x825   :  { %3822 = vmatpush1.msra.mxu1 %v3655_v8  ;;  %v3720_v8 = vld [vmem:[#allocation11 + $0x218] sm:$0xff] }
 0x826   :  { %3823 = vmatprep.subr.mxu1 %v3654_v22  ;;  %v3687_v22 = vld [vmem:[#allocation11 + $0x110] sm:$0xff]  ;;  %3892 = vmatprep.subr.mxu0 %v3720_v8  ;;  %v3252_v52 = vmul.f32 0.5, %v3107_v6  ;;  %v7484_v6 = vld [vmem:[#allocation30_spill] sm:$0xff] }
 0x827   :  { %3824 = vmatpush1.msra.mxu1 %v3653_v2  ;;  %v3719_v2 = vld [vmem:[#allocation11 + $0x210] sm:$0xff] }
 0x828   :  { %3825 = vmatprep.subr.mxu1 %v3716_v0  ;;  %3893 = vmatpush1.msra.mxu0 %v3719_v2  ;;  %v4006_v2 = vld [vmem:[%s6677_s16 + $0x1] ss:$4 sm:$0xf] }
 0x829   :  { %3826 = vmatpush2.msra.mxu1 %v3715_v60 }
 0x82a   :  { %3827 = vmatprep.subr.mxu1 %v3714_v61  ;;  %v3686_v61 = vld [vmem:[#allocation11 + $0x108] sm:$0xff] }
 0x82b   :  { %3828 = vmatpush2.msra.mxu1 %v3713_v50 }
 0x82c   :  { %3829 = vmatprep.subr.mxu1 %v3712_v57  ;;  %v3718_v57 = vld [vmem:[#allocation11 + $0x208] sm:$0xff] }
 0x82d   :  { %3830 = vmatpush2.msra.mxu1 %v3711_v25  ;;  %3894 = vmatprep.subr.mxu0 %v3718_v57  ;;  %v3780_v25 = vld [vmem:[#allocation11 + $0x3f8] sm:$0xff]  ;;  %v7481_v57 = vld [vmem:[#allocation47_spill] sm:$0xff] }
 0x82e   :  { %3831 = vmatprep.subr.mxu1 %v3710_v4  ;;  %3895 = vmatpush1.msra.mxu0 %v3717_v49  ;;  %v3778_v4 = vld [vmem:[#allocation11 + $0x3e8] sm:$0xff] }
 0x82f   :  { %3832 = vmatpush2.msra.mxu1 %v3709_v27  ;;  %3896 = vmatprep.subr.mxu0 %v3780_v25  ;;  %v3776_v27 = vld [vmem:[#allocation11 + $0x3d8] sm:$0xff] }
 0x830   :  { %3833 = vmatprep.subr.mxu1 %v3708_v29  ;;  %3897 = vmatpush2.msra.mxu0 %v3779_v62  ;;  %v3774_v29 = vld [vmem:[#allocation11 + $0x3c8] sm:$0xff] }
 0x831   :  { %3834 = vmatpush2.msra.mxu1 %v3707_v30  ;;  %3898 = vmatprep.subr.mxu0 %v3778_v4  ;;  %v3772_v30 = vld [vmem:[#allocation11 + $0x3b8] sm:$0xff]  ;;  %v7482_v62 = vld [vmem:[#allocation31_spill] sm:$0xff] }
 0x832   :  { %3835 = vmatprep.subr.mxu1 %v3706_v32  ;;  %3899 = vmatpush2.msra.mxu0 %v3777_v26  ;;  %v3770_v32 = vld [vmem:[#allocation11 + $0x3a8] sm:$0xff]  ;;  %v3609_v4 = vrot.slane %v4006_v2, %v7482_v62 }
 0x833   :  { %3836 = vmatpush2.msra.mxu1 %v3705_v24  ;;  %3900 = vmatprep.subr.mxu0 %v3776_v27  ;;  %v3768_v24 = vld [vmem:[#allocation11 + $0x398] sm:$0xff]  ;;  %v4007_v26 = vld [vmem:[%s6677_s16 + $0x2] ss:$4 sm:$0xf]  ;;  %s4473_s16 = smov [#allocation13]  }
 0x834   :  { %3837 = vmatprep.subr.mxu1 %v3704_v33  ;;  %3901 = vmatpush2.msra.mxu0 %v3775_v28  ;;  %v3766_v33 = vld [vmem:[#allocation11 + $0x388] sm:$0xff]  ;;  %s3970_s29 = sshll.u32 %s4473_s16, 4  ;;  %s3971_s29 = int_to_ptr.vmem [resolvable:$true] %s3970_s29 }
 0x835   :  { %3838 = vmatpush2.msra.mxu1 %v3703_v37  ;;  %3902 = vmatprep.subr.mxu0 %v3774_v29  ;;  %v3764_v37 = vld [vmem:[#allocation11 + $0x378] sm:$0xff]  ;;  %v3636_v29 = vrot.slane %v4007_v26, %v7482_v62  ;;  %s4410_s5 = scalar_lea.vmem %s3971_s29, 32  ;;  %p4415_p3 = scmp.lt.s32.totalorder %s3971_s29, %s3971_s29 }
 0x836   :  { %3839 = vmatprep.subr.mxu1 %v3702_v39  ;;  %3903 = vmatpush2.msra.mxu0 %v3773_v20  ;;  %v3762_v39 = vld [vmem:[#allocation11 + $0x368] sm:$0xff]  ;;  %p4411_p2 = scmp.ne.s32.totalorder %s3971_s29, %s4410_s5  ;;  %p4416_p4 = scmp.lt.s32.totalorder %s4410_s5, %s4410_s5 }
 0x837   :  { %3840 = vmatpush2.msra.mxu1 %v3701_v63  ;;  %3904 = vmatprep.subr.mxu0 %v3772_v30  ;;  %v3760_v63 = vld [vmem:[#allocation11 + $0x358] sm:$0xff] }
 0x838   :  { %3841 = vmatprep.subr.mxu1 %v3700_v13  ;;  %3905 = vmatpush2.msra.mxu0 %v3771_v31  ;;  %v3758_v13 = vld [vmem:[#allocation11 + $0x348] sm:$0xff]  ;;  %p4417_p5 = por %p4416_p4, %p4415_p3 }
 0x839   :  { %3842 = vmatpush2.msra.mxu1 %v3699_v1  ;;  %3906 = vmatprep.subr.mxu0 %v3770_v32  ;;  %v3756_v1 = vld [vmem:[#allocation11 + $0x338] sm:$0xff] }
 0x83a   :  { %3843 = vmatprep.subr.mxu1 %v3698_v43  ;;  %3907 = vmatpush2.msra.mxu0 %v3769_v19  ;;  %v3754_v43 = vld [vmem:[#allocation11 + $0x328] sm:$0xff]  ;;  %p4418_p6 = pnand %p4417_p5, %p4411_p2 }
 0x83b   :  { %3844 = vmatpush2.msra.mxu1 %v3697_v5  ;;  %3908 = vmatprep.subr.mxu0 %v3768_v24  ;;  %v3752_v5 = vld [vmem:[#allocation11 + $0x318] sm:$0xff] }
 0x83c   :  { %3845 = vmatprep.subr.mxu1 %v3696_v9  ;;  %3909 = vmatpush2.msra.mxu0 %v3767_v11  ;;  %v3750_v9 = vld [vmem:[#allocation11 + $0x308] sm:$0xff] }
 0x83d   :  { %3846 = vmatpush2.msra.mxu1 %v3695_v46  ;;  %3910 = vmatprep.subr.mxu0 %v3766_v33  ;;  %v3105_v46 = vadd.f32 %v6605_v54, %v6603_v53  ;;  %v7479_v54 = vld [vmem:[#allocation29_spill] sm:$0xff] }
 0x83e   :  { %3847 = vmatprep.subr.mxu1 %v3694_v17  ;;  %3911 = vmatpush2.msra.mxu0 %v3765_v34  ;;  %v3566_v16 = vrot.slane %v3252_v52, %v7479_v54  ;;  %v3632_v30 = vrot.slane %v4007_v26, %v7479_v54 }
 0x83f   :  { %3848 = vmatpush2.msra.mxu1 %v3693_v51  ;;  %3912 = vmatprep.subr.mxu0 %v3764_v37  ;;  %v3251_v17 = vmul.f32 0.5, %v3105_v46 }
 0x840   :  { %3849 = vmatprep.subr.mxu1 %v3692_v55  ;;  %3913 = vmatpush2.msra.mxu0 %v3763_v38  ;;  %v3576_v49 = vsub.f32 %v7481_v57, %v3566_v16 }
 0x841   :  { %3850 = vmatpush2.msra.mxu1 %v3691_v7  ;;  %3914 = vmatprep.subr.mxu0 %v3762_v39  ;;  %v3543_v15 = vmul.f32 %v3251_v17, %v3251_v17  ;;  %v3562_v59 = vrot.slane %v3251_v17, %v7479_v54  ;;  %v3613_v17 = vrot.slane %v4006_v2, %v7484_v6 }
 0x842   :  { %3851 = vmatprep.subr.mxu1 %v3690_v10  ;;  %3915 = vmatpush2.msra.mxu0 %v3761_v40 }
 0x843   :  { %v3175_v0 = vpop.f32.mrf.mxu1  ;;  %v3246_v60 = vpop.f32.mrf.mxu0  ;;  %3852 = vmatpush2.msra.mxu1 %v3689_v58  ;;  %3916 = vmatprep.subr.mxu0 %v3760_v63  ;;  %v3544_v58 = vmul.f32 %v3252_v52, %v3252_v52 }
 0x844   :  { %v6611_v35 = vadd.f32 %v3246_v60, %v3175_v0  ;;  %3853 = vmatprep.subr.mxu1 %v3688_v12  ;;  %3917 = vmatpush2.msra.mxu0 %v3759_v3  ;;  %v7480_v60 = vld [vmem:[#allocation45_spill] sm:$0xff] }
 0x845   :  { %v3177_v21 = vpop.f32.mrf.mxu1  ;;  %v3248_v50 = vpop.f32.mrf.mxu0  ;;  %3854 = vmatpush2.msra.mxu1 %v3687_v22  ;;  %3918 = vmatprep.subr.mxu0 %v3758_v13 }
 0x846   :  { %v6613_v14 = vadd.f32 %v3248_v50, %v3177_v21  ;;  %3855 = vmatprep.subr.mxu1 %v3686_v61  ;;  %3919 = vmatpush2.msra.mxu0 %v3757_v41  ;;  %v3575_v61 = vsub.f32 %v7480_v60, %v3562_v59  ;;  %v3605_v50 = vrot.slane %v4006_v2, %v7479_v54  ;;  %v3253_v24 = vmul.f32 0.5, %v6611_v35 }
 0x847   :  { %3856 = vmatpush2.msra.mxu1 %v3685_v23  ;;  %3920 = vmatprep.subr.mxu0 %v3756_v1 }
 0x848   :  { %3921 = vmatpush2.msra.mxu0 %v3755_v42  ;;  %v3254_v34 = vmul.f32 0.5, %v6613_v14  ;;  %v3545_v40 = vmul.f32 %v3253_v24, %v3253_v24  ;;  %v3570_v35 = vrot.slane %v3253_v24, %v7479_v54  ;;  %v7483_v14 = vld [vmem:[#allocation46_spill] sm:$0xff] }
 0x849   :  { %3922 = vmatprep.subr.mxu0 %v3754_v43 }
 0x84a   :  { %3923 = vmatpush2.msra.mxu0 %v3753_v44  ;;  %v3546_v13 = vmul.f32 %v3254_v34, %v3254_v34 }
 0x84b   :  { %3924 = vmatprep.subr.mxu0 %v3752_v5  ;;  %v3574_v5 = vrot.slane %v3254_v34, %v7479_v54 }
 0x84c   :  { %3925 = vmatpush2.msra.mxu0 %v3751_v36 }
 0x84d   :  { %3926 = vmatprep.subr.mxu0 %v3750_v9  ;;  %v3577_v9 = vsub.f32 %v7483_v14, %v3570_v35 }
 0x84e   :  { %3927 = vmatpush2.msra.mxu0 %v3749_v45 }
 0x885   :  { %v3321_v47 = vpop.f32.mrf.mxu1  ;;  %v3392_v51 = vpop.f32.mrf.mxu0 }
 0x886   :  { %v3393_v55 = vadd.f32 %v3392_v51, %v3321_v47  ;;  %v7485_v47 = vld [vmem:[#allocation48_spill] sm:$0xff] }
 0x887   :  { %v3323_v56 = vpop.f32.mrf.mxu1  ;;  %v3394_v7 = vpop.f32.mrf.mxu0  ;;  %v3578_v51 = vsub.f32 %v7485_v47, %v3574_v5 }
 0x888   :  { %v3539_v10 = vmul.f32 0.5, %v3393_v55  ;;  %v3395_v18 = vadd.f32 %v3394_v7, %v3323_v56  ;;  %v7486_v55 = vld [vmem:[#allocation32_spill] sm:$0xff] }
 0x889   :  { %v3617_v56 = vrot.slane %v4006_v2, %v7486_v55 }
 0x88a   :  { %v3547_v48 = vsub.f32 %v3539_v10, %v3543_v15  ;;  %v3540_v12 = vmul.f32 0.5, %v3395_v18  ;;  %v3644_v10 = vrot.slane %v4007_v26, %v7486_v55 }
 0x88c   :  { %v3551_v8 = vadd.f32 1e-05, %v3547_v48  ;;  %v3548_v22 = vsub.f32 %v3540_v12, %v3544_v58  ;;  %v3640_v58 = vrot.slane %v4007_v26, %v7484_v6 }
 0x88e   :  { %4106 = vrsqrt.f32 %v3551_v8  ;;  %v3552_v53 = vadd.f32 1e-05, %v3548_v22 }
 0x890   :  { %4108 = vrsqrt.f32 %v3552_v53 }
 0x89b   :  { %v4107_v0 = vpop.eup %4106 }
 0x89c   :  { %v3582_v23 = vrot.slane %v4107_v0, %v7479_v54 }
 0x89d   :  { %v4109_v21 = vpop.eup %4108 }
 0x89e   :  { %v3586_v25 = vrot.slane %v4109_v21, %v7479_v54  ;;  %v3595_v27 = vmul.f32 %v3582_v23, %v3575_v61 }
 0x8a0   :  { %v3596_v28 = vmul.f32 %v3586_v25, %v3576_v49  ;;  %v3622_v20 = vmul.f32 %v3605_v50, %v3595_v27 }
 0x8a2   :  { %v3623_v31 = vmul.f32 %v3609_v4, %v3596_v28  ;;  %v3649_v19 = vadd.f32 %v3632_v30, %v3622_v20 }
 0x8a4   :  { %v3650_v32 = vadd.f32 %v3636_v29, %v3623_v31 }
 0x8a6   :  { %3857 = vmatprep.mubr.f32.mxu1 %v3650_v32 }
 0x8a7   :  { %3858 = vmatmul.mubr.f32.vlgmr.msra.gmra.mxu1 %v3649_v19 }
 0x8c7   :  { %v3463_v11 = vpop.f32.mrf.mxu1  ;;  %v3534_v33 = vpop.f32.mrf.mxu0 }
 0x8c8   :  { %v3535_v37 = vadd.f32 %v3534_v33, %v3463_v11 }
 0x8c9   :  { %v3465_v38 = vpop.f32.mrf.mxu1  ;;  %v3536_v39 = vpop.f32.mrf.mxu0 }
 0x8ca   :  { %v3541_v63 = vmul.f32 0.5, %v3535_v37  ;;  %v3537_v3 = vadd.f32 %v3536_v39, %v3465_v38 }
 0x8cc   :  { %v3549_v41 = vsub.f32 %v3541_v63, %v3545_v40  ;;  %v3542_v1 = vmul.f32 0.5, %v3537_v3 }
 0x8ce   :  { %v3553_v42 = vadd.f32 1e-05, %v3549_v41  ;;  %v3550_v43 = vsub.f32 %v3542_v1, %v3546_v13 }
 0x8d0   :  { %4110 = vrsqrt.f32 %v3553_v42  ;;  %v3554_v44 = vadd.f32 1e-05, %v3550_v43 }
 0x8d2   :  { %4112 = vrsqrt.f32 %v3554_v44 }
 0x8dd   :  { %v4111_v36 = vpop.eup %4110 }
 0x8de   :  { %v3590_v45 = vrot.slane %v4111_v36, %v7479_v54 }
 0x8df   :  { %v4113_v46 = vpop.eup %4112 }
 0x8e0   :  { %v3594_v52 = vrot.slane %v4113_v46, %v7479_v54  ;;  %v3597_v7 = vmul.f32 %v3590_v45, %v3577_v9 }
 0x8e2   :  { %v3598_v15 = vmul.f32 %v3594_v52, %v3578_v51  ;;  %v3624_v18 = vmul.f32 %v3613_v17, %v3597_v7 }
 0x8e4   :  { %v3625_v48 = vmul.f32 %v3617_v56, %v3598_v15  ;;  %v3651_v8 = vadd.f32 %v3640_v58, %v3624_v18 }
 0x8e6   :  { %v3652_v12 = vadd.f32 %v3644_v10, %v3625_v48 }
 0x8e8   :  { %3928 = vmatprep.mubr.f32.mxu0 %v3652_v12 }
 0x8e9   :  { %3929 = vmatmul.mubr.f32.vlgmr.msra.gmra.mxu0 %v3651_v8 }
 0x8ea   :  { %4421 = shalt.err (!%p4418_p6)
}
 0x8eb   :  { %3973 = dma.vmem_to_hbm [thread:$0]  %s3971_s29, 32, %s6681_s20, [#allocation4]  }
 0x8ec   :  { %s4430_s9 = scalar_lea.vmem %s3981_s30, 32  ;;  %p4435_p8 = scmp.lt.s32.totalorder %s3981_s30, %s3981_s30 }
 0x8ed   :  { %p4431_p7 = scmp.ne.s32.totalorder %s3981_s30, %s4430_s9  ;;  %p4436_p9 = scmp.lt.s32.totalorder %s4430_s9, %s4430_s9 }
 0x8ef   :  { %p4437_p10 = por %p4436_p9, %p4435_p8 }
 0x8f1   :  { %p4438_p11 = pnand %p4437_p10, %p4431_p7 }
 0x8f3   :  { %4441 = shalt.err (!%p4438_p11)
}
 0x8f4   :  { %3983 = dma.vmem_to_hbm [thread:$0]  %s3981_s30, 32, %s6682_s21, [#allocation15]   ;;  %v3781_v22 = vld [vmem:[%s6679_s18] sm:$0x3] }
 0x8f5   :  { %v3786_v59 = vrot.slane %v3781_v22, %v7479_v54  ;;  %v3790_v16 = vrot.slane %v3781_v22, %v7482_v62  ;;  %s7487_s21 = sld [smem:[#allocation163_spill]] }
 0x967   :  { %v3859_v53 = vpop.f32.mrf.mxu1 }
 0x968   :  { %v3860_v0 = vadd.f32 %v3859_v53, %v3786_v59 }
 0x969   :  { %v3861_v2 = vpop.f32.mrf.mxu1 }
 0x96a   :  { %v3862_v61 = vadd.f32 %v3861_v2, %v3790_v16 }
 0x9a9   :  { %v3930_v60 = vpop.f32.mrf.mxu0 }
 0x9aa   :  { %v3931_v23 = vadd.f32 %v3930_v60, %v3860_v0 }
 0x9ab   :  { %v3932_v21 = vpop.f32.mrf.mxu0 }
 0x9ac   :  { %v3935_v50 = vsub.f32 0.0, %v3931_v23  ;;  %v3933_v57 = vadd.f32 %v3932_v21, %v3862_v61 }
 0x9ae   :  { %v3937_v49 = vmul.f32 1.442695, %v3935_v50  ;;  %v3936_v25 = vsub.f32 0.0, %v3933_v57 }
 0x9b0   :  { %4114 = vpow2.f32 %v3937_v49  ;;  %v3939_v4 = vmul.f32 1.442695, %v3936_v25 }
 0x9b2   :  { %4116 = vpow2.f32 %v3939_v4 }
 0x9bd   :  { %v4115_v26 = vpop.eup %4114 }
 0x9be   :  { %v3941_v27 = vadd.f32 1.0, %v4115_v26 }
 0x9bf   :  { %v4117_v28 = vpop.eup %4116 }
 0x9c0   :  { %v3942_v29 = vadd.f32 1.0, %v4117_v28  ;;  %4118 = vrcp.f32 %v3941_v27 }
 0x9c2   :  { %4120 = vrcp.f32 %v3942_v29 }
 0x9cd   :  { %v4119_v54 = vpop.eup %4118 }
 0x9cf   :  { %v4121_v62 = vpop.eup %4120 }
 0x9d0   :  { %v3949_v20 = vcombine.low %v4119_v54, %v4121_v62 }
 0x9d2   :  { %4008 = vst.sshfl [vmem:[%s7487_s21] sm:$0x33 pattern:$0x76325410] %v3949_v20 }
 0x9d3   :  { %4458 = dma.done.wait [#allocation4], 32  }
 0x9d4   :  { %4459 = vsyncadd [#allocation4], 4294967264 }
 0x9d5   :  { %4460 = dma.done.wait [#allocation15], 32  }
 0x9d6   :  { %4461 = vsyncadd [#allocation15], 4294967264 }
 0x9d7   :  { %3992 = vsyncpa [#allocation3], 1 }
 0x9d8   :  { %3993 = vsyncpa [#allocation6], 1 }
 0x9d9   :  { %3994 = vsyncpa [#allocation9], 1 }
 0x9da   :  { %3995 = vsyncpa [#allocation12], 1 }
 0x9db   :  { %3996 = vsyncpa [#allocation4], 1 }
 0x9dc   :  { %3997 = vsyncpa [#allocation15], 1 }

</bundles_post_ra>
